<compile_context>
chip_gen: v7x
topology: tpu7x:2x2x1
jax: 0.10.0
libtpu: 0.0.40
codegen_flags: <defaults>
</compile_context>

<pallas_src>
import jax
import jax.numpy as jnp
from jax.experimental import pallas as pl
from jax.experimental.pallas import tpu as pltpu

D_IN = 512       # feature dim of x (before GLU)
C_HALF = 256     # GLU output dim == conv in_channels (hardcoded 256 in module)
D_OUT = 512      # conv out_channels == LSTM hidden == output d_model
KSIZE = 3        # local window size
HALO = 16        # halo rows per tile; >= KSIZE-1, multiple of 16 (bf16 sublane tile)


# ---------------------------------------------------------------------------
# Small host-side helpers (evaluated at trace time, never traced)
# ---------------------------------------------------------------------------
def _device_kind():
    try:
        return jax.devices()[0].device_kind.lower()
    except Exception:
        return ""


def _is_pre_v6():
    # v5e and earlier: no bf16 VPU/EUP, smaller MXU -> fp32 gate math, 256 tile.
    k = _device_kind()
    return any(s in k for s in ("v2", "v3", "v4", "v5"))


def _round_up(n, m):
    return ((n + m - 1) // m) * m


def _default_tile_l(l):
    tile_max = 256 if _is_pre_v6() else 512
    return min(tile_max, max(HALO, _round_up(l, 8)))


# ---------------------------------------------------------------------------
# Fused kernel: GLU -> (conv folded into W_ih) -> local windows -> LSTM last h
# ---------------------------------------------------------------------------
def _make_kernel(use_bf16_gates):
    def kernel(x_ref, xh_ref, wf_ref, bf_ref, whh_ref, bl_ref,
               o_ref, glu_ref, z_ref):
        """Processes one (1, T, D_IN) slab of x.

        x_ref  : (1, T, 512)      f32   current tile of x
        xh_ref : (1, 1, 16, 512)  f32   x rows [tile_start-HALO, tile_start)
        wf_ref : (256, 2048)      bf16  w_conv @ w_ih  (gate order i, f, g, o)
        bf_ref : (1, 2048)        f32   b_conv @ w_ih + b_ih + b_hh
        whh_ref: (512, 2048)      bf16  LSTM W_hh^T
        bl_ref : (1, 2048)        f32   b_ih + b_hh (gates of a zero input row)
        o_ref  : (1, T, 512)      f32   last hidden state per position
        glu_ref: (T+HALO, 256)    bf16  scratch: GLU of [halo ; tile]
        z_ref  : (T+HALO, 2048)   f32   scratch: fused input projection
        """
        T = x_ref.shape[1]
        d = D_OUT

        def glu(x2d):
            a = x2d[:, :C_HALF]
            g = x2d[:, C_HALF:]
            return (a * jax.nn.sigmoid(g)).astype(jnp.bfloat16)

        # Stage GLU of [halo ; tile] contiguously -> one merged MXU call below.
        glu_ref[0:HALO, :] = glu(xh_ref[0, 0])
        glu_ref[HALO:HALO + T, :] = glu(x_ref[0])

        # Fused input projection (1x1 conv folded into W_ih):
        #   z = GLU(x) @ (w_conv @ w_ih) + (b_conv @ w_ih + b_ih + b_hh)
        z_ref[...] = (
            jnp.dot(glu_ref[...], wf_ref[...],
                    preferred_element_type=jnp.float32) + bf_ref[...])

        # get_K zero-pads the *post-conv* sequence, so for the first tile the
        # window rows before position 0 must contribute exactly
        # 0 @ W_ih + (b_ih + b_hh) = b_lstm  (NOT the conv-bias-fused b_fused).
        @pl.when(pl.program_id(1) == 0)
        def _():
            z_ref[0:HALO, :] = jnp.broadcast_to(bl_ref[...], (HALO, 4 * D_OUT))

        # LSTM over the KSIZE-long window ending at each position (torch gate
        # order i, f, g, o).  c/h state and the cell update stay fp32.
        whh = whh_ref[...]
        h = jnp.zeros((T, d), jnp.float32)
        c = jnp.zeros((T, d), jnp.float32)
        base = HALO - (KSIZE - 1)
        for t in range(KSIZE):                       # small & static -> unrolled
            gates = z_ref[base + t:base + t + T, :]                 # (T, 2048)
            if t > 0:                                               # h == 0 at t == 0
                gates = gates + jnp.dot(h.astype(jnp.bfloat16), whh,
                                        preferred_element_type=jnp.float32)
            gnl = gates.astype(jnp.bfloat16) if use_bf16_gates else gates
            if_g = jax.nn.sigmoid(gnl[:, 0:2 * d])   # i,f in one EUP launch
            g_g = jnp.tanh(gnl[:, 2 * d:3 * d])
            o_g = jax.nn.sigmoid(gnl[:, 3 * d:4 * d])
            i_g = if_g[:, 0:d].astype(jnp.float32)
            f_g = if_g[:, d:2 * d].astype(jnp.float32)
            c = f_g * c + i_g * g_g.astype(jnp.float32)
            cg = c.astype(jnp.bfloat16) if use_bf16_gates else c
            h = o_g.astype(jnp.float32) * jnp.tanh(cg).astype(jnp.float32)
        o_ref[0] = h.astype(o_ref.dtype)

    return kernel


# ---------------------------------------------------------------------------
# Wrapper
# ---------------------------------------------------------------------------
def local_rnn_forward(x, kparams, *, tile_l=None, use_bf16_gates=None):
    """x: (B, L, 512) float32 -> (B, L, 512) float32."""
    b, l, _ = x.shape
    if tile_l is None:
        tile_l = _default_tile_l(l)
    if use_bf16_gates is None:
        use_bf16_gates = not _is_pre_v6()
    assert tile_l % 8 == 0 and tile_l >= HALO

    n_tiles = pl.cdiv(l, tile_l)
    l_pad = n_tiles * tile_l
    x_pad = jnp.pad(x, ((0, 0), (0, l_pad - l), (0, 0))) if l_pad != l else x

    # Cheap per-tile halo: the HALO x rows immediately before each tile (zeros
    # before the sequence start).  Only ~HALO/tile_l of x is touched here.
    x_tiles = x_pad.reshape(b, n_tiles, tile_l, D_IN)
    x_halo = jnp.concatenate(
        [jnp.zeros((b, 1, HALO, D_IN), x.dtype),
         x_tiles[:, :n_tiles - 1, tile_l - HALO:, :]], axis=1)

    grid_spec = pltpu.PrefetchScalarGridSpec(
        num_scalar_prefetch=0,
        grid=(b, n_tiles),
        in_specs=[
            pl.BlockSpec((1, tile_l, D_IN), lambda bi, j: (bi, j, 0)),
            pl.BlockSpec((1, 1, HALO, D_IN), lambda bi, j: (bi, j, 0, 0)),
            pl.BlockSpec((C_HALF, 4 * D_OUT), lambda bi, j: (0, 0)),
            pl.BlockSpec((1, 4 * D_OUT), lambda bi, j: (0, 0)),
            pl.BlockSpec((D_OUT, 4 * D_OUT), lambda bi, j: (0, 0)),
            pl.BlockSpec((1, 4 * D_OUT), lambda bi, j: (0, 0)),
        ],
        out_specs=pl.BlockSpec((1, tile_l, D_OUT), lambda bi, j: (bi, j, 0)),
        scratch_shapes=[
            pltpu.VMEM((tile_l + HALO, C_HALF), jnp.bfloat16),
            pltpu.VMEM((tile_l + HALO, 4 * D_OUT), jnp.float32),
        ],
    )
    out = pl.pallas_call(
        _make_kernel(use_bf16_gates),
        out_shape=jax.ShapeDtypeStruct((b, l_pad, D_OUT), jnp.float32),
        grid_spec=grid_spec,
        compiler_params=pltpu.CompilerParams(
            dimension_semantics=("parallel", "parallel"),
            vmem_limit_bytes=48 * 1024 * 1024,   # <= v7x physical 64 MiB
        ),
    )(x_pad, x_halo, kparams["w_fused"], kparams["b_fused"],
      kparams["w_hh"], kparams["b_lstm"])
    return out[:, :l]


# ---------------------------------------------------------------------------
# Parameters (fp32 "module" params) and pre-composed kernel operands
# ---------------------------------------------------------------------------
def init_params(key):
    k1, k2, k3, k4, k5, k6 = jax.random.split(key, 6)
    s_conv = 1.0 / jnp.sqrt(C_HALF)
    s_lstm = 1.0 / jnp.sqrt(D_OUT)
    return {
        # Conv1d weight (out, in, 1) stored pre-transposed as (in, out).
        "w_conv": jax.random.uniform(k1, (C_HALF, D_OUT), jnp.float32,
                                     -s_conv, s_conv),
        "b_conv": jax.random.uniform(k2, (1, D_OUT), jnp.float32,
                                     -s_conv, s_conv),
        # LSTM weights stored pre-transposed (D, 4D); bias = b_ih + b_hh.
        "w_ih": jax.random.uniform(k3, (D_OUT, 4 * D_OUT), jnp.float32,
                                   -s_lstm, s_lstm),
        "w_hh": jax.random.uniform(k4, (D_OUT, 4 * D_OUT), jnp.float32,
                                   -s_lstm, s_lstm),
        "b_lstm": (jax.random.uniform(k5, (1, 4 * D_OUT), jnp.float32,
                                      -s_lstm, s_lstm)
                   + jax.random.uniform(k6, (1, 4 * D_OUT), jnp.float32,
                                        -s_lstm, s_lstm)),
    }


def prepare_kernel_params(params):
    """Fold the 1x1 conv into the LSTM input projection (compose fp32, cast bf16)."""
    w_fused = jnp.dot(params["w_conv"], params["w_ih"])                 # (256, 2048)
    b_fused = jnp.dot(params["b_conv"], params["w_ih"]) + params["b_lstm"]
    return {
        "w_fused": w_fused.astype(jnp.bfloat16),
        "b_fused": b_fused.astype(jnp.float32),
        "w_hh": params["w_hh"].astype(jnp.bfloat16),
        "b_lstm": params["b_lstm"].astype(jnp.float32),
    }


# ---------------------------------------------------------------------------
# Pure-JAX reference (same math, fp32, un-fused) for a sanity check
# ---------------------------------------------------------------------------
def local_rnn_reference(x, params):
    b, l, _ = x.shape
    wc = params["w_conv"]
    bc = params["b_conv"][0]
    wih = params["w_ih"]
    whh = params["w_hh"]
    bl = params["b_lstm"][0]
    a, g = x[..., :C_HALF], x[..., C_HALF:]
    y = jnp.einsum("bli,io->blo", a * jax.nn.sigmoid(g), wc) + bc
    yp = jnp.concatenate([jnp.zeros((b, KSIZE - 1, D_OUT), y.dtype), y], axis=1)
    h = jnp.zeros((b, l, D_OUT), jnp.float32)
    c = jnp.zeros((b, l, D_OUT), jnp.float32)
    for t in range(KSIZE):
        xt = yp[:, t:t + l, :]                       # y[p - (KSIZE-1) + t]
        gates = (jnp.einsum("bli,ik->blk", xt, wih)
                 + jnp.einsum("bli,ik->blk", h, whh) + bl)
        i_g = jax.nn.sigmoid(gates[..., 0 * D_OUT:1 * D_OUT])
        f_g = jax.nn.sigmoid(gates[..., 1 * D_OUT:2 * D_OUT])
        g_g = jnp.tanh(gates[..., 2 * D_OUT:3 * D_OUT])
        o_g = jax.nn.sigmoid(gates[..., 3 * D_OUT:4 * D_OUT])
        c = f_g * c + i_g * g_g
        h = o_g * jnp.tanh(c)
    return h


if __name__ == "__main__":
    key = jax.random.PRNGKey(0)
    kx, kx2, kp = jax.random.split(key, 3)
    params = init_params(kp)
    kparams = prepare_kernel_params(params)

    fwd = jax.jit(local_rnn_forward, static_argnames=("tile_l", "use_bf16_gates"))

    # Small shape consistent with the module (feature dim is fixed at 512).
    B, L = 2, 8
    x = jax.random.normal(kx, (B, L, D_IN), jnp.float32)
    out = fwd(x, kparams)
    jax.block_until_ready(out)
    assert out.shape == (B, L, D_OUT) and out.dtype == jnp.float32
    ref = local_rnn_reference(x, params)
    err = float(jnp.max(jnp.abs(out - ref)))
    # Gate-state precision is bf16-limited on v6e/v7x (by design); see review.
    assert err < 5e-2, f"max abs error vs reference: {err}"

    # Multi-tile case: exercises the cross-tile halo path (program_id(1) != 0).
    B2, L2 = 2, 200
    x2 = jax.random.normal(kx2, (B2, L2, D_IN), jnp.float32)
    out2 = fwd(x2, kparams, tile_l=128)
    jax.block_until_ready(out2)
    ref2 = local_rnn_reference(x2, params)
    err2 = float(jnp.max(jnp.abs(out2 - ref2)))
    assert err2 < 5e-2, f"max abs error vs reference (multi-tile): {err2}"

    print("KERNEL_OK")
</pallas_src>

<mosaic_0001>
module attributes {stable_mosaic.version = 11 : i64} {
  func.func @kernel(%arg0: i32, %arg1: i32, %arg2: memref<1x16x512xf32, #tpu.memory_space<vmem>>, %arg3: memref<1x1x16x512xf32, #tpu.memory_space<vmem>>, %arg4: memref<256x2048xbf16, #tpu.memory_space<vmem>>, %arg5: memref<1x2048xf32, #tpu.memory_space<vmem>>, %arg6: memref<512x2048xbf16, #tpu.memory_space<vmem>>, %arg7: memref<1x2048xf32, #tpu.memory_space<vmem>>, %arg8: memref<1x16x512xf32, #tpu.memory_space<vmem>>, %arg9: memref<32x256xbf16, #tpu.memory_space<vmem>>, %arg10: memref<32x2048xf32, #tpu.memory_space<vmem>>) attributes {dimension_semantics = [#tpu.dimension_semantics<parallel>, #tpu.dimension_semantics<parallel>], iteration_bounds = array<i64: 2, 1>, scalar_prefetch = 0 : i64, scratch_operands = 2 : i64, tpu.core_type = #tpu.core_type<tc>, window_params = [{transform_indices = @transform_0, window_bounds = array<i64: 1, 16, 512>}, {transform_indices = @transform_1, window_bounds = array<i64: 1, 1, 16, 512>}, {pipeline_mode = #tpu.pipeline_mode<synchronous>, transform_indices = @transform_2, window_bounds = array<i64: 256, 2048>}, {pipeline_mode = #tpu.pipeline_mode<synchronous>, transform_indices = @transform_3, window_bounds = array<i64: 1, 2048>}, {pipeline_mode = #tpu.pipeline_mode<synchronous>, transform_indices = @transform_4, window_bounds = array<i64: 512, 2048>}, {pipeline_mode = #tpu.pipeline_mode<synchronous>, transform_indices = @transform_5, window_bounds = array<i64: 1, 2048>}, {transform_indices = @transform_6, window_bounds = array<i64: 1, 16, 512>}]} {
    %c0 = arith.constant 0 : index
    %c0_0 = arith.constant 0 : index
    %c0_1 = arith.constant 0 : index
    %c0_2 = arith.constant 0 : index
    %0 = vector.load %arg3[%c0, %c0_0, %c0_1, %c0_2] : memref<1x1x16x512xf32, #tpu.memory_space<vmem>>, vector<1x1x16x512xf32>
    %1 = vector.shape_cast %0 : vector<1x1x16x512xf32> to vector<16x512xf32>
    %2 = vector.extract_strided_slice %1 {offsets = [0, 0], sizes = [16, 256], strides = [1, 1]} : vector<16x512xf32> to vector<16x256xf32>
    %3 = vector.extract_strided_slice %1 {offsets = [0, 256], sizes = [16, 256], strides = [1, 1]} : vector<16x512xf32> to vector<16x256xf32>
    %4 = arith.negf %3 : vector<16x256xf32>
    %5 = math.exp %4 : vector<16x256xf32>
    %cst = arith.constant 1.000000e+00 : f32
    %6 = vector.broadcast %cst : f32 to vector<16x256xf32>
    %7 = arith.addf %6, %5 : vector<16x256xf32>
    %8 = arith.divf %6, %7 : vector<16x256xf32>
    %9 = arith.mulf %2, %8 : vector<16x256xf32>
    %10 = arith.truncf %9 : vector<16x256xf32> to vector<16x256xbf16>
    %c0_3 = arith.constant 0 : index
    %c0_4 = arith.constant 0 : index
    %11 = vector.load %arg9[%c0_3, %c0_4] : memref<32x256xbf16, #tpu.memory_space<vmem>>, vector<16x256xbf16>
    tpu.vector_store %arg9[%c0_3, %c0_4], %10 {strides = array<i32>} : memref<32x256xbf16, #tpu.memory_space<vmem>>, vector<16x256xbf16>,
    %c0_5 = arith.constant 0 : index
    %c0_6 = arith.constant 0 : index
    %c0_7 = arith.constant 0 : index
    %12 = vector.load %arg2[%c0_5, %c0_6, %c0_7] : memref<1x16x512xf32, #tpu.memory_space<vmem>>, vector<1x16x512xf32>
    %13 = vector.shape_cast %12 : vector<1x16x512xf32> to vector<16x512xf32>
    %14 = vector.extract_strided_slice %13 {offsets = [0, 0], sizes = [16, 256], strides = [1, 1]} : vector<16x512xf32> to vector<16x256xf32>
    %15 = vector.extract_strided_slice %13 {offsets = [0, 256], sizes = [16, 256], strides = [1, 1]} : vector<16x512xf32> to vector<16x256xf32>
    %16 = arith.negf %15 : vector<16x256xf32>
    %17 = math.exp %16 : vector<16x256xf32>
    %cst_8 = arith.constant 1.000000e+00 : f32
    %18 = vector.broadcast %cst_8 : f32 to vector<16x256xf32>
    %19 = arith.addf %18, %17 : vector<16x256xf32>
    %20 = arith.divf %18, %19 : vector<16x256xf32>
    %21 = arith.mulf %14, %20 : vector<16x256xf32>
    %22 = arith.truncf %21 : vector<16x256xf32> to vector<16x256xbf16>
    %c16 = arith.constant 16 : index
    %c0_9 = arith.constant 0 : index
    %23 = vector.load %arg9[%c16, %c0_9] : memref<32x256xbf16, #tpu.memory_space<vmem>>, vector<16x256xbf16>
    tpu.vector_store %arg9[%c16, %c0_9], %22 {strides = array<i32>} : memref<32x256xbf16, #tpu.memory_space<vmem>>, vector<16x256xbf16>,
    %c0_10 = arith.constant 0 : index
    %c0_11 = arith.constant 0 : index
    %24 = vector.load %arg9[%c0_10, %c0_11] : memref<32x256xbf16, #tpu.memory_space<vmem>>, vector<32x256xbf16>
    %c0_12 = arith.constant 0 : index
    %c0_13 = arith.constant 0 : index
    %25 = vector.load %arg4[%c0_12, %c0_13] : memref<256x2048xbf16, #tpu.memory_space<vmem>>, vector<256x2048xbf16>
    %cst_14 = arith.constant dense<0.000000e+00> : vector<32x2048xf32>
    %26 = tpu.matmul %24, %25, %cst_14 {dimension_numbers = #tpu.dot_dimension_numbers<[1], [0], [0], [1], [0, 0, 1, 1], [], []>} : vector<32x256xbf16>, vector<256x2048xbf16>, vector<32x2048xf32> -> vector<32x2048xf32>
    %c0_15 = arith.constant 0 : index
    %c0_16 = arith.constant 0 : index
    %27 = vector.load %arg5[%c0_15, %c0_16] : memref<1x2048xf32, #tpu.memory_space<vmem>>, vector<1x2048xf32>
    %28 = vector.broadcast %27 : vector<1x2048xf32> to vector<32x2048xf32>
    %29 = arith.addf %26, %28 : vector<32x2048xf32>
    %c0_17 = arith.constant 0 : index
    %c0_18 = arith.constant 0 : index
    %30 = vector.load %arg10[%c0_17, %c0_18] : memref<32x2048xf32, #tpu.memory_space<vmem>>, vector<32x2048xf32>
    tpu.vector_store %arg10[%c0_17, %c0_18], %29 {strides = array<i32>} : memref<32x2048xf32, #tpu.memory_space<vmem>>, vector<32x2048xf32>,
    %c0_i32 = arith.constant 0 : i32
    %31 = arith.cmpi eq, %arg1, %c0_i32 : i32
    %32 = arith.extui %31 : i1 to i32
    %c0_i32_19 = arith.constant 0 : i32
    %33 = arith.cmpi ne, %32, %c0_i32_19 : i32
    scf.if %33 {
      %c0_38 = arith.constant 0 : index
      %c0_39 = arith.constant 0 : index
      %132 = vector.load %arg7[%c0_38, %c0_39] : memref<1x2048xf32, #tpu.memory_space<vmem>>, vector<1x2048xf32>
      %133 = vector.shape_cast %132 : vector<1x2048xf32> to vector<1x2048xf32>
      %134 = vector.broadcast %133 : vector<1x2048xf32> to vector<16x2048xf32>
      %c0_40 = arith.constant 0 : index
      %c0_41 = arith.constant 0 : index
      %135 = vector.load %arg10[%c0_40, %c0_41] : memref<32x2048xf32, #tpu.memory_space<vmem>>, vector<16x2048xf32>
      tpu.vector_store %arg10[%c0_40, %c0_41], %134 {strides = array<i32>} : memref<32x2048xf32, #tpu.memory_space<vmem>>, vector<16x2048xf32>,
    } else {
    }
    %c0_20 = arith.constant 0 : index
    %c0_21 = arith.constant 0 : index
    %34 = vector.load %arg6[%c0_20, %c0_21] : memref<512x2048xbf16, #tpu.memory_space<vmem>>, vector<512x2048xbf16>
    %cst_22 = arith.constant 0.000000e+00 : f32
    %35 = vector.broadcast %cst_22 : f32 to vector<16x512xf32>
    %c14 = arith.constant 14 : index
    %c0_23 = arith.constant 0 : index
    %36 = vector.load %arg10[%c14, %c0_23] : memref<32x2048xf32, #tpu.memory_space<vmem>>, vector<16x2048xf32>
    %37 = arith.truncf %36 : vector<16x2048xf32> to vector<16x2048xbf16>
    %38 = vector.extract_strided_slice %37 {offsets = [0, 0], sizes = [16, 1024], strides = [1, 1]} : vector<16x2048xbf16> to vector<16x1024xbf16>
    %39 = arith.negf %38 : vector<16x1024xbf16>
    %40 = math.exp %39 : vector<16x1024xbf16>
    %cst_24 = arith.constant 1.000000e+00 : bf16
    %41 = vector.broadcast %cst_24 : bf16 to vector<16x1024xbf16>
    %42 = arith.addf %41, %40 : vector<16x1024xbf16>
    %43 = arith.divf %41, %42 : vector<16x1024xbf16>
    %44 = vector.extract_strided_slice %37 {offsets = [0, 1024], sizes = [16, 512], strides = [1, 1]} : vector<16x2048xbf16> to vector<16x512xbf16>
    %45 = math.tanh %44 : vector<16x512xbf16>
    %46 = vector.extract_strided_slice %37 {offsets = [0, 1536], sizes = [16, 512], strides = [1, 1]} : vector<16x2048xbf16> to vector<16x512xbf16>
    %47 = arith.negf %46 : vector<16x512xbf16>
    %48 = math.exp %47 : vector<16x512xbf16>
    %cst_25 = arith.constant 1.000000e+00 : bf16
    %49 = vector.broadcast %cst_25 : bf16 to vector<16x512xbf16>
    %50 = arith.addf %49, %48 : vector<16x512xbf16>
    %51 = arith.divf %49, %50 : vector<16x512xbf16>
    %52 = vector.extract_strided_slice %43 {offsets = [0, 0], sizes = [16, 512], strides = [1, 1]} : vector<16x1024xbf16> to vector<16x512xbf16>
    %53 = arith.extf %52 : vector<16x512xbf16> to vector<16x512xf32>
    %54 = vector.extract_strided_slice %43 {offsets = [0, 512], sizes = [16, 512], strides = [1, 1]} : vector<16x1024xbf16> to vector<16x512xbf16>
    %55 = arith.extf %54 : vector<16x512xbf16> to vector<16x512xf32>
    %56 = arith.mulf %55, %35 : vector<16x512xf32>
    %57 = arith.extf %45 : vector<16x512xbf16> to vector<16x512xf32>
    %58 = arith.mulf %53, %57 : vector<16x512xf32>
    %59 = arith.addf %56, %58 : vector<16x512xf32>
    %60 = arith.truncf %59 : vector<16x512xf32> to vector<16x512xbf16>
    %61 = arith.extf %51 : vector<16x512xbf16> to vector<16x512xf32>
    %62 = math.tanh %60 : vector<16x512xbf16>
    %63 = arith.extf %62 : vector<16x512xbf16> to vector<16x512xf32>
    %64 = arith.mulf %61, %63 : vector<16x512xf32>
    %c15 = arith.constant 15 : index
    %c0_26 = arith.constant 0 : index
    %65 = vector.load %arg10[%c15, %c0_26] : memref<32x2048xf32, #tpu.memory_space<vmem>>, vector<16x2048xf32>
    %66 = arith.truncf %64 : vector<16x512xf32> to vector<16x512xbf16>
    %cst_27 = arith.constant dense<0.000000e+00> : vector<16x2048xf32>
    %67 = tpu.matmul %66, %34, %cst_27 {dimension_numbers = #tpu.dot_dimension_numbers<[1], [0], [0], [1], [0, 0, 1, 1], [], []>} : vector<16x512xbf16>, vector<512x2048xbf16>, vector<16x2048xf32> -> vector<16x2048xf32>
    %68 = arith.addf %65, %67 : vector<16x2048xf32>
    %69 = arith.truncf %68 : vector<16x2048xf32> to vector<16x2048xbf16>
    %70 = vector.extract_strided_slice %69 {offsets = [0, 0], sizes = [16, 1024], strides = [1, 1]} : vector<16x2048xbf16> to vector<16x1024xbf16>
    %71 = arith.negf %70 : vector<16x1024xbf16>
    %72 = math.exp %71 : vector<16x1024xbf16>
    %cst_28 = arith.constant 1.000000e+00 : bf16
    %73 = vector.broadcast %cst_28 : bf16 to vector<16x1024xbf16>
    %74 = arith.addf %73, %72 : vector<16x1024xbf16>
    %75 = arith.divf %73, %74 : vector<16x1024xbf16>
    %76 = vector.extract_strided_slice %69 {offsets = [0, 1024], sizes = [16, 512], strides = [1, 1]} : vector<16x2048xbf16> to vector<16x512xbf16>
    %77 = math.tanh %76 : vector<16x512xbf16>
    %78 = vector.extract_strided_slice %69 {offsets = [0, 1536], sizes = [16, 512], strides = [1, 1]} : vector<16x2048xbf16> to vector<16x512xbf16>
    %79 = arith.negf %78 : vector<16x512xbf16>
    %80 = math.exp %79 : vector<16x512xbf16>
    %cst_29 = arith.constant 1.000000e+00 : bf16
    %81 = vector.broadcast %cst_29 : bf16 to vector<16x512xbf16>
    %82 = arith.addf %81, %80 : vector<16x512xbf16>
    %83 = arith.divf %81, %82 : vector<16x512xbf16>
    %84 = vector.extract_strided_slice %75 {offsets = [0, 0], sizes = [16, 512], strides = [1, 1]} : vector<16x1024xbf16> to vector<16x512xbf16>
    %85 = arith.extf %84 : vector<16x512xbf16> to vector<16x512xf32>
    %86 = vector.extract_strided_slice %75 {offsets = [0, 512], sizes = [16, 512], strides = [1, 1]} : vector<16x1024xbf16> to vector<16x512xbf16>
    %87 = arith.extf %86 : vector<16x512xbf16> to vector<16x512xf32>
    %88 = arith.mulf %87, %59 : vector<16x512xf32>
    %89 = arith.extf %77 : vector<16x512xbf16> to vector<16x512xf32>
    %90 = arith.mulf %85, %89 : vector<16x512xf32>
    %91 = arith.addf %88, %90 : vector<16x512xf32>
    %92 = arith.truncf %91 : vector<16x512xf32> to vector<16x512xbf16>
    %93 = arith.extf %83 : vector<16x512xbf16> to vector<16x512xf32>
    %94 = math.tanh %92 : vector<16x512xbf16>
    %95 = arith.extf %94 : vector<16x512xbf16> to vector<16x512xf32>
    %96 = arith.mulf %93, %95 : vector<16x512xf32>
    %c16_30 = arith.constant 16 : index
    %c0_31 = arith.constant 0 : index
    %97 = vector.load %arg10[%c16_30, %c0_31] : memref<32x2048xf32, #tpu.memory_space<vmem>>, vector<16x2048xf32>
    %98 = arith.truncf %96 : vector<16x512xf32> to vector<16x512xbf16>
    %cst_32 = arith.constant dense<0.000000e+00> : vector<16x2048xf32>
    %99 = tpu.matmul %98, %34, %cst_32 {dimension_numbers = #tpu.dot_dimension_numbers<[1], [0], [0], [1], [0, 0, 1, 1], [], []>} : vector<16x512xbf16>, vector<512x2048xbf16>, vector<16x2048xf32> -> vector<16x2048xf32>
    %100 = arith.addf %97, %99 : vector<16x2048xf32>
    %101 = arith.truncf %100 : vector<16x2048xf32> to vector<16x2048xbf16>
    %102 = vector.extract_strided_slice %101 {offsets = [0, 0], sizes = [16, 1024], strides = [1, 1]} : vector<16x2048xbf16> to vector<16x1024xbf16>
    %103 = arith.negf %102 : vector<16x1024xbf16>
    %104 = math.exp %103 : vector<16x1024xbf16>
    %cst_33 = arith.constant 1.000000e+00 : bf16
    %105 = vector.broadcast %cst_33 : bf16 to vector<16x1024xbf16>
    %106 = arith.addf %105, %104 : vector<16x1024xbf16>
    %107 = arith.divf %105, %106 : vector<16x1024xbf16>
    %108 = vector.extract_strided_slice %101 {offsets = [0, 1024], sizes = [16, 512], strides = [1, 1]} : vector<16x2048xbf16> to vector<16x512xbf16>
    %109 = math.tanh %108 : vector<16x512xbf16>
    %110 = vector.extract_strided_slice %101 {offsets = [0, 1536], sizes = [16, 512], strides = [1, 1]} : vector<16x2048xbf16> to vector<16x512xbf16>
    %111 = arith.negf %110 : vector<16x512xbf16>
    %112 = math.exp %111 : vector<16x512xbf16>
    %cst_34 = arith.constant 1.000000e+00 : bf16
    %113 = vector.broadcast %cst_34 : bf16 to vector<16x512xbf16>
    %114 = arith.addf %113, %112 : vector<16x512xbf16>
    %115 = arith.divf %113, %114 : vector<16x512xbf16>
    %116 = vector.extract_strided_slice %107 {offsets = [0, 0], sizes = [16, 512], strides = [1, 1]} : vector<16x1024xbf16> to vector<16x512xbf16>
    %117 = arith.extf %116 : vector<16x512xbf16> to vector<16x512xf32>
    %118 = vector.extract_strided_slice %107 {offsets = [0, 512], sizes = [16, 512], strides = [1, 1]} : vector<16x1024xbf16> to vector<16x512xbf16>
    %119 = arith.extf %118 : vector<16x512xbf16> to vector<16x512xf32>
    %120 = arith.mulf %119, %91 : vector<16x512xf32>
    %121 = arith.extf %109 : vector<16x512xbf16> to vector<16x512xf32>
    %122 = arith.mulf %117, %121 : vector<16x512xf32>
    %123 = arith.addf %120, %122 : vector<16x512xf32>
    %124 = arith.truncf %123 : vector<16x512xf32> to vector<16x512xbf16>
    %125 = arith.extf %115 : vector<16x512xbf16> to vector<16x512xf32>
    %126 = math.tanh %124 : vector<16x512xbf16>
    %127 = arith.extf %126 : vector<16x512xbf16> to vector<16x512xf32>
    %128 = arith.mulf %125, %127 : vector<16x512xf32>
    %c0_35 = arith.constant 0 : index
    %c0_36 = arith.constant 0 : index
    %c0_37 = arith.constant 0 : index
    %129 = vector.load %arg8[%c0_35, %c0_36, %c0_37] : memref<1x16x512xf32, #tpu.memory_space<vmem>>, vector<1x16x512xf32>
    %130 = vector.shape_cast %129 : vector<1x16x512xf32> to vector<16x512xf32>
    %131 = vector.shape_cast %128 : vector<16x512xf32> to vector<1x16x512xf32>
    tpu.vector_store %arg8[%c0_35, %c0_36, %c0_37], %131 {strides = array<i32>} : memref<1x16x512xf32, #tpu.memory_space<vmem>>, vector<1x16x512xf32>,
    return
  }
  func.func @transform_0(%arg0: i32, %arg1: i32) -> (i32, i32, i32) {
    %c0_i32 = arith.constant 0 : i32
    %c0_i32_0 = arith.constant 0 : i32
    return %arg0, %arg1, %c0_i32 : i32, i32, i32
  }
  func.func @transform_1(%arg0: i32, %arg1: i32) -> (i32, i32, i32, i32) {
    %c0_i32 = arith.constant 0 : i32
    %c0_i32_0 = arith.constant 0 : i32
    %c0_i32_1 = arith.constant 0 : i32
    return %arg0, %arg1, %c0_i32, %c0_i32_0 : i32, i32, i32, i32
  }
  func.func @transform_2(%arg0: i32, %arg1: i32) -> (i32, i32) {
    %c0_i32 = arith.constant 0 : i32
    %c0_i32_0 = arith.constant 0 : i32
    %c0_i32_1 = arith.constant 0 : i32
    return %c0_i32, %c0_i32_0 : i32, i32
  }
  func.func @transform_3(%arg0: i32, %arg1: i32) -> (i32, i32) {
    %c0_i32 = arith.constant 0 : i32
    %c0_i32_0 = arith.constant 0 : i32
    %c0_i32_1 = arith.constant 0 : i32
    return %c0_i32, %c0_i32_0 : i32, i32
  }
  func.func @transform_4(%arg0: i32, %arg1: i32) -> (i32, i32) {
    %c0_i32 = arith.constant 0 : i32
    %c0_i32_0 = arith.constant 0 : i32
    %c0_i32_1 = arith.constant 0 : i32
    return %c0_i32, %c0_i32_0 : i32, i32
  }
  func.func @transform_5(%arg0: i32, %arg1: i32) -> (i32, i32) {
    %c0_i32 = arith.constant 0 : i32
    %c0_i32_0 = arith.constant 0 : i32
    %c0_i32_1 = arith.constant 0 : i32
    return %c0_i32, %c0_i32_0 : i32, i32
  }
  func.func @transform_6(%arg0: i32, %arg1: i32) -> (i32, i32, i32) {
    %c0_i32 = arith.constant 0 : i32
    %c0_i32_0 = arith.constant 0 : i32
    return %arg0, %arg1, %c0_i32 : i32, i32, i32
  }
}

</mosaic_0001>

<bundles_post_ra>
// kernel: local_rnn_forward.1
= control target key start
LH: loop header
LB: loop body
LE: loop exit
PB: predicated region body
PF: predicated region fallthrough
CT: control target
= control target key end

     0   :  { %11 = vsyncpa [#allocation5], 0  ;;  %s13132_s0 = inlined_call_operand.vmem [shape: f32[2,16,512], index: 0, kind: input, shape index: {}]   ;;  %s13133_s1 = inlined_call_operand.vmem [shape: f32[2,1,16,512], index: 1, kind: input, shape index: {}]   ;;  %s13134_s2 = inlined_call_operand.hbm [shape: bf16[256,2048], index: 2, kind: input, shape index: {}]   ;;  %s13135_s3 = inlined_call_operand.hbm [shape: f32[1,2048], index: 3, kind: input, shape index: {}]   ;;  %s13136_s4 = inlined_call_operand.hbm [shape: bf16[512,2048], index: 4, kind: input, shape index: {}]   ;;  %s13137_s5 = inlined_call_operand.hbm [shape: f32[1,2048], index: 5, kind: input, shape index: {}]   ;;  %s13138_s6 = inlined_call_operand.vmem [shape: f32[2,16,512], index: 6, kind: output, shape index: {}]  }
   0x1   :  { %12 = vsyncpa [#allocation7], 0 }
   0x2   :  { %13 = vsyncpa [#allocation10], 0  ;;  %s10228_s21 = smov 0   ;;  %s10230_s22 = smov 0  }
   0x3   :  { %s10232_s23 = smov 0  }
   0x4 LB: > { %s10187_s24 = smov [#allocation6]   ;;  %s8664_s26 = sadd.s32 4294967295, %s10185_s23   ;;  %s10185_s23 = sphi %s10232_s23, %s19_s23   ;;  %s10181_s22 = sphi %s10230_s22, %s14662_s22   ;;  %s10177_s21 = sphi %s10228_s21, %s14661_s21  }
   0x5   : > { %s230_s25 = sshll.u32 %s10187_s24, 4  ;;  %p8666_p0 = scmp.ge.s32.totalorder %s10185_s23, 1  ;;  %s231_s25 = int_to_ptr.vmem [resolvable:$true] %s230_s25 }
   0x6   : > { %p204_p1 = scmp.lt.s32.totalorder %s10185_s23, 3  ;;  %p10246_p2 = scmp.eq.s32.totalorder %s8664_s26, 0 }
   0x7   : > { %s31_s29 = sadd.s32 1, %s10181_s22  ;;  %s10188_s8 = smov [#allocation4]  }
   0x8   : > { %s13640_s27 = scalar_select %p10246_p2, 1, 0 }
   0x9   : > { %p10250_p3 = pnand %p8666_p0, %p204_p1  ;;  %p10263_p6 = scmp.ge.s32.totalorder %s31_s29, 2 }
   0xa   : > { %s216_s9 = sshll.u32 %s10188_s8, 4  ;;  %s10039_s12 = scalar_lea.hbm %s13135_s3, 256  ;;  %s10267_s9 = int_to_ptr.vmem [resolvable:$true] %s216_s9 }
   0xb   : > { %s13641_s28 = scalar_select %p10250_p3, 1, 0 }
   0xc   : > { %p9604_p4 = pneg %p10250_p3  ;;  %p10040_p7 = scmp.ne.s32.totalorder %s13135_s3, %s10039_s12 }
   0xd   : > { %s13643_s7 = scalar_select %p10263_p6, 1, 0 }
   0xe   : > { %p10259_p5 = pnand %p10246_p2, %p9604_p4  ;;  %p10046_p11 = scmp.lt.u32.totalorder %s10039_s12, %s13135_s3 }
  0x10   : > { %p10277_p8 = pneg %p10259_p5 }
  0x12   : > { %p10042_p9 = pnand %p10277_p8, %p10040_p7 }
  0x14   : > { %p10043_p10 = pneg %p10042_p9 }
  0x16   : > { %p10048_p12 = pnand %p10046_p11, %p10043_p10 }
  0x18   : > { %10051 = shalt.err (!%p10048_p12)
}
  0x19   : > { %s10052_s18 = scalar_lea.vmem %s231_s25, 256  ;;  %p10060_p4 = scmp.lt.s32.totalorder %s231_s25, %s231_s25 }
  0x1a   : > { %p10053_p13 = scmp.ne.s32.totalorder %s231_s25, %s10052_s18  ;;  %p10061_p2 = scmp.lt.s32.totalorder %s10052_s18, %s10052_s18 }
  0x1c   : > { %p10055_p0 = pnand %p10053_p13, %p10277_p8  ;;  %p10062_p3 = por %p10061_p2, %p10060_p4 }
  0x1e   : > { %p10056_p1 = pneg %p10055_p0 }
  0x20   : > { %p10063_p6 = pnand %p10062_p3, %p10056_p1 }
  0x22   : > { %10066 = shalt.err (!%p10063_p6)
}
  0x23   : > { %9610 = dma.hbm_to_vmem [thread:$0]  (!%p10259_p5), %s13135_s3, 256, %s231_s25, [#allocation7]  }
  0x24   : > { %p13645_p7 = scmp.ne.s32.totalorder %s13643_s7, 0  ;;  %s10067_s8 = scalar_lea.hbm %s13134_s2, 32768 }
  0x25   : > { %p10068_p2 = scmp.ne.s32.totalorder %s13134_s2, %s10067_s8  ;;  %p10074_p9 = scmp.lt.u32.totalorder %s10067_s8, %s13134_s2 }
  0x26   : > { %s14664_s29 = smov (%p13645_p7, %s31_s29), 0 }
  0x27   : > { %p10070_p3 = pnand %p10068_p2, %p10277_p8 }
  0x29   : > { %p10071_p6 = pneg %p10070_p3 }
  0x2b   : > { %p10076_p10 = pnand %p10074_p9, %p10071_p6 }
  0x2d   : > { %10079 = shalt.err (!%p10076_p10)
}
  0x2e   : > { %s10080_s25 = scalar_lea.vmem %s10267_s9, 32768  ;;  %p10088_p0 = scmp.lt.s32.totalorder %s10267_s9, %s10267_s9 }
  0x2f   : > { %p10081_p11 = scmp.ne.s32.totalorder %s10267_s9, %s10080_s25  ;;  %p10089_p1 = scmp.lt.s32.totalorder %s10080_s25, %s10080_s25 }
  0x31   : > { %p10083_p12 = pnand %p10081_p11, %p10277_p8  ;;  %p10090_p4 = por %p10089_p1, %p10088_p0 }
  0x33   : > { %p10084_p13 = pneg %p10083_p12 }
  0x35   : > { %p10091_p7 = pnand %p10090_p4, %p10084_p13 }
  0x37   : > { %10094 = shalt.err (!%p10091_p7)
}
  0x38   : > { %s10189_s7 = smov 1024   ;;  %s10190_s14 = smov 64  }
  0x39   : > { %9607 = dma.hbm_to_vmem [thread:$0]  (!%p10259_p5), %s13134_s2, 32768, %s10267_s9, [#allocation5], %s10189_s7, %s10189_s7, %s10190_s14  }
  0x3a   : > { %s10191_s18 = smov [#allocation8]   ;;  %s10192_s20 = smov [#allocation9]  }
  0x3b   : > { %s240_s19 = sshll.u32 %s10191_s18, 4  ;;  %s254_s24 = sshll.u32 %s10192_s20, 4  ;;  %s241_s19 = int_to_ptr.vmem [resolvable:$true] %s240_s19  ;;  %s255_s24 = int_to_ptr.vmem [resolvable:$true] %s254_s24 }
  0x3c   : > { %s10095_s10 = scalar_lea.hbm %s13136_s4, 65536 }
  0x3d   : > { %p10096_p2 = scmp.ne.s32.totalorder %s13136_s4, %s10095_s10  ;;  %p10102_p9 = scmp.lt.u32.totalorder %s10095_s10, %s13136_s4 }
  0x3f   : > { %p10098_p3 = pnand %p10096_p2, %p10277_p8 }
  0x41   : > { %p10099_p6 = pneg %p10098_p3 }
  0x43   : > { %p10104_p10 = pnand %p10102_p9, %p10099_p6 }
  0x45   : > { %10107 = shalt.err (!%p10104_p10)
}
  0x46   : > { %s10108_s9 = scalar_lea.vmem %s241_s19, 65536  ;;  %p10116_p0 = scmp.lt.s32.totalorder %s241_s19, %s241_s19 }
  0x47   : > { %p10109_p11 = scmp.ne.s32.totalorder %s241_s19, %s10108_s9  ;;  %p10117_p1 = scmp.lt.s32.totalorder %s10108_s9, %s10108_s9 }
  0x49   : > { %p10111_p12 = pnand %p10109_p11, %p10277_p8  ;;  %p10118_p4 = por %p10117_p1, %p10116_p0 }
  0x4b   : > { %p10112_p13 = pneg %p10111_p12 }
  0x4d   : > { %p10119_p7 = pnand %p10118_p4, %p10112_p13 }
  0x4f   : > { %10122 = shalt.err (!%p10119_p7)
}
  0x50   : > { %9613 = dma.hbm_to_vmem [thread:$0]  (!%p10259_p5), %s13136_s4, 65536, %s241_s19, [#allocation7], %s10189_s7, %s10189_s7, %s10190_s14  }
  0x51   : > { %s10123_s26 = scalar_lea.hbm %s13137_s5, 256 }
  0x52   : > { %p10124_p2 = scmp.ne.s32.totalorder %s13137_s5, %s10123_s26  ;;  %p10130_p9 = scmp.lt.u32.totalorder %s10123_s26, %s13137_s5 }
  0x54   : > { %p10126_p3 = pnand %p10124_p2, %p10277_p8 }
  0x56   : > { %p10127_p6 = pneg %p10126_p3 }
  0x58   : > { %p10132_p10 = pnand %p10130_p9, %p10127_p6 }
  0x5a   : > { %10135 = shalt.err (!%p10132_p10)
}
  0x5b   : > { %s10136_s13 = scalar_lea.vmem %s255_s24, 256  ;;  %p10144_p0 = scmp.lt.s32.totalorder %s255_s24, %s255_s24 }
  0x5c   : > { %p10137_p11 = scmp.ne.s32.totalorder %s255_s24, %s10136_s13  ;;  %p10145_p1 = scmp.lt.s32.totalorder %s10136_s13, %s10136_s13 }
  0x5e   : > { %p10139_p12 = pnand %p10137_p11, %p10277_p8  ;;  %p10146_p4 = por %p10145_p1, %p10144_p0 }
  0x60   : > { %p10140_p13 = pneg %p10139_p12 }
  0x62   : > { %p10147_p7 = pnand %p10146_p4, %p10140_p13 }
  0x64   : > { %10150 = shalt.err (!%p10147_p7)
}
  0x65   : > { %9616 = dma.hbm_to_vmem [thread:$0]  (!%p10259_p5), %s13137_s5, 256, %s255_s24, [#allocation10]  }
  0x66   : > { %p13646_p2 = scmp.ne.s32.totalorder %s13641_s28, 0 }
  0x68   : > { %293 = sbr.rel (%p13646_p2) target bundleno = 2077 (0x81d), region = 44 }
  0x6f   : > { %p13647_p3 = scmp.ne.s32.totalorder %s13640_s27, 0 }
  0x71   : > { %10164 = dma.done.wait (%p13647_p3), [#allocation5], 32768  }
  0x72   : > { %10166 = vsyncadd (%p13647_p3), [#allocation5], 4294934528 }
  0x73   : > { %10168 = dma.done.wait (%p13647_p3), [#allocation7], 65792  }
  0x74   : > { %10170 = vsyncadd (%p13647_p3), [#allocation7], 4294901504 }
  0x75   : > { %10172 = dma.done.wait (%p13647_p3), [#allocation10], 256  }
  0x76   : > { %10174 = vsyncadd (%p13647_p3), [#allocation10], 4294967040  ;;  %v470_v0 = vld [vmem:[#allocation4] sm:$0xff]  ;;  %v471_v2 = vld [vmem:[#allocation4 + $0x8] sm:$0xff]  ;;  %p355_p5 = scmp.lt.s32.totalorder %s10177_s21, 1  ;;  %vm7324_vm0 = vcmask 1040384  }
  0x77   : > { %v478_v1 = vld [vmem:[#allocation4 + $0x40] sm:$0xff]  ;;  %v479_v4 = vld [vmem:[#allocation4 + $0x48] sm:$0xff]  ;;  %vm3638_vm1 = vcmask 1044480   ;;  %vm6935_vm2 = vcmask 1046528   ;;  %vm7481_vm3 = vsmask.f32 4352 }
  0x78   : > { %v8692_v3 = vcombine.high %v470_v0, %v478_v1  ;;  %v8691_v5 = vcombine.low %v470_v0, %v478_v1  ;;  %v486_v6 = vld [vmem:[#allocation4 + $0x80] sm:$0xff]  ;;  %v8694_v8 = vcombine.high %v471_v2, %v479_v4  ;;  %v8693_v9 = vcombine.low %v471_v2, %v479_v4  ;;  %v487_v11 = vld [vmem:[#allocation4 + $0x88] sm:$0xff]  ;;  %s14666_s21 = smov (!%p355_p5, %s10177_s21), 1 }
  0x79   : > { %v494_v7 = vld [vmem:[#allocation4 + $0xc0] sm:$0xff]  ;;  %v495_v12 = vld [vmem:[#allocation4 + $0xc8] sm:$0xff]  ;;  %s10372_s27 = sshll.u32 %s14666_s21, 6 }
  0x7a   : > { %v8708_v10 = vcombine.high %v486_v6, %v494_v7  ;;  %v502_v13 = vld [vmem:[#allocation4 + $0x100] sm:$0xff]  ;;  %2090 = vmatprep.subr.bf16.mxu0 %v8692_v3  ;;  %v8710_v14 = vcombine.high %v487_v11, %v495_v12  ;;  %v503_v16 = vld [vmem:[#allocation4 + $0x108] sm:$0xff]  ;;  %2143 = vmatprep.subr.bf16.mxu1 %v8694_v8  ;;  %v8707_v18 = vcombine.low %v486_v6, %v494_v7  ;;  %s10378_s15 = scalar_lea.vmem %s13133_s1, %s10372_s27  ;;  %s10388_s24 = scalar_lea.vmem %s13132_s0, %s10372_s27 }
  0x7b   : > { %v510_v15 = vld [vmem:[#allocation4 + $0x140] sm:$0xff]  ;;  %v511_v17 = vld [vmem:[#allocation4 + $0x148] sm:$0xff]  ;;  %2091 = vmatpush1.bf16.msra.mxu0 %v8691_v5  ;;  %2144 = vmatpush1.bf16.msra.mxu1 %v8693_v9  ;;  %v8709_v19 = vcombine.low %v487_v11, %v495_v12  ;;  %v389_v54 = vld [vmem:[%s10378_s15 + $0x18] sm:$0xff]  ;;  %s383_s16 = scalar_lea.vmem %s13138_s6, %s10372_s27 }
  0x7c   : > { %2092 = vmatprep.subr.bf16.mxu0 %v8708_v10  ;;  %v8724_v20 = vcombine.high %v502_v13, %v510_v15  ;;  %2145 = vmatprep.subr.bf16.mxu1 %v8710_v14  ;;  %v8726_v21 = vcombine.high %v503_v16, %v511_v17  ;;  %v518_v22 = vld [vmem:[#allocation4 + $0x180] sm:$0xff]  ;;  %v519_v24 = vld [vmem:[#allocation4 + $0x188] sm:$0xff]  ;;  %v8723_v26 = vcombine.low %v502_v13, %v510_v15  ;;  %v393_v58 = vld [vmem:[%s10378_s15 + $0x38] sm:$0xff]  ;;  %v8684_v59 = vmul.f32 -1.442695, %v389_v54 }
  0x7d   : > { %v526_v23 = vld [vmem:[#allocation4 + $0x1c0] sm:$0xff]  ;;  %v527_v25 = vld [vmem:[#allocation4 + $0x1c8] sm:$0xff]  ;;  %v8725_v27 = vcombine.low %v503_v16, %v511_v17  ;;  %v8686_v61 = vmul.f32 -1.442695, %v393_v58  ;;  %v388_v62 = vld [vmem:[%s10378_s15 + $0x10] sm:$0xff] }
  0x7e   : > { %v8740_v28 = vcombine.high %v518_v22, %v526_v23  ;;  %v8742_v29 = vcombine.high %v519_v24, %v527_v25  ;;  %v534_v30 = vld [vmem:[#allocation4 + $0x200] sm:$0xff]  ;;  %v535_v32 = vld [vmem:[#allocation4 + $0x208] sm:$0xff]  ;;  %v8739_v34 = vcombine.low %v518_v22, %v526_v23  ;;  %v8741_v35 = vcombine.low %v519_v24, %v527_v25  ;;  %v392_v63 = vld [vmem:[%s10378_s15 + $0x30] sm:$0xff] }
  0x7f   : > { %2093 = vmatpush1.bf16.msra.mxu0 %v8707_v18  ;;  %2146 = vmatpush1.bf16.msra.mxu1 %v8709_v19  ;;  %v542_v31 = vld [vmem:[#allocation4 + $0x240] sm:$0xff]  ;;  %v543_v33 = vld [vmem:[#allocation4 + $0x248] sm:$0xff]  ;;  %9655 = vpow2.f32 %v8684_v59  ;;  %v8683_v1 = vmul.f32 -1.442695, %v388_v62  ;;  %v8685_v2 = vmul.f32 -1.442695, %v392_v63 }
  0x80   : > { %2094 = vmatprep.subr.bf16.mxu0 %v8724_v20  ;;  %2147 = vmatprep.subr.bf16.mxu1 %v8726_v21  ;;  %v8756_v36 = vcombine.high %v534_v30, %v542_v31  ;;  %v8758_v37 = vcombine.high %v535_v32, %v543_v33  ;;  %v550_v38 = vld [vmem:[#allocation4 + $0x280] sm:$0xff]  ;;  %v551_v40 = vld [vmem:[#allocation4 + $0x288] sm:$0xff]  ;;  %v8755_v42 = vcombine.low %v534_v30, %v542_v31  ;;  %9657 = vpow2.f32 %v8686_v61  ;;  %v432_v59 = vld [vmem:[%s10388_s24 + $0x30] sm:$0xff] }
  0x81   : > { %v558_v39 = vld [vmem:[#allocation4 + $0x2c0] sm:$0xff]  ;;  %v559_v41 = vld [vmem:[#allocation4 + $0x2c8] sm:$0xff]  ;;  %v8757_v43 = vcombine.low %v535_v32, %v543_v33  ;;  %9659 = vpow2.f32 %v8683_v1  ;;  %v8689_v1 = vmul.f32 -1.442695, %v432_v59 }
  0x82   : > { %v8772_v44 = vcombine.high %v550_v38, %v558_v39  ;;  %v8774_v45 = vcombine.high %v551_v40, %v559_v41  ;;  %v566_v46 = vld [vmem:[#allocation4 + $0x300] sm:$0xff]  ;;  %v567_v48 = vld [vmem:[#allocation4 + $0x308] sm:$0xff]  ;;  %v8771_v50 = vcombine.low %v550_v38, %v558_v39  ;;  %v8773_v51 = vcombine.low %v551_v40, %v559_v41 }
  0x83   : > { %2095 = vmatpush1.bf16.msra.mxu0 %v8723_v26  ;;  %2148 = vmatpush1.bf16.msra.mxu1 %v8725_v27  ;;  %v574_v47 = vld [vmem:[#allocation4 + $0x340] sm:$0xff]  ;;  %v575_v49 = vld [vmem:[#allocation4 + $0x348] sm:$0xff]  ;;  %9661 = vpow2.f32 %v8685_v2 }
  0x84   : > { %2096 = vmatprep.subr.bf16.mxu0 %v8740_v28  ;;  %2149 = vmatprep.subr.bf16.mxu1 %v8742_v29  ;;  %v8788_v52 = vcombine.high %v566_v46, %v574_v47  ;;  %v582_v53 = vld [vmem:[#allocation4 + $0x380] sm:$0xff]  ;;  %v8790_v55 = vcombine.high %v567_v48, %v575_v49  ;;  %v583_v57 = vld [vmem:[#allocation4 + $0x388] sm:$0xff]  ;;  %v8787_v0 = vcombine.low %v566_v46, %v574_v47 }
  0x85   : > { %v590_v56 = vld [vmem:[#allocation4 + $0x3c0] sm:$0xff]  ;;  %v591_v60 = vld [vmem:[#allocation4 + $0x3c8] sm:$0xff]  ;;  %v8789_v3 = vcombine.low %v567_v48, %v575_v49 }
  0x86   : > { %v8804_v4 = vcombine.high %v582_v53, %v590_v56  ;;  %v8806_v5 = vcombine.high %v583_v57, %v591_v60  ;;  %v598_v6 = vld [vmem:[#allocation4 + $0x400] sm:$0xff]  ;;  %v599_v8 = vld [vmem:[#allocation4 + $0x408] sm:$0xff]  ;;  %v8803_v10 = vcombine.low %v582_v53, %v590_v56  ;;  %v8805_v11 = vcombine.low %v583_v57, %v591_v60  ;;  %v433_v53 = vld [vmem:[%s10388_s24 + $0x38] sm:$0xff] }
  0x87   : > { %2097 = vmatpush1.bf16.msra.mxu0 %v8739_v34  ;;  %2150 = vmatpush1.bf16.msra.mxu1 %v8741_v35  ;;  %v606_v7 = vld [vmem:[#allocation4 + $0x440] sm:$0xff]  ;;  %v607_v9 = vld [vmem:[#allocation4 + $0x448] sm:$0xff]  ;;  %v8690_v58 = vmul.f32 -1.442695, %v433_v53 }
  0x88   : > { %2098 = vmatprep.subr.bf16.mxu0 %v8756_v36  ;;  %2151 = vmatprep.subr.bf16.mxu1 %v8758_v37  ;;  %v8820_v12 = vcombine.high %v598_v6, %v606_v7  ;;  %v8822_v13 = vcombine.high %v599_v8, %v607_v9  ;;  %v614_v14 = vld [vmem:[#allocation4 + $0x480] sm:$0xff]  ;;  %v615_v16 = vld [vmem:[#allocation4 + $0x488] sm:$0xff]  ;;  %v8819_v18 = vcombine.low %v598_v6, %v606_v7 }
  0x89   : > { %v622_v15 = vld [vmem:[#allocation4 + $0x4c0] sm:$0xff]  ;;  %v623_v17 = vld [vmem:[#allocation4 + $0x4c8] sm:$0xff]  ;;  %v8821_v19 = vcombine.low %v599_v8, %v607_v9  ;;  %v9656_v21 = vpop.eup %9655 }
  0x8a   : > { %v8836_v20 = vcombine.high %v614_v14, %v622_v15  ;;  %v8838_v22 = vcombine.high %v615_v16, %v623_v17  ;;  %v630_v23 = vld [vmem:[#allocation4 + $0x500] sm:$0xff]  ;;  %v9658_v25 = vpop.eup %9657  ;;  %v631_v26 = vld [vmem:[#allocation4 + $0x508] sm:$0xff]  ;;  %v407_v28 = vadd.f32 1.0, %v9656_v21  ;;  %v8835_v29 = vcombine.low %v614_v14, %v622_v15 }
  0x8b   : > { %2099 = vmatpush1.bf16.msra.mxu0 %v8755_v42  ;;  %2152 = vmatpush1.bf16.msra.mxu1 %v8757_v43  ;;  %v638_v24 = vld [vmem:[#allocation4 + $0x540] sm:$0xff]  ;;  %v639_v27 = vld [vmem:[#allocation4 + $0x548] sm:$0xff]  ;;  %v409_v30 = vadd.f32 1.0, %v9658_v25  ;;  %v9660_v31 = vpop.eup %9659  ;;  %v8837_v32 = vcombine.low %v615_v16, %v623_v17 }
  0x8c   : > { %2100 = vmatprep.subr.bf16.mxu0 %v8772_v44  ;;  %2153 = vmatprep.subr.bf16.mxu1 %v8774_v45  ;;  %v8852_v33 = vcombine.high %v630_v23, %v638_v24  ;;  %9663 = vrcp.f32 %v407_v28  ;;  %v8854_v35 = vcombine.high %v631_v26, %v639_v27  ;;  %v646_v36 = vld [vmem:[#allocation4 + $0x580] sm:$0xff]  ;;  %v647_v38 = vld [vmem:[#allocation4 + $0x588] sm:$0xff]  ;;  %v8851_v40 = vcombine.low %v630_v23, %v638_v24 }
  0x8d   : > { %v9662_v34 = vpop.eup %9661  ;;  %v654_v37 = vld [vmem:[#allocation4 + $0x5c0] sm:$0xff]  ;;  %9665 = vrcp.f32 %v409_v30  ;;  %v655_v39 = vld [vmem:[#allocation4 + $0x5c8] sm:$0xff]  ;;  %v406_v41 = vadd.f32 1.0, %v9660_v31  ;;  %v8853_v42 = vcombine.low %v631_v26, %v639_v27 }
  0x8e   : > { %v8868_v43 = vcombine.high %v646_v36, %v654_v37  ;;  %v408_v44 = vadd.f32 1.0, %v9662_v34  ;;  %v8870_v45 = vcombine.high %v647_v38, %v655_v39  ;;  %v662_v46 = vld [vmem:[#allocation4 + $0x600] sm:$0xff]  ;;  %v663_v48 = vld [vmem:[#allocation4 + $0x608] sm:$0xff] }
  0x8f   : > { %2101 = vmatpush1.bf16.msra.mxu0 %v8771_v50  ;;  %2154 = vmatpush1.bf16.msra.mxu1 %v8773_v51  ;;  %v670_v47 = vld [vmem:[#allocation4 + $0x640] sm:$0xff]  ;;  %v671_v49 = vld [vmem:[#allocation4 + $0x648] sm:$0xff]  ;;  %v429_v50 = vld [vmem:[%s10388_s24 + $0x18] sm:$0xff]  ;;  %v8867_v51 = vcombine.low %v646_v36, %v654_v37  ;;  %9667 = vrcp.f32 %v406_v41 }
  0x90   : > { %2102 = vmatprep.subr.bf16.mxu0 %v8788_v52  ;;  %2155 = vmatprep.subr.bf16.mxu1 %v8790_v55  ;;  %v8869_v52 = vcombine.low %v647_v38, %v655_v39  ;;  %v8688_v54 = vmul.f32 -1.442695, %v429_v50  ;;  %v428_v55 = vld [vmem:[%s10388_s24 + $0x10] sm:$0xff]  ;;  %v8884_v56 = vcombine.high %v662_v46, %v670_v47  ;;  %v387_v57 = vld [vmem:[%s10378_s15 + $0x8] sm:$0xff]  ;;  %9669 = vrcp.f32 %v408_v44  ;;  %v678_v62 = vld [vmem:[#allocation4 + $0x680] sm:$0xff] }
  0x91   : > { %v8687_v60 = vmul.f32 -1.442695, %v428_v55  ;;  %v8886_v61 = vcombine.high %v663_v48, %v671_v49  ;;  %v686_v63 = vld [vmem:[#allocation4 + $0x6c0] sm:$0xff]  ;;  %v8883_v6 = vcombine.low %v662_v46, %v670_v47  ;;  %v8885_v8 = vcombine.low %v663_v48, %v671_v49  ;;  %v695_v14 = vld [vmem:[#allocation4 + $0x708] sm:$0xff]  ;;  %v472_v37 = vld [vmem:[#allocation4 + $0x10] sm:$0xff] }
  0x92   : > { %9671 = vpow2.f32 %v8688_v54  ;;  %v8900_v9 = vcombine.high %v678_v62, %v686_v63  ;;  %v703_v15 = vld [vmem:[#allocation4 + $0x748] sm:$0xff]  ;;  %v8899_v17 = vcombine.low %v678_v62, %v686_v63  ;;  %v718_v23 = vld [vmem:[#allocation4 + $0x7c0] sm:$0xff]  ;;  %v480_v38 = vld [vmem:[#allocation4 + $0x50] sm:$0xff] }
  0x93   : > { %2103 = vmatpush1.bf16.msra.mxu0 %v8787_v0  ;;  %2156 = vmatpush1.bf16.msra.mxu1 %v8789_v3  ;;  %v391_v0 = vld [vmem:[%s10378_s15 + $0x28] sm:$0xff]  ;;  %9673 = vpow2.f32 %v8690_v58  ;;  %v8918_v21 = vcombine.high %v695_v14, %v703_v15  ;;  %v390_v30 = vld [vmem:[%s10378_s15 + $0x20] sm:$0xff]  ;;  %v481_v44 = vld [vmem:[#allocation4 + $0x58] sm:$0xff]  ;;  %v8696_v49 = vcombine.high %v472_v37, %v480_v38 }
  0x94   : > { %2104 = vmatprep.subr.bf16.mxu0 %v8804_v4  ;;  %2157 = vmatprep.subr.bf16.mxu1 %v8806_v5  ;;  %v679_v3 = vld [vmem:[#allocation4 + $0x688] sm:$0xff]  ;;  %9675 = vpow2.f32 %v8687_v60  ;;  %v489_v54 = vld [vmem:[#allocation4 + $0x98] sm:$0xff]  ;;  %v504_v60 = vld [vmem:[#allocation4 + $0x110] sm:$0xff] }
  0x95   : > { %v687_v4 = vld [vmem:[#allocation4 + $0x6c8] sm:$0xff]  ;;  %9677 = vpow2.f32 %v8689_v1  ;;  %v497_v55 = vld [vmem:[#allocation4 + $0xd8] sm:$0xff] }
  0x96   : > { %v9664_v2 = vpop.eup %9663  ;;  %v711_v25 = vld [vmem:[#allocation4 + $0x788] sm:$0xff]  ;;  %v8714_v59 = vcombine.high %v489_v54, %v497_v55  ;;  %v505_v62 = vld [vmem:[#allocation4 + $0x118] sm:$0xff] }
  0x97   : > { %2105 = vmatpush1.bf16.msra.mxu0 %v8803_v10  ;;  %2158 = vmatpush1.bf16.msra.mxu1 %v8805_v11  ;;  %v9666_v5 = vpop.eup %9665  ;;  %v419_v7 = vmul.f32 %v9664_v2, %v387_v57  ;;  %v8902_v11 = vcombine.high %v679_v3, %v687_v4  ;;  %v719_v26 = vld [vmem:[#allocation4 + $0x7c8] sm:$0xff]  ;;  %v513_v63 = vld [vmem:[#allocation4 + $0x158] sm:$0xff] }
  0x98   : > { %2106 = vmatprep.subr.bf16.mxu0 %v8820_v12  ;;  %2159 = vmatprep.subr.bf16.mxu1 %v8822_v13  ;;  %v421_v10 = vmul.f32 %v9666_v5, %v391_v0  ;;  %v694_v12 = vld [vmem:[#allocation4 + $0x700] sm:$0xff]  ;;  %v8934_v36 = vcombine.high %v711_v25, %v719_v26  ;;  %v8933_v48 = vcombine.low %v711_v25, %v719_v26  ;;  %v427_v0 = vld [vmem:[%s10388_s24 + $0x8] sm:$0xff]  ;;  %v536_v26 = vld [vmem:[#allocation4 + $0x210] sm:$0xff] }
  0x99   : > { %v702_v13 = vld [vmem:[#allocation4 + $0x740] sm:$0xff]  ;;  %v431_v2 = vld [vmem:[%s10388_s24 + $0x28] sm:$0xff] }
  0x9a   : > { %v10396_v16 = vpack.c.bf16 %v421_v10, %v419_v7  ;;  %v8915_v28 = vcombine.low %v694_v12, %v702_v13  ;;  %v528_v10 = vld [vmem:[#allocation4 + $0x1d0] sm:$0xff] }
  0x9b   : > { %2107 = vmatpush1.bf16.msra.mxu0 %v8819_v18  ;;  %2160 = vmatpush1.bf16.msra.mxu1 %v8821_v19  ;;  %v8901_v18 = vcombine.low %v679_v3, %v687_v4  ;;  %v8916_v19 = vcombine.high %v694_v12, %v702_v13  ;;  %v8713_v4 = vcombine.low %v489_v54, %v497_v55  ;;  %v430_v12 = vld [vmem:[%s10388_s24 + $0x20] sm:$0xff]  ;;  %v585_v54 = vld [vmem:[#allocation4 + $0x398] sm:$0xff] }
  0x9c   : > { %2108 = vmatprep.subr.bf16.mxu0 %v8836_v20  ;;  %2161 = vmatprep.subr.bf16.mxu1 %v8838_v22  ;;  %v9668_v20 = vpop.eup %9667  ;;  %v710_v22 = vld [vmem:[#allocation4 + $0x780] sm:$0xff]  ;;  %v593_v55 = vld [vmem:[#allocation4 + $0x3d8] sm:$0xff] }
  0x9d   : > { %2122 = vmatprep.mubr.bf16.mxu0 %v10396_v16  ;;  %v9670_v24 = vpop.eup %9669  ;;  %2175 = vmatprep.mubr.bf16.mxu1 %v10396_v16  ;;  %v8931_v46 = vcombine.low %v710_v22, %v718_v23 }
  0x9e   : > { %v9672_v27 = vpop.eup %9671 }
  0x9f   : > { %2109 = vmatpush1.bf16.msra.mxu0 %v8835_v29  ;;  %2162 = vmatpush1.bf16.msra.mxu1 %v8837_v32  ;;  %v386_v29 = vld [vmem:[%s10378_s15] sm:$0xff]  ;;  %v9674_v31 = vpop.eup %9673  ;;  %v8917_v32 = vcombine.low %v695_v14, %v703_v15  ;;  %v447_v34 = vadd.f32 1.0, %v9672_v27  ;;  %v521_v14 = vld [vmem:[#allocation4 + $0x198] sm:$0xff]  ;;  %v544_v27 = vld [vmem:[#allocation4 + $0x250] sm:$0xff] }
  0xa0   : > { %2110 = vmatprep.subr.bf16.mxu0 %v8852_v33  ;;  %2163 = vmatprep.subr.bf16.mxu1 %v8854_v35  ;;  %v8932_v33 = vcombine.high %v710_v22, %v718_v23  ;;  %v9676_v35 = vpop.eup %9675  ;;  %v449_v39 = vadd.f32 1.0, %v9674_v31  ;;  %v418_v41 = vmul.f32 %v9668_v20, %v386_v29  ;;  %v529_v15 = vld [vmem:[#allocation4 + $0x1d8] sm:$0xff]  ;;  %v8729_v20 = vcombine.low %v505_v62, %v513_v63 }
  0xa1   : > { %9679 = vrcp.f32 %v447_v34  ;;  %v8746_v25 = vcombine.high %v521_v14, %v529_v15  ;;  %v545_v29 = vld [vmem:[#allocation4 + $0x258] sm:$0xff] }
  0xa2   : > { %9681 = vrcp.f32 %v449_v39  ;;  %v8759_v39 = vcombine.low %v536_v26, %v544_v27 }
  0xa3   : > { %2111 = vmatpush1.bf16.msra.mxu0 %v8851_v40  ;;  %2164 = vmatpush1.bf16.msra.mxu1 %v8853_v42  ;;  %v9678_v40 = vpop.eup %9677  ;;  %v420_v42 = vmul.f32 %v9670_v24, %v390_v30 }
  0xa4   : > { %2112 = vmatprep.subr.bf16.mxu0 %v8868_v43  ;;  %2165 = vmatprep.subr.bf16.mxu1 %v8870_v45  ;;  %v473_v43 = vld [vmem:[#allocation4 + $0x18] sm:$0xff]  ;;  %v446_v45 = vadd.f32 1.0, %v9676_v35  ;;  %v448_v47 = vadd.f32 1.0, %v9678_v40  ;;  %v552_v35 = vld [vmem:[#allocation4 + $0x290] sm:$0xff] }
  0xa5   : > { %v8698_v50 = vcombine.high %v473_v43, %v481_v44  ;;  %v10402_v53 = vpack.c.bf16 %v420_v42, %v418_v41  ;;  %v8697_v57 = vcombine.low %v473_v43, %v481_v44  ;;  %v568_v43 = vld [vmem:[#allocation4 + $0x310] sm:$0xff] }
  0xa6   : > { %9683 = vrcp.f32 %v446_v45  ;;  %v576_v44 = vld [vmem:[#allocation4 + $0x350] sm:$0xff]  ;;  %v569_v45 = vld [vmem:[#allocation4 + $0x318] sm:$0xff] }
  0xa7   : > { %2113 = vmatpush1.bf16.msra.mxu0 %v8867_v51  ;;  %2166 = vmatpush1.bf16.msra.mxu1 %v8869_v52  ;;  %v488_v51 = vld [vmem:[#allocation4 + $0x90] sm:$0xff]  ;;  %9685 = vrcp.f32 %v448_v47 }
  0xa8   : > { %2114 = vmatprep.subr.bf16.mxu0 %v8884_v56  ;;  %2167 = vmatprep.subr.bf16.mxu1 %v8886_v61  ;;  %v496_v52 = vld [vmem:[#allocation4 + $0xd0] sm:$0xff]  ;;  %v8695_v56 = vcombine.low %v472_v37, %v480_v38  ;;  %v553_v37 = vld [vmem:[#allocation4 + $0x298] sm:$0xff] }
  0xa9   : > { %v8712_v58 = vcombine.high %v488_v51, %v496_v52  ;;  %v512_v61 = vld [vmem:[#allocation4 + $0x150] sm:$0xff]  ;;  %v8711_v1 = vcombine.low %v488_v51, %v496_v52  ;;  %v561_v38 = vld [vmem:[#allocation4 + $0x2d8] sm:$0xff] }
  0xaa   : > { %v8728_v5 = vcombine.high %v504_v60, %v512_v61  ;;  %v8778_v42 = vcombine.high %v553_v37, %v561_v38  ;;  %v584_v51 = vld [vmem:[#allocation4 + $0x390] sm:$0xff] }
  0xab   : > { %2115 = vmatpush1.bf16.msra.mxu0 %v8883_v6  ;;  %2168 = vmatpush1.bf16.msra.mxu1 %v8885_v8  ;;  %v9680_v3 = vpop.eup %9679  ;;  %v426_v6 = vld [vmem:[%s10388_s24] sm:$0xff]  ;;  %v8730_v8 = vcombine.high %v505_v62, %v513_v63  ;;  %v592_v52 = vld [vmem:[#allocation4 + $0x3d0] sm:$0xff]  ;;  %v601_v62 = vld [vmem:[#allocation4 + $0x418] sm:$0xff] }
  0xac   : > { %2116 = vmatprep.subr.bf16.mxu0 %v8900_v9  ;;  %2169 = vmatprep.subr.bf16.mxu1 %v8902_v11  ;;  %v9682_v7 = vpop.eup %9681  ;;  %v520_v9 = vld [vmem:[#allocation4 + $0x190] sm:$0xff]  ;;  %v459_v11 = vmul.f32 %v9680_v3, %v427_v0  ;;  %v609_v63 = vld [vmem:[#allocation4 + $0x458] sm:$0xff]  ;;  %v8807_v0 = vcombine.low %v584_v51, %v592_v52 }
  0xad   : > { %v8744_v22 = vcombine.high %v520_v9, %v528_v10  ;;  %v8743_v31 = vcombine.low %v520_v9, %v528_v10  ;;  %v8826_v3 = vcombine.high %v601_v62, %v609_v63  ;;  %v8825_v9 = vcombine.low %v601_v62, %v609_v63 }
  0xaf   : > { %2117 = vmatpush1.bf16.msra.mxu0 %v8899_v17  ;;  %2170 = vmatpush1.bf16.msra.mxu1 %v8901_v18  ;;  %v461_v17 = vmul.f32 %v9682_v7, %v431_v2  ;;  %v625_v7 = vld [vmem:[#allocation4 + $0x4d8] sm:$0xff] }
  0xb0   : > { %2118 = vmatprep.subr.bf16.mxu0 %v8916_v19  ;;  %2171 = vmatprep.subr.bf16.mxu1 %v8918_v21  ;;  %v9684_v13 = vpop.eup %9683  ;;  %v8727_v19 = vcombine.low %v504_v60, %v512_v61  ;;  %v600_v60 = vld [vmem:[#allocation4 + $0x410] sm:$0xff] }
  0xb1   : > { %v9686_v18 = vpop.eup %9685  ;;  %v458_v21 = vmul.f32 %v9684_v13, %v426_v6  ;;  %v10410_v23 = vpack.c.bf16 %v461_v17, %v459_v11  ;;  %v608_v61 = vld [vmem:[#allocation4 + $0x450] sm:$0xff]  ;;  %v617_v6 = vld [vmem:[#allocation4 + $0x498] sm:$0xff] }
  0xb2   : > { %v460_v24 = vmul.f32 %v9686_v18, %v430_v12  ;;  %v8824_v2 = vcombine.high %v600_v60, %v608_v61  ;;  %v8842_v11 = vcombine.high %v617_v6, %v625_v7  ;;  %v632_v12 = vld [vmem:[#allocation4 + $0x510] sm:$0xff]  ;;  %v8841_v18 = vcombine.low %v617_v6, %v625_v7 }
  0xb3   : > { %2119 = vmatpush1.bf16.msra.mxu0 %v8915_v28  ;;  %2172 = vmatpush1.bf16.msra.mxu1 %v8917_v32  ;;  %v537_v28 = vld [vmem:[#allocation4 + $0x218] sm:$0xff]  ;;  %v8745_v32 = vcombine.low %v521_v14, %v529_v15  ;;  %v640_v13 = vld [vmem:[#allocation4 + $0x550] sm:$0xff] }
  0xb4   : > { %2120 = vmatprep.subr.bf16.mxu0 %v8932_v33  ;;  %2173 = vmatprep.subr.bf16.mxu1 %v8934_v36  ;;  %v10413_v30 = vpack.c.bf16 %v460_v24, %v458_v21  ;;  %v8760_v33 = vcombine.high %v536_v26, %v544_v27  ;;  %v8762_v34 = vcombine.high %v537_v28, %v545_v29  ;;  %v560_v36 = vld [vmem:[#allocation4 + $0x2d0] sm:$0xff]  ;;  %v633_v14 = vld [vmem:[#allocation4 + $0x518] sm:$0xff] }
  0xb5   : > { %v8761_v40 = vcombine.low %v537_v28, %v545_v29  ;;  %v8776_v41 = vcombine.high %v552_v35, %v560_v36  ;;  %v8775_v47 = vcombine.low %v552_v35, %v560_v36  ;;  %v641_v15 = vld [vmem:[#allocation4 + $0x558] sm:$0xff]  ;;  %v648_v21 = vld [vmem:[#allocation4 + $0x590] sm:$0xff]  ;;  %v8855_v26 = vcombine.low %v632_v12, %v640_v13 }
  0xb6   : > { %v649_v24 = vld [vmem:[#allocation4 + $0x598] sm:$0xff]  ;;  %v8857_v27 = vcombine.low %v633_v14, %v641_v15 }
  0xb7   : > { %2121 = vmatpush1.bf16.msra.mxu0 %v8931_v46  ;;  %2174 = vmatpush1.bf16.msra.mxu1 %v8933_v48  ;;  %v577_v46 = vld [vmem:[#allocation4 + $0x358] sm:$0xff]  ;;  %v8777_v48 = vcombine.low %v553_v37, %v561_v38 }
  0xb8   : > { %2196 = vmatprep.subr.bf16.mxu0 %v8696_v49  ;;  %2249 = vmatprep.subr.bf16.mxu1 %v8698_v50  ;;  %v8792_v49 = vcombine.high %v568_v43, %v576_v44  ;;  %v8794_v50 = vcombine.high %v569_v45, %v577_v46 }
  0xba   : > { %2123 = vmatmul.mubr.bf16.vlgmr.msra.gmra.mrb[0].mxu0 %v10402_v53  ;;  %2176 = vmatmul.mubr.bf16.vlgmr.msra.gmra.mrb[0].mxu1 %v10402_v53 }
  0xbb   : > { %2197 = vmatpush1.bf16.msra.mxu0 %v8695_v56  ;;  %2250 = vmatpush1.bf16.msra.mxu1 %v8697_v57  ;;  %v8791_v56 = vcombine.low %v568_v43, %v576_v44  ;;  %v8793_v57 = vcombine.low %v569_v45, %v577_v46 }
  0xbc   : > { %2198 = vmatprep.subr.bf16.mxu0 %v8712_v58  ;;  %2251 = vmatprep.subr.bf16.mxu1 %v8714_v59  ;;  %v8808_v58 = vcombine.high %v584_v51, %v592_v52  ;;  %v8810_v59 = vcombine.high %v585_v54, %v593_v55 }
  0xbd   : > { %2132 = vmatprep.mubr.bf16.mxu0 %v10410_v23  ;;  %2185 = vmatprep.mubr.bf16.mxu1 %v10410_v23 }
  0xbf   : > { %2199 = vmatpush1.bf16.msra.mxu0 %v8711_v1  ;;  %2252 = vmatpush1.bf16.msra.mxu1 %v8713_v4  ;;  %v8809_v1 = vcombine.low %v585_v54, %v593_v55  ;;  %v616_v4 = vld [vmem:[#allocation4 + $0x490] sm:$0xff] }
  0xc0   : > { %2200 = vmatprep.subr.bf16.mxu0 %v8728_v5  ;;  %2253 = vmatprep.subr.bf16.mxu1 %v8730_v8  ;;  %v624_v5 = vld [vmem:[#allocation4 + $0x4d0] sm:$0xff]  ;;  %v8823_v8 = vcombine.low %v600_v60, %v608_v61 }
  0xc1   : > { %v8840_v10 = vcombine.high %v616_v4, %v624_v5  ;;  %v8839_v17 = vcombine.low %v616_v4, %v624_v5 }
  0xc2   : > { %2133 = vmatmul.mubr.bf16.gmra.mrb[4].mxu0 %v10413_v30  ;;  %2186 = vmatmul.mubr.bf16.gmra.mrb[4].mxu1 %v10413_v30 }
  0xc3   : > { %2201 = vmatpush1.bf16.msra.mxu0 %v8727_v19  ;;  %2254 = vmatpush1.bf16.msra.mxu1 %v8729_v20  ;;  %v8856_v19 = vcombine.high %v632_v12, %v640_v13  ;;  %v8858_v20 = vcombine.high %v633_v14, %v641_v15 }
  0xc4   : > { %2202 = vmatprep.subr.bf16.mxu0 %v8744_v22  ;;  %2255 = vmatprep.subr.bf16.mxu1 %v8746_v25  ;;  %v656_v22 = vld [vmem:[#allocation4 + $0x5d0] sm:$0xff]  ;;  %v657_v25 = vld [vmem:[#allocation4 + $0x5d8] sm:$0xff] }
  0xc5   : > { %2228 = vmatprep.mubr.bf16.mxu0 %v10396_v16  ;;  %2281 = vmatprep.mubr.bf16.mxu1 %v10396_v16  ;;  %v8872_v28 = vcombine.high %v648_v21, %v656_v22  ;;  %v8874_v29 = vcombine.high %v649_v24, %v657_v25  ;;  %v8871_v35 = vcombine.low %v648_v21, %v656_v22 }
  0xc6   : > { %v8873_v36 = vcombine.low %v649_v24, %v657_v25 }
  0xc7   : > { %2203 = vmatpush1.bf16.msra.mxu0 %v8743_v31  ;;  %2256 = vmatpush1.bf16.msra.mxu1 %v8745_v32  ;;  %v664_v31 = vld [vmem:[#allocation4 + $0x610] sm:$0xff] }
  0xc8   : > { %2204 = vmatprep.subr.bf16.mxu0 %v8760_v33  ;;  %2257 = vmatprep.subr.bf16.mxu1 %v8762_v34  ;;  %v672_v32 = vld [vmem:[#allocation4 + $0x650] sm:$0xff]  ;;  %v665_v33 = vld [vmem:[#allocation4 + $0x618] sm:$0xff] }
  0xc9   : > { %v673_v34 = vld [vmem:[#allocation4 + $0x658] sm:$0xff]  ;;  %v8888_v37 = vcombine.high %v664_v31, %v672_v32  ;;  %v8887_v43 = vcombine.low %v664_v31, %v672_v32 }
  0xca   : > { %v8890_v38 = vcombine.high %v665_v33, %v673_v34  ;;  %v8889_v44 = vcombine.low %v665_v33, %v673_v34 }
  0xcb   : > { %2205 = vmatpush1.bf16.msra.mxu0 %v8759_v39  ;;  %2258 = vmatpush1.bf16.msra.mxu1 %v8761_v40  ;;  %v680_v39 = vld [vmem:[#allocation4 + $0x690] sm:$0xff] }
  0xcc   : > { %2206 = vmatprep.subr.bf16.mxu0 %v8776_v41  ;;  %2259 = vmatprep.subr.bf16.mxu1 %v8778_v42  ;;  %v688_v40 = vld [vmem:[#allocation4 + $0x6d0] sm:$0xff]  ;;  %v681_v41 = vld [vmem:[#allocation4 + $0x698] sm:$0xff] }
  0xcd   : > { %v689_v42 = vld [vmem:[#allocation4 + $0x6d8] sm:$0xff]  ;;  %v8904_v45 = vcombine.high %v680_v39, %v688_v40  ;;  %v8903_v51 = vcombine.low %v680_v39, %v688_v40  ;;  %v730_v40 = vlaneseq }
  0xce   : > { %v8906_v46 = vcombine.high %v681_v41, %v689_v42  ;;  %v8905_v52 = vcombine.low %v681_v41, %v689_v42 }
  0xcf   : > { %2207 = vmatpush1.bf16.msra.mxu0 %v8775_v47  ;;  %2260 = vmatpush1.bf16.msra.mxu1 %v8777_v48  ;;  %v696_v47 = vld [vmem:[#allocation4 + $0x710] sm:$0xff] }
  0xd0   : > { %2208 = vmatprep.subr.bf16.mxu0 %v8792_v49  ;;  %2261 = vmatprep.subr.bf16.mxu1 %v8794_v50  ;;  %v704_v48 = vld [vmem:[#allocation4 + $0x750] sm:$0xff]  ;;  %v697_v49 = vld [vmem:[#allocation4 + $0x718] sm:$0xff] }
  0xd1   : > { %v705_v50 = vld [vmem:[#allocation4 + $0x758] sm:$0xff]  ;;  %v8920_v54 = vcombine.high %v696_v47, %v704_v48  ;;  %v8919_v60 = vcombine.low %v696_v47, %v704_v48  ;;  %v563_v47 = vld [vmem:[#allocation4 + $0x2e8] sm:$0xff]  ;;  %v10428_v48 = vshrl.u32 %v730_v40, 7 }
  0xd2   : > { %v8922_v55 = vcombine.high %v697_v49, %v705_v50  ;;  %v8921_v61 = vcombine.low %v697_v49, %v705_v50  ;;  %v651_v40 = vld [vmem:[#allocation4 + $0x5a8] sm:$0xff] }
  0xd3   : > { %2209 = vmatpush1.bf16.msra.mxu0 %v8791_v56  ;;  %2262 = vmatpush1.bf16.msra.mxu1 %v8793_v57  ;;  %v712_v56 = vld [vmem:[#allocation4 + $0x790] sm:$0xff] }
  0xd4   : > { %2210 = vmatprep.subr.bf16.mxu0 %v8808_v58  ;;  %2263 = vmatprep.subr.bf16.mxu1 %v8810_v59  ;;  %v720_v57 = vld [vmem:[#allocation4 + $0x7d0] sm:$0xff]  ;;  %v713_v58 = vld [vmem:[#allocation4 + $0x798] sm:$0xff] }
  0xd5   : > { %v721_v59 = vld [vmem:[#allocation4 + $0x7d8] sm:$0xff]  ;;  %v8936_v62 = vcombine.high %v712_v56, %v720_v57  ;;  %v8935_v4 = vcombine.low %v712_v56, %v720_v57  ;;  %v571_v56 = vld [vmem:[#allocation4 + $0x328] sm:$0xff] }
  0xd6   : > { %v8938_v63 = vcombine.high %v713_v58, %v721_v59  ;;  %v8937_v5 = vcombine.low %v713_v58, %v721_v59  ;;  %v579_v57 = vld [vmem:[#allocation4 + $0x368] sm:$0xff]  ;;  %v10431_v58 = vsub.s32 0, %v10428_v48 }
  0xd7   : > { %2211 = vmatpush1.bf16.msra.mxu0 %v8807_v0  ;;  %2264 = vmatpush1.bf16.msra.mxu1 %v8809_v1  ;;  %v474_v0 = vld [vmem:[#allocation4 + $0x20] sm:$0xff] }
  0xd8   : > { %2212 = vmatprep.subr.bf16.mxu0 %v8824_v2  ;;  %2265 = vmatprep.subr.bf16.mxu1 %v8826_v3  ;;  %v482_v1 = vld [vmem:[#allocation4 + $0x60] sm:$0xff]  ;;  %v475_v2 = vld [vmem:[#allocation4 + $0x28] sm:$0xff] }
  0xd9   : > { %v483_v3 = vld [vmem:[#allocation4 + $0x68] sm:$0xff]  ;;  %v8700_v6 = vcombine.high %v474_v0, %v482_v1  ;;  %v8699_v12 = vcombine.low %v474_v0, %v482_v1  ;;  %v594_v0 = vld [vmem:[#allocation4 + $0x3e0] sm:$0xff]  ;;  %v10433_v1 = vld [vmem:[#allocation9] sm:$0xff] }
  0xda   : > { %v8702_v7 = vcombine.high %v475_v2, %v483_v3  ;;  %v8701_v13 = vcombine.low %v475_v2, %v483_v3  ;;  %v10436_v2 = vsub.s32 1, %v10428_v48  ;;  %v587_v3 = vld [vmem:[#allocation4 + $0x3a8] sm:$0xff] }
  0xdb   : > { %2213 = vmatpush1.bf16.msra.mxu0 %v8823_v8  ;;  %2266 = vmatpush1.bf16.msra.mxu1 %v8825_v9  ;;  %v490_v8 = vld [vmem:[#allocation4 + $0xa0] sm:$0xff] }
  0xdc   : > { %2214 = vmatprep.subr.bf16.mxu0 %v8840_v10  ;;  %2267 = vmatprep.subr.bf16.mxu1 %v8842_v11  ;;  %v498_v9 = vld [vmem:[#allocation4 + $0xe0] sm:$0xff]  ;;  %v491_v10 = vld [vmem:[#allocation4 + $0xa8] sm:$0xff] }
  0xdd   : > { %v499_v11 = vld [vmem:[#allocation4 + $0xe8] sm:$0xff]  ;;  %v8716_v14 = vcombine.high %v490_v8, %v498_v9  ;;  %v8715_v21 = vcombine.low %v490_v8, %v498_v9  ;;  %v8797_v8 = vcombine.low %v571_v56, %v579_v57 }
  0xde   : > { %v8718_v15 = vcombine.high %v491_v10, %v499_v11  ;;  %v8717_v22 = vcombine.low %v491_v10, %v499_v11  ;;  %v602_v11 = vld [vmem:[#allocation4 + $0x420] sm:$0xff] }
  0xdf   : > { %2215 = vmatpush1.bf16.msra.mxu0 %v8839_v17  ;;  %2268 = vmatpush1.bf16.msra.mxu1 %v8841_v18  ;;  %v506_v17 = vld [vmem:[#allocation4 + $0x120] sm:$0xff] }
  0xe0   : > { %2216 = vmatprep.subr.bf16.mxu0 %v8856_v19  ;;  %2269 = vmatprep.subr.bf16.mxu1 %v8858_v20  ;;  %v514_v18 = vld [vmem:[#allocation4 + $0x160] sm:$0xff]  ;;  %v507_v19 = vld [vmem:[#allocation4 + $0x128] sm:$0xff] }
  0xe1   : > { %v515_v20 = vld [vmem:[#allocation4 + $0x168] sm:$0xff]  ;;  %v8732_v24 = vcombine.high %v506_v17, %v514_v18  ;;  %v8731_v31 = vcombine.low %v506_v17, %v514_v18 }
  0xe2   : > { %v8734_v25 = vcombine.high %v507_v19, %v515_v20  ;;  %v8733_v32 = vcombine.low %v507_v19, %v515_v20  ;;  %v618_v20 = vld [vmem:[#allocation4 + $0x4a0] sm:$0xff] }
  0xe3   : > { %2217 = vmatpush1.bf16.msra.mxu0 %v8855_v26  ;;  %2270 = vmatpush1.bf16.msra.mxu1 %v8857_v27  ;;  %v522_v26 = vld [vmem:[#allocation4 + $0x1a0] sm:$0xff] }
  0xe4   : > { %2218 = vmatprep.subr.bf16.mxu0 %v8872_v28  ;;  %2271 = vmatprep.subr.bf16.mxu1 %v8874_v29  ;;  %v530_v27 = vld [vmem:[#allocation4 + $0x1e0] sm:$0xff]  ;;  %v523_v28 = vld [vmem:[#allocation4 + $0x1a8] sm:$0xff] }
  0xe5   : > { %v531_v29 = vld [vmem:[#allocation4 + $0x1e8] sm:$0xff]  ;;  %v8748_v33 = vcombine.high %v522_v26, %v530_v27  ;;  %v8747_v39 = vcombine.low %v522_v26, %v530_v27 }
  0xe6   : > { %v8750_v34 = vcombine.high %v523_v28, %v531_v29  ;;  %v8749_v41 = vcombine.low %v523_v28, %v531_v29  ;;  %v634_v29 = vld [vmem:[#allocation4 + $0x520] sm:$0xff] }
  0xe7   : > { %2219 = vmatpush1.bf16.msra.mxu0 %v8871_v35  ;;  %2272 = vmatpush1.bf16.msra.mxu1 %v8873_v36  ;;  %v538_v35 = vld [vmem:[#allocation4 + $0x220] sm:$0xff] }
  0xe8   : > { %2220 = vmatprep.subr.bf16.mxu0 %v8888_v37  ;;  %2273 = vmatprep.subr.bf16.mxu1 %v8890_v38  ;;  %v546_v36 = vld [vmem:[#allocation4 + $0x260] sm:$0xff]  ;;  %v539_v37 = vld [vmem:[#allocation4 + $0x228] sm:$0xff] }
  0xe9   : > { %v547_v38 = vld [vmem:[#allocation4 + $0x268] sm:$0xff]  ;;  %v8764_v42 = vcombine.high %v538_v35, %v546_v36  ;;  %v8763_v49 = vcombine.low %v538_v35, %v546_v36 }
  0xea   : > { %v8765_v50 = vcombine.low %v539_v37, %v547_v38 }
  0xeb   : > { %2221 = vmatpush1.bf16.msra.mxu0 %v8887_v43  ;;  %2274 = vmatpush1.bf16.msra.mxu1 %v8889_v44  ;;  %v8766_v43 = vcombine.high %v539_v37, %v547_v38  ;;  %v554_v44 = vld [vmem:[#allocation4 + $0x2a0] sm:$0xff] }
  0xec   : > { %2222 = vmatprep.subr.bf16.mxu0 %v8904_v45  ;;  %2275 = vmatprep.subr.bf16.mxu1 %v8906_v46  ;;  %v562_v45 = vld [vmem:[#allocation4 + $0x2e0] sm:$0xff]  ;;  %v555_v46 = vld [vmem:[#allocation4 + $0x2a8] sm:$0xff] }
  0xed   : > { %v8779_v59 = vcombine.low %v554_v44, %v562_v45  ;;  %v650_v38 = vld [vmem:[#allocation4 + $0x5a0] sm:$0xff] }
  0xef   : > { %2223 = vmatpush1.bf16.msra.mxu0 %v8903_v51  ;;  %2276 = vmatpush1.bf16.msra.mxu1 %v8905_v52  ;;  %v8780_v51 = vcombine.high %v554_v44, %v562_v45  ;;  %v8782_v52 = vcombine.high %v555_v46, %v563_v47 }
  0xf0   : > { %2224 = vmatprep.subr.bf16.mxu0 %v8920_v54  ;;  %2277 = vmatprep.subr.bf16.mxu1 %v8922_v55  ;;  %v570_v54 = vld [vmem:[#allocation4 + $0x320] sm:$0xff] }
  0xf1   : > { %v578_v55 = vld [vmem:[#allocation4 + $0x360] sm:$0xff] }
  0xf3   : > { %2225 = vmatpush1.bf16.msra.mxu0 %v8919_v60  ;;  %2278 = vmatpush1.bf16.msra.mxu1 %v8921_v61  ;;  %v8781_v60 = vcombine.low %v555_v46, %v563_v47  ;;  %v8796_v61 = vcombine.high %v570_v54, %v578_v55  ;;  %v666_v46 = vld [vmem:[#allocation4 + $0x620] sm:$0xff] }
  0xf4   : > { %2226 = vmatprep.subr.bf16.mxu0 %v8936_v62  ;;  %2279 = vmatprep.subr.bf16.mxu1 %v8938_v63  ;;  %v8798_v62 = vcombine.high %v571_v56, %v579_v57  ;;  %v586_v63 = vld [vmem:[#allocation4 + $0x3a0] sm:$0xff] }
  0xf5   : > { %v8812_v9 = vcombine.high %v586_v63, %v594_v0  ;;  %v674_v47 = vld [vmem:[#allocation4 + $0x660] sm:$0xff] }
  0xf6   : > { %v682_v56 = vld [vmem:[#allocation4 + $0x6a0] sm:$0xff] }
  0xf7   : > { %2227 = vmatpush1.bf16.msra.mxu0 %v8935_v4  ;;  %2280 = vmatpush1.bf16.msra.mxu1 %v8937_v5  ;;  %v595_v4 = vld [vmem:[#allocation4 + $0x3e8] sm:$0xff]  ;;  %v2589_v5 = vrot.slane %v10433_v1, %v10431_v58  ;;  %v690_v57 = vld [vmem:[#allocation4 + $0x6e0] sm:$0xff] }
  0xf8   : > { %2302 = vmatprep.subr.bf16.mxu0 %v8700_v6  ;;  %2355 = vmatprep.subr.bf16.mxu1 %v8702_v7  ;;  %v8795_v6 = vcombine.low %v570_v54, %v578_v55  ;;  %v2593_v7 = vrot.slane %v10433_v1, %v10436_v2  ;;  %v8814_v10 = vcombine.high %v587_v3, %v595_v4 }
  0xf9   : > { %2682 = vst [vmem:[#allocation3 + $0x80] sm:$0xff] %v2589_v5  ;;  %v8813_v17 = vcombine.low %v587_v3, %v595_v4  ;;  %v8892_v54 = vcombine.high %v666_v46, %v674_v47  ;;  %v698_v3 = vld [vmem:[#allocation4 + $0x720] sm:$0xff]  ;;  %v699_v5 = vld [vmem:[#allocation4 + $0x728] sm:$0xff] }
  0xfa   : > { %2229 = vmatmul.mubr.bf16.vlgmr.msra.gmra.mrb[8].mxu0 %v10402_v53  ;;  %2282 = vmatmul.mubr.bf16.vlgmr.msra.gmra.mrb[8].mxu1 %v10402_v53  ;;  %2683 = vst [vmem:[#allocation3 + $0x88] sm:$0xff] %v2593_v7  ;;  %v706_v4 = vld [vmem:[#allocation4 + $0x760] sm:$0xff]  ;;  %v8907_v7 = vcombine.low %v682_v56, %v690_v57 }
  0xfb   : > { %2303 = vmatpush1.bf16.msra.mxu0 %v8699_v12  ;;  %2356 = vmatpush1.bf16.msra.mxu1 %v8701_v13  ;;  %v610_v12 = vld [vmem:[#allocation4 + $0x460] sm:$0xff]  ;;  %v603_v13 = vld [vmem:[#allocation4 + $0x428] sm:$0xff] }
  0xfc   : > { %2304 = vmatprep.subr.bf16.mxu0 %v8716_v14  ;;  %2357 = vmatprep.subr.bf16.mxu1 %v8718_v15  ;;  %v611_v14 = vld [vmem:[#allocation4 + $0x468] sm:$0xff]  ;;  %v8811_v15 = vcombine.low %v586_v63, %v594_v0  ;;  %v8828_v18 = vcombine.high %v602_v11, %v610_v12  ;;  %v8908_v63 = vcombine.high %v682_v56, %v690_v57 }
  0xfd   : > { %2238 = vmatprep.mubr.bf16.mxu0 %v10410_v23  ;;  %2291 = vmatprep.mubr.bf16.mxu1 %v10410_v23  ;;  %v8830_v19 = vcombine.high %v603_v13, %v611_v14  ;;  %v8829_v26 = vcombine.low %v603_v13, %v611_v14  ;;  %v715_v13 = vld [vmem:[#allocation4 + $0x7a8] sm:$0xff] }
  0xfe   : > { %v723_v14 = vld [vmem:[#allocation4 + $0x7e8] sm:$0xff] }
  0xff   : > { %2305 = vmatpush1.bf16.msra.mxu0 %v8715_v21  ;;  %2358 = vmatpush1.bf16.msra.mxu1 %v8717_v22  ;;  %v626_v21 = vld [vmem:[#allocation4 + $0x4e0] sm:$0xff]  ;;  %v619_v22 = vld [vmem:[#allocation4 + $0x4a8] sm:$0xff] }
 0x100   : > { %2306 = vmatprep.subr.bf16.mxu0 %v8732_v24  ;;  %2359 = vmatprep.subr.bf16.mxu1 %v8734_v25  ;;  %v627_v24 = vld [vmem:[#allocation4 + $0x4e8] sm:$0xff]  ;;  %v8827_v25 = vcombine.low %v602_v11, %v610_v12  ;;  %v8844_v27 = vcombine.high %v618_v20, %v626_v21  ;;  %v714_v11 = vld [vmem:[#allocation4 + $0x7a0] sm:$0xff] }
 0x101   : > { %v8846_v28 = vcombine.high %v619_v22, %v627_v24  ;;  %v8845_v35 = vcombine.low %v619_v22, %v627_v24  ;;  %v722_v12 = vld [vmem:[#allocation4 + $0x7e0] sm:$0xff]  ;;  %v477_v22 = vld [vmem:[#allocation4 + $0x38] sm:$0xff] }
 0x102   : > { %2239 = vmatmul.mubr.bf16.gmra.mrb[12].mxu0 %v10413_v30  ;;  %2292 = vmatmul.mubr.bf16.gmra.mrb[12].mxu1 %v10413_v30  ;;  %v485_v24 = vld [vmem:[#allocation4 + $0x78] sm:$0xff] }
 0x103   : > { %2307 = vmatpush1.bf16.msra.mxu0 %v8731_v31  ;;  %2360 = vmatpush1.bf16.msra.mxu1 %v8733_v32  ;;  %v642_v31 = vld [vmem:[#allocation4 + $0x560] sm:$0xff]  ;;  %v635_v32 = vld [vmem:[#allocation4 + $0x528] sm:$0xff] }
 0x104   : > { %2308 = vmatprep.subr.bf16.mxu0 %v8748_v33  ;;  %2361 = vmatprep.subr.bf16.mxu1 %v8750_v34  ;;  %v643_v33 = vld [vmem:[#allocation4 + $0x568] sm:$0xff]  ;;  %v8843_v34 = vcombine.low %v618_v20, %v626_v21  ;;  %v8860_v36 = vcombine.high %v634_v29, %v642_v31  ;;  %v476_v20 = vld [vmem:[#allocation4 + $0x30] sm:$0xff] }
 0x105   : > { %2334 = vmatprep.mubr.bf16.mxu0 %v10396_v16  ;;  %2387 = vmatprep.mubr.bf16.mxu1 %v10396_v16  ;;  %v8862_v37 = vcombine.high %v635_v32, %v643_v33  ;;  %v484_v21 = vld [vmem:[#allocation4 + $0x70] sm:$0xff] }
 0x107   : > { %2309 = vmatpush1.bf16.msra.mxu0 %v8747_v39  ;;  %2362 = vmatpush1.bf16.msra.mxu1 %v8749_v41  ;;  %v658_v39 = vld [vmem:[#allocation4 + $0x5e0] sm:$0xff]  ;;  %v659_v41 = vld [vmem:[#allocation4 + $0x5e8] sm:$0xff] }
 0x108   : > { %2310 = vmatprep.subr.bf16.mxu0 %v8764_v42  ;;  %2363 = vmatprep.subr.bf16.mxu1 %v8766_v43  ;;  %v8859_v42 = vcombine.low %v634_v29, %v642_v31  ;;  %v8861_v43 = vcombine.low %v635_v32, %v643_v33  ;;  %v8876_v44 = vcombine.high %v650_v38, %v658_v39  ;;  %v492_v29 = vld [vmem:[#allocation4 + $0xb0] sm:$0xff]  ;;  %v493_v32 = vld [vmem:[#allocation4 + $0xb8] sm:$0xff] }
 0x109   : > { %v8878_v45 = vcombine.high %v651_v40, %v659_v41  ;;  %v500_v31 = vld [vmem:[#allocation4 + $0xf0] sm:$0xff]  ;;  %v501_v33 = vld [vmem:[#allocation4 + $0xf8] sm:$0xff] }
 0x10b   : > { %2311 = vmatpush1.bf16.msra.mxu0 %v8763_v49  ;;  %2364 = vmatpush1.bf16.msra.mxu1 %v8765_v50  ;;  %v667_v49 = vld [vmem:[#allocation4 + $0x628] sm:$0xff] }
 0x10c   : > { %2312 = vmatprep.subr.bf16.mxu0 %v8780_v51  ;;  %2365 = vmatprep.subr.bf16.mxu1 %v8782_v52  ;;  %v675_v50 = vld [vmem:[#allocation4 + $0x668] sm:$0xff]  ;;  %v8875_v51 = vcombine.low %v650_v38, %v658_v39  ;;  %v8877_v52 = vcombine.low %v651_v40, %v659_v41  ;;  %v508_v38 = vld [vmem:[#allocation4 + $0x130] sm:$0xff]  ;;  %v509_v40 = vld [vmem:[#allocation4 + $0x138] sm:$0xff] }
 0x10d   : > { %v8894_v55 = vcombine.high %v667_v49, %v675_v50  ;;  %v516_v39 = vld [vmem:[#allocation4 + $0x170] sm:$0xff]  ;;  %v517_v41 = vld [vmem:[#allocation4 + $0x178] sm:$0xff] }
 0x10e   : > { %v8735_v56 = vcombine.low %v508_v38, %v516_v39  ;;  %v8737_v57 = vcombine.low %v509_v40, %v517_v41 }
 0x10f   : > { %2313 = vmatpush1.bf16.msra.mxu0 %v8779_v59  ;;  %2366 = vmatpush1.bf16.msra.mxu1 %v8781_v60  ;;  %v683_v59 = vld [vmem:[#allocation4 + $0x6a8] sm:$0xff] }
 0x110   : > { %2314 = vmatprep.subr.bf16.mxu0 %v8796_v61  ;;  %2367 = vmatprep.subr.bf16.mxu1 %v8798_v62  ;;  %v691_v60 = vld [vmem:[#allocation4 + $0x6e8] sm:$0xff]  ;;  %v8891_v61 = vcombine.low %v666_v46, %v674_v47  ;;  %v8893_v62 = vcombine.low %v667_v49, %v675_v50  ;;  %v8736_v46 = vcombine.high %v508_v38, %v516_v39  ;;  %v524_v50 = vld [vmem:[#allocation4 + $0x1b0] sm:$0xff] }
 0x111   : > { %v8910_v0 = vcombine.high %v683_v59, %v691_v60  ;;  %v8738_v49 = vcombine.high %v509_v40, %v517_v41  ;;  %v604_v39 = vld [vmem:[#allocation4 + $0x430] sm:$0xff]  ;;  %v605_v41 = vld [vmem:[#allocation4 + $0x438] sm:$0xff] }
 0x112   : > { %v612_v40 = vld [vmem:[#allocation4 + $0x470] sm:$0xff] }
 0x113   : > { %2315 = vmatpush1.bf16.msra.mxu0 %v8795_v6  ;;  %2368 = vmatpush1.bf16.msra.mxu1 %v8797_v8  ;;  %v707_v6 = vld [vmem:[#allocation4 + $0x768] sm:$0xff]  ;;  %v8909_v8 = vcombine.low %v683_v59, %v691_v60 }
 0x114   : > { %2316 = vmatprep.subr.bf16.mxu0 %v8812_v9  ;;  %2369 = vmatprep.subr.bf16.mxu1 %v8814_v10  ;;  %v8924_v9 = vcombine.high %v698_v3, %v706_v4  ;;  %v8926_v10 = vcombine.high %v699_v5, %v707_v6 }
 0x117   : > { %2317 = vmatpush1.bf16.msra.mxu0 %v8811_v15  ;;  %2370 = vmatpush1.bf16.msra.mxu1 %v8813_v17  ;;  %v8923_v15 = vcombine.low %v698_v3, %v706_v4  ;;  %v8925_v17 = vcombine.low %v699_v5, %v707_v6 }
 0x118   : > { %2318 = vmatprep.subr.bf16.mxu0 %v8828_v18  ;;  %2371 = vmatprep.subr.bf16.mxu1 %v8830_v19  ;;  %v8940_v18 = vcombine.high %v714_v11, %v722_v12  ;;  %v8942_v19 = vcombine.high %v715_v13, %v723_v14 }
 0x11b   : > { %2319 = vmatpush1.bf16.msra.mxu0 %v8827_v25  ;;  %2372 = vmatpush1.bf16.msra.mxu1 %v8829_v26  ;;  %v8939_v25 = vcombine.low %v714_v11, %v722_v12  ;;  %v8941_v26 = vcombine.low %v715_v13, %v723_v14 }
 0x11c   : > { %2320 = vmatprep.subr.bf16.mxu0 %v8844_v27  ;;  %2373 = vmatprep.subr.bf16.mxu1 %v8846_v28  ;;  %v8704_v27 = vcombine.high %v476_v20, %v484_v21  ;;  %v8706_v28 = vcombine.high %v477_v22, %v485_v24 }
 0x11f   : > { %2321 = vmatpush1.bf16.msra.mxu0 %v8843_v34  ;;  %2374 = vmatpush1.bf16.msra.mxu1 %v8845_v35  ;;  %v8703_v34 = vcombine.low %v476_v20, %v484_v21  ;;  %v8705_v35 = vcombine.low %v477_v22, %v485_v24  ;;  %v581_v20 = vld [vmem:[#allocation4 + $0x378] sm:$0xff] }
 0x120   : > { %2322 = vmatprep.subr.bf16.mxu0 %v8860_v36  ;;  %2375 = vmatprep.subr.bf16.mxu1 %v8862_v37  ;;  %v8720_v36 = vcombine.high %v492_v29, %v500_v31  ;;  %v8722_v37 = vcombine.high %v493_v32, %v501_v33 }
 0x123   : > { %2323 = vmatpush1.bf16.msra.mxu0 %v8859_v42  ;;  %2376 = vmatpush1.bf16.msra.mxu1 %v8861_v43  ;;  %v10444_v42 = vsub.s32 2, %v10428_v48  ;;  %v10447_v43 = vsub.s32 3, %v10428_v48 }
 0x124   : > { %2324 = vmatprep.subr.bf16.mxu0 %v8876_v44  ;;  %2377 = vmatprep.subr.bf16.mxu1 %v8878_v45  ;;  %v8719_v44 = vcombine.low %v492_v29, %v500_v31  ;;  %v8721_v45 = vcombine.low %v493_v32, %v501_v33  ;;  %v589_v29 = vld [vmem:[#allocation4 + $0x3b8] sm:$0xff] }
 0x125   : > { %v2597_v47 = vrot.slane %v10433_v1, %v10444_v42  ;;  %v597_v31 = vld [vmem:[#allocation4 + $0x3f8] sm:$0xff] }
 0x126   : > { %v8818_v38 = vcombine.high %v589_v29, %v597_v31 }
 0x127   : > { %2325 = vmatpush1.bf16.msra.mxu0 %v8875_v51  ;;  %2378 = vmatpush1.bf16.msra.mxu1 %v8877_v52  ;;  %v532_v51 = vld [vmem:[#allocation4 + $0x1f0] sm:$0xff]  ;;  %v2601_v52 = vrot.slane %v10433_v1, %v10447_v43  ;;  %2684 = vst [vmem:[#allocation3 + $0x90] sm:$0xff] %v2597_v47 }
 0x128   : > { %2326 = vmatprep.subr.bf16.mxu0 %v8892_v54  ;;  %2379 = vmatprep.subr.bf16.mxu1 %v8894_v55  ;;  %v525_v54 = vld [vmem:[#allocation4 + $0x1b8] sm:$0xff]  ;;  %v8752_v59 = vcombine.high %v524_v50, %v532_v51  ;;  %v8751_v3 = vcombine.low %v524_v50, %v532_v51  ;;  %v620_v51 = vld [vmem:[#allocation4 + $0x4b0] sm:$0xff] }
 0x129   : > { %v533_v55 = vld [vmem:[#allocation4 + $0x1f8] sm:$0xff]  ;;  %2685 = vst [vmem:[#allocation3 + $0x98] sm:$0xff] %v2601_v52  ;;  %v628_v52 = vld [vmem:[#allocation4 + $0x4f0] sm:$0xff] }
 0x12a   : > { %v8754_v60 = vcombine.high %v525_v54, %v533_v55  ;;  %v8753_v4 = vcombine.low %v525_v54, %v533_v55  ;;  %v621_v54 = vld [vmem:[#allocation4 + $0x4b8] sm:$0xff] }
 0x12b   : > { %2327 = vmatpush1.bf16.msra.mxu0 %v8891_v61  ;;  %2380 = vmatpush1.bf16.msra.mxu1 %v8893_v62  ;;  %v540_v61 = vld [vmem:[#allocation4 + $0x230] sm:$0xff]  ;;  %v629_v55 = vld [vmem:[#allocation4 + $0x4f8] sm:$0xff] }
 0x12c   : > { %2328 = vmatprep.subr.bf16.mxu0 %v8908_v63  ;;  %2381 = vmatprep.subr.bf16.mxu1 %v8910_v0  ;;  %v548_v62 = vld [vmem:[#allocation4 + $0x270] sm:$0xff]  ;;  %v541_v63 = vld [vmem:[#allocation4 + $0x238] sm:$0xff] }
 0x12d   : > { %v549_v0 = vld [vmem:[#allocation4 + $0x278] sm:$0xff]  ;;  %v8768_v5 = vcombine.high %v540_v61, %v548_v62  ;;  %v8767_v11 = vcombine.low %v540_v61, %v548_v62  ;;  %v644_v61 = vld [vmem:[#allocation4 + $0x570] sm:$0xff] }
 0x12e   : > { %v8770_v6 = vcombine.high %v541_v63, %v549_v0  ;;  %v8769_v12 = vcombine.low %v541_v63, %v549_v0  ;;  %v637_v62 = vld [vmem:[#allocation4 + $0x538] sm:$0xff]  ;;  %v8847_v0 = vcombine.low %v620_v51, %v628_v52 }
 0x12f   : > { %2329 = vmatpush1.bf16.msra.mxu0 %v8907_v7  ;;  %2382 = vmatpush1.bf16.msra.mxu1 %v8909_v8  ;;  %v556_v7 = vld [vmem:[#allocation4 + $0x2b0] sm:$0xff]  ;;  %v645_v63 = vld [vmem:[#allocation4 + $0x578] sm:$0xff] }
 0x130   : > { %2330 = vmatprep.subr.bf16.mxu0 %v8924_v9  ;;  %2383 = vmatprep.subr.bf16.mxu1 %v8926_v10  ;;  %v564_v8 = vld [vmem:[#allocation4 + $0x2f0] sm:$0xff]  ;;  %v557_v9 = vld [vmem:[#allocation4 + $0x2b8] sm:$0xff] }
 0x131   : > { %v565_v10 = vld [vmem:[#allocation4 + $0x2f8] sm:$0xff]  ;;  %v8784_v13 = vcombine.high %v556_v7, %v564_v8  ;;  %v8783_v21 = vcombine.low %v556_v7, %v564_v8  ;;  %v660_v7 = vld [vmem:[#allocation4 + $0x5f0] sm:$0xff] }
 0x132   : > { %v8786_v14 = vcombine.high %v557_v9, %v565_v10  ;;  %v653_v8 = vld [vmem:[#allocation4 + $0x5b8] sm:$0xff] }
 0x133   : > { %2331 = vmatpush1.bf16.msra.mxu0 %v8923_v15  ;;  %2384 = vmatpush1.bf16.msra.mxu1 %v8925_v17  ;;  %v572_v15 = vld [vmem:[#allocation4 + $0x330] sm:$0xff] }
 0x134   : > { %2332 = vmatprep.subr.bf16.mxu0 %v8940_v18  ;;  %2385 = vmatprep.subr.bf16.mxu1 %v8942_v19  ;;  %v580_v17 = vld [vmem:[#allocation4 + $0x370] sm:$0xff]  ;;  %v10461_v18 = vsub.s32 4, %v10428_v48  ;;  %v573_v19 = vld [vmem:[#allocation4 + $0x338] sm:$0xff] }
 0x135   : > { %v8800_v22 = vcombine.high %v572_v15, %v580_v17  ;;  %v8802_v24 = vcombine.high %v573_v19, %v581_v20  ;;  %v8799_v32 = vcombine.low %v572_v15, %v580_v17  ;;  %v676_v15 = vld [vmem:[#allocation4 + $0x670] sm:$0xff]  ;;  %v669_v17 = vld [vmem:[#allocation4 + $0x638] sm:$0xff] }
 0x137   : > { %2333 = vmatpush1.bf16.msra.mxu0 %v8939_v25  ;;  %2386 = vmatpush1.bf16.msra.mxu1 %v8941_v26  ;;  %v588_v25 = vld [vmem:[#allocation4 + $0x3b0] sm:$0xff] }
 0x138   : > { %2408 = vmatprep.subr.bf16.mxu0 %v8704_v27  ;;  %2461 = vmatprep.subr.bf16.mxu1 %v8706_v28  ;;  %v596_v26 = vld [vmem:[#allocation4 + $0x3f0] sm:$0xff]  ;;  %v2605_v27 = vrot.slane %v10433_v1, %v10461_v18  ;;  %v10466_v28 = vsub.s32 5, %v10428_v48 }
 0x139   : > { %v8815_v47 = vcombine.low %v588_v25, %v596_v26 }
 0x13a   : > { %2335 = vmatmul.mubr.bf16.vlgmr.msra.gmra.mrb[16].mxu0 %v10402_v53  ;;  %2388 = vmatmul.mubr.bf16.vlgmr.msra.gmra.mrb[16].mxu1 %v10402_v53  ;;  %v2609_v33 = vrot.slane %v10433_v1, %v10466_v28  ;;  %2686 = vst [vmem:[#allocation3 + $0xa0] sm:$0xff] %v2605_v27  ;;  %v693_v27 = vld [vmem:[#allocation4 + $0x6f8] sm:$0xff] }
 0x13b   : > { %2409 = vmatpush1.bf16.msra.mxu0 %v8703_v34  ;;  %2462 = vmatpush1.bf16.msra.mxu1 %v8705_v35  ;;  %v8801_v34 = vcombine.low %v573_v19, %v581_v20  ;;  %v8816_v35 = vcombine.high %v588_v25, %v596_v26  ;;  %v677_v19 = vld [vmem:[#allocation4 + $0x678] sm:$0xff]  ;;  %v692_v25 = vld [vmem:[#allocation4 + $0x6f0] sm:$0xff] }
 0x13c   : > { %2410 = vmatprep.subr.bf16.mxu0 %v8720_v36  ;;  %2463 = vmatprep.subr.bf16.mxu1 %v8722_v37  ;;  %v10471_v36 = vsub.s32 6, %v10428_v48  ;;  %v10474_v37 = vsub.s32 7, %v10428_v48  ;;  %2687 = vst [vmem:[#allocation3 + $0xa8] sm:$0xff] %v2609_v33  ;;  %v8832_v48 = vcombine.high %v604_v39, %v612_v40  ;;  %v685_v26 = vld [vmem:[#allocation4 + $0x6b8] sm:$0xff] }
 0x13d   : > { %2344 = vmatprep.mubr.bf16.mxu0 %v10410_v23  ;;  %2397 = vmatprep.mubr.bf16.mxu1 %v10410_v23  ;;  %v8914_v33 = vcombine.high %v685_v26, %v693_v27 }
 0x13f   : > { %2411 = vmatpush1.bf16.msra.mxu0 %v8719_v44  ;;  %2464 = vmatpush1.bf16.msra.mxu1 %v8721_v45  ;;  %v613_v44 = vld [vmem:[#allocation4 + $0x478] sm:$0xff]  ;;  %v2613_v45 = vrot.slane %v10433_v1, %v10471_v36 }
 0x140   : > { %2412 = vmatprep.subr.bf16.mxu0 %v8736_v46  ;;  %2465 = vmatprep.subr.bf16.mxu1 %v8738_v49  ;;  %v2617_v46 = vrot.slane %v10433_v1, %v10474_v37  ;;  %v8817_v49 = vcombine.low %v589_v29, %v597_v31  ;;  %v8834_v50 = vcombine.high %v605_v41, %v613_v44 }
 0x141   : > { %2688 = vst [vmem:[#allocation3 + $0xb0] sm:$0xff] %v2613_v45  ;;  %v8848_v1 = vcombine.high %v620_v51, %v628_v52  ;;  %v8897_v31 = vcombine.low %v669_v17, %v677_v19 }
 0x142   : > { %2345 = vmatmul.mubr.bf16.gmra.mrb[20].mxu0 %v10413_v30  ;;  %2398 = vmatmul.mubr.bf16.gmra.mrb[20].mxu1 %v10413_v30  ;;  %2689 = vst [vmem:[#allocation3 + $0xb8] sm:$0xff] %v2617_v46  ;;  %v716_v46 = vld [vmem:[#allocation4 + $0x7b0] sm:$0xff] }
 0x143   : > { %2413 = vmatpush1.bf16.msra.mxu0 %v8735_v56  ;;  %2466 = vmatpush1.bf16.msra.mxu1 %v8737_v57  ;;  %v8831_v56 = vcombine.low %v604_v39, %v612_v40  ;;  %v8833_v57 = vcombine.low %v605_v41, %v613_v44  ;;  %v709_v39 = vld [vmem:[#allocation4 + $0x778] sm:$0xff]  ;;  %v8913_v41 = vcombine.low %v685_v26, %v693_v27 }
 0x144   : > { %2414 = vmatprep.subr.bf16.mxu0 %v8752_v59  ;;  %2467 = vmatprep.subr.bf16.mxu1 %v8754_v60  ;;  %v8850_v59 = vcombine.high %v621_v54, %v629_v55  ;;  %v636_v60 = vld [vmem:[#allocation4 + $0x530] sm:$0xff] }
 0x145   : > { %2440 = vmatprep.mubr.bf16.mxu0 %v10396_v16  ;;  %2493 = vmatprep.mubr.bf16.mxu1 %v10396_v16  ;;  %v8785_v16 = vcombine.low %v557_v9, %v565_v10  ;;  %v661_v9 = vld [vmem:[#allocation4 + $0x5f8] sm:$0xff]  ;;  %v8863_v10 = vcombine.low %v636_v60, %v644_v61 }
 0x147   : > { %2415 = vmatpush1.bf16.msra.mxu0 %v8751_v3  ;;  %2468 = vmatpush1.bf16.msra.mxu1 %v8753_v4  ;;  %v8849_v3 = vcombine.low %v621_v54, %v629_v55  ;;  %v8864_v4 = vcombine.high %v636_v60, %v644_v61 }
 0x148   : > { %2416 = vmatprep.subr.bf16.mxu0 %v8768_v5  ;;  %2469 = vmatprep.subr.bf16.mxu1 %v8770_v6  ;;  %v8866_v5 = vcombine.high %v637_v62, %v645_v63  ;;  %v652_v6 = vld [vmem:[#allocation4 + $0x5b0] sm:$0xff] }
 0x149   : > { %v8879_v20 = vcombine.low %v652_v6, %v660_v7 }
 0x14b   : > { %2417 = vmatpush1.bf16.msra.mxu0 %v8767_v11  ;;  %2470 = vmatpush1.bf16.msra.mxu1 %v8769_v12  ;;  %v8865_v11 = vcombine.low %v637_v62, %v645_v63  ;;  %v8880_v12 = vcombine.high %v652_v6, %v660_v7 }
 0x14c   : > { %2418 = vmatprep.subr.bf16.mxu0 %v8784_v13  ;;  %2471 = vmatprep.subr.bf16.mxu1 %v8786_v14  ;;  %v8882_v13 = vcombine.high %v653_v8, %v661_v9  ;;  %v668_v14 = vld [vmem:[#allocation4 + $0x630] sm:$0xff] }
 0x14d   : > { %v8895_v29 = vcombine.low %v668_v14, %v676_v15 }
 0x14f   : > { %2419 = vmatpush1.bf16.msra.mxu0 %v8783_v21  ;;  %2472 = vmatpush1.bf16.msra.mxu1 %v8785_v16  ;;  %v8881_v21 = vcombine.low %v653_v8, %v661_v9  ;;  %v8896_v16 = vcombine.high %v668_v14, %v676_v15 }
 0x150   : > { %2420 = vmatprep.subr.bf16.mxu0 %v8800_v22  ;;  %2473 = vmatprep.subr.bf16.mxu1 %v8802_v24  ;;  %v8898_v22 = vcombine.high %v669_v17, %v677_v19  ;;  %v684_v24 = vld [vmem:[#allocation4 + $0x6b0] sm:$0xff] }
 0x151   : > { %v8911_v40 = vcombine.low %v684_v24, %v692_v25 }
 0x153   : > { %2421 = vmatpush1.bf16.msra.mxu0 %v8799_v32  ;;  %2474 = vmatpush1.bf16.msra.mxu1 %v8801_v34  ;;  %v8912_v32 = vcombine.high %v684_v24, %v692_v25  ;;  %v700_v34 = vld [vmem:[#allocation4 + $0x730] sm:$0xff] }
 0x154   : > { %2422 = vmatprep.subr.bf16.mxu0 %v8816_v35  ;;  %2475 = vmatprep.subr.bf16.mxu1 %v8818_v38  ;;  %v708_v35 = vld [vmem:[#allocation4 + $0x770] sm:$0xff]  ;;  %v701_v38 = vld [vmem:[#allocation4 + $0x738] sm:$0xff] }
 0x155   : > { %v8928_v44 = vcombine.high %v700_v34, %v708_v35  ;;  %v8930_v45 = vcombine.high %v701_v38, %v709_v39  ;;  %v8929_v51 = vcombine.low %v701_v38, %v709_v39 }
 0x157   : > { %2423 = vmatpush1.bf16.msra.mxu0 %v8815_v47  ;;  %2476 = vmatpush1.bf16.msra.mxu1 %v8817_v49  ;;  %v724_v47 = vld [vmem:[#allocation4 + $0x7f0] sm:$0xff]  ;;  %v717_v49 = vld [vmem:[#allocation4 + $0x7b8] sm:$0xff] }
 0x158   : > { %2424 = vmatprep.subr.bf16.mxu0 %v8832_v48  ;;  %2477 = vmatprep.subr.bf16.mxu1 %v8834_v50  ;;  %v725_v48 = vld [vmem:[#allocation4 + $0x7f8] sm:$0xff]  ;;  %v8927_v50 = vcombine.low %v700_v34, %v708_v35  ;;  %v8944_v52 = vcombine.high %v716_v46, %v724_v47  ;;  %v8943_v55 = vcombine.low %v716_v46, %v724_v47 }
 0x159   : > { %v8946_v54 = vcombine.high %v717_v49, %v725_v48  ;;  %v2707_v35 = vld [vmem:[#allocation8 + $0x48] sm:$0xff] }
 0x15b   : > { %2425 = vmatpush1.bf16.msra.mxu0 %v8831_v56  ;;  %2478 = vmatpush1.bf16.msra.mxu1 %v8833_v57  ;;  %v8945_v56 = vcombine.low %v717_v49, %v725_v48  ;;  %v2714_v48 = vld [vmem:[#allocation8 + $0x80] sm:$0xff] }
 0x15c   : > { %2426 = vmatprep.subr.bf16.mxu0 %v8848_v1  ;;  %2479 = vmatprep.subr.bf16.mxu1 %v8850_v59  ;;  %v10486_v1 = vld [vmem:[#allocation9 + $0x8] sm:$0xff] }
 0x15d   : > { %v2621_v61 = vrot.slane %v10486_v1, %v10431_v58  ;;  %v2625_v62 = vrot.slane %v10486_v1, %v10436_v2  ;;  %v2641_v46 = vrot.slane %v10486_v1, %v10466_v28 }
 0x15f   : > { %2427 = vmatpush1.bf16.msra.mxu0 %v8847_v0  ;;  %2480 = vmatpush1.bf16.msra.mxu1 %v8849_v3  ;;  %2690 = vst [vmem:[#allocation3 + $0xc0] sm:$0xff] %v2621_v61  ;;  %2691 = vst [vmem:[#allocation3 + $0xc8] sm:$0xff] %v2625_v62 }
 0x160   : > { %2428 = vmatprep.subr.bf16.mxu0 %v8864_v4  ;;  %2481 = vmatprep.subr.bf16.mxu1 %v8866_v5  ;;  %v10496_v5 = vld [vmem:[#allocation6] sm:$0xff]  ;;  %2695 = vst [vmem:[#allocation3 + $0xe8] sm:$0xff] %v2641_v46 }
 0x161   : > { %v733_v6 = vrot.slane %v10496_v5, %v10431_v58  ;;  %v737_v7 = vrot.slane %v10496_v5, %v10436_v2  ;;  %v741_v8 = vrot.slane %v10496_v5, %v10444_v42  ;;  %v745_v9 = vrot.slane %v10496_v5, %v10447_v43 }
 0x163   : > { %2429 = vmatpush1.bf16.msra.mxu0 %v8863_v10  ;;  %2482 = vmatpush1.bf16.msra.mxu1 %v8865_v11 }
 0x164   : > { %2430 = vmatprep.subr.bf16.mxu0 %v8880_v12  ;;  %2483 = vmatprep.subr.bf16.mxu1 %v8882_v13 }
 0x167   : > { %2431 = vmatpush1.bf16.msra.mxu0 %v8879_v20  ;;  %2484 = vmatpush1.bf16.msra.mxu1 %v8881_v21 }
 0x168   : > { %2432 = vmatprep.subr.bf16.mxu0 %v8896_v16  ;;  %2485 = vmatprep.subr.bf16.mxu1 %v8898_v22 }
 0x16b   : > { %2433 = vmatpush1.bf16.msra.mxu0 %v8895_v29  ;;  %2486 = vmatpush1.bf16.msra.mxu1 %v8897_v31  ;;  %v2698_v29 = vld [vmem:[#allocation8] sm:$0xff] }
 0x16c   : > { %2434 = vmatprep.subr.bf16.mxu0 %v8912_v32  ;;  %2487 = vmatprep.subr.bf16.mxu1 %v8914_v33  ;;  %v2706_v31 = vld [vmem:[#allocation8 + $0x40] sm:$0xff]  ;;  %v2699_v32 = vld [vmem:[#allocation8 + $0x8] sm:$0xff] }
 0x16d   : > { %v10518_v33 = vcombine.low %v2698_v29, %v2706_v31  ;;  %v10520_v34 = vcombine.high %v2698_v29, %v2706_v31  ;;  %v10522_v38 = vcombine.low %v2699_v32, %v2707_v35  ;;  %v10524_v39 = vcombine.high %v2699_v32, %v2707_v35  ;;  %v2747_v35 = vld [vmem:[#allocation8 + $0x188] sm:$0xff] }
 0x16f   : > { %2435 = vmatpush1.bf16.msra.mxu0 %v8911_v40  ;;  %2488 = vmatpush1.bf16.msra.mxu1 %v8913_v41  ;;  %v2637_v41 = vrot.slane %v10486_v1, %v10461_v18 }
 0x170   : > { %2436 = vmatprep.subr.bf16.mxu0 %v8928_v44  ;;  %2489 = vmatprep.subr.bf16.mxu1 %v8930_v45 }
 0x171   : > { %2694 = vst [vmem:[#allocation3 + $0xe0] sm:$0xff] %v2637_v41 }
 0x173   : > { %2437 = vmatpush1.bf16.msra.mxu0 %v8927_v50  ;;  %2490 = vmatpush1.bf16.msra.mxu1 %v8929_v51  ;;  %v2722_v50 = vld [vmem:[#allocation8 + $0xc0] sm:$0xff]  ;;  %v2715_v51 = vld [vmem:[#allocation8 + $0x88] sm:$0xff] }
 0x174   : > { %2438 = vmatprep.subr.bf16.mxu0 %v8944_v52  ;;  %2491 = vmatprep.subr.bf16.mxu1 %v8946_v54 }
 0x177   : > { %2439 = vmatpush1.bf16.msra.mxu0 %v8943_v55  ;;  %2492 = vmatpush1.bf16.msra.mxu1 %v8945_v56  ;;  %v10534_v55 = vcombine.low %v2714_v48, %v2722_v50  ;;  %v10536_v56 = vcombine.high %v2714_v48, %v2722_v50  ;;  %v2762_v50 = vld [vmem:[#allocation8 + $0x200] sm:$0xff] }
 0x178   : > { %6215 = vmatprep.subr.bf16.mxu0 %v10520_v34  ;;  %6301 = vmatprep.subr.bf16.mxu1 %v10524_v39 }
 0x17a   : > { %2441 = vmatmul.mubr.bf16.vlgmr.msra.gmra.mrb[24].mxu0 %v10402_v53  ;;  %2494 = vmatmul.mubr.bf16.vlgmr.msra.gmra.mrb[24].mxu1 %v10402_v53 }
 0x17b   : > { %2450 = vmatprep.mubr.bf16.mxu0 %v10410_v23  ;;  %2503 = vmatprep.mubr.bf16.mxu1 %v10410_v23  ;;  %v2629_v23 = vrot.slane %v10486_v1, %v10444_v42 }
 0x17c   : > { %6216 = vmatpush1.bf16.msra.mxu0 %v10518_v33  ;;  %6302 = vmatpush1.bf16.msra.mxu1 %v10522_v38 }
 0x17d   : > { %2692 = vst [vmem:[#allocation3 + $0xd0] sm:$0xff] %v2629_v23  ;;  %v749_v23 = vrot.slane %v10496_v5, %v10461_v18  ;;  %6217 = vmatprep.subr.bf16.mxu0 %v10536_v56 }
 0x180   : > { %6218 = vmatpush1.bf16.msra.mxu0 %v10534_v55 }
 0x182   : > { %2451 = vmatmul.mubr.bf16.gmra.mrb[28].mxu0 %v10413_v30  ;;  %2504 = vmatmul.mubr.bf16.gmra.mrb[28].mxu1 %v10413_v30  ;;  %v2633_v30 = vrot.slane %v10486_v1, %v10447_v43 }
 0x184   : > { %2693 = vst [vmem:[#allocation3 + $0xd8] sm:$0xff] %v2633_v30  ;;  %v753_v30 = vrot.slane %v10496_v5, %v10466_v28 }
 0x18d   : > { %v2124_v57 = vpop.f32.mrb[0].mxu0  ;;  %v2177_v60 = vpop.f32.mrb[0].mxu1 }
 0x18e   : > { %v2126_v59 = vpop.f32.mrb[1].mxu0  ;;  %v2179_v63 = vpop.f32.mrb[1].mxu1  ;;  %v2723_v57 = vld [vmem:[#allocation8 + $0xc8] sm:$0xff] }
 0x18f   : > { %v2128_v53 = vpop.f32.mrb[2].mxu0  ;;  %v2181_v3 = vpop.f32.mrb[2].mxu1  ;;  %v2645_v59 = vrot.slane %v10486_v1, %v10471_v36  ;;  %v10540_v61 = vcombine.low %v2715_v51, %v2723_v57  ;;  %v10542_v62 = vcombine.high %v2715_v51, %v2723_v57  ;;  %v2730_v63 = vld [vmem:[#allocation8 + $0x100] sm:$0xff]  ;;  %v2763_v57 = vld [vmem:[#allocation8 + $0x208] sm:$0xff] }
 0x190   : > { %v2130_v0 = vpop.f32.mrb[3].mxu0  ;;  %v2183_v4 = vpop.f32.mrb[3].mxu1  ;;  %v2649_v53 = vrot.slane %v10486_v1, %v10474_v37  ;;  %v2731_v3 = vld [vmem:[#allocation8 + $0x108] sm:$0xff]  ;;  %v2770_v51 = vld [vmem:[#allocation8 + $0x240] sm:$0xff] }
 0x191   : > { %v2738_v0 = vld [vmem:[#allocation8 + $0x140] sm:$0xff]  ;;  %2696 = vst [vmem:[#allocation3 + $0xf0] sm:$0xff] %v2645_v59  ;;  %6303 = vmatprep.subr.bf16.mxu1 %v10542_v62  ;;  %v2771_v59 = vld [vmem:[#allocation8 + $0x248] sm:$0xff] }
 0x192   : > { %v10551_v4 = vcombine.high %v2730_v63, %v2738_v0  ;;  %2697 = vst [vmem:[#allocation3 + $0xf8] sm:$0xff] %v2649_v53  ;;  %v10557_v1 = vcombine.low %v2730_v63, %v2738_v0  ;;  %6304 = vmatpush1.bf16.msra.mxu1 %v10540_v61  ;;  %v10597_v53 = vcombine.high %v2763_v57, %v2771_v59  ;;  %v2786_v63 = vld [vmem:[#allocation8 + $0x2c0] sm:$0xff]  ;;  %v2779_v0 = vld [vmem:[#allocation8 + $0x288] sm:$0xff] }
 0x194   : > { %13648 = vst [vmem:[#allocation14_spill] sm:$0xff] %v10557_v1  ;;  %6219 = vmatprep.subr.bf16.mxu0 %v10551_v4  ;;  %13657 = vst [vmem:[#allocation23_spill] sm:$0xff] %v10597_v53 }
 0x195   : > { %v2134_v10 = vpop.f32.mrb[4].mxu0  ;;  %v2187_v13 = vpop.f32.mrb[4].mxu1  ;;  %6220 = vmatpush1.bf16.msra.mxu0 %v10557_v1 }
 0x196   : > { %v10506_v11 = vadd.f32 %v2134_v10, %v733_v6  ;;  %v2136_v12 = vpop.f32.mrb[5].mxu0  ;;  %v10510_v17 = vadd.f32 %v2187_v13, %v741_v8  ;;  %v2189_v19 = vpop.f32.mrb[5].mxu1 }
 0x197   : > { %v10508_v14 = vadd.f32 %v2136_v12, %v737_v7  ;;  %v2138_v15 = vpop.f32.mrb[6].mxu0  ;;  %v10513_v16 = vadd.f32 %v2189_v19, %v745_v9  ;;  %v2191_v22 = vpop.f32.mrb[6].mxu1 }
 0x198   : > { %2546 = vst [vmem:[#allocation3 + $0x100] sm:$0xff] %v10506_v11  ;;  %v2139_v20 = vadd.f32 %v2138_v15, %v733_v6  ;;  %v2140_v21 = vpop.f32.mrb[7].mxu0  ;;  %2548 = vst [vmem:[#allocation3 + $0x110] sm:$0xff] %v10510_v17  ;;  %v2192_v25 = vadd.f32 %v2191_v22, %v741_v8  ;;  %v2193_v26 = vpop.f32.mrb[7].mxu1  ;;  %v2739_v6 = vld [vmem:[#allocation8 + $0x148] sm:$0xff] }
 0x199   : > { %2547 = vst [vmem:[#allocation3 + $0x108] sm:$0xff] %v10508_v14  ;;  %v2141_v24 = vadd.f32 %v2140_v21, %v737_v7  ;;  %2549 = vst [vmem:[#allocation3 + $0x118] sm:$0xff] %v10513_v16  ;;  %v2194_v27 = vadd.f32 %v2193_v26, %v745_v9  ;;  %v757_v7 = vrot.slane %v10496_v5, %v10471_v36 }
 0x19a   : > { %2562 = vst [vmem:[#allocation3 + $0x180] sm:$0xff] %v2139_v20  ;;  %2564 = vst [vmem:[#allocation3 + $0x190] sm:$0xff] %v2192_v25  ;;  %v10559_v8 = vcombine.high %v2731_v3, %v2739_v6  ;;  %v761_v9 = vrot.slane %v10496_v5, %v10474_v37  ;;  %v10565_v10 = vcombine.low %v2731_v3, %v2739_v6  ;;  %v2746_v5 = vld [vmem:[#allocation8 + $0x180] sm:$0xff]  ;;  %v2787_v3 = vld [vmem:[#allocation8 + $0x2c8] sm:$0xff] }
 0x19b   : > { %2563 = vst [vmem:[#allocation3 + $0x188] sm:$0xff] %v2141_v24  ;;  %2565 = vst [vmem:[#allocation3 + $0x198] sm:$0xff] %v2194_v27  ;;  %v2754_v25 = vld [vmem:[#allocation8 + $0x1c0] sm:$0xff] }
 0x19c   : > { %13649 = vst [vmem:[#allocation15_spill] sm:$0xff] %v10559_v8  ;;  %13650 = vst [vmem:[#allocation16_spill] sm:$0xff] %v10565_v10  ;;  %6305 = vmatprep.subr.bf16.mxu1 %v10559_v8  ;;  %v10579_v32 = vcombine.high %v2746_v5, %v2754_v25  ;;  %v2794_v6 = vld [vmem:[#allocation8 + $0x300] sm:$0xff] }
 0x19d   : > { %6306 = vmatpush1.bf16.msra.mxu1 %v10565_v10 }
 0x19e   : > { %13651 = vst [vmem:[#allocation17_spill] sm:$0xff] %v10579_v32  ;;  %6221 = vmatprep.subr.bf16.mxu0 %v10579_v32 }
 0x1cd   : > { %v2230_v40 = vpop.f32.mrb[8].mxu0  ;;  %v2283_v45 = vpop.f32.mrb[8].mxu1 }
 0x1ce   : > { %v2232_v44 = vpop.f32.mrb[9].mxu0  ;;  %v2285_v49 = vpop.f32.mrb[9].mxu1  ;;  %v2755_v40 = vld [vmem:[#allocation8 + $0x1c8] sm:$0xff] }
 0x1cf   : > { %v2234_v47 = vpop.f32.mrb[10].mxu0  ;;  %v2287_v54 = vpop.f32.mrb[10].mxu1  ;;  %v10587_v49 = vcombine.low %v2747_v35, %v2755_v40  ;;  %v10589_v48 = vcombine.high %v2747_v35, %v2755_v40  ;;  %v2819_v35 = vld [vmem:[#allocation8 + $0x3c8] sm:$0xff] }
 0x1d0   : > { %v2236_v52 = vpop.f32.mrb[11].mxu0  ;;  %v2289_v60 = vpop.f32.mrb[11].mxu1  ;;  %v10584_v47 = vcombine.low %v2746_v5, %v2754_v25  ;;  %v10594_v54 = vcombine.high %v2762_v50, %v2770_v51  ;;  %v2810_v5 = vld [vmem:[#allocation8 + $0x380] sm:$0xff] }
 0x1d1   : > { %13653 = vst [vmem:[#allocation19_spill] sm:$0xff] %v10587_v49  ;;  %13654 = vst [vmem:[#allocation20_spill] sm:$0xff] %v10589_v48  ;;  %v10592_v52 = vcombine.low %v2762_v50, %v2770_v51  ;;  %v2778_v60 = vld [vmem:[#allocation8 + $0x280] sm:$0xff]  ;;  %6307 = vmatprep.subr.bf16.mxu1 %v10589_v48  ;;  %v2827_v51 = vld [vmem:[#allocation8 + $0x408] sm:$0xff] }
 0x1d2   : > { %13652 = vst [vmem:[#allocation18_spill] sm:$0xff] %v10584_v47  ;;  %6222 = vmatpush1.bf16.msra.mxu0 %v10584_v47  ;;  %13656 = vst [vmem:[#allocation22_spill] sm:$0xff] %v10594_v54  ;;  %6308 = vmatpush1.bf16.msra.mxu1 %v10587_v49  ;;  %v2818_v25 = vld [vmem:[#allocation8 + $0x3c0] sm:$0xff] }
 0x1d3   : > { %13655 = vst [vmem:[#allocation21_spill] sm:$0xff] %v10592_v52  ;;  %6223 = vmatprep.subr.bf16.mxu0 %v10594_v54  ;;  %6309 = vmatprep.subr.bf16.mxu1 %v10597_v53  ;;  %v10624_v40 = vcombine.high %v2810_v5, %v2818_v25  ;;  %v10633_v50 = vcombine.low %v2810_v5, %v2818_v25 }
 0x1d5   : > { %v2240_v12 = vpop.f32.mrb[12].mxu0  ;;  %v2293_v15 = vpop.f32.mrb[12].mxu1  ;;  %13666 = vst [vmem:[#allocation32_spill] sm:$0xff] %v10624_v40  ;;  %13669 = vst [vmem:[#allocation35_spill] sm:$0xff] %v10633_v50 }
 0x1d6   : > { %v10568_v13 = vadd.f32 %v2240_v12, %v749_v23  ;;  %v2242_v19 = vpop.f32.mrb[13].mxu0  ;;  %v10570_v20 = vadd.f32 %v2293_v15, %v757_v7  ;;  %v2295_v22 = vpop.f32.mrb[13].mxu1  ;;  %6224 = vmatpush1.bf16.msra.mxu0 %v10592_v52  ;;  %v10609_v12 = vcombine.low %v2778_v60, %v2786_v63  ;;  %v2795_v15 = vld [vmem:[#allocation8 + $0x308] sm:$0xff] }
 0x1d7   : > { %v10572_v21 = vadd.f32 %v2242_v19, %v753_v30  ;;  %v2244_v24 = vpop.f32.mrb[14].mxu0  ;;  %v10576_v26 = vadd.f32 %v2295_v22, %v761_v9  ;;  %v2297_v29 = vpop.f32.mrb[14].mxu1  ;;  %v2803_v19 = vld [vmem:[#allocation8 + $0x348] sm:$0xff] }
 0x1d8   : > { %2550 = vst [vmem:[#allocation3 + $0x120] sm:$0xff] %v10568_v13  ;;  %v2245_v27 = vadd.f32 %v2244_v24, %v749_v23  ;;  %v2246_v31 = vpop.f32.mrb[15].mxu0  ;;  %2552 = vst [vmem:[#allocation3 + $0x130] sm:$0xff] %v10570_v20  ;;  %v2298_v41 = vadd.f32 %v2297_v29, %v757_v7  ;;  %v2299_v45 = vpop.f32.mrb[15].mxu1  ;;  %v10601_v23 = vcombine.low %v2763_v57, %v2771_v59  ;;  %v2802_v7 = vld [vmem:[#allocation8 + $0x340] sm:$0xff]  ;;  %v2835_v57 = vld [vmem:[#allocation8 + $0x448] sm:$0xff] }
 0x1d9   : > { %2551 = vst [vmem:[#allocation3 + $0x128] sm:$0xff] %v10572_v21  ;;  %v2247_v44 = vadd.f32 %v2246_v31, %v753_v30  ;;  %2553 = vst [vmem:[#allocation3 + $0x138] sm:$0xff] %v10576_v26  ;;  %v2300_v46 = vadd.f32 %v2299_v45, %v761_v9  ;;  %v10603_v30 = vcombine.high %v2778_v60, %v2786_v63  ;;  %v2811_v31 = vld [vmem:[#allocation8 + $0x388] sm:$0xff]  ;;  %v2834_v45 = vld [vmem:[#allocation8 + $0x440] sm:$0xff] }
 0x1da   : > { %2566 = vst [vmem:[#allocation3 + $0x1a0] sm:$0xff] %v2245_v27  ;;  %2568 = vst [vmem:[#allocation3 + $0x1b0] sm:$0xff] %v2298_v41  ;;  %v10606_v9 = vcombine.high %v2779_v0, %v2787_v3  ;;  %v10612_v22 = vcombine.high %v2794_v6, %v2802_v7  ;;  %6310 = vmatpush1.bf16.msra.mxu1 %v10601_v23  ;;  %v10615_v24 = vcombine.low %v2779_v0, %v2787_v3  ;;  %v2842_v63 = vld [vmem:[#allocation8 + $0x480] sm:$0xff] }
 0x1db   : > { %2567 = vst [vmem:[#allocation3 + $0x1a8] sm:$0xff] %v2247_v44  ;;  %2569 = vst [vmem:[#allocation3 + $0x1b8] sm:$0xff] %v2300_v46  ;;  %6225 = vmatprep.subr.bf16.mxu0 %v10603_v30  ;;  %v10618_v27 = vcombine.high %v2795_v15, %v2803_v19  ;;  %v10621_v29 = vcombine.low %v2794_v6, %v2802_v7  ;;  %v10627_v41 = vcombine.low %v2795_v15, %v2803_v19  ;;  %v2826_v44 = vld [vmem:[#allocation8 + $0x400] sm:$0xff]  ;;  %v3210_v6 = vld [vmem:[#allocation3 + $0x80] sm:$0xc0] }
 0x1dc   : > { %13658 = vst [vmem:[#allocation24_spill] sm:$0xff] %v10601_v23  ;;  %13659 = vst [vmem:[#allocation25_spill] sm:$0xff] %v10603_v30  ;;  %6311 = vmatprep.subr.bf16.mxu1 %v10606_v9  ;;  %6226 = vmatpush1.bf16.msra.mxu0 %v10609_v12  ;;  %v10630_v46 = vcombine.high %v2811_v31, %v2819_v35  ;;  %v10636_v59 = vcombine.high %v2826_v44, %v2834_v45  ;;  %v2850_v0 = vld [vmem:[#allocation8 + $0x4c0] sm:$0xff]  ;;  %v2843_v15 = vld [vmem:[#allocation8 + $0x488] sm:$0xff] }
 0x1dd   : > { %13660 = vst [vmem:[#allocation26_spill] sm:$0xff] %v10606_v9  ;;  %13661 = vst [vmem:[#allocation27_spill] sm:$0xff] %v10609_v12  ;;  %6227 = vmatprep.subr.bf16.mxu0 %v10612_v22  ;;  %v10639_v60 = vcombine.low %v2811_v31, %v2819_v35  ;;  %v10642_v3 = vcombine.high %v2827_v51, %v2835_v57  ;;  %v10645_v7 = vcombine.low %v2826_v44, %v2834_v45  ;;  %v2851_v19 = vld [vmem:[#allocation8 + $0x4c8] sm:$0xff]  ;;  %v2858_v31 = vld [vmem:[#allocation8 + $0x500] sm:$0xff] }
 0x1de   : > { %13662 = vst [vmem:[#allocation28_spill] sm:$0xff] %v10612_v22  ;;  %13663 = vst [vmem:[#allocation29_spill] sm:$0xff] %v10615_v24  ;;  %6312 = vmatpush1.bf16.msra.mxu1 %v10615_v24  ;;  %v10648_v5 = vcombine.high %v2842_v63, %v2850_v0  ;;  %v10651_v25 = vcombine.low %v2827_v51, %v2835_v57  ;;  %v2866_v35 = vld [vmem:[#allocation8 + $0x540] sm:$0xff]  ;;  %v10658_v45 = vcombine.low %v2842_v63, %v2850_v0 }
 0x1df   : > { %13664 = vst [vmem:[#allocation30_spill] sm:$0xff] %v10618_v27  ;;  %13665 = vst [vmem:[#allocation31_spill] sm:$0xff] %v10621_v29  ;;  %6313 = vmatprep.subr.bf16.mxu1 %v10618_v27  ;;  %v3212_v44 = vld [vmem:[#allocation3 + $0x90] sm:$0xc0]  ;;  %v10661_v51 = vcombine.high %v2858_v31, %v2866_v35  ;;  %v3242_v27 = vld [vmem:[#allocation3 + $0x180] sm:$0x3f] }
 0x1e0   : > { %13667 = vst [vmem:[#allocation33_spill] sm:$0xff] %v10627_v41  ;;  %13668 = vst [vmem:[#allocation34_spill] sm:$0xff] %v10630_v46  ;;  %6228 = vmatpush1.bf16.msra.mxu0 %v10621_v29  ;;  %v3260_v63 = vpack.c.bf16 %v10510_v17, %v3212_v44  ;;  %v3274_v17 = vpack.c.bf16 %v3242_v27, %v3242_v27  ;;  %v3245_v44 = vld [vmem:[#allocation3 + $0x198] sm:$0x3f]  ;;  %v2890_v22 = vld [vmem:[#allocation8 + $0x600] sm:$0xff] }
 0x1e1   : > { %6229 = vmatprep.subr.bf16.mxu0 %v10624_v40  ;;  %13670 = vst [vmem:[#allocation36_spill] sm:$0xff] %v10636_v59  ;;  %13671 = vst [vmem:[#allocation37_spill] sm:$0xff] %v10639_v60  ;;  %v3258_v40 = vpack.c.bf16 %v10506_v11, %v3210_v6  ;;  %v10665_v11 = vcombine.low %v2843_v15, %v2851_v19  ;;  %v2874_v6 = vld [vmem:[#allocation8 + $0x580] sm:$0xff]  ;;  %v3277_v12 = vpack.c.bf16 %v3245_v44, %v3245_v44 }
 0x1e2   : > { %6314 = vmatpush1.bf16.msra.mxu1 %v10627_v41  ;;  %13672 = vst [vmem:[#allocation38_spill] sm:$0xff] %v10642_v3  ;;  %13673 = vst [vmem:[#allocation39_spill] sm:$0xff] %v10645_v7  ;;  %v2867_v41 = vld [vmem:[#allocation8 + $0x548] sm:$0xff]  ;;  %v8949_v24 = vmul.bf16 3216621497, %v3260_v63 }
 0x1e3   : > { %6315 = vmatprep.subr.bf16.mxu1 %v10630_v46  ;;  %13674 = vst [vmem:[#allocation40_spill] sm:$0xff] %v10648_v5  ;;  %13675 = vst [vmem:[#allocation41_spill] sm:$0xff] %v10651_v25  ;;  %v3211_v46 = vld [vmem:[#allocation3 + $0x88] sm:$0xc0]  ;;  %v8947_v29 = vmul.bf16 3216621497, %v3258_v40 }
 0x1e4   : > { %6230 = vmatpush1.bf16.msra.mxu0 %v10633_v50  ;;  %v10655_v50 = vcombine.high %v2843_v15, %v2851_v19  ;;  %13677 = vst [vmem:[#allocation43_spill] sm:$0xff] %v10658_v45  ;;  %13678 = vst [vmem:[#allocation44_spill] sm:$0xff] %v10661_v51  ;;  %v3259_v57 = vpack.c.bf16 %v10508_v14, %v3211_v46  ;;  %v2875_v14 = vld [vmem:[#allocation8 + $0x588] sm:$0xff]  ;;  %v3244_v19 = vld [vmem:[#allocation3 + $0x190] sm:$0x3f] }
 0x1e5   : > { %6231 = vmatprep.subr.bf16.mxu0 %v10636_v59  ;;  %v2859_v59 = vld [vmem:[#allocation8 + $0x508] sm:$0xff]  ;;  %13679 = vst [vmem:[#allocation45_spill] sm:$0xff] %v10665_v11  ;;  %9687 = vpow.bf16 %v8947_v29 }
 0x1e6   : > { %6316 = vmatpush1.bf16.msra.mxu1 %v10639_v60  ;;  %13676 = vst [vmem:[#allocation42_spill] sm:$0xff] %v10655_v50  ;;  %v3213_v60 = vld [vmem:[#allocation3 + $0x98] sm:$0xc0]  ;;  %v10669_v0 = vcombine.high %v2859_v59, %v2867_v41 }
 0x1e7   : > { %6317 = vmatprep.subr.bf16.mxu1 %v10642_v3  ;;  %v2882_v3 = vld [vmem:[#allocation8 + $0x5c0] sm:$0xff]  ;;  %v2883_v46 = vld [vmem:[#allocation8 + $0x5c8] sm:$0xff]  ;;  %v3261_v15 = vpack.c.bf16 %v10513_v16, %v3213_v60  ;;  %v3276_v60 = vpack.c.bf16 %v3244_v19, %v3244_v19 }
 0x1e8   : > { %6232 = vmatpush1.bf16.msra.mxu0 %v10645_v7  ;;  %13680 = vst [vmem:[#allocation46_spill] sm:$0xff] %v10669_v0  ;;  %v10672_v7 = vcombine.low %v2858_v31, %v2866_v35  ;;  %v10676_v40 = vcombine.high %v2874_v6, %v2882_v3  ;;  %v3214_v35 = vld [vmem:[#allocation3 + $0xa0] sm:$0xc0]  ;;  %v10682_v16 = vcombine.high %v2875_v14, %v2883_v46  ;;  %v3217_v63 = vld [vmem:[#allocation3 + $0xb8] sm:$0xc0] }
 0x1e9   : > { %6233 = vmatprep.subr.bf16.mxu0 %v10648_v5  ;;  %v3243_v5 = vld [vmem:[#allocation3 + $0x188] sm:$0x3f]  ;;  %v10685_v27 = vcombine.low %v2874_v6, %v2882_v3  ;;  %v10692_v19 = vcombine.low %v2875_v14, %v2883_v46  ;;  %v2906_v3 = vld [vmem:[#allocation8 + $0x680] sm:$0xff]  ;;  %v2907_v14 = vld [vmem:[#allocation8 + $0x688] sm:$0xff] }
 0x1ea   : > { %6318 = vmatpush1.bf16.msra.mxu1 %v10651_v25  ;;  %13681 = vst [vmem:[#allocation47_spill] sm:$0xff] %v10672_v7  ;;  %13682 = vst [vmem:[#allocation48_spill] sm:$0xff] %v10676_v40  ;;  %v8948_v25 = vmul.bf16 3216621497, %v3259_v57  ;;  %v3275_v31 = vpack.c.bf16 %v3243_v5, %v3243_v5  ;;  %v2891_v57 = vld [vmem:[#allocation8 + $0x608] sm:$0xff]  ;;  %v2914_v6 = vld [vmem:[#allocation8 + $0x6c0] sm:$0xff] }
 0x1eb   : > { %6319 = vmatprep.subr.bf16.mxu1 %v10655_v50  ;;  %v10679_v50 = vcombine.low %v2859_v59, %v2867_v41  ;;  %13684 = vst [vmem:[#allocation50_spill] sm:$0xff] %v10682_v16  ;;  %13685 = vst [vmem:[#allocation51_spill] sm:$0xff] %v10685_v27  ;;  %v3215_v41 = vld [vmem:[#allocation3 + $0xa8] sm:$0xc0]  ;;  %v8950_v59 = vmul.bf16 3216621497, %v3261_v15 }
 0x1ec   : > { %6234 = vmatpush1.bf16.msra.mxu0 %v10658_v45  ;;  %v2898_v45 = vld [vmem:[#allocation8 + $0x640] sm:$0xff]  ;;  %9689 = vpow.bf16 %v8948_v25  ;;  %v8955_v5 = vmul.bf16 3216621497, %v3274_v17  ;;  %13687 = vst [vmem:[#allocation53_spill] sm:$0xff] %v10692_v19  ;;  %v3263_v25 = vpack.c.bf16 %v10572_v21, %v3215_v41  ;;  %v3246_v17 = vld [vmem:[#allocation3 + $0x1a0] sm:$0x3f] }
 0x1ed   : > { %6235 = vmatprep.subr.bf16.mxu0 %v10661_v51  ;;  %13683 = vst [vmem:[#allocation49_spill] sm:$0xff] %v10679_v50  ;;  %v3216_v51 = vld [vmem:[#allocation3 + $0xb0] sm:$0xc0]  ;;  %v10688_v29 = vcombine.high %v2890_v22, %v2898_v45  ;;  %9691 = vpow.bf16 %v8949_v24  ;;  %v2915_v46 = vld [vmem:[#allocation8 + $0x6c8] sm:$0xff]  ;;  %v3265_v24 = vpack.c.bf16 %v10576_v26, %v3217_v63  ;;  %v3248_v41 = vld [vmem:[#allocation3 + $0x1b0] sm:$0x3f] }
 0x1ee   : > { %6320 = vmatpush1.bf16.msra.mxu1 %v10665_v11  ;;  %v2899_v11 = vld [vmem:[#allocation8 + $0x648] sm:$0xff]  ;;  %v3264_v15 = vpack.c.bf16 %v10570_v20, %v3216_v51  ;;  %9693 = vpow.bf16 %v8950_v59  ;;  %v10704_v20 = vcombine.high %v2906_v3, %v2914_v6  ;;  %v8952_v26 = vmul.bf16 3216621497, %v3263_v25  ;;  %v3247_v59 = vld [vmem:[#allocation3 + $0x1a8] sm:$0x3f]  ;;  %v2938_v25 = vld [vmem:[#allocation8 + $0x780] sm:$0xff] }
 0x1ef   : > { %6321 = vmatprep.subr.bf16.mxu1 %v10669_v0  ;;  %13686 = vst [vmem:[#allocation52_spill] sm:$0xff] %v10688_v29  ;;  %v3262_v0 = vpack.c.bf16 %v10568_v13, %v3214_v35  ;;  %v10696_v44 = vcombine.high %v2891_v57, %v2899_v11  ;;  %v10700_v13 = vcombine.low %v2890_v22, %v2898_v45  ;;  %v8958_v35 = vmul.bf16 3216621497, %v3277_v12 }
 0x1f0   : > { %6236 = vmatpush1.bf16.msra.mxu0 %v10672_v7  ;;  %v8956_v7 = vmul.bf16 3216621497, %v3275_v31  ;;  %13690 = vst [vmem:[#allocation56_spill] sm:$0xff] %v10704_v20  ;;  %9695 = vpow.bf16 %v8955_v5  ;;  %v10707_v21 = vcombine.low %v2891_v57, %v2899_v11  ;;  %v2922_v31 = vld [vmem:[#allocation8 + $0x700] sm:$0xff]  ;;  %v8953_v22 = vmul.bf16 3216621497, %v3264_v15  ;;  %v9688_v63 = vpop.eup %9687 }
 0x1f1   : > { %6237 = vmatprep.subr.bf16.mxu0 %v10676_v40  ;;  %13688 = vst [vmem:[#allocation54_spill] sm:$0xff] %v10696_v44  ;;  %v8957_v40 = vmul.bf16 3216621497, %v3276_v60  ;;  %13689 = vst [vmem:[#allocation55_spill] sm:$0xff] %v10700_v13  ;;  %v8951_v51 = vmul.bf16 3216621497, %v3262_v0  ;;  %v3278_v45 = vpack.c.bf16 %v3246_v17, %v3246_v17  ;;  %v10710_v12 = vcombine.high %v2907_v14, %v2915_v46 }
 0x1f2   : > { %6322 = vmatpush1.bf16.msra.mxu1 %v10679_v50  ;;  %13691 = vst [vmem:[#allocation57_spill] sm:$0xff] %v10707_v21  ;;  %v2930_v60 = vld [vmem:[#allocation8 + $0x740] sm:$0xff]  ;;  %9697 = vpow.bf16 %v8956_v7  ;;  %v10713_v0 = vcombine.low %v2906_v3, %v2914_v6  ;;  %v2923_v5 = vld [vmem:[#allocation8 + $0x708] sm:$0xff]  ;;  %v8954_v57 = vmul.bf16 3216621497, %v3265_v24  ;;  %v3280_v15 = vpack.c.bf16 %v3248_v41, %v3248_v41 }
 0x1f3   : > { %6323 = vmatprep.subr.bf16.mxu1 %v10682_v16  ;;  %13692 = vst [vmem:[#allocation58_spill] sm:$0xff] %v10710_v12  ;;  %9699 = vpow.bf16 %v8957_v40  ;;  %v2931_v11 = vld [vmem:[#allocation8 + $0x748] sm:$0xff]  ;;  %v10716_v7 = vcombine.high %v2922_v31, %v2930_v60  ;;  %v10719_v40 = vcombine.low %v2907_v14, %v2915_v46  ;;  %v2946_v17 = vld [vmem:[#allocation8 + $0x7c0] sm:$0xff]  ;;  %v8959_v3 = vmul.bf16 3216621497, %v3278_v45 }
 0x1f4   : > { %6238 = vmatpush1.bf16.msra.mxu0 %v10685_v27  ;;  %13693 = vst [vmem:[#allocation59_spill] sm:$0xff] %v10713_v0  ;;  %9701 = vpow.bf16 %v8958_v35  ;;  %v3279_v6 = vpack.c.bf16 %v3247_v59, %v3247_v59  ;;  %v10722_v35 = vcombine.high %v2923_v5, %v2931_v11  ;;  %v10725_v24 = vcombine.low %v2922_v31, %v2930_v60  ;;  %v2947_v41 = vld [vmem:[#allocation8 + $0x7c8] sm:$0xff] }
 0x1f5   : > { %6239 = vmatprep.subr.bf16.mxu0 %v10688_v29  ;;  %13694 = vst [vmem:[#allocation60_spill] sm:$0xff] %v10716_v7  ;;  %9703 = vpow.bf16 %v8951_v51  ;;  %13695 = vst [vmem:[#allocation61_spill] sm:$0xff] %v10719_v40  ;;  %v2939_v51 = vld [vmem:[#allocation8 + $0x788] sm:$0xff]  ;;  %v3354_v14 = vadd.bf16 1065369472, %v9688_v63  ;;  %v10728_v46 = vcombine.high %v2938_v25, %v2946_v17 }
 0x1f6   : > { %6324 = vmatpush1.bf16.msra.mxu1 %v10692_v19  ;;  %9705 = vpow.bf16 %v8953_v22  ;;  %13696 = vst [vmem:[#allocation62_spill] sm:$0xff] %v10722_v35  ;;  %13697 = vst [vmem:[#allocation63_spill] sm:$0xff] %v10725_v24  ;;  %v8961_v45 = vmul.bf16 3216621497, %v3280_v15  ;;  %v10734_v31 = vcombine.high %v2939_v51, %v2947_v41 }
 0x1f7   : > { %6325 = vmatprep.subr.bf16.mxu1 %v10696_v44  ;;  %9707 = vpow.bf16 %v8952_v26  ;;  %13698 = vst [vmem:[#allocation64_spill] sm:$0xff] %v10728_v46  ;;  %v8960_v26 = vmul.bf16 3216621497, %v3279_v6 }
 0x1f8   : > { %6240 = vmatpush1.bf16.msra.mxu0 %v10700_v13  ;;  %v3249_v13 = vld [vmem:[#allocation3 + $0x1b8] sm:$0x3f]  ;;  %9709 = vpow.bf16 %v8954_v57  ;;  %13700 = vst [vmem:[#allocation66_spill] sm:$0xff] %v10734_v31  ;;  %v10737_v57 = vcombine.low %v2938_v25, %v2946_v17  ;;  %v2962_v25 = vld [vmem:[#allocation8 + $0x840] sm:$0xff] }
 0x1f9   : > { %6241 = vmatprep.subr.bf16.mxu0 %v10704_v20  ;;  %v9690_v20 = vpop.eup %9689  ;;  %v3281_v59 = vpack.c.bf16 %v3249_v13, %v3249_v13  ;;  %9711 = vpow.bf16 %v8959_v3  ;;  %v2955_v17 = vld [vmem:[#allocation8 + $0x808] sm:$0xff] }
 0x1fa   : > { %6326 = vmatpush1.bf16.msra.mxu1 %v10707_v21  ;;  %v9692_v22 = vpop.eup %9691  ;;  %v3355_v63 = vadd.bf16 1065369472, %v9690_v20  ;;  %13701 = vst [vmem:[#allocation67_spill] sm:$0xff] %v10737_v57  ;;  %9713 = vrcp.bf16 %v3354_v14  ;;  %v2954_v20 = vld [vmem:[#allocation8 + $0x800] sm:$0xff] }
 0x1fb   : > { %6327 = vmatprep.subr.bf16.mxu1 %v10710_v12  ;;  %v10731_v12 = vcombine.low %v2923_v5, %v2931_v11  ;;  %v9694_v60 = vpop.eup %9693  ;;  %v3356_v15 = vadd.bf16 1065369472, %v9692_v22  ;;  %9715 = vpow.bf16 %v8961_v45  ;;  %v8962_v5 = vmul.bf16 3216621497, %v3281_v59  ;;  %v2963_v45 = vld [vmem:[#allocation8 + $0x848] sm:$0xff] }
 0x1fc   : > { %6242 = vmatpush1.bf16.msra.mxu0 %v10713_v0  ;;  %v10741_v11 = vcombine.low %v2939_v51, %v2947_v41  ;;  %v3357_v6 = vadd.bf16 1065369472, %v9694_v60  ;;  %9717 = vpow.bf16 %v8960_v26  ;;  %v10745_v14 = vcombine.low %v2954_v20, %v2962_v25 }
 0x1fd   : > { %6243 = vmatprep.subr.bf16.mxu0 %v10716_v7  ;;  %13699 = vst [vmem:[#allocation65_spill] sm:$0xff] %v10731_v12  ;;  %v9696_v7 = vpop.eup %9695  ;;  %9719 = vrcp.bf16 %v3355_v63  ;;  %v10747_v22 = vcombine.high %v2954_v20, %v2962_v25  ;;  %v10749_v26 = vcombine.low %v2955_v17, %v2963_v45 }
 0x1fe   : > { %6328 = vmatpush1.bf16.msra.mxu1 %v10719_v40  ;;  %v9698_v13 = vpop.eup %9697  ;;  %13702 = vst [vmem:[#allocation68_spill] sm:$0xff] %v10741_v11  ;;  %13703 = vst [vmem:[#allocation69_spill] sm:$0xff] %v10745_v14  ;;  %v3362_v59 = vadd.bf16 1065369472, %v9696_v7  ;;  %9721 = vrcp.bf16 %v3356_v15  ;;  %v10755_v7 = vld [vmem:[#allocation6 + $0x8] sm:$0xff] }
 0x1ff   : > { %6329 = vmatprep.subr.bf16.mxu1 %v10722_v35  ;;  %v9700_v3 = vpop.eup %9699  ;;  %13704 = vst [vmem:[#allocation70_spill] sm:$0xff] %v10747_v22  ;;  %v3363_v60 = vadd.bf16 1065369472, %v9698_v13  ;;  %13705 = vst [vmem:[#allocation71_spill] sm:$0xff] %v10749_v26  ;;  %9723 = vpow.bf16 %v8962_v5 }
 0x200   : > { %6244 = vmatpush1.bf16.msra.mxu0 %v10725_v24  ;;  %v9702_v24 = vpop.eup %9701  ;;  %v3364_v20 = vadd.bf16 1065369472, %v9700_v3  ;;  %9725 = vrcp.bf16 %v3357_v6  ;;  %v765_v3 = vrot.slane %v10755_v7, %v10431_v58 }
 0x201   : > { %6245 = vmatprep.subr.bf16.mxu0 %v10728_v46  ;;  %v9704_v51 = vpop.eup %9703  ;;  %v3365_v13 = vadd.bf16 1065369472, %v9702_v24  ;;  %9727 = vrcp.bf16 %v3362_v59  ;;  %v773_v24 = vrot.slane %v10755_v7, %v10444_v42 }
 0x202   : > { %6330 = vmatpush1.bf16.msra.mxu1 %v10731_v12  ;;  %v9706_v46 = vpop.eup %9705  ;;  %9729 = vrcp.bf16 %v3363_v60 }
 0x203   : > { %6331 = vmatprep.subr.bf16.mxu1 %v10734_v31  ;;  %v10751_v31 = vcombine.high %v2955_v17, %v2963_v45  ;;  %v9708_v25 = vpop.eup %9707  ;;  %v3358_v45 = vadd.bf16 1065369472, %v9704_v51  ;;  %9731 = vrcp.bf16 %v3364_v20  ;;  %v3218_v51 = vld [vmem:[#allocation3 + $0xc0] sm:$0xc0] }
 0x204   : > { %6246 = vmatpush1.bf16.msra.mxu0 %v10737_v57  ;;  %v9710_v17 = vpop.eup %9709  ;;  %9733 = vrcp.bf16 %v3365_v13 }
 0x205   : > { %13706 = vst [vmem:[#allocation72_spill] sm:$0xff] %v10751_v31  ;;  %6258 = vmatprep.subr.bf16.mxu0 %v10747_v22  ;;  %v3359_v22 = vadd.bf16 1065369472, %v9708_v25  ;;  %v3361_v6 = vadd.bf16 1065369472, %v9710_v17  ;;  %9735 = vrcp.bf16 %v3358_v45 }
 0x206   : > { %6332 = vmatpush1.bf16.msra.mxu1 %v10741_v11  ;;  %v9712_v11 = vpop.eup %9711 }
 0x207   : > { %6344 = vmatprep.subr.bf16.mxu1 %v10751_v31  ;;  %v3366_v58 = vadd.bf16 1065369472, %v9712_v11  ;;  %v3220_v31 = vld [vmem:[#allocation3 + $0xd0] sm:$0xc0] }
 0x20d   : > { %v2336_v41 = vpop.f32.mrb[16].mxu0  ;;  %v2389_v63 = vpop.f32.mrb[16].mxu1 }
 0x20e   : > { %v2338_v12 = vpop.f32.mrb[17].mxu0  ;;  %v2391_v41 = vpop.f32.mrb[17].mxu1 }
 0x20f   : > { %v2340_v15 = vpop.f32.mrb[18].mxu0  ;;  %v2393_v5 = vpop.f32.mrb[18].mxu1  ;;  %v3360_v12 = vadd.bf16 1065369472, %v9706_v46  ;;  %v777_v46 = vrot.slane %v10755_v7, %v10447_v43 }
 0x210   : > { %v2342_v57 = vpop.f32.mrb[19].mxu0  ;;  %v2395_v63 = vpop.f32.mrb[19].mxu1  ;;  %v769_v15 = vrot.slane %v10755_v7, %v10436_v2 }
 0x211   : > { %v10764_v57 = vpop.eup %9713  ;;  %9737 = vrcp.bf16 %v3360_v12 }
 0x212   : > { %v9716_v59 = vpop.eup %9715  ;;  %9739 = vrcp.bf16 %v3359_v22 }
 0x213   : > { %v9718_v20 = vpop.eup %9717  ;;  %9741 = vrcp.bf16 %v3361_v6  ;;  %v3368_v11 = vadd.bf16 1065369472, %v9716_v59 }
 0x214   : > { %v9720_v17 = vpop.eup %9719  ;;  %v3367_v6 = vadd.bf16 1065369472, %v9718_v20  ;;  %9743 = vrcp.bf16 %v3366_v58 }
 0x215   : > { %v2346_v60 = vpop.f32.mrb[20].mxu0  ;;  %v2399_v41 = vpop.f32.mrb[20].mxu1 }
 0x216   : > { %v2347_v25 = vadd.f32 %v2346_v60, %v765_v3  ;;  %v2348_v2 = vpop.f32.mrb[21].mxu0  ;;  %v2400_v42 = vadd.f32 %v2399_v41, %v773_v24  ;;  %v2401_v5 = vpop.f32.mrb[21].mxu1 }
 0x217   : > { %v2349_v13 = vadd.f32 %v2348_v2, %v769_v15  ;;  %v2350_v63 = vpop.f32.mrb[22].mxu0  ;;  %v9722_v45 = vpop.eup %9721  ;;  %v2402_v35 = vadd.f32 %v2401_v5, %v777_v46  ;;  %v3219_v2 = vld [vmem:[#allocation3 + $0xc8] sm:$0xc0] }
 0x218   : > { %2554 = vst [vmem:[#allocation3 + $0x140] sm:$0xff] %v2347_v25  ;;  %v3266_v43 = vpack.c.bf16 %v2347_v25, %v3218_v51  ;;  %v2351_v12 = vadd.f32 %v2350_v63, %v765_v3  ;;  %v2403_v40 = vpop.f32.mrb[22].mxu1  ;;  %v2352_v0 = vpop.f32.mrb[23].mxu0  ;;  %2556 = vst [vmem:[#allocation3 + $0x150] sm:$0xff] %v2400_v42  ;;  %v3221_v51 = vld [vmem:[#allocation3 + $0xd8] sm:$0xc0]  ;;  %v3268_v3 = vpack.c.bf16 %v2400_v42, %v3220_v31 }
 0x219   : > { %v9724_v21 = vpop.eup %9723  ;;  %2555 = vst [vmem:[#allocation3 + $0x148] sm:$0xff] %v2349_v13  ;;  %v2404_v22 = vadd.f32 %v2403_v40, %v773_v24  ;;  %v2353_v60 = vadd.f32 %v2352_v0, %v769_v15  ;;  %v2405_v44 = vpop.f32.mrb[23].mxu1  ;;  %2557 = vst [vmem:[#allocation3 + $0x158] sm:$0xff] %v2402_v35  ;;  %v3371_v25 = vmul.bf16 1065369472, %v10764_v57  ;;  %v3267_v24 = vpack.c.bf16 %v2349_v13, %v3219_v2 }
 0x21a   : > { %v9726_v41 = vpop.eup %9725  ;;  %2570 = vst [vmem:[#allocation3 + $0x1c0] sm:$0xff] %v2351_v12  ;;  %v2406_v29 = vadd.f32 %v2405_v44, %v777_v46  ;;  %9745 = vtanh.bf16 %v3266_v43  ;;  %v3369_v40 = vadd.bf16 1065369472, %v9724_v21  ;;  %v3373_v15 = vmul.bf16 1065369472, %v9720_v17 }
 0x21b   : > { %v9728_v19 = vpop.eup %9727  ;;  %2572 = vst [vmem:[#allocation3 + $0x1d0] sm:$0xff] %v2404_v22  ;;  %2571 = vst [vmem:[#allocation3 + $0x1c8] sm:$0xff] %v2353_v60  ;;  %9747 = vrcp.bf16 %v3368_v11  ;;  %v3375_v20 = vmul.bf16 1065369472, %v9722_v45  ;;  %v3269_v5 = vpack.c.bf16 %v2402_v35, %v3221_v51  ;;  %v10769_v63 = vunpack.c.l.bf16 %v3371_v25 }
 0x21c   : > { %v9730_v59 = vpop.eup %9729  ;;  %2573 = vst [vmem:[#allocation3 + $0x1d8] sm:$0xff] %v2406_v29  ;;  %9749 = vrcp.bf16 %v3367_v6  ;;  %v3377_v42 = vmul.bf16 1065369472, %v9726_v41  ;;  %v10771_v29 = vunpack.c.l.bf16 %v3373_v15  ;;  %v3470_v21 = vunpack.c.h.bf16 %v3371_v25 }
 0x21d   : > { %v9732_v0 = vpop.eup %9731  ;;  %9751 = vtanh.bf16 %v3268_v3  ;;  %v10773_v45 = vunpack.c.h.bf16 %v3373_v15  ;;  %v10775_v35 = vunpack.c.l.bf16 %v3375_v20  ;;  %v3387_v6 = vmul.bf16 1065369472, %v9728_v19 }
 0x21e   : > { %v9734_v58 = vpop.eup %9733  ;;  %9753 = vrcp.bf16 %v3369_v40  ;;  %v10777_v2 = vunpack.c.h.bf16 %v3375_v20  ;;  %v10781_v27 = vunpack.c.h.bf16 %v3377_v42 }
 0x21f   : > { %v9736_v44 = vpop.eup %9735  ;;  %9755 = vtanh.bf16 %v3267_v24  ;;  %v3389_v24 = vmul.bf16 1065369472, %v9730_v59  ;;  %v3474_v20 = vunpack.c.l.bf16 %v3387_v6  ;;  %v3393_v16 = vmul.bf16 1065369472, %v9734_v58 }
 0x220   : > { %v9738_v46 = vpop.eup %9737  ;;  %9757 = vtanh.bf16 %v3269_v5  ;;  %v3379_v3 = vmul.bf16 1065369472, %v9736_v44  ;;  %v10779_v5 = vunpack.c.l.bf16 %v3377_v42 }
 0x221   : > { %v9740_v31 = vpop.eup %9739  ;;  %v3250_v57 = vld [vmem:[#allocation3 + $0x1c0] sm:$0x3f]  ;;  %v3383_v25 = vmul.bf16 1065369472, %v9738_v46 }
 0x222   : > { %v9742_v43 = vpop.eup %9741  ;;  %v3282_v17 = vpack.c.bf16 %v3250_v57, %v3250_v57  ;;  %v3252_v13 = vld [vmem:[#allocation3 + $0x1d0] sm:$0x3f]  ;;  %v3251_v12 = vld [vmem:[#allocation3 + $0x1c8] sm:$0x3f]  ;;  %v3381_v40 = vmul.bf16 1065369472, %v9740_v31  ;;  %v3482_v44 = vunpack.c.h.bf16 %v3379_v3  ;;  %v3475_v31 = vunpack.c.l.bf16 %v3389_v24 }
 0x223   : > { %v3284_v11 = vpack.c.bf16 %v3252_v13, %v3252_v13  ;;  %v3283_v22 = vpack.c.bf16 %v3251_v12, %v3251_v12  ;;  %v3253_v60 = vld [vmem:[#allocation3 + $0x1d8] sm:$0x3f]  ;;  %v9744_v41 = vpop.eup %9743  ;;  %v3385_v57 = vmul.bf16 1065369472, %v9742_v43  ;;  %v3391_v13 = vmul.bf16 1065369472, %v9732_v0 }
 0x224   : > { %9759 = vtanh.bf16 %v3282_v17  ;;  %v3285_v51 = vpack.c.bf16 %v3253_v60, %v3253_v60  ;;  %v3395_v19 = vmul.bf16 1065369472, %v9744_v41  ;;  %v3478_v60 = vunpack.c.l.bf16 %v3379_v3 }
 0x225   : > { %9761 = vtanh.bf16 %v3284_v11  ;;  %v9746_v15 = vpop.eup %9745  ;;  %v3480_v46 = vunpack.c.l.bf16 %v3383_v25  ;;  %v3484_v11 = vunpack.c.h.bf16 %v3383_v25  ;;  %v3479_v59 = vunpack.c.l.bf16 %v3381_v40 }
 0x226   : > { %9763 = vtanh.bf16 %v3283_v22  ;;  %v9748_v12 = vpop.eup %9747  ;;  %v3483_v50 = vunpack.c.h.bf16 %v3381_v40  ;;  %v3502_v9 = vunpack.c.l.bf16 %v9746_v15  ;;  %v3506_v22 = vunpack.c.h.bf16 %v9746_v15 }
 0x227   : > { %9765 = vtanh.bf16 %v3285_v51  ;;  %v9750_v17 = vpop.eup %9749  ;;  %v3481_v43 = vunpack.c.l.bf16 %v3385_v57  ;;  %v3485_v42 = vunpack.c.h.bf16 %v3385_v57  ;;  %v3476_v23 = vunpack.c.l.bf16 %v3391_v13 }
 0x228   : > { %v9752_v30 = vpop.eup %9751  ;;  %v3397_v52 = vmul.bf16 1065369472, %v9750_v17  ;;  %v3486_v51 = vunpack.c.l.bf16 %v3395_v19  ;;  %v3477_v41 = vunpack.c.l.bf16 %v3393_v16  ;;  %v3399_v6 = vmul.bf16 1065369472, %v9748_v12 }
 0x229   : > { %v9754_v0 = vpop.eup %9753  ;;  %v3490_v53 = vmul.f32 0.0, %v3478_v60  ;;  %v3494_v54 = vmul.f32 0.0, %v3482_v44  ;;  %v3492_v3 = vmul.f32 0.0, %v3480_v46  ;;  %v3496_v49 = vmul.f32 0.0, %v3484_v11 }
 0x22a   : > { %v9756_v58 = vpop.eup %9755  ;;  %v3491_v24 = vmul.f32 0.0, %v3479_v59  ;;  %v3495_v47 = vmul.f32 0.0, %v3483_v50  ;;  %v3514_v40 = vmul.f32 %v3502_v9, %v10769_v63  ;;  %v3504_v48 = vunpack.c.l.bf16 %v9752_v30 }
 0x22b   : > { %v9758_v25 = vpop.eup %9757  ;;  %v3518_v15 = vmul.f32 %v3506_v22, %v3470_v21  ;;  %v3493_v32 = vmul.f32 0.0, %v3481_v43  ;;  %v3497_v57 = vmul.f32 0.0, %v3485_v42  ;;  %v3508_v13 = vunpack.c.h.bf16 %v9752_v30 }
 0x22c   : > { %v3487_v19 = vunpack.c.l.bf16 %v3397_v52  ;;  %v3498_v16 = vmul.f32 0.0, %v3486_v51  ;;  %v3401_v12 = vmul.bf16 1065369472, %v9754_v0  ;;  %v3488_v10 = vunpack.c.l.bf16 %v3399_v6 }
 0x22d   : > { %v3503_v44 = vunpack.c.l.bf16 %v9756_v58  ;;  %v3507_v46 = vunpack.c.h.bf16 %v9756_v58  ;;  %v3505_v1 = vunpack.c.l.bf16 %v9758_v25  ;;  %v10784_v50 = vadd.f32 %v3514_v40, %v3490_v53 }
 0x22e   : > { %v3509_v9 = vunpack.c.h.bf16 %v9758_v25  ;;  %v3516_v21 = vmul.f32 %v3504_v48, %v10775_v35  ;;  %v10787_v42 = vadd.f32 %v3518_v15, %v3494_v54  ;;  %v3520_v52 = vmul.f32 %v3508_v13, %v10777_v2 }
 0x22f   : > { %v9760_v17 = vpop.eup %9759  ;;  %v3489_v0 = vunpack.c.l.bf16 %v3401_v12  ;;  %v3500_v6 = vmul.f32 0.0, %v3488_v10  ;;  %v3515_v8 = vmul.f32 %v3503_v44, %v10771_v29  ;;  %v3519_v53 = vmul.f32 %v3507_v46, %v10773_v45 }
 0x230   : > { %v9762_v60 = vpop.eup %9761  ;;  %v3510_v11 = vunpack.c.l.bf16 %v9760_v17  ;;  %v3499_v17 = vmul.f32 0.0, %v3487_v19  ;;  %v3517_v48 = vmul.f32 %v3505_v1, %v10779_v5  ;;  %v3521_v35 = vmul.f32 %v3509_v9, %v10781_v27 }
 0x231   : > { %v9764_v59 = vpop.eup %9763  ;;  %v3512_v63 = vunpack.c.l.bf16 %v9762_v60  ;;  %v13202_v54 = vrot.slane %v10784_v50, 7  ;;  %v10799_v40 = vadd.f32 %v3520_v52, %v3496_v49  ;;  %v7329_v10 = vrot.slane %v10787_v42, 7 }
 0x232   : > { %v9766_v22 = vpop.eup %9765  ;;  %v3511_v30 = vunpack.c.l.bf16 %v9764_v59  ;;  %v3522_v43 = vmul.f32 %v3510_v11, %v3474_v20  ;;  %v10796_v20 = vadd.f32 %v3516_v21, %v3492_v3  ;;  %v3501_v29 = vmul.f32 0.0, %v3489_v0 }
 0x233   : > { %v3513_v51 = vunpack.c.l.bf16 %v9766_v22  ;;  %v3524_v58 = vmul.f32 %v3512_v63, %v3476_v23  ;;  %v10805_v13 = vadd.f32 %v3515_v8, %v3491_v24  ;;  %v10807_v1 = vadd.f32 %v3517_v48, %v3493_v32 }
 0x234   : > { %v10792_v25 = vadd.f32 %v3522_v43, %v3498_v16  ;;  %v3523_v2 = vmul.f32 %v3511_v30, %v3475_v31  ;;  %v13201_v27 = vrot.slane %v10796_v20, 7  ;;  %v10813_v5 = vsel %vm7324_vm0, %v13202_v54, %v7329_v10 }
 0x235   : > { %v3525_v15 = vmul.f32 %v3513_v51, %v3477_v41  ;;  %v10803_v45 = vadd.f32 %v3524_v58, %v3500_v6  ;;  %v10818_v31 = vadd.f32 %v3519_v53, %v3495_v47  ;;  %v10822_v41 = vadd.f32 %v3521_v35, %v3497_v57 }
 0x236   : > { %v7337_v23 = vrot.slane %v10792_v25, 7  ;;  %v10820_v3 = vadd.f32 %v3523_v2, %v3499_v17  ;;  %v7333_v8 = vrot.slane %v10799_v40, 7  ;;  %v13200_v19 = vrot.slane %v10805_v13, 7  ;;  %v3222_v2 = vld [vmem:[#allocation3 + $0xe0] sm:$0xc0] }
 0x237   : > { %v10825_v32 = vadd.f32 %v3525_v15, %v3501_v29  ;;  %v7341_v24 = vrot.slane %v10803_v45, 7  ;;  %v13199_v16 = vrot.slane %v10807_v1, 7  ;;  %v7331_v57 = vrot.slane %v10818_v31, 7  ;;  %v3223_v15 = vld [vmem:[#allocation3 + $0xe8] sm:$0xc0] }
 0x238   : > { %v10816_v49 = vsel %vm7324_vm0, %v7329_v10, %v7337_v23  ;;  %v10833_v12 = vsel %vm7324_vm0, %v13201_v27, %v7333_v8  ;;  %v7339_v60 = vrot.slane %v10820_v3, 7  ;;  %v7335_v44 = vrot.slane %v10822_v41, 7 }
 0x239   : > { %v10836_v47 = vsel %vm7324_vm0, %v7333_v8, %v7341_v24  ;;  %v7343_v46 = vrot.slane %v10825_v32, 7  ;;  %v10845_v11 = vsel %vm7324_vm0, %v13200_v19, %v7331_v57  ;;  %v781_v58 = vrot.slane %v10755_v7, %v10461_v18 }
 0x23a   : > { %v10848_v59 = vsel %vm7324_vm0, %v7331_v57, %v7339_v60  ;;  %v10853_v9 = vsel %vm7324_vm0, %v13199_v16, %v7335_v44  ;;  %v785_v17 = vrot.slane %v10755_v7, %v10466_v28  ;;  %v789_v53 = vrot.slane %v10755_v7, %v10471_v36  ;;  %v3225_v60 = vld [vmem:[#allocation3 + $0xf8] sm:$0xc0] }
 0x23b   : > { %v10856_v63 = vsel %vm7324_vm0, %v7335_v44, %v7343_v46  ;;  %v793_v48 = vrot.slane %v10755_v7, %v10474_v37 }
 0x24d   : > { %v2442_v21 = vpop.f32.mrb[24].mxu0  ;;  %v2495_v30 = vpop.f32.mrb[24].mxu1 }
 0x24e   : > { %v2444_v22 = vpop.f32.mrb[25].mxu0  ;;  %v2497_v52 = vpop.f32.mrb[25].mxu1 }
 0x24f   : > { %v2446_v43 = vpop.f32.mrb[26].mxu0  ;;  %v2499_v51 = vpop.f32.mrb[26].mxu1 }
 0x250   : > { %v2448_v0 = vpop.f32.mrb[27].mxu0  ;;  %v2501_v6 = vpop.f32.mrb[27].mxu1 }
 0x255   : > { %v2452_v35 = vpop.f32.mrb[28].mxu0  ;;  %v2505_v23 = vpop.f32.mrb[28].mxu1 }
 0x256   : > { %v2453_v10 = vadd.f32 %v2452_v35, %v781_v58  ;;  %v2454_v29 = vpop.f32.mrb[29].mxu0  ;;  %v10866_v8 = vadd.f32 %v2505_v23, %v789_v53  ;;  %v2507_v57 = vpop.f32.mrb[29].mxu1 }
 0x257   : > { %v2455_v24 = vadd.f32 %v2454_v29, %v785_v17  ;;  %v2456_v18 = vpop.f32.mrb[30].mxu0  ;;  %v2508_v28 = vadd.f32 %v2507_v57, %v793_v48  ;;  %v2509_v46 = vpop.f32.mrb[30].mxu1 }
 0x258   : > { %2558 = vst [vmem:[#allocation3 + $0x160] sm:$0xff] %v2453_v10  ;;  %v2457_v44 = vadd.f32 %v2456_v18, %v781_v58  ;;  %v2458_v36 = vpop.f32.mrb[31].mxu0  ;;  %v3270_v21 = vpack.c.bf16 %v2453_v10, %v3222_v2  ;;  %2560 = vst [vmem:[#allocation3 + $0x170] sm:$0xff] %v10866_v8  ;;  %v2510_v37 = vadd.f32 %v2509_v46, %v789_v53  ;;  %v2511_v22 = vpop.f32.mrb[31].mxu1 }
 0x259   : > { %2559 = vst [vmem:[#allocation3 + $0x168] sm:$0xff] %v2455_v24  ;;  %v2459_v7 = vadd.f32 %v2458_v36, %v785_v17  ;;  %v3271_v30 = vpack.c.bf16 %v2455_v24, %v3223_v15  ;;  %2561 = vst [vmem:[#allocation3 + $0x178] sm:$0xff] %v2508_v28  ;;  %v2512_v43 = vadd.f32 %v2511_v22, %v793_v48 }
 0x25a   : > { %2574 = vst [vmem:[#allocation3 + $0x1e0] sm:$0xff] %v2457_v44  ;;  %v8963_v52 = vmul.bf16 3216621497, %v3270_v21  ;;  %v3273_v0 = vpack.c.bf16 %v2508_v28, %v3225_v60  ;;  %2576 = vst [vmem:[#allocation3 + $0x1f0] sm:$0xff] %v2510_v37  ;;  %v3538_v28 = vpack.c.bf16 %v10787_v42, %v10784_v50  ;;  %v3539_v46 = vpack.c.bf16 %v10818_v31, %v10805_v13 }
 0x25b   : > { %2575 = vst [vmem:[#allocation3 + $0x1e8] sm:$0xff] %v2459_v7  ;;  %v8964_v51 = vmul.bf16 3216621497, %v3271_v30  ;;  %2577 = vst [vmem:[#allocation3 + $0x1f8] sm:$0xff] %v2512_v43  ;;  %v3541_v36 = vpack.c.bf16 %v10822_v41, %v10807_v1  ;;  %v3542_v21 = vpack.c.bf16 %v10792_v25, %v10792_v25  ;;  %v3543_v37 = vpack.c.bf16 %v10820_v3, %v10820_v3 }
 0x25c   : > { %9767 = vpow.bf16 %v8963_v52  ;;  %v8966_v6 = vmul.bf16 3216621497, %v3273_v0  ;;  %v3545_v42 = vpack.c.bf16 %v10825_v32, %v10825_v32 }
 0x25d   : > { %9769 = vpow.bf16 %v8964_v51 }
 0x25e   : > { %9771 = vpow.bf16 %v8966_v6 }
 0x261   : > { %v3254_v58 = vld [vmem:[#allocation3 + $0x1e0] sm:$0x3f] }
 0x262   : > { %v3255_v35 = vld [vmem:[#allocation3 + $0x1e8] sm:$0x3f]  ;;  %v3286_v2 = vpack.c.bf16 %v3254_v58, %v3254_v58  ;;  %v3257_v17 = vld [vmem:[#allocation3 + $0x1f8] sm:$0x3f] }
 0x263   : > { %v3287_v53 = vpack.c.bf16 %v3255_v35, %v3255_v35  ;;  %v3289_v23 = vpack.c.bf16 %v3257_v17, %v3257_v17 }
 0x264   : > { %v8967_v10 = vmul.bf16 3216621497, %v3286_v2 }
 0x265   : > { %v8968_v29 = vmul.bf16 3216621497, %v3287_v53  ;;  %v8970_v48 = vmul.bf16 3216621497, %v3289_v23 }
 0x266   : > { %9773 = vpow.bf16 %v8967_v10 }
 0x267   : > { %v9768_v15 = vpop.eup %9767  ;;  %9775 = vpow.bf16 %v8968_v29 }
 0x268   : > { %v9770_v24 = vpop.eup %9769  ;;  %v3442_v57 = vadd.bf16 1065369472, %v9768_v15  ;;  %9777 = vpow.bf16 %v8970_v48 }
 0x269   : > { %v9772_v18 = vpop.eup %9771  ;;  %v3443_v60 = vadd.bf16 1065369472, %v9770_v24 }
 0x26a   : > { %v3445_v44 = vadd.bf16 1065369472, %v9772_v18 }
 0x26b   : > { %9779 = vrcp.bf16 %v3443_v60 }
 0x26c   : > { %9781 = vrcp.bf16 %v3442_v57 }
 0x26d   : > { %9783 = vtanh.bf16 %v3538_v28 }
 0x26e   : > { %9785 = vrcp.bf16 %v3445_v44 }
 0x26f   : > { %9787 = vtanh.bf16 %v3539_v46 }
 0x270   : > { %9789 = vtanh.bf16 %v3541_v36 }
 0x271   : > { %v9774_v7 = vpop.eup %9773  ;;  %9791 = vtanh.bf16 %v3542_v21 }
 0x272   : > { %v9776_v31 = vpop.eup %9775  ;;  %9793 = vtanh.bf16 %v3543_v37  ;;  %v3446_v22 = vadd.bf16 1065369472, %v9774_v7 }
 0x273   : > { %v9778_v30 = vpop.eup %9777  ;;  %v3447_v41 = vadd.bf16 1065369472, %v9776_v31  ;;  %9795 = vtanh.bf16 %v3545_v42 }
 0x274   : > { %9797 = vrcp.bf16 %v3446_v22  ;;  %v3449_v25 = vadd.bf16 1065369472, %v9778_v30 }
 0x275   : > { %9799 = vrcp.bf16 %v3447_v41 }
 0x276   : > { %v9780_v43 = vpop.eup %9779  ;;  %9801 = vrcp.bf16 %v3449_v25 }
 0x277   : > { %v9782_v3 = vpop.eup %9781  ;;  %v3453_v51 = vmul.bf16 1065369472, %v9780_v43 }
 0x278   : > { %v9784_v52 = vpop.eup %9783  ;;  %v3451_v32 = vmul.bf16 1065369472, %v9782_v3 }
 0x279   : > { %v9786_v0 = vpop.eup %9785  ;;  %v3547_v17 = vunpack.c.l.bf16 %v3453_v51  ;;  %v3551_v10 = vunpack.c.h.bf16 %v3453_v51  ;;  %v3566_v15 = vunpack.c.l.bf16 %v9784_v52  ;;  %v3570_v60 = vunpack.c.h.bf16 %v9784_v52 }
 0x27a   : > { %v9788_v6 = vpop.eup %9787  ;;  %v3457_v2 = vmul.bf16 1065369472, %v9786_v0  ;;  %v3546_v29 = vunpack.c.l.bf16 %v3451_v32  ;;  %v3550_v48 = vunpack.c.h.bf16 %v3451_v32 }
 0x27b   : > { %v9790_v58 = vpop.eup %9789  ;;  %v3567_v57 = vunpack.c.l.bf16 %v9788_v6  ;;  %v3571_v18 = vunpack.c.h.bf16 %v9788_v6 }
 0x27c   : > { %v9792_v35 = vpop.eup %9791  ;;  %v3569_v28 = vunpack.c.l.bf16 %v9790_v58  ;;  %v3549_v36 = vunpack.c.l.bf16 %v3457_v2  ;;  %v3553_v21 = vunpack.c.h.bf16 %v3457_v2  ;;  %v3573_v37 = vunpack.c.h.bf16 %v9790_v58 }
 0x27d   : > { %v9794_v53 = vpop.eup %9793  ;;  %v3579_v31 = vmul.f32 %v3567_v57, %v3547_v17  ;;  %v3583_v22 = vmul.f32 %v3571_v18, %v3551_v10  ;;  %v3574_v30 = vunpack.c.l.bf16 %v9792_v35  ;;  %v3578_v25 = vmul.f32 %v3566_v15, %v3546_v29  ;;  %v2970_v29 = vld [vmem:[#allocation8 + $0x880] sm:$0xff] }
 0x27e   : > { %v9796_v23 = vpop.eup %9795  ;;  %v3582_v43 = vmul.f32 %v3570_v60, %v3550_v48  ;;  %v3575_v51 = vunpack.c.l.bf16 %v9794_v53  ;;  %v3581_v16 = vmul.f32 %v3569_v28, %v3549_v36  ;;  %v3585_v19 = vmul.f32 %v3573_v37, %v3553_v21  ;;  %v2978_v57 = vld [vmem:[#allocation8 + $0x8c0] sm:$0xff]  ;;  %v2971_v53 = vld [vmem:[#allocation8 + $0x888] sm:$0xff] }
 0x27f   : > { %v9798_v24 = vpop.eup %9797  ;;  %v3577_v32 = vunpack.c.l.bf16 %v9796_v23  ;;  %v3623_v27 = vpack.c.bf16 %v3583_v22, %v3579_v31  ;;  %v2979_v23 = vld [vmem:[#allocation8 + $0x8c8] sm:$0xff]  ;;  %v10900_v31 = vcombine.low %v2970_v29, %v2978_v57 }
 0x280   : > { %v9800_v44 = vpop.eup %9799  ;;  %v3459_v46 = vmul.bf16 1065369472, %v9798_v24  ;;  %v3622_v2 = vpack.c.bf16 %v3582_v43, %v3578_v25  ;;  %v3625_v35 = vpack.c.bf16 %v3585_v19, %v3581_v16  ;;  %v10889_v19 = vcombine.high %v2970_v29, %v2978_v57  ;;  %v2994_v16 = vld [vmem:[#allocation8 + $0x940] sm:$0xff]  ;;  %v2987_v21 = vld [vmem:[#allocation8 + $0x908] sm:$0xff] }
 0x281   : > { %v9802_v42 = vpop.eup %9801  ;;  %v3461_v7 = vmul.bf16 1065369472, %v9800_v44  ;;  %v3642_v48 = vrot.slane %v3623_v27, 3  ;;  %v10891_v27 = vcombine.high %v2971_v53, %v2979_v23  ;;  %v2995_v37 = vld [vmem:[#allocation8 + $0x948] sm:$0xff]  ;;  %13709 = vst [vmem:[#allocation75_spill] sm:$0xff] %v10900_v31  ;;  %v10902_v22 = vcombine.low %v2971_v53, %v2979_v23  ;;  %v3002_v25 = vld [vmem:[#allocation8 + $0x980] sm:$0xff] }
 0x282   : > { %v3554_v41 = vunpack.c.l.bf16 %v3459_v46  ;;  %v3465_v3 = vmul.bf16 1065369472, %v9802_v42  ;;  %v3639_v18 = vrot.slane %v3622_v2, 3  ;;  %v2986_v46 = vld [vmem:[#allocation8 + $0x900] sm:$0xff]  ;;  %13707 = vst [vmem:[#allocation73_spill] sm:$0xff] %v10889_v19 }
 0x283   : > { %v3555_v0 = vunpack.c.l.bf16 %v3461_v7  ;;  %13708 = vst [vmem:[#allocation74_spill] sm:$0xff] %v10891_v27  ;;  %v3256_v42 = vld [vmem:[#allocation3 + $0x1f0] sm:$0x3f]  ;;  %13710 = vst [vmem:[#allocation76_spill] sm:$0xff] %v10902_v22  ;;  %v3224_v43 = vld [vmem:[#allocation3 + $0xf0] sm:$0xc0] }
 0x284   : > { %v3586_v6 = vmul.f32 %v3574_v30, %v3554_v41  ;;  %v3557_v52 = vunpack.c.l.bf16 %v3465_v3  ;;  %v10906_v30 = vcombine.high %v2986_v46, %v2994_v16  ;;  %v10908_v41 = vcombine.high %v2987_v21, %v2995_v37  ;;  %v3010_v3 = vld [vmem:[#allocation8 + $0x9c0] sm:$0xff] }
 0x285   : > { %v3587_v24 = vmul.f32 %v3575_v51, %v3555_v0  ;;  %v3003_v0 = vld [vmem:[#allocation8 + $0x988] sm:$0xff]  ;;  %v10921_v2 = vcombine.high %v3002_v25, %v3010_v3  ;;  %v3034_v23 = vld [vmem:[#allocation8 + $0xa80] sm:$0xff] }
 0x286   : > { %v3626_v58 = vpack.c.bf16 %v3586_v6, %v3586_v6  ;;  %v3589_v54 = vmul.f32 %v3577_v32, %v3557_v52  ;;  %13711 = vst [vmem:[#allocation77_spill] sm:$0xff] %v10906_v30  ;;  %13712 = vst [vmem:[#allocation78_spill] sm:$0xff] %v10908_v41  ;;  %v3011_v51 = vld [vmem:[#allocation8 + $0x9c8] sm:$0xff]  ;;  %v3288_v32 = vpack.c.bf16 %v3256_v42, %v3256_v42  ;;  %v3050_v42 = vld [vmem:[#allocation8 + $0xb00] sm:$0xff] }
 0x287   : > { %v3627_v44 = vpack.c.bf16 %v3587_v24, %v3587_v24  ;;  %v10914_v6 = vcombine.low %v2986_v46, %v2994_v16  ;;  %v10916_v52 = vcombine.low %v2987_v21, %v2995_v37  ;;  %v3272_v24 = vpack.c.bf16 %v10866_v8, %v3224_v43  ;;  %13715 = vst [vmem:[#allocation81_spill] sm:$0xff] %v10921_v2  ;;  %v3043_v46 = vld [vmem:[#allocation8 + $0xac8] sm:$0xff] }
 0x288   : > { %v3640_v17 = vrot.slane %v3626_v58, 3  ;;  %v3629_v10 = vpack.c.bf16 %v3589_v54, %v3589_v54  ;;  %v3648_v54 = vrot.slane %v3625_v35, 3  ;;  %v10923_v58 = vcombine.high %v3003_v0, %v3011_v51  ;;  %v3019_v35 = vld [vmem:[#allocation8 + $0xa08] sm:$0xff] }
 0x289   : > { %v3643_v15 = vrot.slane %v3627_v44, 3  ;;  %13713 = vst [vmem:[#allocation79_spill] sm:$0xff] %v10914_v6  ;;  %13714 = vst [vmem:[#allocation80_spill] sm:$0xff] %v10916_v52  ;;  %v3018_v44 = vld [vmem:[#allocation8 + $0xa00] sm:$0xff]  ;;  %v8969_v29 = vmul.bf16 3216621497, %v3288_v32  ;;  %v10929_v8 = vcombine.low %v3003_v0, %v3011_v51 }
 0x28a   : > { %v3649_v60 = vrot.slane %v3629_v10, 3  ;;  %v10887_v36 = vsel %vm3638_vm1, %v3639_v18, %v3640_v17  ;;  %13716 = vst [vmem:[#allocation82_spill] sm:$0xff] %v10923_v58  ;;  %v3026_v17 = vld [vmem:[#allocation8 + $0xa40] sm:$0xff]  ;;  %v3027_v10 = vld [vmem:[#allocation8 + $0xa48] sm:$0xff] }
 0x28b   : > { %v10882_v28 = vsel %vm3638_vm1, %v3642_v48, %v3643_v15  ;;  %v10927_v48 = vcombine.low %v3002_v25, %v3010_v3  ;;  %13718 = vst [vmem:[#allocation84_spill] sm:$0xff] %v10929_v8  ;;  %v8965_v15 = vmul.bf16 3216621497, %v3272_v24  ;;  %v10933_v57 = vcombine.high %v3018_v44, %v3026_v17  ;;  %v3042_v18 = vld [vmem:[#allocation8 + $0xac0] sm:$0xff]  ;;  %v3051_v43 = vld [vmem:[#allocation8 + $0xb08] sm:$0xff] }
 0x28c   : > { %6247 = vmatprep.mubr.bf16.mxu0 %v10882_v28  ;;  %6333 = vmatprep.mubr.bf16.mxu1 %v10882_v28  ;;  %v10898_v7 = vsel %vm3638_vm1, %v3648_v54, %v3649_v60  ;;  %v10935_v53 = vcombine.high %v3019_v35, %v3027_v10  ;;  %v3035_v60 = vld [vmem:[#allocation8 + $0xa88] sm:$0xff]  ;;  %9803 = vpow.bf16 %v8969_v29  ;;  %v10939_v54 = vcombine.low %v3018_v44, %v3026_v17  ;;  %v3058_v25 = vld [vmem:[#allocation8 + $0xb40] sm:$0xff] }
 0x28d   : > { %6248 = vmatmul.mubr.bf16.vlgmr.msra.gmra.mrb[32].mxu0 %v10887_v36  ;;  %6334 = vmatmul.mubr.bf16.vlgmr.msra.gmra.mrb[32].mxu1 %v10887_v36  ;;  %13717 = vst [vmem:[#allocation83_spill] sm:$0xff] %v10927_v48  ;;  %13719 = vst [vmem:[#allocation85_spill] sm:$0xff] %v10933_v57  ;;  %v10941_v16 = vcombine.low %v3019_v35, %v3027_v10  ;;  %9805 = vpow.bf16 %v8965_v15  ;;  %v10945_v21 = vcombine.high %v3034_v23, %v3042_v18  ;;  %v3059_v3 = vld [vmem:[#allocation8 + $0xb48] sm:$0xff]  ;;  %v3066_v44 = vld [vmem:[#allocation8 + $0xb80] sm:$0xff] }
 0x28e   : > { %6259 = vmatpush1.bf16.msra.mxu0 %v10745_v14  ;;  %6345 = vmatpush1.bf16.msra.mxu1 %v10749_v26  ;;  %13720 = vst [vmem:[#allocation86_spill] sm:$0xff] %v10935_v53  ;;  %13721 = vst [vmem:[#allocation87_spill] sm:$0xff] %v10939_v54  ;;  %v10947_v37 = vcombine.high %v3035_v60, %v3043_v46  ;;  %v10951_v0 = vcombine.low %v3034_v23, %v3042_v18  ;;  %v3074_v17 = vld [vmem:[#allocation8 + $0xbc0] sm:$0xff]  ;;  %v3067_v35 = vld [vmem:[#allocation8 + $0xb88] sm:$0xff] }
 0x28f   : > { %6290 = vmatprep.mubr.bf16.mxu0 %v10898_v7  ;;  %6376 = vmatprep.mubr.bf16.mxu1 %v10898_v7  ;;  %13722 = vst [vmem:[#allocation88_spill] sm:$0xff] %v10941_v16  ;;  %13723 = vst [vmem:[#allocation89_spill] sm:$0xff] %v10945_v21  ;;  %v10953_v51 = vcombine.low %v3035_v60, %v3043_v46  ;;  %v10957_v32 = vcombine.high %v3050_v42, %v3058_v25  ;;  %v3075_v10 = vld [vmem:[#allocation8 + $0xbc8] sm:$0xff]  ;;  %v3082_v46 = vld [vmem:[#allocation8 + $0xc00] sm:$0xff] }
 0x290   : > { %6260 = vmatprep.subr.bf16.mxu0 %v10889_v19  ;;  %6346 = vmatprep.subr.bf16.mxu1 %v10891_v27  ;;  %13724 = vst [vmem:[#allocation90_spill] sm:$0xff] %v10947_v37  ;;  %13725 = vst [vmem:[#allocation91_spill] sm:$0xff] %v10951_v0  ;;  %v10959_v24 = vcombine.high %v3051_v43, %v3059_v3  ;;  %v10963_v29 = vcombine.low %v3050_v42, %v3058_v25  ;;  %v3595_v27 = vld [vmem:[#allocation3 + $0xa8] sm:$0x80] }
 0x291   : > { %13726 = vst [vmem:[#allocation92_spill] sm:$0xff] %v10953_v51  ;;  %13727 = vst [vmem:[#allocation93_spill] sm:$0xff] %v10957_v32  ;;  %v10965_v15 = vcombine.low %v3051_v43, %v3059_v3  ;;  %v10969_v18 = vcombine.high %v3066_v44, %v3074_v17  ;;  %v10971_v60 = vcombine.high %v3067_v35, %v3075_v10 }
 0x292   : > { %6261 = vmatpush1.bf16.msra.mxu0 %v10900_v31  ;;  %6347 = vmatpush1.bf16.msra.mxu1 %v10902_v22  ;;  %13728 = vst [vmem:[#allocation94_spill] sm:$0xff] %v10959_v24  ;;  %13729 = vst [vmem:[#allocation95_spill] sm:$0xff] %v10963_v29  ;;  %v10975_v42 = vcombine.low %v3066_v44, %v3074_v17  ;;  %v10977_v25 = vcombine.low %v3067_v35, %v3075_v10 }
 0x293   : > { %6262 = vmatprep.subr.bf16.mxu0 %v10906_v30  ;;  %6348 = vmatprep.subr.bf16.mxu1 %v10908_v41  ;;  %13730 = vst [vmem:[#allocation96_spill] sm:$0xff] %v10965_v15  ;;  %13731 = vst [vmem:[#allocation97_spill] sm:$0xff] %v10969_v18 }
 0x294   : > { %13732 = vst [vmem:[#allocation98_spill] sm:$0xff] %v10971_v60  ;;  %13733 = vst [vmem:[#allocation99_spill] sm:$0xff] %v10975_v42 }
 0x295   : > { %13734 = vst [vmem:[#allocation100_spill] sm:$0xff] %v10977_v25 }
 0x296   : > { %6263 = vmatpush1.bf16.msra.mxu0 %v10914_v6  ;;  %6349 = vmatpush1.bf16.msra.mxu1 %v10916_v52 }
 0x297   : > { %6264 = vmatprep.subr.bf16.mxu0 %v10921_v2  ;;  %6350 = vmatprep.subr.bf16.mxu1 %v10923_v58  ;;  %v9804_v23 = vpop.eup %9803  ;;  %v3094_v58 = vld [vmem:[#allocation8 + $0xc60] sm:$0xff] }
 0x298   : > { %v3448_v43 = vadd.bf16 1065369472, %v9804_v23  ;;  %v3114_v23 = vld [vmem:[#allocation8 + $0xd00] sm:$0xff] }
 0x29a   : > { %6265 = vmatpush1.bf16.msra.mxu0 %v10927_v48  ;;  %6351 = vmatpush1.bf16.msra.mxu1 %v10929_v8  ;;  %9807 = vrcp.bf16 %v3448_v43 }
 0x29b   : > { %6266 = vmatprep.subr.bf16.mxu0 %v10933_v57  ;;  %6352 = vmatprep.subr.bf16.mxu1 %v10935_v53  ;;  %v3107_v53 = vld [vmem:[#allocation8 + $0xcc8] sm:$0xff] }
 0x29e   : > { %6267 = vmatpush1.bf16.msra.mxu0 %v10939_v54  ;;  %6353 = vmatpush1.bf16.msra.mxu1 %v10941_v16  ;;  %v3091_v16 = vld [vmem:[#allocation8 + $0xc48] sm:$0xff] }
 0x29f   : > { %6268 = vmatprep.subr.bf16.mxu0 %v10945_v21  ;;  %6354 = vmatprep.subr.bf16.mxu1 %v10947_v37  ;;  %v3090_v37 = vld [vmem:[#allocation8 + $0xc40] sm:$0xff]  ;;  %v3083_v21 = vld [vmem:[#allocation8 + $0xc08] sm:$0xff] }
 0x2a0   : > { %v10981_v3 = vcombine.high %v3082_v46, %v3090_v37  ;;  %v3099_v54 = vld [vmem:[#allocation8 + $0xc88] sm:$0xff]  ;;  %v10987_v44 = vcombine.low %v3082_v46, %v3090_v37  ;;  %v10989_v17 = vcombine.low %v3083_v21, %v3091_v16  ;;  %v3544_v37 = vpack.c.bf16 %v10803_v45, %v10803_v45  ;;  %v3130_v45 = vld [vmem:[#allocation8 + $0xd80] sm:$0xff] }
 0x2a1   : > { %v10995_v10 = vcombine.high %v3099_v54, %v3107_v53  ;;  %v3540_v46 = vpack.c.bf16 %v10799_v40, %v10796_v20 }
 0x2a2   : > { %6269 = vmatpush1.bf16.msra.mxu0 %v10951_v0  ;;  %6355 = vmatpush1.bf16.msra.mxu1 %v10953_v51  ;;  %v9806_v0 = vpop.eup %9805  ;;  %13735 = vst [vmem:[#allocation101_spill] sm:$0xff] %v10981_v3  ;;  %v3106_v51 = vld [vmem:[#allocation8 + $0xcc0] sm:$0xff]  ;;  %13737 = vst [vmem:[#allocation103_spill] sm:$0xff] %v10987_v44 }
 0x2a3   : > { %6270 = vmatprep.subr.bf16.mxu0 %v10957_v32  ;;  %6356 = vmatprep.subr.bf16.mxu1 %v10959_v24  ;;  %v10983_v24 = vcombine.high %v3083_v21, %v3091_v16  ;;  %v3098_v32 = vld [vmem:[#allocation8 + $0xc80] sm:$0xff]  ;;  %13738 = vst [vmem:[#allocation104_spill] sm:$0xff] %v10989_v17  ;;  %13740 = vst [vmem:[#allocation106_spill] sm:$0xff] %v10995_v10  ;;  %v11003_v21 = vcombine.low %v3099_v54, %v3107_v53 }
 0x2a4   : > { %v10993_v35 = vcombine.high %v3098_v32, %v3106_v51  ;;  %v11001_v16 = vcombine.low %v3098_v32, %v3106_v51  ;;  %v3146_v32 = vld [vmem:[#allocation8 + $0xe00] sm:$0xff] }
 0x2a5   : > { %13736 = vst [vmem:[#allocation102_spill] sm:$0xff] %v10983_v24  ;;  %13742 = vst [vmem:[#allocation108_spill] sm:$0xff] %v11003_v21 }
 0x2a6   : > { %6271 = vmatpush1.bf16.msra.mxu0 %v10963_v29  ;;  %6357 = vmatpush1.bf16.msra.mxu1 %v10965_v15  ;;  %v3444_v29 = vadd.bf16 1065369472, %v9806_v0  ;;  %13739 = vst [vmem:[#allocation105_spill] sm:$0xff] %v10993_v35  ;;  %v3115_v0 = vld [vmem:[#allocation8 + $0xd08] sm:$0xff]  ;;  %13741 = vst [vmem:[#allocation107_spill] sm:$0xff] %v11001_v16 }
 0x2a7   : > { %6272 = vmatprep.subr.bf16.mxu0 %v10969_v18  ;;  %6358 = vmatprep.subr.bf16.mxu1 %v10971_v60  ;;  %v3122_v60 = vld [vmem:[#allocation8 + $0xd40] sm:$0xff]  ;;  %v3123_v18 = vld [vmem:[#allocation8 + $0xd48] sm:$0xff] }
 0x2a8   : > { %9809 = vrcp.bf16 %v3444_v29  ;;  %v11009_v43 = vcombine.high %v3114_v23, %v3122_v60  ;;  %v11011_v29 = vcombine.high %v3115_v0, %v3123_v18  ;;  %v11015_v53 = vcombine.low %v3114_v23, %v3122_v60  ;;  %v3203_v15 = vld [vmem:[#allocation8 + $0xfc8] sm:$0xff] }
 0x2a9   : > { %9811 = vtanh.bf16 %v3544_v37  ;;  %v11017_v40 = vcombine.low %v3115_v0, %v3123_v18  ;;  %v3147_v37 = vld [vmem:[#allocation8 + $0xe08] sm:$0xff] }
 0x2aa   : > { %6273 = vmatpush1.bf16.msra.mxu0 %v10975_v42  ;;  %6359 = vmatpush1.bf16.msra.mxu1 %v10977_v25  ;;  %13743 = vst [vmem:[#allocation109_spill] sm:$0xff] %v11009_v43  ;;  %13744 = vst [vmem:[#allocation110_spill] sm:$0xff] %v11011_v29  ;;  %9813 = vtanh.bf16 %v3540_v46  ;;  %v3179_v25 = vld [vmem:[#allocation8 + $0xf08] sm:$0xff] }
 0x2ab   : > { %6274 = vmatprep.subr.bf16.mxu0 %v10981_v3  ;;  %6360 = vmatprep.subr.bf16.mxu1 %v10983_v24  ;;  %v3138_v24 = vld [vmem:[#allocation8 + $0xdc0] sm:$0xff]  ;;  %v3139_v3 = vld [vmem:[#allocation8 + $0xdc8] sm:$0xff]  ;;  %13745 = vst [vmem:[#allocation111_spill] sm:$0xff] %v11015_v53  ;;  %13746 = vst [vmem:[#allocation112_spill] sm:$0xff] %v11017_v40 }
 0x2ac   : > { %v11021_v54 = vcombine.high %v3130_v45, %v3138_v24  ;;  %v11027_v18 = vcombine.low %v3130_v45, %v3138_v24 }
 0x2ae   : > { %6275 = vmatpush1.bf16.msra.mxu0 %v10987_v44  ;;  %6361 = vmatpush1.bf16.msra.mxu1 %v10989_v17  ;;  %v3131_v44 = vld [vmem:[#allocation8 + $0xd88] sm:$0xff]  ;;  %13747 = vst [vmem:[#allocation113_spill] sm:$0xff] %v11021_v54  ;;  %13749 = vst [vmem:[#allocation115_spill] sm:$0xff] %v11027_v18 }
 0x2af   : > { %6276 = vmatprep.subr.bf16.mxu0 %v10993_v35  ;;  %6362 = vmatprep.subr.bf16.mxu1 %v10995_v10  ;;  %v11023_v51 = vcombine.high %v3131_v44, %v3139_v3  ;;  %v3154_v10 = vld [vmem:[#allocation8 + $0xe40] sm:$0xff]  ;;  %v3155_v35 = vld [vmem:[#allocation8 + $0xe48] sm:$0xff]  ;;  %v11029_v60 = vcombine.low %v3131_v44, %v3139_v3 }
 0x2b0   : > { %v11033_v0 = vcombine.high %v3146_v32, %v3154_v10  ;;  %v11035_v46 = vcombine.high %v3147_v37, %v3155_v35  ;;  %v3171_v17 = vld [vmem:[#allocation8 + $0xec8] sm:$0xff]  ;;  %v11039_v24 = vcombine.low %v3146_v32, %v3154_v10  ;;  %v11041_v3 = vcombine.low %v3147_v37, %v3155_v35 }
 0x2b1   : > { %13748 = vst [vmem:[#allocation114_spill] sm:$0xff] %v11023_v51  ;;  %13750 = vst [vmem:[#allocation116_spill] sm:$0xff] %v11029_v60 }
 0x2b2   : > { %6277 = vmatpush1.bf16.msra.mxu0 %v11001_v16  ;;  %6363 = vmatpush1.bf16.msra.mxu1 %v11003_v21  ;;  %v9808_v16 = vpop.eup %9807  ;;  %13751 = vst [vmem:[#allocation117_spill] sm:$0xff] %v11033_v0  ;;  %13752 = vst [vmem:[#allocation118_spill] sm:$0xff] %v11035_v46  ;;  %v3163_v21 = vld [vmem:[#allocation8 + $0xe88] sm:$0xff] }
 0x2b3   : > { %6278 = vmatprep.subr.bf16.mxu0 %v11009_v43  ;;  %6364 = vmatprep.subr.bf16.mxu1 %v11011_v29  ;;  %v9810_v23 = vpop.eup %9809  ;;  %v3162_v29 = vld [vmem:[#allocation8 + $0xe80] sm:$0xff]  ;;  %13753 = vst [vmem:[#allocation119_spill] sm:$0xff] %v11039_v24  ;;  %13754 = vst [vmem:[#allocation120_spill] sm:$0xff] %v11041_v3  ;;  %v11053_v35 = vcombine.low %v3163_v21, %v3171_v17 }
 0x2b4   : > { %v3170_v43 = vld [vmem:[#allocation8 + $0xec0] sm:$0xff]  ;;  %v3455_v44 = vmul.bf16 1065369472, %v9810_v23  ;;  %v9812_v45 = vpop.eup %9811 }
 0x2b5   : > { %v11049_v10 = vcombine.low %v3162_v29, %v3170_v43  ;;  %13758 = vst [vmem:[#allocation124_spill] sm:$0xff] %v11053_v35  ;;  %v3576_v23 = vunpack.c.l.bf16 %v9812_v45 }
 0x2b6   : > { %6279 = vmatpush1.bf16.msra.mxu0 %v11015_v53  ;;  %6365 = vmatpush1.bf16.msra.mxu1 %v11017_v40  ;;  %v3463_v53 = vmul.bf16 1065369472, %v9808_v16  ;;  %v3178_v40 = vld [vmem:[#allocation8 + $0xf00] sm:$0xff]  ;;  %v3548_v32 = vunpack.c.l.bf16 %v3455_v44  ;;  %v3552_v37 = vunpack.c.h.bf16 %v3455_v44 }
 0x2b7   : > { %6280 = vmatprep.subr.bf16.mxu0 %v11021_v54  ;;  %6366 = vmatprep.subr.bf16.mxu1 %v11023_v51  ;;  %v11045_v51 = vcombine.high %v3162_v29, %v3170_v43  ;;  %v11047_v54 = vcombine.high %v3163_v21, %v3171_v17  ;;  %v3186_v16 = vld [vmem:[#allocation8 + $0xf40] sm:$0xff]  ;;  %13757 = vst [vmem:[#allocation123_spill] sm:$0xff] %v11049_v10  ;;  %v3195_v29 = vld [vmem:[#allocation8 + $0xf88] sm:$0xff] }
 0x2b8   : > { %v3556_v42 = vunpack.c.l.bf16 %v3463_v53  ;;  %v3194_v53 = vld [vmem:[#allocation8 + $0xf80] sm:$0xff]  ;;  %v11061_v17 = vcombine.low %v3178_v40, %v3186_v16 }
 0x2b9   : > { %13755 = vst [vmem:[#allocation121_spill] sm:$0xff] %v11045_v51  ;;  %13756 = vst [vmem:[#allocation122_spill] sm:$0xff] %v11047_v54  ;;  %v3202_v43 = vld [vmem:[#allocation8 + $0xfc0] sm:$0xff] }
 0x2ba   : > { %6281 = vmatpush1.bf16.msra.mxu0 %v11027_v18  ;;  %6367 = vmatpush1.bf16.msra.mxu1 %v11029_v60  ;;  %v3187_v18 = vld [vmem:[#allocation8 + $0xf48] sm:$0xff]  ;;  %v9814_v60 = vpop.eup %9813  ;;  %13761 = vst [vmem:[#allocation127_spill] sm:$0xff] %v11061_v17 }
 0x2bb   : > { %6282 = vmatprep.subr.bf16.mxu0 %v11033_v0  ;;  %6368 = vmatprep.subr.bf16.mxu1 %v11035_v46  ;;  %v11057_v46 = vcombine.high %v3178_v40, %v3186_v16  ;;  %v11059_v0 = vcombine.high %v3179_v25, %v3187_v18  ;;  %v3572_v57 = vunpack.c.h.bf16 %v9814_v60  ;;  %v11065_v21 = vcombine.low %v3179_v25, %v3187_v18  ;;  %v2708_v40 = vld [vmem:[#allocation8 + $0x50] sm:$0xff]  ;;  %v2701_v16 = vld [vmem:[#allocation8 + $0x18] sm:$0xff] }
 0x2bc   : > { %v11075_v25 = vcombine.low %v3194_v53, %v3202_v43 }
 0x2bd   : > { %13759 = vst [vmem:[#allocation125_spill] sm:$0xff] %v11057_v46  ;;  %13760 = vst [vmem:[#allocation126_spill] sm:$0xff] %v11059_v0  ;;  %v3584_v45 = vmul.f32 %v3572_v57, %v3552_v37  ;;  %v11077_v57 = vcombine.low %v3195_v29, %v3203_v15  ;;  %v2716_v37 = vld [vmem:[#allocation8 + $0x90] sm:$0xff] }
 0x2be   : > { %6283 = vmatpush1.bf16.msra.mxu0 %v11039_v24  ;;  %6369 = vmatpush1.bf16.msra.mxu1 %v11041_v3  ;;  %v3568_v24 = vunpack.c.l.bf16 %v9814_v60  ;;  %v3588_v3 = vmul.f32 %v3576_v23, %v3556_v42  ;;  %13762 = vst [vmem:[#allocation128_spill] sm:$0xff] %v11065_v21  ;;  %v2700_v60 = vld [vmem:[#allocation8 + $0x10] sm:$0xff]  ;;  %v2709_v23 = vld [vmem:[#allocation8 + $0x58] sm:$0xff]  ;;  %13765 = vst [vmem:[#allocation131_spill] sm:$0xff] %v11075_v25 }
 0x2bf   : > { %6284 = vmatprep.subr.bf16.mxu0 %v11045_v51  ;;  %6370 = vmatprep.subr.bf16.mxu1 %v11047_v54  ;;  %v11069_v54 = vcombine.high %v3194_v53, %v3202_v43  ;;  %v11071_v51 = vcombine.high %v3195_v29, %v3203_v15  ;;  %13766 = vst [vmem:[#allocation132_spill] sm:$0xff] %v11077_v57 }
 0x2c0   : > { %v3580_v44 = vmul.f32 %v3568_v24, %v3548_v32  ;;  %v3628_v42 = vpack.c.bf16 %v3588_v3, %v3588_v3  ;;  %v11081_v24 = vcombine.high %v2700_v60, %v2708_v40  ;;  %v11083_v32 = vcombine.high %v2701_v16, %v2709_v23 }
 0x2c1   : > { %13763 = vst [vmem:[#allocation129_spill] sm:$0xff] %v11069_v54  ;;  %13764 = vst [vmem:[#allocation130_spill] sm:$0xff] %v11071_v51  ;;  %v11087_v53 = vcombine.low %v2700_v60, %v2708_v40  ;;  %v11090_v43 = vcombine.low %v2701_v16, %v2709_v23  ;;  %v2733_v60 = vld [vmem:[#allocation8 + $0x118] sm:$0xff] }
 0x2c2   : > { %6285 = vmatpush1.bf16.msra.mxu0 %v11049_v10  ;;  %6371 = vmatpush1.bf16.msra.mxu1 %v11053_v35  ;;  %v3624_v18 = vpack.c.bf16 %v3584_v45, %v3580_v44  ;;  %13767 = vst [vmem:[#allocation133_spill] sm:$0xff] %v11081_v24  ;;  %13768 = vst [vmem:[#allocation134_spill] sm:$0xff] %v11083_v32  ;;  %v3646_v3 = vrot.slane %v3628_v42, 3  ;;  %v2732_v42 = vld [vmem:[#allocation8 + $0x110] sm:$0xff]  ;;  %v2741_v40 = vld [vmem:[#allocation8 + $0x158] sm:$0xff] }
 0x2c3   : > { %6286 = vmatprep.subr.bf16.mxu0 %v11057_v46  ;;  %6372 = vmatprep.subr.bf16.mxu1 %v11059_v0  ;;  %v2724_v0 = vld [vmem:[#allocation8 + $0xd0] sm:$0xff]  ;;  %v2717_v46 = vld [vmem:[#allocation8 + $0x98] sm:$0xff]  ;;  %13769 = vst [vmem:[#allocation135_spill] sm:$0xff] %v11087_v53  ;;  %13770 = vst [vmem:[#allocation136_spill] sm:$0xff] %v11090_v43 }
 0x2c4   : > { %v3645_v15 = vrot.slane %v3624_v18, 3  ;;  %v11096_v44 = vcombine.high %v2716_v37, %v2724_v0  ;;  %v11104_v16 = vcombine.low %v2716_v37, %v2724_v0 }
 0x2c6   : > { %6287 = vmatpush1.bf16.msra.mxu0 %v11061_v17  ;;  %6373 = vmatpush1.bf16.msra.mxu1 %v11065_v21  ;;  %v2725_v17 = vld [vmem:[#allocation8 + $0xd8] sm:$0xff]  ;;  %v11094_v29 = vsel %vm3638_vm1, %v3645_v15, %v3646_v3  ;;  %13771 = vst [vmem:[#allocation137_spill] sm:$0xff] %v11096_v44  ;;  %13773 = vst [vmem:[#allocation139_spill] sm:$0xff] %v11104_v16  ;;  %v11114_v3 = vcombine.high %v2733_v60, %v2741_v40  ;;  %v2748_v15 = vld [vmem:[#allocation8 + $0x190] sm:$0xff] }
 0x2c7   : > { %6288 = vmatprep.subr.bf16.mxu0 %v11069_v54  ;;  %6374 = vmatprep.subr.bf16.mxu1 %v11071_v51  ;;  %v11098_v45 = vcombine.high %v2717_v46, %v2725_v17  ;;  %v11108_v23 = vcombine.low %v2717_v46, %v2725_v17  ;;  %v11121_v46 = vcombine.low %v2733_v60, %v2741_v40  ;;  %v3592_v54 = vld [vmem:[#allocation3 + $0x90] sm:$0x80] }
 0x2c8   : > { %13776 = vst [vmem:[#allocation142_spill] sm:$0xff] %v11114_v3 }
 0x2c9   : > { %13772 = vst [vmem:[#allocation138_spill] sm:$0xff] %v11098_v45  ;;  %13774 = vst [vmem:[#allocation140_spill] sm:$0xff] %v11108_v23 }
 0x2ca   : > { %6289 = vmatpush1.bf16.msra.mxu0 %v11075_v25  ;;  %6375 = vmatpush1.bf16.msra.mxu1 %v11077_v57  ;;  %v2740_v25 = vld [vmem:[#allocation8 + $0x150] sm:$0xff]  ;;  %13778 = vst [vmem:[#allocation144_spill] sm:$0xff] %v11121_v46  ;;  %v2773_v57 = vld [vmem:[#allocation8 + $0x258] sm:$0xff] }
 0x2cb   : > { %6387 = vmatprep.subr.bf16.mxu0 %v11081_v24  ;;  %6473 = vmatprep.subr.bf16.mxu1 %v11083_v32  ;;  %v11110_v18 = vcombine.high %v2732_v42, %v2740_v25  ;;  %v2749_v32 = vld [vmem:[#allocation8 + $0x198] sm:$0xff]  ;;  %v11117_v0 = vcombine.low %v2732_v42, %v2740_v25 }
 0x2cc   : > { %v2757_v24 = vld [vmem:[#allocation8 + $0x1d8] sm:$0xff] }
 0x2cd   : > { %6291 = vmatmul.mubr.bf16.vlgmr.msra.gmra.mrb[32].mxu0 %v11094_v29  ;;  %6377 = vmatmul.mubr.bf16.vlgmr.msra.gmra.mrb[32].mxu1 %v11094_v29  ;;  %13775 = vst [vmem:[#allocation141_spill] sm:$0xff] %v11110_v18  ;;  %13777 = vst [vmem:[#allocation143_spill] sm:$0xff] %v11117_v0  ;;  %v11126_v37 = vcombine.high %v2749_v32, %v2757_v24  ;;  %v11133_v42 = vcombine.low %v2749_v32, %v2757_v24 }
 0x2ce   : > { %6388 = vmatpush1.bf16.msra.mxu0 %v11087_v53  ;;  %6419 = vmatprep.mubr.bf16.mxu0 %v10882_v28  ;;  %v2756_v53 = vld [vmem:[#allocation8 + $0x1d0] sm:$0xff] }
 0x2cf   : > { %6474 = vmatpush1.bf16.msra.mxu1 %v11090_v43  ;;  %6505 = vmatprep.mubr.bf16.mxu1 %v10882_v28  ;;  %v11123_v17 = vcombine.high %v2748_v15, %v2756_v53  ;;  %13780 = vst [vmem:[#allocation146_spill] sm:$0xff] %v11126_v37  ;;  %v2765_v43 = vld [vmem:[#allocation8 + $0x218] sm:$0xff]  ;;  %v11129_v25 = vcombine.low %v2748_v15, %v2756_v53  ;;  %13782 = vst [vmem:[#allocation148_spill] sm:$0xff] %v11133_v42 }
 0x2d0   : > { %6389 = vmatprep.subr.bf16.mxu0 %v11096_v44  ;;  %6475 = vmatprep.subr.bf16.mxu1 %v11098_v45  ;;  %v2764_v45 = vld [vmem:[#allocation8 + $0x210] sm:$0xff]  ;;  %v11138_v40 = vcombine.high %v2765_v43, %v2773_v57  ;;  %v11145_v24 = vcombine.low %v2765_v43, %v2773_v57 }
 0x2d1   : > { %13779 = vst [vmem:[#allocation145_spill] sm:$0xff] %v11123_v17  ;;  %v2772_v44 = vld [vmem:[#allocation8 + $0x250] sm:$0xff]  ;;  %13781 = vst [vmem:[#allocation147_spill] sm:$0xff] %v11129_v25 }
 0x2d2   : > { %6390 = vmatpush1.bf16.msra.mxu0 %v11104_v16  ;;  %v11135_v60 = vcombine.high %v2764_v45, %v2772_v44  ;;  %13784 = vst [vmem:[#allocation150_spill] sm:$0xff] %v11138_v40  ;;  %v2789_v16 = vld [vmem:[#allocation8 + $0x2d8] sm:$0xff]  ;;  %v11141_v53 = vcombine.low %v2764_v45, %v2772_v44  ;;  %13786 = vst [vmem:[#allocation152_spill] sm:$0xff] %v11145_v24 }
 0x2d3   : > { %6476 = vmatpush1.bf16.msra.mxu1 %v11108_v23  ;;  %6391 = vmatprep.subr.bf16.mxu0 %v11110_v18  ;;  %v2788_v18 = vld [vmem:[#allocation8 + $0x2d0] sm:$0xff]  ;;  %v2781_v23 = vld [vmem:[#allocation8 + $0x298] sm:$0xff] }
 0x2d4   : > { %6477 = vmatprep.subr.bf16.mxu1 %v11114_v3  ;;  %13783 = vst [vmem:[#allocation149_spill] sm:$0xff] %v11135_v60  ;;  %v2780_v3 = vld [vmem:[#allocation8 + $0x290] sm:$0xff]  ;;  %13785 = vst [vmem:[#allocation151_spill] sm:$0xff] %v11141_v53  ;;  %v11150_v15 = vcombine.high %v2781_v23, %v2789_v16  ;;  %v11157_v57 = vcombine.low %v2781_v23, %v2789_v16 }
 0x2d5   : > { %v11147_v32 = vcombine.high %v2780_v3, %v2788_v18  ;;  %v11153_v44 = vcombine.low %v2780_v3, %v2788_v18 }
 0x2d6   : > { %6392 = vmatpush1.bf16.msra.mxu0 %v11117_v0  ;;  %13788 = vst [vmem:[#allocation154_spill] sm:$0xff] %v11150_v15  ;;  %v2805_v0 = vld [vmem:[#allocation8 + $0x358] sm:$0xff]  ;;  %13790 = vst [vmem:[#allocation156_spill] sm:$0xff] %v11157_v57 }
 0x2d7   : > { %6478 = vmatpush1.bf16.msra.mxu1 %v11121_v46  ;;  %6393 = vmatprep.subr.bf16.mxu0 %v11123_v17  ;;  %13787 = vst [vmem:[#allocation153_spill] sm:$0xff] %v11147_v32  ;;  %v2804_v17 = vld [vmem:[#allocation8 + $0x350] sm:$0xff]  ;;  %v2797_v46 = vld [vmem:[#allocation8 + $0x318] sm:$0xff]  ;;  %13789 = vst [vmem:[#allocation155_spill] sm:$0xff] %v11153_v44 }
 0x2d8   : > { %6479 = vmatprep.subr.bf16.mxu1 %v11126_v37  ;;  %v2796_v37 = vld [vmem:[#allocation8 + $0x310] sm:$0xff]  ;;  %v11162_v45 = vcombine.high %v2797_v46, %v2805_v0  ;;  %v11169_v16 = vcombine.low %v2797_v46, %v2805_v0 }
 0x2d9   : > { %v11159_v43 = vcombine.high %v2796_v37, %v2804_v17  ;;  %v11165_v18 = vcombine.low %v2796_v37, %v2804_v17 }
 0x2da   : > { %6394 = vmatpush1.bf16.msra.mxu0 %v11129_v25  ;;  %13792 = vst [vmem:[#allocation158_spill] sm:$0xff] %v11162_v45  ;;  %v2821_v25 = vld [vmem:[#allocation8 + $0x3d8] sm:$0xff]  ;;  %13794 = vst [vmem:[#allocation160_spill] sm:$0xff] %v11169_v16 }
 0x2db   : > { %6480 = vmatpush1.bf16.msra.mxu1 %v11133_v42  ;;  %6395 = vmatprep.subr.bf16.mxu0 %v11135_v60  ;;  %13791 = vst [vmem:[#allocation157_spill] sm:$0xff] %v11159_v43  ;;  %v2820_v60 = vld [vmem:[#allocation8 + $0x3d0] sm:$0xff]  ;;  %v2813_v42 = vld [vmem:[#allocation8 + $0x398] sm:$0xff]  ;;  %13793 = vst [vmem:[#allocation159_spill] sm:$0xff] %v11165_v18 }
 0x2dc   : > { %6481 = vmatprep.subr.bf16.mxu1 %v11138_v40  ;;  %v2812_v40 = vld [vmem:[#allocation8 + $0x390] sm:$0xff]  ;;  %v11174_v3 = vcombine.high %v2813_v42, %v2821_v25  ;;  %v11181_v0 = vcombine.low %v2813_v42, %v2821_v25 }
 0x2dd   : > { %v11171_v23 = vcombine.high %v2812_v40, %v2820_v60  ;;  %v11177_v17 = vcombine.low %v2812_v40, %v2820_v60 }
 0x2de   : > { %6396 = vmatpush1.bf16.msra.mxu0 %v11141_v53  ;;  %13796 = vst [vmem:[#allocation162_spill] sm:$0xff] %v11174_v3  ;;  %v2837_v53 = vld [vmem:[#allocation8 + $0x458] sm:$0xff]  ;;  %13798 = vst [vmem:[#allocation164_spill] sm:$0xff] %v11181_v0 }
 0x2df   : > { %6482 = vmatpush1.bf16.msra.mxu1 %v11145_v24  ;;  %6397 = vmatprep.subr.bf16.mxu0 %v11147_v32  ;;  %13795 = vst [vmem:[#allocation161_spill] sm:$0xff] %v11171_v23  ;;  %v2836_v32 = vld [vmem:[#allocation8 + $0x450] sm:$0xff]  ;;  %v2829_v24 = vld [vmem:[#allocation8 + $0x418] sm:$0xff]  ;;  %13797 = vst [vmem:[#allocation163_spill] sm:$0xff] %v11177_v17 }
 0x2e0   : > { %6483 = vmatprep.subr.bf16.mxu1 %v11150_v15  ;;  %v2828_v15 = vld [vmem:[#allocation8 + $0x410] sm:$0xff]  ;;  %v11186_v37 = vcombine.high %v2829_v24, %v2837_v53  ;;  %v11193_v25 = vcombine.low %v2829_v24, %v2837_v53 }
 0x2e1   : > { %v11183_v46 = vcombine.high %v2828_v15, %v2836_v32  ;;  %v11189_v60 = vcombine.low %v2828_v15, %v2836_v32 }
 0x2e2   : > { %6398 = vmatpush1.bf16.msra.mxu0 %v11153_v44  ;;  %13800 = vst [vmem:[#allocation166_spill] sm:$0xff] %v11186_v37  ;;  %v2853_v44 = vld [vmem:[#allocation8 + $0x4d8] sm:$0xff]  ;;  %13802 = vst [vmem:[#allocation168_spill] sm:$0xff] %v11193_v25 }
 0x2e3   : > { %6484 = vmatpush1.bf16.msra.mxu1 %v11157_v57  ;;  %6399 = vmatprep.subr.bf16.mxu0 %v11159_v43  ;;  %13799 = vst [vmem:[#allocation165_spill] sm:$0xff] %v11183_v46  ;;  %v2852_v43 = vld [vmem:[#allocation8 + $0x4d0] sm:$0xff]  ;;  %v2845_v57 = vld [vmem:[#allocation8 + $0x498] sm:$0xff]  ;;  %13801 = vst [vmem:[#allocation167_spill] sm:$0xff] %v11189_v60 }
 0x2e4   : > { %6485 = vmatprep.subr.bf16.mxu1 %v11162_v45  ;;  %v2844_v45 = vld [vmem:[#allocation8 + $0x490] sm:$0xff]  ;;  %v11198_v40 = vcombine.high %v2845_v57, %v2853_v44  ;;  %v11205_v53 = vcombine.low %v2845_v57, %v2853_v44 }
 0x2e5   : > { %v11195_v42 = vcombine.high %v2844_v45, %v2852_v43  ;;  %v11201_v32 = vcombine.low %v2844_v45, %v2852_v43 }
 0x2e6   : > { %6400 = vmatpush1.bf16.msra.mxu0 %v11165_v18  ;;  %13804 = vst [vmem:[#allocation170_spill] sm:$0xff] %v11198_v40  ;;  %v2869_v18 = vld [vmem:[#allocation8 + $0x558] sm:$0xff]  ;;  %13806 = vst [vmem:[#allocation172_spill] sm:$0xff] %v11205_v53 }
 0x2e7   : > { %6486 = vmatpush1.bf16.msra.mxu1 %v11169_v16  ;;  %6401 = vmatprep.subr.bf16.mxu0 %v11171_v23  ;;  %13803 = vst [vmem:[#allocation169_spill] sm:$0xff] %v11195_v42  ;;  %v2868_v23 = vld [vmem:[#allocation8 + $0x550] sm:$0xff]  ;;  %v2861_v16 = vld [vmem:[#allocation8 + $0x518] sm:$0xff]  ;;  %13805 = vst [vmem:[#allocation171_spill] sm:$0xff] %v11201_v32 }
 0x2e8   : > { %6487 = vmatprep.subr.bf16.mxu1 %v11174_v3  ;;  %v2860_v3 = vld [vmem:[#allocation8 + $0x510] sm:$0xff]  ;;  %v11210_v15 = vcombine.high %v2861_v16, %v2869_v18  ;;  %v11217_v44 = vcombine.low %v2861_v16, %v2869_v18 }
 0x2e9   : > { %v11207_v24 = vcombine.high %v2860_v3, %v2868_v23  ;;  %v11213_v43 = vcombine.low %v2860_v3, %v2868_v23 }
 0x2ea   : > { %6402 = vmatpush1.bf16.msra.mxu0 %v11177_v17  ;;  %13808 = vst [vmem:[#allocation174_spill] sm:$0xff] %v11210_v15  ;;  %v2885_v17 = vld [vmem:[#allocation8 + $0x5d8] sm:$0xff]  ;;  %13810 = vst [vmem:[#allocation176_spill] sm:$0xff] %v11217_v44 }
 0x2eb   : > { %6488 = vmatpush1.bf16.msra.mxu1 %v11181_v0  ;;  %6403 = vmatprep.subr.bf16.mxu0 %v11183_v46  ;;  %13807 = vst [vmem:[#allocation173_spill] sm:$0xff] %v11207_v24  ;;  %v2884_v46 = vld [vmem:[#allocation8 + $0x5d0] sm:$0xff]  ;;  %v2877_v0 = vld [vmem:[#allocation8 + $0x598] sm:$0xff]  ;;  %13809 = vst [vmem:[#allocation175_spill] sm:$0xff] %v11213_v43 }
 0x2ec   : > { %6489 = vmatprep.subr.bf16.mxu1 %v11186_v37  ;;  %v2876_v37 = vld [vmem:[#allocation8 + $0x590] sm:$0xff]  ;;  %v11222_v45 = vcombine.high %v2877_v0, %v2885_v17  ;;  %v11229_v18 = vcombine.low %v2877_v0, %v2885_v17 }
 0x2ed   : > { %v11219_v57 = vcombine.high %v2876_v37, %v2884_v46  ;;  %v11225_v23 = vcombine.low %v2876_v37, %v2884_v46 }
 0x2ee   : > { %6404 = vmatpush1.bf16.msra.mxu0 %v11189_v60  ;;  %13812 = vst [vmem:[#allocation178_spill] sm:$0xff] %v11222_v45  ;;  %v2901_v60 = vld [vmem:[#allocation8 + $0x658] sm:$0xff]  ;;  %13814 = vst [vmem:[#allocation180_spill] sm:$0xff] %v11229_v18 }
 0x2ef   : > { %6490 = vmatpush1.bf16.msra.mxu1 %v11193_v25  ;;  %6405 = vmatprep.subr.bf16.mxu0 %v11195_v42  ;;  %13811 = vst [vmem:[#allocation177_spill] sm:$0xff] %v11219_v57  ;;  %v2900_v42 = vld [vmem:[#allocation8 + $0x650] sm:$0xff]  ;;  %v2893_v25 = vld [vmem:[#allocation8 + $0x618] sm:$0xff]  ;;  %13813 = vst [vmem:[#allocation179_spill] sm:$0xff] %v11225_v23 }
 0x2f0   : > { %6491 = vmatprep.subr.bf16.mxu1 %v11198_v40  ;;  %v2892_v40 = vld [vmem:[#allocation8 + $0x610] sm:$0xff]  ;;  %v11234_v3 = vcombine.high %v2893_v25, %v2901_v60  ;;  %v11241_v17 = vcombine.low %v2893_v25, %v2901_v60 }
 0x2f1   : > { %v11231_v16 = vcombine.high %v2892_v40, %v2900_v42  ;;  %v11237_v46 = vcombine.low %v2892_v40, %v2900_v42 }
 0x2f2   : > { %6406 = vmatpush1.bf16.msra.mxu0 %v11201_v32  ;;  %13816 = vst [vmem:[#allocation182_spill] sm:$0xff] %v11234_v3  ;;  %v2917_v32 = vld [vmem:[#allocation8 + $0x6d8] sm:$0xff]  ;;  %13818 = vst [vmem:[#allocation184_spill] sm:$0xff] %v11241_v17 }
 0x2f3   : > { %6492 = vmatpush1.bf16.msra.mxu1 %v11205_v53  ;;  %6407 = vmatprep.subr.bf16.mxu0 %v11207_v24  ;;  %13815 = vst [vmem:[#allocation181_spill] sm:$0xff] %v11231_v16  ;;  %v2916_v24 = vld [vmem:[#allocation8 + $0x6d0] sm:$0xff]  ;;  %v2909_v53 = vld [vmem:[#allocation8 + $0x698] sm:$0xff]  ;;  %13817 = vst [vmem:[#allocation183_spill] sm:$0xff] %v11237_v46 }
 0x2f4   : > { %6493 = vmatprep.subr.bf16.mxu1 %v11210_v15  ;;  %v2908_v15 = vld [vmem:[#allocation8 + $0x690] sm:$0xff]  ;;  %v11246_v37 = vcombine.high %v2909_v53, %v2917_v32  ;;  %v11253_v60 = vcombine.low %v2909_v53, %v2917_v32 }
 0x2f5   : > { %v11243_v0 = vcombine.high %v2908_v15, %v2916_v24  ;;  %v11249_v42 = vcombine.low %v2908_v15, %v2916_v24 }
 0x2f6   : > { %6408 = vmatpush1.bf16.msra.mxu0 %v11213_v43  ;;  %13820 = vst [vmem:[#allocation186_spill] sm:$0xff] %v11246_v37  ;;  %v2933_v43 = vld [vmem:[#allocation8 + $0x758] sm:$0xff]  ;;  %13822 = vst [vmem:[#allocation188_spill] sm:$0xff] %v11253_v60 }
 0x2f7   : > { %6494 = vmatpush1.bf16.msra.mxu1 %v11217_v44  ;;  %6409 = vmatprep.subr.bf16.mxu0 %v11219_v57  ;;  %13819 = vst [vmem:[#allocation185_spill] sm:$0xff] %v11243_v0  ;;  %v2932_v57 = vld [vmem:[#allocation8 + $0x750] sm:$0xff]  ;;  %v2925_v44 = vld [vmem:[#allocation8 + $0x718] sm:$0xff]  ;;  %13821 = vst [vmem:[#allocation187_spill] sm:$0xff] %v11249_v42 }
 0x2f8   : > { %6495 = vmatprep.subr.bf16.mxu1 %v11222_v45  ;;  %v2924_v45 = vld [vmem:[#allocation8 + $0x710] sm:$0xff]  ;;  %v11258_v40 = vcombine.high %v2925_v44, %v2933_v43  ;;  %v11265_v32 = vcombine.low %v2925_v44, %v2933_v43 }
 0x2f9   : > { %v11255_v25 = vcombine.high %v2924_v45, %v2932_v57  ;;  %v11261_v24 = vcombine.low %v2924_v45, %v2932_v57 }
 0x2fa   : > { %6410 = vmatpush1.bf16.msra.mxu0 %v11225_v23  ;;  %13824 = vst [vmem:[#allocation190_spill] sm:$0xff] %v11258_v40  ;;  %v2949_v23 = vld [vmem:[#allocation8 + $0x7d8] sm:$0xff]  ;;  %13826 = vst [vmem:[#allocation192_spill] sm:$0xff] %v11265_v32 }
 0x2fb   : > { %6496 = vmatpush1.bf16.msra.mxu1 %v11229_v18  ;;  %6411 = vmatprep.subr.bf16.mxu0 %v11231_v16  ;;  %13823 = vst [vmem:[#allocation189_spill] sm:$0xff] %v11255_v25  ;;  %v2948_v16 = vld [vmem:[#allocation8 + $0x7d0] sm:$0xff]  ;;  %v2941_v18 = vld [vmem:[#allocation8 + $0x798] sm:$0xff]  ;;  %13825 = vst [vmem:[#allocation191_spill] sm:$0xff] %v11261_v24 }
 0x2fc   : > { %6497 = vmatprep.subr.bf16.mxu1 %v11234_v3  ;;  %v2940_v3 = vld [vmem:[#allocation8 + $0x790] sm:$0xff]  ;;  %v11270_v15 = vcombine.high %v2941_v18, %v2949_v23  ;;  %v11277_v43 = vcombine.low %v2941_v18, %v2949_v23 }
 0x2fd   : > { %v11267_v53 = vcombine.high %v2940_v3, %v2948_v16  ;;  %v11273_v57 = vcombine.low %v2940_v3, %v2948_v16  ;;  %v2973_v16 = vld [vmem:[#allocation8 + $0x898] sm:$0xff] }
 0x2fe   : > { %6412 = vmatpush1.bf16.msra.mxu0 %v11237_v46  ;;  %13828 = vst [vmem:[#allocation194_spill] sm:$0xff] %v11270_v15  ;;  %v2965_v46 = vld [vmem:[#allocation8 + $0x858] sm:$0xff]  ;;  %13830 = vst [vmem:[#allocation196_spill] sm:$0xff] %v11277_v43 }
 0x2ff   : > { %6498 = vmatpush1.bf16.msra.mxu1 %v11241_v17  ;;  %6413 = vmatprep.subr.bf16.mxu0 %v11243_v0  ;;  %13827 = vst [vmem:[#allocation193_spill] sm:$0xff] %v11267_v53  ;;  %v2964_v0 = vld [vmem:[#allocation8 + $0x850] sm:$0xff]  ;;  %v2957_v17 = vld [vmem:[#allocation8 + $0x818] sm:$0xff]  ;;  %13829 = vst [vmem:[#allocation195_spill] sm:$0xff] %v11273_v57 }
 0x300   : > { %6499 = vmatprep.subr.bf16.mxu1 %v11246_v37  ;;  %v2956_v37 = vld [vmem:[#allocation8 + $0x810] sm:$0xff]  ;;  %v11282_v45 = vcombine.high %v2957_v17, %v2965_v46  ;;  %v2981_v3 = vld [vmem:[#allocation8 + $0x8d8] sm:$0xff]  ;;  %v11289_v23 = vcombine.low %v2957_v17, %v2965_v46 }
 0x301   : > { %v11279_v44 = vcombine.high %v2956_v37, %v2964_v0  ;;  %v11303_v46 = vcombine.low %v2973_v16, %v2981_v3 }
 0x302   : > { %6414 = vmatpush1.bf16.msra.mxu0 %v11249_v42  ;;  %13832 = vst [vmem:[#allocation198_spill] sm:$0xff] %v11282_v45  ;;  %13834 = vst [vmem:[#allocation200_spill] sm:$0xff] %v11289_v23  ;;  %v3029_v42 = vld [vmem:[#allocation8 + $0xa58] sm:$0xff] }
 0x303   : > { %6500 = vmatpush1.bf16.msra.mxu1 %v11253_v60  ;;  %6415 = vmatprep.subr.bf16.mxu0 %v11255_v25  ;;  %13831 = vst [vmem:[#allocation197_spill] sm:$0xff] %v11279_v44  ;;  %v2980_v25 = vld [vmem:[#allocation8 + $0x8d0] sm:$0xff]  ;;  %v11285_v60 = vcombine.low %v2956_v37, %v2964_v0  ;;  %v2989_v0 = vld [vmem:[#allocation8 + $0x918] sm:$0xff]  ;;  %13838 = vst [vmem:[#allocation204_spill] sm:$0xff] %v11303_v46 }
 0x304   : > { %6501 = vmatprep.subr.bf16.mxu1 %v11258_v40  ;;  %v2972_v40 = vld [vmem:[#allocation8 + $0x890] sm:$0xff]  ;;  %v2997_v37 = vld [vmem:[#allocation8 + $0x958] sm:$0xff] }
 0x305   : > { %13833 = vst [vmem:[#allocation199_spill] sm:$0xff] %v11285_v60  ;;  %v11292_v18 = vcombine.high %v2972_v40, %v2980_v25 }
 0x306   : > { %6416 = vmatpush1.bf16.msra.mxu0 %v11261_v24  ;;  %v3021_v24 = vld [vmem:[#allocation8 + $0xa18] sm:$0xff] }
 0x307   : > { %6502 = vmatpush1.bf16.msra.mxu1 %v11265_v32  ;;  %6417 = vmatprep.subr.bf16.mxu0 %v11267_v53  ;;  %13835 = vst [vmem:[#allocation201_spill] sm:$0xff] %v11292_v18  ;;  %v2996_v53 = vld [vmem:[#allocation8 + $0x950] sm:$0xff]  ;;  %v11295_v32 = vcombine.high %v2973_v16, %v2981_v3  ;;  %v11317_v16 = vcombine.low %v2989_v0, %v2997_v37 }
 0x308   : > { %6503 = vmatprep.subr.bf16.mxu1 %v11270_v15  ;;  %v2988_v15 = vld [vmem:[#allocation8 + $0x910] sm:$0xff] }
 0x309   : > { %13836 = vst [vmem:[#allocation202_spill] sm:$0xff] %v11295_v32  ;;  %v11305_v17 = vcombine.high %v2988_v15, %v2996_v53  ;;  %13842 = vst [vmem:[#allocation208_spill] sm:$0xff] %v11317_v16 }
 0x30a   : > { %6418 = vmatpush1.bf16.msra.mxu0 %v11273_v57  ;;  %v3012_v57 = vld [vmem:[#allocation8 + $0x9d0] sm:$0xff] }
 0x30b   : > { %6504 = vmatpush1.bf16.msra.mxu1 %v11277_v43  ;;  %6430 = vmatprep.subr.bf16.mxu0 %v11279_v44  ;;  %v11299_v43 = vcombine.low %v2972_v40, %v2980_v25  ;;  %13839 = vst [vmem:[#allocation205_spill] sm:$0xff] %v11305_v17  ;;  %v3004_v44 = vld [vmem:[#allocation8 + $0x990] sm:$0xff]  ;;  %v3005_v25 = vld [vmem:[#allocation8 + $0x998] sm:$0xff] }
 0x30c   : > { %6516 = vmatprep.subr.bf16.mxu1 %v11282_v45  ;;  %v11309_v45 = vcombine.high %v2989_v0, %v2997_v37  ;;  %v3013_v40 = vld [vmem:[#allocation8 + $0x9d8] sm:$0xff]  ;;  %v11319_v3 = vcombine.high %v3004_v44, %v3012_v57  ;;  %v11334_v37 = vcombine.high %v3021_v24, %v3029_v42 }
 0x30d   : > { %6420 = vmatmul.mubr.bf16.vlgmr.msra.gmra.mrb[36].mxu0 %v10887_v36  ;;  %13837 = vst [vmem:[#allocation203_spill] sm:$0xff] %v11299_v43 }
 0x30e   : > { %6506 = vmatmul.mubr.bf16.vlgmr.msra.gmra.mrb[36].mxu1 %v10887_v36  ;;  %6431 = vmatpush1.bf16.msra.mxu0 %v11285_v60  ;;  %13840 = vst [vmem:[#allocation206_spill] sm:$0xff] %v11309_v45  ;;  %v11313_v60 = vcombine.low %v2988_v15, %v2996_v53  ;;  %13843 = vst [vmem:[#allocation209_spill] sm:$0xff] %v11319_v3  ;;  %v11325_v53 = vcombine.low %v3004_v44, %v3012_v57 }
 0x30f   : > { %6462 = vmatprep.mubr.bf16.mxu0 %v10898_v7  ;;  %6517 = vmatpush1.bf16.msra.mxu1 %v11289_v23  ;;  %v3020_v23 = vld [vmem:[#allocation8 + $0xa10] sm:$0xff]  ;;  %v11329_v15 = vcombine.low %v3005_v25, %v3013_v40  ;;  %13848 = vst [vmem:[#allocation214_spill] sm:$0xff] %v11334_v37  ;;  %v11341_v44 = vcombine.low %v3021_v24, %v3029_v42 }
 0x310   : > { %6548 = vmatprep.mubr.bf16.mxu1 %v10898_v7  ;;  %6432 = vmatprep.subr.bf16.mxu0 %v11292_v18  ;;  %13841 = vst [vmem:[#allocation207_spill] sm:$0xff] %v11313_v60  ;;  %v11322_v18 = vcombine.high %v3005_v25, %v3013_v40  ;;  %13845 = vst [vmem:[#allocation211_spill] sm:$0xff] %v11325_v53 }
 0x311   : > { %6518 = vmatprep.subr.bf16.mxu1 %v11295_v32  ;;  %v3028_v32 = vld [vmem:[#allocation8 + $0xa50] sm:$0xff]  ;;  %13846 = vst [vmem:[#allocation212_spill] sm:$0xff] %v11329_v15  ;;  %13850 = vst [vmem:[#allocation216_spill] sm:$0xff] %v11341_v44 }
 0x312   : > { %6433 = vmatpush1.bf16.msra.mxu0 %v11299_v43  ;;  %13844 = vst [vmem:[#allocation210_spill] sm:$0xff] %v11322_v18  ;;  %v11331_v0 = vcombine.high %v3020_v23, %v3028_v32  ;;  %v3045_v43 = vld [vmem:[#allocation8 + $0xad8] sm:$0xff]  ;;  %v11337_v57 = vcombine.low %v3020_v23, %v3028_v32 }
 0x313   : > { %6519 = vmatpush1.bf16.msra.mxu1 %v11303_v46  ;;  %6434 = vmatprep.subr.bf16.mxu0 %v11305_v17  ;;  %v3044_v17 = vld [vmem:[#allocation8 + $0xad0] sm:$0xff]  ;;  %v3037_v46 = vld [vmem:[#allocation8 + $0xa98] sm:$0xff] }
 0x314   : > { %6520 = vmatprep.subr.bf16.mxu1 %v11309_v45  ;;  %13847 = vst [vmem:[#allocation213_spill] sm:$0xff] %v11331_v0  ;;  %v3036_v45 = vld [vmem:[#allocation8 + $0xa90] sm:$0xff]  ;;  %13849 = vst [vmem:[#allocation215_spill] sm:$0xff] %v11337_v57  ;;  %v11346_v40 = vcombine.high %v3037_v46, %v3045_v43  ;;  %v11353_v42 = vcombine.low %v3037_v46, %v3045_v43 }
 0x315   : > { %v11343_v25 = vcombine.high %v3036_v45, %v3044_v17  ;;  %v11349_v32 = vcombine.low %v3036_v45, %v3044_v17 }
 0x316   : > { %6435 = vmatpush1.bf16.msra.mxu0 %v11313_v60  ;;  %13852 = vst [vmem:[#allocation218_spill] sm:$0xff] %v11346_v40  ;;  %v3061_v60 = vld [vmem:[#allocation8 + $0xb58] sm:$0xff]  ;;  %13854 = vst [vmem:[#allocation220_spill] sm:$0xff] %v11353_v42 }
 0x317   : > { %6521 = vmatpush1.bf16.msra.mxu1 %v11317_v16  ;;  %6436 = vmatprep.subr.bf16.mxu0 %v11319_v3  ;;  %13851 = vst [vmem:[#allocation217_spill] sm:$0xff] %v11343_v25  ;;  %v3060_v3 = vld [vmem:[#allocation8 + $0xb50] sm:$0xff]  ;;  %v3053_v16 = vld [vmem:[#allocation8 + $0xb18] sm:$0xff]  ;;  %13853 = vst [vmem:[#allocation219_spill] sm:$0xff] %v11349_v32 }
 0x318   : > { %6522 = vmatprep.subr.bf16.mxu1 %v11322_v18  ;;  %v3052_v18 = vld [vmem:[#allocation8 + $0xb10] sm:$0xff]  ;;  %v11358_v23 = vcombine.high %v3053_v16, %v3061_v60  ;;  %v11365_v43 = vcombine.low %v3053_v16, %v3061_v60 }
 0x319   : > { %v11355_v24 = vcombine.high %v3052_v18, %v3060_v3  ;;  %v11361_v45 = vcombine.low %v3052_v18, %v3060_v3 }
 0x31a   : > { %6437 = vmatpush1.bf16.msra.mxu0 %v11325_v53  ;;  %13856 = vst [vmem:[#allocation222_spill] sm:$0xff] %v11358_v23  ;;  %v3077_v53 = vld [vmem:[#allocation8 + $0xbd8] sm:$0xff]  ;;  %13858 = vst [vmem:[#allocation224_spill] sm:$0xff] %v11365_v43 }
 0x31b   : > { %6523 = vmatpush1.bf16.msra.mxu1 %v11329_v15  ;;  %6438 = vmatprep.subr.bf16.mxu0 %v11331_v0  ;;  %13855 = vst [vmem:[#allocation221_spill] sm:$0xff] %v11355_v24  ;;  %v3076_v0 = vld [vmem:[#allocation8 + $0xbd0] sm:$0xff]  ;;  %v3069_v15 = vld [vmem:[#allocation8 + $0xb98] sm:$0xff]  ;;  %13857 = vst [vmem:[#allocation223_spill] sm:$0xff] %v11361_v45 }
 0x31c   : > { %6524 = vmatprep.subr.bf16.mxu1 %v11334_v37  ;;  %v3068_v37 = vld [vmem:[#allocation8 + $0xb90] sm:$0xff]  ;;  %v11370_v17 = vcombine.high %v3069_v15, %v3077_v53  ;;  %v11377_v60 = vcombine.low %v3069_v15, %v3077_v53 }
 0x31d   : > { %v11367_v46 = vcombine.high %v3068_v37, %v3076_v0  ;;  %v11373_v18 = vcombine.low %v3068_v37, %v3076_v0 }
 0x31e   : > { %6439 = vmatpush1.bf16.msra.mxu0 %v11337_v57  ;;  %13860 = vst [vmem:[#allocation226_spill] sm:$0xff] %v11370_v17  ;;  %v3093_v57 = vld [vmem:[#allocation8 + $0xc58] sm:$0xff]  ;;  %13862 = vst [vmem:[#allocation228_spill] sm:$0xff] %v11377_v60 }
 0x31f   : > { %6525 = vmatpush1.bf16.msra.mxu1 %v11341_v44  ;;  %6440 = vmatprep.subr.bf16.mxu0 %v11343_v25  ;;  %13859 = vst [vmem:[#allocation225_spill] sm:$0xff] %v11367_v46  ;;  %v3092_v25 = vld [vmem:[#allocation8 + $0xc50] sm:$0xff]  ;;  %v3085_v44 = vld [vmem:[#allocation8 + $0xc18] sm:$0xff]  ;;  %13861 = vst [vmem:[#allocation227_spill] sm:$0xff] %v11373_v18 }
 0x320   : > { %6526 = vmatprep.subr.bf16.mxu1 %v11346_v40  ;;  %v3084_v40 = vld [vmem:[#allocation8 + $0xc10] sm:$0xff]  ;;  %v11382_v3 = vcombine.high %v3085_v44, %v3093_v57  ;;  %v11389_v53 = vcombine.low %v3085_v44, %v3093_v57 }
 0x321   : > { %v11379_v16 = vcombine.high %v3084_v40, %v3092_v25  ;;  %v11385_v0 = vcombine.low %v3084_v40, %v3092_v25 }
 0x322   : > { %6441 = vmatpush1.bf16.msra.mxu0 %v11349_v32  ;;  %13864 = vst [vmem:[#allocation230_spill] sm:$0xff] %v11382_v3  ;;  %v3109_v32 = vld [vmem:[#allocation8 + $0xcd8] sm:$0xff]  ;;  %13866 = vst [vmem:[#allocation232_spill] sm:$0xff] %v11389_v53 }
 0x323   : > { %6527 = vmatpush1.bf16.msra.mxu1 %v11353_v42  ;;  %6442 = vmatprep.subr.bf16.mxu0 %v11355_v24  ;;  %13863 = vst [vmem:[#allocation229_spill] sm:$0xff] %v11379_v16  ;;  %v3108_v24 = vld [vmem:[#allocation8 + $0xcd0] sm:$0xff]  ;;  %v3101_v42 = vld [vmem:[#allocation8 + $0xc98] sm:$0xff]  ;;  %13865 = vst [vmem:[#allocation231_spill] sm:$0xff] %v11385_v0 }
 0x324   : > { %6528 = vmatprep.subr.bf16.mxu1 %v11358_v23  ;;  %v3100_v23 = vld [vmem:[#allocation8 + $0xc90] sm:$0xff]  ;;  %v11394_v37 = vcombine.high %v3101_v42, %v3109_v32  ;;  %v11401_v57 = vcombine.low %v3101_v42, %v3109_v32 }
 0x325   : > { %v11391_v15 = vcombine.high %v3100_v23, %v3108_v24  ;;  %v11397_v25 = vcombine.low %v3100_v23, %v3108_v24 }
 0x326   : > { %6443 = vmatpush1.bf16.msra.mxu0 %v11361_v45  ;;  %13868 = vst [vmem:[#allocation234_spill] sm:$0xff] %v11394_v37  ;;  %v3125_v45 = vld [vmem:[#allocation8 + $0xd58] sm:$0xff]  ;;  %13870 = vst [vmem:[#allocation236_spill] sm:$0xff] %v11401_v57 }
 0x327   : > { %6529 = vmatpush1.bf16.msra.mxu1 %v11365_v43  ;;  %6444 = vmatprep.subr.bf16.mxu0 %v11367_v46  ;;  %13867 = vst [vmem:[#allocation233_spill] sm:$0xff] %v11391_v15  ;;  %v3124_v46 = vld [vmem:[#allocation8 + $0xd50] sm:$0xff]  ;;  %v3117_v43 = vld [vmem:[#allocation8 + $0xd18] sm:$0xff]  ;;  %13869 = vst [vmem:[#allocation235_spill] sm:$0xff] %v11397_v25 }
 0x328   : > { %6530 = vmatprep.subr.bf16.mxu1 %v11370_v17  ;;  %v3116_v17 = vld [vmem:[#allocation8 + $0xd10] sm:$0xff]  ;;  %v11406_v40 = vcombine.high %v3117_v43, %v3125_v45  ;;  %v11413_v32 = vcombine.low %v3117_v43, %v3125_v45 }
 0x329   : > { %v11403_v44 = vcombine.high %v3116_v17, %v3124_v46  ;;  %v11409_v24 = vcombine.low %v3116_v17, %v3124_v46 }
 0x32a   : > { %6445 = vmatpush1.bf16.msra.mxu0 %v11373_v18  ;;  %13872 = vst [vmem:[#allocation238_spill] sm:$0xff] %v11406_v40  ;;  %v3141_v18 = vld [vmem:[#allocation8 + $0xdd8] sm:$0xff]  ;;  %13874 = vst [vmem:[#allocation240_spill] sm:$0xff] %v11413_v32 }
 0x32b   : > { %6531 = vmatpush1.bf16.msra.mxu1 %v11377_v60  ;;  %6446 = vmatprep.subr.bf16.mxu0 %v11379_v16  ;;  %13871 = vst [vmem:[#allocation237_spill] sm:$0xff] %v11403_v44  ;;  %v3140_v16 = vld [vmem:[#allocation8 + $0xdd0] sm:$0xff]  ;;  %v3133_v60 = vld [vmem:[#allocation8 + $0xd98] sm:$0xff]  ;;  %13873 = vst [vmem:[#allocation239_spill] sm:$0xff] %v11409_v24 }
 0x32c   : > { %6532 = vmatprep.subr.bf16.mxu1 %v11382_v3  ;;  %v3132_v3 = vld [vmem:[#allocation8 + $0xd90] sm:$0xff]  ;;  %v11418_v23 = vcombine.high %v3133_v60, %v3141_v18  ;;  %v11425_v45 = vcombine.low %v3133_v60, %v3141_v18 }
 0x32d   : > { %v11415_v42 = vcombine.high %v3132_v3, %v3140_v16  ;;  %v11421_v46 = vcombine.low %v3132_v3, %v3140_v16 }
 0x32e   : > { %6447 = vmatpush1.bf16.msra.mxu0 %v11385_v0  ;;  %13876 = vst [vmem:[#allocation242_spill] sm:$0xff] %v11418_v23  ;;  %v3157_v0 = vld [vmem:[#allocation8 + $0xe58] sm:$0xff]  ;;  %13878 = vst [vmem:[#allocation244_spill] sm:$0xff] %v11425_v45 }
 0x32f   : > { %6533 = vmatpush1.bf16.msra.mxu1 %v11389_v53  ;;  %6448 = vmatprep.subr.bf16.mxu0 %v11391_v15  ;;  %13875 = vst [vmem:[#allocation241_spill] sm:$0xff] %v11415_v42  ;;  %v3156_v15 = vld [vmem:[#allocation8 + $0xe50] sm:$0xff]  ;;  %v3149_v53 = vld [vmem:[#allocation8 + $0xe18] sm:$0xff]  ;;  %13877 = vst [vmem:[#allocation243_spill] sm:$0xff] %v11421_v46 }
 0x330   : > { %6534 = vmatprep.subr.bf16.mxu1 %v11394_v37  ;;  %v3148_v37 = vld [vmem:[#allocation8 + $0xe10] sm:$0xff]  ;;  %v11430_v17 = vcombine.high %v3149_v53, %v3157_v0  ;;  %v11437_v18 = vcombine.low %v3149_v53, %v3157_v0 }
 0x331   : > { %v11427_v43 = vcombine.high %v3148_v37, %v3156_v15  ;;  %v11433_v16 = vcombine.low %v3148_v37, %v3156_v15 }
 0x332   : > { %6449 = vmatpush1.bf16.msra.mxu0 %v11397_v25  ;;  %13880 = vst [vmem:[#allocation246_spill] sm:$0xff] %v11430_v17  ;;  %v3173_v25 = vld [vmem:[#allocation8 + $0xed8] sm:$0xff]  ;;  %13882 = vst [vmem:[#allocation248_spill] sm:$0xff] %v11437_v18 }
 0x333   : > { %6535 = vmatpush1.bf16.msra.mxu1 %v11401_v57  ;;  %6450 = vmatprep.subr.bf16.mxu0 %v11403_v44  ;;  %13879 = vst [vmem:[#allocation245_spill] sm:$0xff] %v11427_v43  ;;  %v3172_v44 = vld [vmem:[#allocation8 + $0xed0] sm:$0xff]  ;;  %v3165_v57 = vld [vmem:[#allocation8 + $0xe98] sm:$0xff]  ;;  %13881 = vst [vmem:[#allocation247_spill] sm:$0xff] %v11433_v16 }
 0x334   : > { %6536 = vmatprep.subr.bf16.mxu1 %v11406_v40  ;;  %v3164_v40 = vld [vmem:[#allocation8 + $0xe90] sm:$0xff]  ;;  %v11442_v3 = vcombine.high %v3165_v57, %v3173_v25  ;;  %v11449_v0 = vcombine.low %v3165_v57, %v3173_v25 }
 0x335   : > { %v11439_v60 = vcombine.high %v3164_v40, %v3172_v44  ;;  %v11445_v15 = vcombine.low %v3164_v40, %v3172_v44 }
 0x336   : > { %6451 = vmatpush1.bf16.msra.mxu0 %v11409_v24  ;;  %13884 = vst [vmem:[#allocation250_spill] sm:$0xff] %v11442_v3  ;;  %v3189_v24 = vld [vmem:[#allocation8 + $0xf58] sm:$0xff]  ;;  %13886 = vst [vmem:[#allocation252_spill] sm:$0xff] %v11449_v0 }
 0x337   : > { %6537 = vmatpush1.bf16.msra.mxu1 %v11413_v32  ;;  %6452 = vmatprep.subr.bf16.mxu0 %v11415_v42  ;;  %13883 = vst [vmem:[#allocation249_spill] sm:$0xff] %v11439_v60  ;;  %v3188_v42 = vld [vmem:[#allocation8 + $0xf50] sm:$0xff]  ;;  %v3181_v32 = vld [vmem:[#allocation8 + $0xf18] sm:$0xff]  ;;  %13885 = vst [vmem:[#allocation251_spill] sm:$0xff] %v11445_v15 }
 0x338   : > { %6538 = vmatprep.subr.bf16.mxu1 %v11418_v23  ;;  %v3180_v23 = vld [vmem:[#allocation8 + $0xf10] sm:$0xff]  ;;  %v11454_v37 = vcombine.high %v3181_v32, %v3189_v24  ;;  %v11461_v25 = vcombine.low %v3181_v32, %v3189_v24 }
 0x339   : > { %v11451_v53 = vcombine.high %v3180_v23, %v3188_v42  ;;  %v11457_v44 = vcombine.low %v3180_v23, %v3188_v42 }
 0x33a   : > { %6453 = vmatpush1.bf16.msra.mxu0 %v11421_v46  ;;  %13888 = vst [vmem:[#allocation254_spill] sm:$0xff] %v11454_v37  ;;  %v3205_v46 = vld [vmem:[#allocation8 + $0xfd8] sm:$0xff]  ;;  %13890 = vst [vmem:[#allocation256_spill] sm:$0xff] %v11461_v25 }
 0x33b   : > { %6539 = vmatpush1.bf16.msra.mxu1 %v11425_v45  ;;  %6454 = vmatprep.subr.bf16.mxu0 %v11427_v43  ;;  %13887 = vst [vmem:[#allocation253_spill] sm:$0xff] %v11451_v53  ;;  %v3204_v43 = vld [vmem:[#allocation8 + $0xfd0] sm:$0xff]  ;;  %v3197_v45 = vld [vmem:[#allocation8 + $0xf98] sm:$0xff]  ;;  %13889 = vst [vmem:[#allocation255_spill] sm:$0xff] %v11457_v44 }
 0x33c   : > { %6540 = vmatprep.subr.bf16.mxu1 %v11430_v17  ;;  %v3196_v17 = vld [vmem:[#allocation8 + $0xf90] sm:$0xff]  ;;  %v11466_v40 = vcombine.high %v3197_v45, %v3205_v46  ;;  %v11473_v24 = vcombine.low %v3197_v45, %v3205_v46 }
 0x33d   : > { %v11463_v57 = vcombine.high %v3196_v17, %v3204_v43  ;;  %v11469_v42 = vcombine.low %v3196_v17, %v3204_v43  ;;  %v2719_v43 = vld [vmem:[#allocation8 + $0xa8] sm:$0xff] }
 0x33e   : > { %6455 = vmatpush1.bf16.msra.mxu0 %v11433_v16  ;;  %13892 = vst [vmem:[#allocation258_spill] sm:$0xff] %v11466_v40  ;;  %v2711_v16 = vld [vmem:[#allocation8 + $0x68] sm:$0xff]  ;;  %13894 = vst [vmem:[#allocation260_spill] sm:$0xff] %v11473_v24 }
 0x33f   : > { %6541 = vmatpush1.bf16.msra.mxu1 %v11437_v18  ;;  %6456 = vmatprep.subr.bf16.mxu0 %v11439_v60  ;;  %13891 = vst [vmem:[#allocation257_spill] sm:$0xff] %v11463_v57  ;;  %v2710_v60 = vld [vmem:[#allocation8 + $0x60] sm:$0xff]  ;;  %v2703_v18 = vld [vmem:[#allocation8 + $0x28] sm:$0xff]  ;;  %13893 = vst [vmem:[#allocation259_spill] sm:$0xff] %v11469_v42 }
 0x340   : > { %6542 = vmatprep.subr.bf16.mxu1 %v11442_v3  ;;  %v2702_v3 = vld [vmem:[#allocation8 + $0x20] sm:$0xff]  ;;  %v11478_v23 = vcombine.high %v2703_v18, %v2711_v16  ;;  %v2727_v17 = vld [vmem:[#allocation8 + $0xe8] sm:$0xff]  ;;  %v11485_v46 = vcombine.low %v2703_v18, %v2711_v16 }
 0x341   : > { %v11475_v32 = vcombine.high %v2702_v3, %v2710_v60  ;;  %v11499_v16 = vcombine.low %v2719_v43, %v2727_v17 }
 0x342   : > { %6457 = vmatpush1.bf16.msra.mxu0 %v11445_v15  ;;  %13896 = vst [vmem:[#allocation262_spill] sm:$0xff] %v11478_v23  ;;  %13898 = vst [vmem:[#allocation264_spill] sm:$0xff] %v11485_v46  ;;  %v2775_v15 = vld [vmem:[#allocation8 + $0x268] sm:$0xff] }
 0x343   : > { %6543 = vmatpush1.bf16.msra.mxu1 %v11449_v0  ;;  %6458 = vmatprep.subr.bf16.mxu0 %v11451_v53  ;;  %13895 = vst [vmem:[#allocation261_spill] sm:$0xff] %v11475_v32  ;;  %v2726_v53 = vld [vmem:[#allocation8 + $0xe0] sm:$0xff]  ;;  %v11481_v0 = vcombine.low %v2702_v3, %v2710_v60  ;;  %v2735_v60 = vld [vmem:[#allocation8 + $0x128] sm:$0xff]  ;;  %13902 = vst [vmem:[#allocation268_spill] sm:$0xff] %v11499_v16 }
 0x344   : > { %6544 = vmatprep.subr.bf16.mxu1 %v11454_v37  ;;  %v2718_v37 = vld [vmem:[#allocation8 + $0xa0] sm:$0xff]  ;;  %v2743_v3 = vld [vmem:[#allocation8 + $0x168] sm:$0xff] }
 0x345   : > { %13897 = vst [vmem:[#allocation263_spill] sm:$0xff] %v11481_v0  ;;  %v11488_v45 = vcombine.high %v2718_v37, %v2726_v53 }
 0x346   : > { %6459 = vmatpush1.bf16.msra.mxu0 %v11457_v44  ;;  %v2767_v44 = vld [vmem:[#allocation8 + $0x228] sm:$0xff] }
 0x347   : > { %6545 = vmatpush1.bf16.msra.mxu1 %v11461_v25  ;;  %6460 = vmatprep.subr.bf16.mxu0 %v11463_v57  ;;  %13899 = vst [vmem:[#allocation265_spill] sm:$0xff] %v11488_v45  ;;  %v2742_v57 = vld [vmem:[#allocation8 + $0x160] sm:$0xff]  ;;  %v11491_v25 = vcombine.high %v2719_v43, %v2727_v17  ;;  %v11513_v43 = vcombine.low %v2735_v60, %v2743_v3 }
 0x348   : > { %6546 = vmatprep.subr.bf16.mxu1 %v11466_v40  ;;  %v2734_v40 = vld [vmem:[#allocation8 + $0x120] sm:$0xff] }
 0x349   : > { %13900 = vst [vmem:[#allocation266_spill] sm:$0xff] %v11491_v25  ;;  %v11501_v18 = vcombine.high %v2734_v40, %v2742_v57  ;;  %13906 = vst [vmem:[#allocation272_spill] sm:$0xff] %v11513_v43 }
 0x34a   : > { %6461 = vmatpush1.bf16.msra.mxu0 %v11469_v42  ;;  %v2758_v42 = vld [vmem:[#allocation8 + $0x1e0] sm:$0xff] }
 0x34b   : > { %6547 = vmatpush1.bf16.msra.mxu1 %v11473_v24  ;;  %6559 = vmatprep.subr.bf16.mxu0 %v11475_v32  ;;  %v11495_v24 = vcombine.low %v2718_v37, %v2726_v53  ;;  %13903 = vst [vmem:[#allocation269_spill] sm:$0xff] %v11501_v18  ;;  %v2750_v32 = vld [vmem:[#allocation8 + $0x1a0] sm:$0xff]  ;;  %v2751_v53 = vld [vmem:[#allocation8 + $0x1a8] sm:$0xff] }
 0x34c   : > { %6645 = vmatprep.subr.bf16.mxu1 %v11478_v23  ;;  %v11505_v23 = vcombine.high %v2735_v60, %v2743_v3  ;;  %v2759_v37 = vld [vmem:[#allocation8 + $0x1e8] sm:$0xff]  ;;  %v11515_v17 = vcombine.high %v2750_v32, %v2758_v42  ;;  %v11530_v3 = vcombine.high %v2767_v44, %v2775_v15 }
 0x34d   : > { %6463 = vmatmul.mubr.bf16.vlgmr.msra.gmra.mrb[36].mxu0 %v11094_v29  ;;  %13901 = vst [vmem:[#allocation267_spill] sm:$0xff] %v11495_v24 }
 0x34e   : > { %6549 = vmatmul.mubr.bf16.vlgmr.msra.gmra.mrb[36].mxu1 %v11094_v29  ;;  %6560 = vmatpush1.bf16.msra.mxu0 %v11481_v0  ;;  %13904 = vst [vmem:[#allocation270_spill] sm:$0xff] %v11505_v23  ;;  %v11509_v0 = vcombine.low %v2734_v40, %v2742_v57  ;;  %13907 = vst [vmem:[#allocation273_spill] sm:$0xff] %v11515_v17  ;;  %v11521_v57 = vcombine.low %v2750_v32, %v2758_v42 }
 0x34f   : > { %6591 = vmatprep.mubr.bf16.mxu0 %v10882_v28  ;;  %6646 = vmatpush1.bf16.msra.mxu1 %v11485_v46  ;;  %v2766_v46 = vld [vmem:[#allocation8 + $0x220] sm:$0xff]  ;;  %v11525_v40 = vcombine.low %v2751_v53, %v2759_v37  ;;  %13912 = vst [vmem:[#allocation278_spill] sm:$0xff] %v11530_v3  ;;  %v11537_v32 = vcombine.low %v2767_v44, %v2775_v15 }
 0x350   : > { %6677 = vmatprep.mubr.bf16.mxu1 %v10882_v28  ;;  %6561 = vmatprep.subr.bf16.mxu0 %v11488_v45  ;;  %13905 = vst [vmem:[#allocation271_spill] sm:$0xff] %v11509_v0  ;;  %v11518_v45 = vcombine.high %v2751_v53, %v2759_v37  ;;  %13909 = vst [vmem:[#allocation275_spill] sm:$0xff] %v11521_v57 }
 0x351   : > { %6647 = vmatprep.subr.bf16.mxu1 %v11491_v25  ;;  %v2774_v25 = vld [vmem:[#allocation8 + $0x260] sm:$0xff]  ;;  %13910 = vst [vmem:[#allocation276_spill] sm:$0xff] %v11525_v40  ;;  %13914 = vst [vmem:[#allocation280_spill] sm:$0xff] %v11537_v32 }
 0x352   : > { %6562 = vmatpush1.bf16.msra.mxu0 %v11495_v24  ;;  %13908 = vst [vmem:[#allocation274_spill] sm:$0xff] %v11518_v45  ;;  %v11527_v60 = vcombine.high %v2766_v46, %v2774_v25  ;;  %v2791_v24 = vld [vmem:[#allocation8 + $0x2e8] sm:$0xff]  ;;  %v11533_v42 = vcombine.low %v2766_v46, %v2774_v25 }
 0x353   : > { %6648 = vmatpush1.bf16.msra.mxu1 %v11499_v16  ;;  %6563 = vmatprep.subr.bf16.mxu0 %v11501_v18  ;;  %v2790_v18 = vld [vmem:[#allocation8 + $0x2e0] sm:$0xff]  ;;  %v2783_v16 = vld [vmem:[#allocation8 + $0x2a8] sm:$0xff] }
 0x354   : > { %6649 = vmatprep.subr.bf16.mxu1 %v11505_v23  ;;  %13911 = vst [vmem:[#allocation277_spill] sm:$0xff] %v11527_v60  ;;  %v2782_v23 = vld [vmem:[#allocation8 + $0x2a0] sm:$0xff]  ;;  %13913 = vst [vmem:[#allocation279_spill] sm:$0xff] %v11533_v42  ;;  %v11542_v37 = vcombine.high %v2783_v16, %v2791_v24  ;;  %v11549_v15 = vcombine.low %v2783_v16, %v2791_v24 }
 0x355   : > { %v11539_v53 = vcombine.high %v2782_v23, %v2790_v18  ;;  %v11545_v25 = vcombine.low %v2782_v23, %v2790_v18 }
 0x356   : > { %6564 = vmatpush1.bf16.msra.mxu0 %v11509_v0  ;;  %13916 = vst [vmem:[#allocation282_spill] sm:$0xff] %v11542_v37  ;;  %v2807_v0 = vld [vmem:[#allocation8 + $0x368] sm:$0xff]  ;;  %13918 = vst [vmem:[#allocation284_spill] sm:$0xff] %v11549_v15 }
 0x357   : > { %6650 = vmatpush1.bf16.msra.mxu1 %v11513_v43  ;;  %6565 = vmatprep.subr.bf16.mxu0 %v11515_v17  ;;  %13915 = vst [vmem:[#allocation281_spill] sm:$0xff] %v11539_v53  ;;  %v2806_v17 = vld [vmem:[#allocation8 + $0x360] sm:$0xff]  ;;  %v2799_v43 = vld [vmem:[#allocation8 + $0x328] sm:$0xff]  ;;  %13917 = vst [vmem:[#allocation283_spill] sm:$0xff] %v11545_v25 }
 0x358   : > { %6651 = vmatprep.subr.bf16.mxu1 %v11518_v45  ;;  %v2798_v45 = vld [vmem:[#allocation8 + $0x320] sm:$0xff]  ;;  %v11554_v46 = vcombine.high %v2799_v43, %v2807_v0  ;;  %v11561_v24 = vcombine.low %v2799_v43, %v2807_v0 }
 0x359   : > { %v11551_v44 = vcombine.high %v2798_v45, %v2806_v17  ;;  %v11557_v23 = vcombine.low %v2798_v45, %v2806_v17 }
 0x35a   : > { %6566 = vmatpush1.bf16.msra.mxu0 %v11521_v57  ;;  %13920 = vst [vmem:[#allocation286_spill] sm:$0xff] %v11554_v46  ;;  %v2823_v57 = vld [vmem:[#allocation8 + $0x3e8] sm:$0xff]  ;;  %13922 = vst [vmem:[#allocation288_spill] sm:$0xff] %v11561_v24 }
 0x35b   : > { %6652 = vmatpush1.bf16.msra.mxu1 %v11525_v40  ;;  %6567 = vmatprep.subr.bf16.mxu0 %v11527_v60  ;;  %13919 = vst [vmem:[#allocation285_spill] sm:$0xff] %v11551_v44  ;;  %v2822_v60 = vld [vmem:[#allocation8 + $0x3e0] sm:$0xff]  ;;  %v2815_v40 = vld [vmem:[#allocation8 + $0x3a8] sm:$0xff]  ;;  %13921 = vst [vmem:[#allocation287_spill] sm:$0xff] %v11557_v23 }
 0x35c   : > { %6653 = vmatprep.subr.bf16.mxu1 %v11530_v3  ;;  %v2814_v3 = vld [vmem:[#allocation8 + $0x3a0] sm:$0xff]  ;;  %v11566_v18 = vcombine.high %v2815_v40, %v2823_v57  ;;  %v11573_v0 = vcombine.low %v2815_v40, %v2823_v57 }
 0x35d   : > { %v11563_v16 = vcombine.high %v2814_v3, %v2822_v60  ;;  %v11569_v45 = vcombine.low %v2814_v3, %v2822_v60 }
 0x35e   : > { %6568 = vmatpush1.bf16.msra.mxu0 %v11533_v42  ;;  %13924 = vst [vmem:[#allocation290_spill] sm:$0xff] %v11566_v18  ;;  %v2839_v42 = vld [vmem:[#allocation8 + $0x468] sm:$0xff]  ;;  %13926 = vst [vmem:[#allocation292_spill] sm:$0xff] %v11573_v0 }
 0x35f   : > { %6654 = vmatpush1.bf16.msra.mxu1 %v11537_v32  ;;  %6569 = vmatprep.subr.bf16.mxu0 %v11539_v53  ;;  %13923 = vst [vmem:[#allocation289_spill] sm:$0xff] %v11563_v16  ;;  %v2838_v53 = vld [vmem:[#allocation8 + $0x460] sm:$0xff]  ;;  %v2831_v32 = vld [vmem:[#allocation8 + $0x428] sm:$0xff]  ;;  %13925 = vst [vmem:[#allocation291_spill] sm:$0xff] %v11569_v45 }
 0x360   : > { %6655 = vmatprep.subr.bf16.mxu1 %v11542_v37  ;;  %v2830_v37 = vld [vmem:[#allocation8 + $0x420] sm:$0xff]  ;;  %v11578_v17 = vcombine.high %v2831_v32, %v2839_v42  ;;  %v11585_v57 = vcombine.low %v2831_v32, %v2839_v42 }
 0x361   : > { %v11575_v43 = vcombine.high %v2830_v37, %v2838_v53  ;;  %v11581_v60 = vcombine.low %v2830_v37, %v2838_v53 }
 0x362   : > { %6570 = vmatpush1.bf16.msra.mxu0 %v11545_v25  ;;  %13928 = vst [vmem:[#allocation294_spill] sm:$0xff] %v11578_v17  ;;  %v2855_v25 = vld [vmem:[#allocation8 + $0x4e8] sm:$0xff]  ;;  %13930 = vst [vmem:[#allocation296_spill] sm:$0xff] %v11585_v57 }
 0x363   : > { %6656 = vmatpush1.bf16.msra.mxu1 %v11549_v15  ;;  %6571 = vmatprep.subr.bf16.mxu0 %v11551_v44  ;;  %13927 = vst [vmem:[#allocation293_spill] sm:$0xff] %v11575_v43  ;;  %v2854_v44 = vld [vmem:[#allocation8 + $0x4e0] sm:$0xff]  ;;  %v2847_v15 = vld [vmem:[#allocation8 + $0x4a8] sm:$0xff]  ;;  %13929 = vst [vmem:[#allocation295_spill] sm:$0xff] %v11581_v60 }
 0x364   : > { %6657 = vmatprep.subr.bf16.mxu1 %v11554_v46  ;;  %v2846_v46 = vld [vmem:[#allocation8 + $0x4a0] sm:$0xff]  ;;  %v11590_v3 = vcombine.high %v2847_v15, %v2855_v25  ;;  %v11597_v42 = vcombine.low %v2847_v15, %v2855_v25 }
 0x365   : > { %v11587_v40 = vcombine.high %v2846_v46, %v2854_v44  ;;  %v11593_v53 = vcombine.low %v2846_v46, %v2854_v44 }
 0x366   : > { %6572 = vmatpush1.bf16.msra.mxu0 %v11557_v23  ;;  %13932 = vst [vmem:[#allocation298_spill] sm:$0xff] %v11590_v3  ;;  %v2871_v23 = vld [vmem:[#allocation8 + $0x568] sm:$0xff]  ;;  %13934 = vst [vmem:[#allocation300_spill] sm:$0xff] %v11597_v42 }
 0x367   : > { %6658 = vmatpush1.bf16.msra.mxu1 %v11561_v24  ;;  %6573 = vmatprep.subr.bf16.mxu0 %v11563_v16  ;;  %13931 = vst [vmem:[#allocation297_spill] sm:$0xff] %v11587_v40  ;;  %v2870_v16 = vld [vmem:[#allocation8 + $0x560] sm:$0xff]  ;;  %v2863_v24 = vld [vmem:[#allocation8 + $0x528] sm:$0xff]  ;;  %13933 = vst [vmem:[#allocation299_spill] sm:$0xff] %v11593_v53 }
 0x368   : > { %6659 = vmatprep.subr.bf16.mxu1 %v11566_v18  ;;  %v2862_v18 = vld [vmem:[#allocation8 + $0x520] sm:$0xff]  ;;  %v11602_v37 = vcombine.high %v2863_v24, %v2871_v23  ;;  %v11609_v25 = vcombine.low %v2863_v24, %v2871_v23 }
 0x369   : > { %v11599_v32 = vcombine.high %v2862_v18, %v2870_v16  ;;  %v11605_v44 = vcombine.low %v2862_v18, %v2870_v16 }
 0x36a   : > { %6574 = vmatpush1.bf16.msra.mxu0 %v11569_v45  ;;  %13936 = vst [vmem:[#allocation302_spill] sm:$0xff] %v11602_v37  ;;  %v2887_v45 = vld [vmem:[#allocation8 + $0x5e8] sm:$0xff]  ;;  %13938 = vst [vmem:[#allocation304_spill] sm:$0xff] %v11609_v25 }
 0x36b   : > { %6660 = vmatpush1.bf16.msra.mxu1 %v11573_v0  ;;  %6575 = vmatprep.subr.bf16.mxu0 %v11575_v43  ;;  %13935 = vst [vmem:[#allocation301_spill] sm:$0xff] %v11599_v32  ;;  %v2886_v43 = vld [vmem:[#allocation8 + $0x5e0] sm:$0xff]  ;;  %v2879_v0 = vld [vmem:[#allocation8 + $0x5a8] sm:$0xff]  ;;  %13937 = vst [vmem:[#allocation303_spill] sm:$0xff] %v11605_v44 }
 0x36c   : > { %6661 = vmatprep.subr.bf16.mxu1 %v11578_v17  ;;  %v2878_v17 = vld [vmem:[#allocation8 + $0x5a0] sm:$0xff]  ;;  %v11614_v46 = vcombine.high %v2879_v0, %v2887_v45  ;;  %v11621_v23 = vcombine.low %v2879_v0, %v2887_v45 }
 0x36d   : > { %v11611_v15 = vcombine.high %v2878_v17, %v2886_v43  ;;  %v11617_v16 = vcombine.low %v2878_v17, %v2886_v43 }
 0x36e   : > { %6576 = vmatpush1.bf16.msra.mxu0 %v11581_v60  ;;  %13940 = vst [vmem:[#allocation306_spill] sm:$0xff] %v11614_v46  ;;  %v2903_v60 = vld [vmem:[#allocation8 + $0x668] sm:$0xff]  ;;  %13942 = vst [vmem:[#allocation308_spill] sm:$0xff] %v11621_v23 }
 0x36f   : > { %6662 = vmatpush1.bf16.msra.mxu1 %v11585_v57  ;;  %6577 = vmatprep.subr.bf16.mxu0 %v11587_v40  ;;  %13939 = vst [vmem:[#allocation305_spill] sm:$0xff] %v11611_v15  ;;  %v2902_v40 = vld [vmem:[#allocation8 + $0x660] sm:$0xff]  ;;  %v2895_v57 = vld [vmem:[#allocation8 + $0x628] sm:$0xff]  ;;  %13941 = vst [vmem:[#allocation307_spill] sm:$0xff] %v11617_v16 }
 0x370   : > { %6663 = vmatprep.subr.bf16.mxu1 %v11590_v3  ;;  %v2894_v3 = vld [vmem:[#allocation8 + $0x620] sm:$0xff]  ;;  %v11626_v18 = vcombine.high %v2895_v57, %v2903_v60  ;;  %v11633_v45 = vcombine.low %v2895_v57, %v2903_v60 }
 0x371   : > { %v11623_v24 = vcombine.high %v2894_v3, %v2902_v40  ;;  %v11629_v43 = vcombine.low %v2894_v3, %v2902_v40 }
 0x372   : > { %6578 = vmatpush1.bf16.msra.mxu0 %v11593_v53  ;;  %13944 = vst [vmem:[#allocation310_spill] sm:$0xff] %v11626_v18  ;;  %v2919_v53 = vld [vmem:[#allocation8 + $0x6e8] sm:$0xff]  ;;  %13946 = vst [vmem:[#allocation312_spill] sm:$0xff] %v11633_v45 }
 0x373   : > { %6664 = vmatpush1.bf16.msra.mxu1 %v11597_v42  ;;  %6579 = vmatprep.subr.bf16.mxu0 %v11599_v32  ;;  %13943 = vst [vmem:[#allocation309_spill] sm:$0xff] %v11623_v24  ;;  %v2918_v32 = vld [vmem:[#allocation8 + $0x6e0] sm:$0xff]  ;;  %v2911_v42 = vld [vmem:[#allocation8 + $0x6a8] sm:$0xff]  ;;  %13945 = vst [vmem:[#allocation311_spill] sm:$0xff] %v11629_v43 }
 0x374   : > { %6665 = vmatprep.subr.bf16.mxu1 %v11602_v37  ;;  %v2910_v37 = vld [vmem:[#allocation8 + $0x6a0] sm:$0xff]  ;;  %v11638_v17 = vcombine.high %v2911_v42, %v2919_v53  ;;  %v11645_v60 = vcombine.low %v2911_v42, %v2919_v53 }
 0x375   : > { %v11635_v0 = vcombine.high %v2910_v37, %v2918_v32  ;;  %v11641_v40 = vcombine.low %v2910_v37, %v2918_v32 }
 0x376   : > { %6580 = vmatpush1.bf16.msra.mxu0 %v11605_v44  ;;  %13948 = vst [vmem:[#allocation314_spill] sm:$0xff] %v11638_v17  ;;  %v2935_v44 = vld [vmem:[#allocation8 + $0x768] sm:$0xff]  ;;  %13950 = vst [vmem:[#allocation316_spill] sm:$0xff] %v11645_v60 }
 0x377   : > { %6666 = vmatpush1.bf16.msra.mxu1 %v11609_v25  ;;  %6581 = vmatprep.subr.bf16.mxu0 %v11611_v15  ;;  %13947 = vst [vmem:[#allocation313_spill] sm:$0xff] %v11635_v0  ;;  %v2934_v15 = vld [vmem:[#allocation8 + $0x760] sm:$0xff]  ;;  %v2927_v25 = vld [vmem:[#allocation8 + $0x728] sm:$0xff]  ;;  %13949 = vst [vmem:[#allocation315_spill] sm:$0xff] %v11641_v40 }
 0x378   : > { %6667 = vmatprep.subr.bf16.mxu1 %v11614_v46  ;;  %v2926_v46 = vld [vmem:[#allocation8 + $0x720] sm:$0xff]  ;;  %v11650_v3 = vcombine.high %v2927_v25, %v2935_v44  ;;  %v11657_v53 = vcombine.low %v2927_v25, %v2935_v44 }
 0x379   : > { %v11647_v57 = vcombine.high %v2926_v46, %v2934_v15  ;;  %v11653_v32 = vcombine.low %v2926_v46, %v2934_v15 }
 0x37a   : > { %6582 = vmatpush1.bf16.msra.mxu0 %v11617_v16  ;;  %13952 = vst [vmem:[#allocation318_spill] sm:$0xff] %v11650_v3  ;;  %v2951_v16 = vld [vmem:[#allocation8 + $0x7e8] sm:$0xff]  ;;  %13954 = vst [vmem:[#allocation320_spill] sm:$0xff] %v11657_v53 }
 0x37b   : > { %6668 = vmatpush1.bf16.msra.mxu1 %v11621_v23  ;;  %6583 = vmatprep.subr.bf16.mxu0 %v11623_v24  ;;  %13951 = vst [vmem:[#allocation317_spill] sm:$0xff] %v11647_v57  ;;  %v2950_v24 = vld [vmem:[#allocation8 + $0x7e0] sm:$0xff]  ;;  %v2943_v23 = vld [vmem:[#allocation8 + $0x7a8] sm:$0xff]  ;;  %13953 = vst [vmem:[#allocation319_spill] sm:$0xff] %v11653_v32 }
 0x37c   : > { %6669 = vmatprep.subr.bf16.mxu1 %v11626_v18  ;;  %v2942_v18 = vld [vmem:[#allocation8 + $0x7a0] sm:$0xff]  ;;  %v11662_v37 = vcombine.high %v2943_v23, %v2951_v16  ;;  %v11669_v44 = vcombine.low %v2943_v23, %v2951_v16 }
 0x37d   : > { %v11659_v42 = vcombine.high %v2942_v18, %v2950_v24  ;;  %v11665_v15 = vcombine.low %v2942_v18, %v2950_v24  ;;  %v2975_v24 = vld [vmem:[#allocation8 + $0x8a8] sm:$0xff] }
 0x37e   : > { %6584 = vmatpush1.bf16.msra.mxu0 %v11629_v43  ;;  %13956 = vst [vmem:[#allocation322_spill] sm:$0xff] %v11662_v37  ;;  %v2967_v43 = vld [vmem:[#allocation8 + $0x868] sm:$0xff]  ;;  %13958 = vst [vmem:[#allocation324_spill] sm:$0xff] %v11669_v44 }
 0x37f   : > { %6670 = vmatpush1.bf16.msra.mxu1 %v11633_v45  ;;  %6585 = vmatprep.subr.bf16.mxu0 %v11635_v0  ;;  %13955 = vst [vmem:[#allocation321_spill] sm:$0xff] %v11659_v42  ;;  %v2966_v0 = vld [vmem:[#allocation8 + $0x860] sm:$0xff]  ;;  %v2959_v45 = vld [vmem:[#allocation8 + $0x828] sm:$0xff]  ;;  %13957 = vst [vmem:[#allocation323_spill] sm:$0xff] %v11665_v15 }
 0x380   : > { %6671 = vmatprep.subr.bf16.mxu1 %v11638_v17  ;;  %v2958_v17 = vld [vmem:[#allocation8 + $0x820] sm:$0xff]  ;;  %v11674_v46 = vcombine.high %v2959_v45, %v2967_v43  ;;  %v2983_v18 = vld [vmem:[#allocation8 + $0x8e8] sm:$0xff]  ;;  %v11681_v16 = vcombine.low %v2959_v45, %v2967_v43 }
 0x381   : > { %v11671_v25 = vcombine.high %v2958_v17, %v2966_v0  ;;  %v11695_v43 = vcombine.low %v2975_v24, %v2983_v18 }
 0x382   : > { %6586 = vmatpush1.bf16.msra.mxu0 %v11641_v40  ;;  %13960 = vst [vmem:[#allocation326_spill] sm:$0xff] %v11674_v46  ;;  %13962 = vst [vmem:[#allocation328_spill] sm:$0xff] %v11681_v16  ;;  %v3031_v40 = vld [vmem:[#allocation8 + $0xa68] sm:$0xff] }
 0x383   : > { %6672 = vmatpush1.bf16.msra.mxu1 %v11645_v60  ;;  %6587 = vmatprep.subr.bf16.mxu0 %v11647_v57  ;;  %13959 = vst [vmem:[#allocation325_spill] sm:$0xff] %v11671_v25  ;;  %v2982_v57 = vld [vmem:[#allocation8 + $0x8e0] sm:$0xff]  ;;  %v11677_v60 = vcombine.low %v2958_v17, %v2966_v0  ;;  %v2991_v0 = vld [vmem:[#allocation8 + $0x928] sm:$0xff]  ;;  %13966 = vst [vmem:[#allocation332_spill] sm:$0xff] %v11695_v43 }
 0x384   : > { %6673 = vmatprep.subr.bf16.mxu1 %v11650_v3  ;;  %v2974_v3 = vld [vmem:[#allocation8 + $0x8a0] sm:$0xff]  ;;  %v2999_v17 = vld [vmem:[#allocation8 + $0x968] sm:$0xff] }
 0x385   : > { %13961 = vst [vmem:[#allocation327_spill] sm:$0xff] %v11677_v60  ;;  %v11684_v23 = vcombine.high %v2974_v3, %v2982_v57 }
 0x386   : > { %6588 = vmatpush1.bf16.msra.mxu0 %v11653_v32  ;;  %v3023_v32 = vld [vmem:[#allocation8 + $0xa28] sm:$0xff] }
 0x387   : > { %6674 = vmatpush1.bf16.msra.mxu1 %v11657_v53  ;;  %6589 = vmatprep.subr.bf16.mxu0 %v11659_v42  ;;  %13963 = vst [vmem:[#allocation329_spill] sm:$0xff] %v11684_v23  ;;  %v2998_v42 = vld [vmem:[#allocation8 + $0x960] sm:$0xff]  ;;  %v11687_v53 = vcombine.high %v2975_v24, %v2983_v18  ;;  %v11709_v24 = vcombine.low %v2991_v0, %v2999_v17 }
 0x388   : > { %6675 = vmatprep.subr.bf16.mxu1 %v11662_v37  ;;  %v2990_v37 = vld [vmem:[#allocation8 + $0x920] sm:$0xff] }
 0x389   : > { %13964 = vst [vmem:[#allocation330_spill] sm:$0xff] %v11687_v53  ;;  %v11697_v45 = vcombine.high %v2990_v37, %v2998_v42  ;;  %13970 = vst [vmem:[#allocation336_spill] sm:$0xff] %v11709_v24 }
 0x38a   : > { %6590 = vmatpush1.bf16.msra.mxu0 %v11665_v15  ;;  %v3014_v15 = vld [vmem:[#allocation8 + $0x9e0] sm:$0xff] }
 0x38b   : > { %6676 = vmatpush1.bf16.msra.mxu1 %v11669_v44  ;;  %6602 = vmatprep.subr.bf16.mxu0 %v11671_v25  ;;  %v11691_v44 = vcombine.low %v2974_v3, %v2982_v57  ;;  %13967 = vst [vmem:[#allocation333_spill] sm:$0xff] %v11697_v45  ;;  %v3006_v25 = vld [vmem:[#allocation8 + $0x9a0] sm:$0xff]  ;;  %v3007_v57 = vld [vmem:[#allocation8 + $0x9a8] sm:$0xff] }
 0x38c   : > { %6688 = vmatprep.subr.bf16.mxu1 %v11674_v46  ;;  %v11701_v46 = vcombine.high %v2991_v0, %v2999_v17  ;;  %v3015_v3 = vld [vmem:[#allocation8 + $0x9e8] sm:$0xff]  ;;  %v11711_v18 = vcombine.high %v3006_v25, %v3014_v15  ;;  %v11726_v17 = vcombine.high %v3023_v32, %v3031_v40 }
 0x38d   : > { %6592 = vmatmul.mubr.bf16.vlgmr.msra.gmra.mrb[40].mxu0 %v10887_v36  ;;  %13965 = vst [vmem:[#allocation331_spill] sm:$0xff] %v11691_v44 }
 0x38e   : > { %6678 = vmatmul.mubr.bf16.vlgmr.msra.gmra.mrb[40].mxu1 %v10887_v36  ;;  %6603 = vmatpush1.bf16.msra.mxu0 %v11677_v60  ;;  %13968 = vst [vmem:[#allocation334_spill] sm:$0xff] %v11701_v46  ;;  %v11705_v60 = vcombine.low %v2990_v37, %v2998_v42  ;;  %13971 = vst [vmem:[#allocation337_spill] sm:$0xff] %v11711_v18  ;;  %v11717_v42 = vcombine.low %v3006_v25, %v3014_v15 }
 0x38f   : > { %6634 = vmatprep.mubr.bf16.mxu0 %v10898_v7  ;;  %6689 = vmatpush1.bf16.msra.mxu1 %v11681_v16  ;;  %v3022_v16 = vld [vmem:[#allocation8 + $0xa20] sm:$0xff]  ;;  %v11721_v37 = vcombine.low %v3007_v57, %v3015_v3  ;;  %13976 = vst [vmem:[#allocation342_spill] sm:$0xff] %v11726_v17  ;;  %v11733_v25 = vcombine.low %v3023_v32, %v3031_v40 }
 0x390   : > { %6720 = vmatprep.mubr.bf16.mxu1 %v10898_v7  ;;  %6604 = vmatprep.subr.bf16.mxu0 %v11684_v23  ;;  %13969 = vst [vmem:[#allocation335_spill] sm:$0xff] %v11705_v60  ;;  %v11714_v23 = vcombine.high %v3007_v57, %v3015_v3  ;;  %13973 = vst [vmem:[#allocation339_spill] sm:$0xff] %v11717_v42 }
 0x391   : > { %6690 = vmatprep.subr.bf16.mxu1 %v11687_v53  ;;  %v3030_v53 = vld [vmem:[#allocation8 + $0xa60] sm:$0xff]  ;;  %13974 = vst [vmem:[#allocation340_spill] sm:$0xff] %v11721_v37  ;;  %13978 = vst [vmem:[#allocation344_spill] sm:$0xff] %v11733_v25 }
 0x392   : > { %6605 = vmatpush1.bf16.msra.mxu0 %v11691_v44  ;;  %13972 = vst [vmem:[#allocation338_spill] sm:$0xff] %v11714_v23  ;;  %v11723_v0 = vcombine.high %v3022_v16, %v3030_v53  ;;  %v3047_v44 = vld [vmem:[#allocation8 + $0xae8] sm:$0xff]  ;;  %v11729_v15 = vcombine.low %v3022_v16, %v3030_v53  ;;  %v3070_v16 = vld [vmem:[#allocation8 + $0xba0] sm:$0xff] }
 0x393   : > { %6691 = vmatpush1.bf16.msra.mxu1 %v11695_v43  ;;  %6606 = vmatprep.subr.bf16.mxu0 %v11697_v45  ;;  %v3046_v45 = vld [vmem:[#allocation8 + $0xae0] sm:$0xff]  ;;  %v3039_v43 = vld [vmem:[#allocation8 + $0xaa8] sm:$0xff] }
 0x394   : > { %6692 = vmatprep.subr.bf16.mxu1 %v11701_v46  ;;  %13975 = vst [vmem:[#allocation341_spill] sm:$0xff] %v11723_v0  ;;  %v3038_v46 = vld [vmem:[#allocation8 + $0xaa0] sm:$0xff]  ;;  %13977 = vst [vmem:[#allocation343_spill] sm:$0xff] %v11729_v15  ;;  %v11738_v3 = vcombine.high %v3039_v43, %v3047_v44  ;;  %v11745_v40 = vcombine.low %v3039_v43, %v3047_v44 }
 0x395   : > { %v11735_v57 = vcombine.high %v3038_v46, %v3046_v45  ;;  %v11741_v53 = vcombine.low %v3038_v46, %v3046_v45  ;;  %v3079_v46 = vld [vmem:[#allocation8 + $0xbe8] sm:$0xff] }
 0x396   : > { %6607 = vmatpush1.bf16.msra.mxu0 %v11705_v60  ;;  %13980 = vst [vmem:[#allocation346_spill] sm:$0xff] %v11738_v3  ;;  %v3063_v60 = vld [vmem:[#allocation8 + $0xb68] sm:$0xff]  ;;  %13982 = vst [vmem:[#allocation348_spill] sm:$0xff] %v11745_v40 }
 0x397   : > { %6693 = vmatpush1.bf16.msra.mxu1 %v11709_v24  ;;  %6608 = vmatprep.subr.bf16.mxu0 %v11711_v18  ;;  %13979 = vst [vmem:[#allocation345_spill] sm:$0xff] %v11735_v57  ;;  %v3062_v18 = vld [vmem:[#allocation8 + $0xb60] sm:$0xff]  ;;  %v3055_v24 = vld [vmem:[#allocation8 + $0xb28] sm:$0xff]  ;;  %13981 = vst [vmem:[#allocation347_spill] sm:$0xff] %v11741_v53 }
 0x398   : > { %6694 = vmatprep.subr.bf16.mxu1 %v11714_v23  ;;  %v3054_v23 = vld [vmem:[#allocation8 + $0xb20] sm:$0xff]  ;;  %v11750_v51 = vcombine.high %v3055_v24, %v3063_v60 }
 0x399   : > { %v11747_v32 = vcombine.high %v3054_v23, %v3062_v18  ;;  %v11752_v44 = vcombine.low %v3054_v23, %v3062_v18  ;;  %v3087_v18 = vld [vmem:[#allocation8 + $0xc28] sm:$0xff] }
 0x39a   : > { %6609 = vmatpush1.bf16.msra.mxu0 %v11717_v42  ;;  %13984 = vst [vmem:[#allocation350_spill] sm:$0xff] %v11750_v51  ;;  %v3095_v23 = vld [vmem:[#allocation8 + $0xc68] sm:$0xff] }
 0x39b   : > { %6695 = vmatpush1.bf16.msra.mxu1 %v11721_v37  ;;  %6610 = vmatprep.subr.bf16.mxu0 %v11723_v0  ;;  %13983 = vst [vmem:[#allocation349_spill] sm:$0xff] %v11747_v32  ;;  %v3590_v0 = vld [vmem:[#allocation3 + $0x80] sm:$0x80]  ;;  %13985 = vst [vmem:[#allocation351_spill] sm:$0xff] %v11752_v44 }
 0x39c   : > { %6696 = vmatprep.subr.bf16.mxu1 %v11726_v17  ;;  %v3078_v17 = vld [vmem:[#allocation8 + $0xbe0] sm:$0xff] }
 0x39d   : > { %v11761_v8 = vcombine.low %v3070_v16, %v3078_v17  ;;  %v11763_v48 = vcombine.high %v3070_v16, %v3078_v17 }
 0x39e   : > { %6611 = vmatpush1.bf16.msra.mxu0 %v11729_v15  ;;  %v3071_v15 = vld [vmem:[#allocation8 + $0xba8] sm:$0xff] }
 0x39f   : > { %6697 = vmatpush1.bf16.msra.mxu1 %v11733_v25  ;;  %6612 = vmatprep.subr.bf16.mxu0 %v11735_v57  ;;  %v3591_v57 = vld [vmem:[#allocation3 + $0x88] sm:$0x80]  ;;  %13987 = vst [vmem:[#allocation353_spill] sm:$0xff] %v11761_v8  ;;  %13988 = vst [vmem:[#allocation354_spill] sm:$0xff] %v11763_v48 }
 0x3a0   : > { %v6292_v37 = vpop.f32.mrb[32].mxu0  ;;  %v6378_v42 = vpop.f32.mrb[32].mxu1  ;;  %6698 = vmatprep.subr.bf16.mxu1 %v11738_v3  ;;  %v11759_v3 = vcombine.low %v3055_v24, %v3063_v60  ;;  %v11773_v60 = vcombine.low %v3071_v15, %v3079_v46 }
 0x3a1   : > { %v6936_v45 = vrot.slane %v6292_v37, 1  ;;  %v6294_v25 = vpop.f32.mrb[33].mxu0  ;;  %v6380_v21 = vpop.f32.mrb[33].mxu1  ;;  %v6938_v43 = vrot.slane %v6378_v42, 1  ;;  %v3086_v37 = vld [vmem:[#allocation8 + $0xc20] sm:$0xff] }
 0x3a2   : > { %v11754_v35 = vpop.f32.mrb[34].mxu0  ;;  %v11756_v10 = vpop.f32.mrb[34].mxu1  ;;  %6613 = vmatpush1.bf16.msra.mxu0 %v11741_v53  ;;  %13986 = vst [vmem:[#allocation352_spill] sm:$0xff] %v11759_v3  ;;  %v6937_v2 = vrot.slane %v6294_v25, 1  ;;  %13990 = vst [vmem:[#allocation356_spill] sm:$0xff] %v11773_v60  ;;  %v6939_v24 = vrot.slane %v6380_v21, 1  ;;  %v11778_v25 = vcombine.high %v3071_v15, %v3079_v46  ;;  %v11788_v17 = vcombine.high %v3086_v37, %v3094_v58 }
 0x3a3   : > { %6699 = vmatpush1.bf16.msra.mxu1 %v11745_v40  ;;  %v11768_v42 = vpop.f32.mrb[35].mxu0  ;;  %v11770_v52 = vpop.f32.mrb[35].mxu1  ;;  %6614 = vmatprep.subr.bf16.mxu0 %v11747_v32  ;;  %v11780_v40 = vadd.f32 %v6936_v45, %v3590_v0  ;;  %v3593_v53 = vld [vmem:[#allocation3 + $0x98] sm:$0x80]  ;;  %v13993_v6 = vrot.slane %v11754_v35, 1  ;;  %v13994_v41 = vrot.slane %v11756_v10, 1  ;;  %v11790_v16 = vadd.f32 %v6938_v43, %v3592_v54 }
 0x3a4   : > { %13989 = vst [vmem:[#allocation355_spill] sm:$0xff] %v11770_v52  ;;  %6700 = vmatprep.subr.bf16.mxu1 %v11750_v51  ;;  %13991 = vst [vmem:[#allocation357_spill] sm:$0xff] %v11778_v25  ;;  %v10007_v51 = vld [vmem:[#allocation3 + $0x100] sm:$0xff]  ;;  %v10008_v46 = vld [vmem:[#allocation3 + $0x110] sm:$0xff]  ;;  %v13999_v0 = vrot.slane %v11768_v42, 1  ;;  %v14002_v54 = vrot.slane %v11770_v52, 1 }
 0x3a5   : > { %13992 = vst [vmem:[#allocation358_spill] sm:$0xff] %v11780_v40  ;;  %v6953_v32 = vsel %vm6935_vm2, %v6936_v45, %v13993_v6  ;;  %v6957_v21 = vsel %vm6935_vm2, %v6938_v43, %v13994_v41  ;;  %13995 = vst [vmem:[#allocation359_spill] sm:$0xff] %v11788_v17  ;;  %v11800_v6 = vadd.f32 %v6937_v2, %v3591_v57  ;;  %v10009_v45 = vld [vmem:[#allocation3 + $0x108] sm:$0xff]  ;;  %v10010_v57 = vld [vmem:[#allocation3 + $0x118] sm:$0xff] }
 0x3a6   : > { %13996 = vst [vmem:[#allocation360_spill] sm:$0xff] %v11790_v16  ;;  %v11792_v15 = vadd.f32 %v10007_v51, %v6953_v32  ;;  %v11794_v30 = vadd.f32 %v10008_v46, %v6957_v21  ;;  %v6955_v22 = vsel %vm6935_vm2, %v6937_v2, %v13999_v0  ;;  %6615 = vmatpush1.bf16.msra.mxu0 %v11752_v44  ;;  %v3110_v0 = vld [vmem:[#allocation8 + $0xce0] sm:$0xff]  ;;  %v3594_v44 = vld [vmem:[#allocation3 + $0xa0] sm:$0x80]  ;;  %v3610_v52 = vld [vmem:[#allocation3 + $0x1a0] sm:$0x7f] }
 0x3a7   : > { %14000 = vst [vmem:[#allocation363_spill] sm:$0xff] %v11800_v6  ;;  %v11802_v41 = vadd.f32 %v10009_v45, %v6955_v22  ;;  %v6959_v43 = vsel %vm6935_vm2, %v6939_v24, %v14002_v54  ;;  %6701 = vmatpush1.bf16.msra.mxu1 %v11759_v3  ;;  %v11808_v51 = vcombine.high %v3087_v18, %v3095_v23  ;;  %v3102_v22 = vld [vmem:[#allocation8 + $0xca0] sm:$0xff]  ;;  %v3127_v54 = vld [vmem:[#allocation8 + $0xd68] sm:$0xff]  ;;  %v3097_v3 = vld [vmem:[#allocation8 + $0xc78] sm:$0xff] }
 0x3a8   : > { %13997 = vst [vmem:[#allocation361_spill] sm:$0xff] %v11792_v15  ;;  %13998 = vst [vmem:[#allocation362_spill] sm:$0xff] %v11794_v30  ;;  %v11810_v32 = vadd.f32 %v6939_v24, %v3593_v53  ;;  %v11816_v46 = vadd.f32 %v10010_v57, %v6959_v43  ;;  %6616 = vmatprep.subr.bf16.mxu0 %v11763_v48  ;;  %6702 = vmatprep.subr.bf16.mxu1 %v11778_v25  ;;  %v3103_v53 = vld [vmem:[#allocation8 + $0xca8] sm:$0xff]  ;;  %v3118_v21 = vld [vmem:[#allocation8 + $0xd20] sm:$0xff] }
 0x3a9   : > { %14001 = vst [vmem:[#allocation364_spill] sm:$0xff] %v11802_v41  ;;  %14003 = vst [vmem:[#allocation365_spill] sm:$0xff] %v11808_v51  ;;  %v3111_v24 = vld [vmem:[#allocation8 + $0xce8] sm:$0xff]  ;;  %v11825_v2 = vcombine.low %v3086_v37, %v3094_v58  ;;  %v11829_v43 = vcombine.low %v3087_v18, %v3095_v23  ;;  %v11831_v57 = vcombine.high %v3102_v22, %v3110_v0  ;;  %v3126_v25 = vld [vmem:[#allocation8 + $0xd60] sm:$0xff] }
 0x3aa   : > { %14004 = vst [vmem:[#allocation366_spill] sm:$0xff] %v11810_v32  ;;  %14005 = vst [vmem:[#allocation367_spill] sm:$0xff] %v11816_v46  ;;  %6617 = vmatpush1.bf16.msra.mxu0 %v11761_v8  ;;  %v11834_v45 = vcombine.high %v3103_v53, %v3111_v24  ;;  %v3119_v48 = vld [vmem:[#allocation8 + $0xd28] sm:$0xff]  ;;  %v11837_v58 = vcombine.low %v3102_v22, %v3110_v0  ;;  %v11841_v37 = vcombine.low %v3103_v53, %v3111_v24 }
 0x3ab   : > { %14006 = vst [vmem:[#allocation368_spill] sm:$0xff] %v11825_v2  ;;  %6703 = vmatpush1.bf16.msra.mxu1 %v11773_v60  ;;  %6618 = vmatprep.subr.bf16.mxu0 %v11788_v17  ;;  %14007 = vst [vmem:[#allocation369_spill] sm:$0xff] %v11829_v43  ;;  %v11843_v23 = vcombine.high %v3118_v21, %v3126_v25  ;;  %v11846_v18 = vcombine.high %v3119_v48, %v3127_v54  ;;  %v3142_v17 = vld [vmem:[#allocation8 + $0xde0] sm:$0xff]  ;;  %v3135_v60 = vld [vmem:[#allocation8 + $0xda8] sm:$0xff] }
 0x3ac   : > { %14008 = vst [vmem:[#allocation370_spill] sm:$0xff] %v11831_v57  ;;  %6704 = vmatprep.subr.bf16.mxu1 %v11808_v51  ;;  %14009 = vst [vmem:[#allocation371_spill] sm:$0xff] %v11834_v45  ;;  %v3134_v51 = vld [vmem:[#allocation8 + $0xda0] sm:$0xff]  ;;  %v3143_v8 = vld [vmem:[#allocation8 + $0xde8] sm:$0xff]  ;;  %v11849_v22 = vcombine.low %v3118_v21, %v3126_v25  ;;  %v11853_v0 = vcombine.low %v3119_v48, %v3127_v54 }
 0x3ad   : > { %14010 = vst [vmem:[#allocation372_spill] sm:$0xff] %v11837_v58  ;;  %14011 = vst [vmem:[#allocation373_spill] sm:$0xff] %v11841_v37  ;;  %v11855_v53 = vcombine.high %v3134_v51, %v3142_v17  ;;  %v11858_v24 = vcombine.high %v3135_v60, %v3143_v8  ;;  %v11861_v25 = vcombine.low %v3134_v51, %v3142_v17  ;;  %v3597_v32 = vld [vmem:[#allocation3 + $0xb8] sm:$0x80] }
 0x3ae   : > { %6619 = vmatpush1.bf16.msra.mxu0 %v11825_v2  ;;  %14012 = vst [vmem:[#allocation374_spill] sm:$0xff] %v11843_v23  ;;  %14013 = vst [vmem:[#allocation375_spill] sm:$0xff] %v11846_v18  ;;  %v3159_v2 = vld [vmem:[#allocation8 + $0xe68] sm:$0xff]  ;;  %v11865_v48 = vcombine.low %v3135_v60, %v3143_v8 }
 0x3af   : > { %6705 = vmatpush1.bf16.msra.mxu1 %v11829_v43  ;;  %6620 = vmatprep.subr.bf16.mxu0 %v11831_v57  ;;  %14014 = vst [vmem:[#allocation376_spill] sm:$0xff] %v11849_v22  ;;  %14015 = vst [vmem:[#allocation377_spill] sm:$0xff] %v11853_v0  ;;  %v3158_v57 = vld [vmem:[#allocation8 + $0xe60] sm:$0xff]  ;;  %v3151_v43 = vld [vmem:[#allocation8 + $0xe28] sm:$0xff] }
 0x3b0   : > { %6706 = vmatprep.subr.bf16.mxu1 %v11834_v45  ;;  %14016 = vst [vmem:[#allocation378_spill] sm:$0xff] %v11855_v53  ;;  %14017 = vst [vmem:[#allocation379_spill] sm:$0xff] %v11858_v24  ;;  %v3150_v45 = vld [vmem:[#allocation8 + $0xe20] sm:$0xff]  ;;  %v11870_v54 = vcombine.high %v3151_v43, %v3159_v2  ;;  %v11877_v8 = vcombine.low %v3151_v43, %v3159_v2 }
 0x3b1   : > { %14018 = vst [vmem:[#allocation380_spill] sm:$0xff] %v11861_v25  ;;  %14019 = vst [vmem:[#allocation381_spill] sm:$0xff] %v11865_v48  ;;  %v11867_v21 = vcombine.high %v3150_v45, %v3158_v57  ;;  %v11873_v17 = vcombine.low %v3150_v45, %v3158_v57 }
 0x3b2   : > { %6621 = vmatpush1.bf16.msra.mxu0 %v11837_v58  ;;  %14021 = vst [vmem:[#allocation383_spill] sm:$0xff] %v11870_v54  ;;  %v3175_v58 = vld [vmem:[#allocation8 + $0xee8] sm:$0xff]  ;;  %14023 = vst [vmem:[#allocation385_spill] sm:$0xff] %v11877_v8 }
 0x3b3   : > { %6707 = vmatpush1.bf16.msra.mxu1 %v11841_v37  ;;  %6622 = vmatprep.subr.bf16.mxu0 %v11843_v23  ;;  %14020 = vst [vmem:[#allocation382_spill] sm:$0xff] %v11867_v21  ;;  %v3174_v23 = vld [vmem:[#allocation8 + $0xee0] sm:$0xff]  ;;  %v3167_v37 = vld [vmem:[#allocation8 + $0xea8] sm:$0xff]  ;;  %14022 = vst [vmem:[#allocation384_spill] sm:$0xff] %v11873_v17 }
 0x3b4   : > { %6708 = vmatprep.subr.bf16.mxu1 %v11846_v18  ;;  %v3166_v18 = vld [vmem:[#allocation8 + $0xea0] sm:$0xff]  ;;  %v11882_v51 = vcombine.high %v3167_v37, %v3175_v58  ;;  %v11889_v2 = vcombine.low %v3167_v37, %v3175_v58 }
 0x3b5   : > { %v11879_v60 = vcombine.high %v3166_v18, %v3174_v23  ;;  %v11885_v45 = vcombine.low %v3166_v18, %v3174_v23 }
 0x3b6   : > { %6623 = vmatpush1.bf16.msra.mxu0 %v11849_v22  ;;  %14025 = vst [vmem:[#allocation387_spill] sm:$0xff] %v11882_v51  ;;  %v3191_v22 = vld [vmem:[#allocation8 + $0xf68] sm:$0xff]  ;;  %14027 = vst [vmem:[#allocation389_spill] sm:$0xff] %v11889_v2 }
 0x3b7   : > { %6709 = vmatpush1.bf16.msra.mxu1 %v11853_v0  ;;  %6624 = vmatprep.subr.bf16.mxu0 %v11855_v53  ;;  %14024 = vst [vmem:[#allocation386_spill] sm:$0xff] %v11879_v60  ;;  %v3190_v53 = vld [vmem:[#allocation8 + $0xf60] sm:$0xff]  ;;  %v3183_v0 = vld [vmem:[#allocation8 + $0xf28] sm:$0xff]  ;;  %14026 = vst [vmem:[#allocation388_spill] sm:$0xff] %v11885_v45 }
 0x3b8   : > { %6710 = vmatprep.subr.bf16.mxu1 %v11858_v24  ;;  %v3182_v24 = vld [vmem:[#allocation8 + $0xf20] sm:$0xff]  ;;  %v11894_v57 = vcombine.high %v3183_v0, %v3191_v22  ;;  %v11901_v58 = vcombine.low %v3183_v0, %v3191_v22 }
 0x3b9   : > { %v11891_v43 = vcombine.high %v3182_v24, %v3190_v53  ;;  %v11897_v23 = vcombine.low %v3182_v24, %v3190_v53 }
 0x3ba   : > { %6625 = vmatpush1.bf16.msra.mxu0 %v11861_v25  ;;  %14029 = vst [vmem:[#allocation391_spill] sm:$0xff] %v11894_v57  ;;  %v3207_v25 = vld [vmem:[#allocation8 + $0xfe8] sm:$0xff]  ;;  %14031 = vst [vmem:[#allocation393_spill] sm:$0xff] %v11901_v58 }
 0x3bb   : > { %6711 = vmatpush1.bf16.msra.mxu1 %v11865_v48  ;;  %6626 = vmatprep.subr.bf16.mxu0 %v11867_v21  ;;  %14028 = vst [vmem:[#allocation390_spill] sm:$0xff] %v11891_v43  ;;  %v3206_v21 = vld [vmem:[#allocation8 + $0xfe0] sm:$0xff]  ;;  %v3199_v48 = vld [vmem:[#allocation8 + $0xfa8] sm:$0xff]  ;;  %14030 = vst [vmem:[#allocation392_spill] sm:$0xff] %v11897_v23 }
 0x3bc   : > { %6712 = vmatprep.subr.bf16.mxu1 %v11870_v54  ;;  %v3198_v54 = vld [vmem:[#allocation8 + $0xfa0] sm:$0xff]  ;;  %v11906_v18 = vcombine.high %v3199_v48, %v3207_v25  ;;  %v11913_v22 = vcombine.low %v3199_v48, %v3207_v25 }
 0x3bd   : > { %v11903_v37 = vcombine.high %v3198_v54, %v3206_v21  ;;  %v11909_v53 = vcombine.low %v3198_v54, %v3206_v21  ;;  %v2721_v21 = vld [vmem:[#allocation8 + $0xb8] sm:$0xff] }
 0x3be   : > { %6627 = vmatpush1.bf16.msra.mxu0 %v11873_v17  ;;  %14033 = vst [vmem:[#allocation395_spill] sm:$0xff] %v11906_v18  ;;  %v2713_v17 = vld [vmem:[#allocation8 + $0x78] sm:$0xff]  ;;  %14035 = vst [vmem:[#allocation397_spill] sm:$0xff] %v11913_v22 }
 0x3bf   : > { %6713 = vmatpush1.bf16.msra.mxu1 %v11877_v8  ;;  %6628 = vmatprep.subr.bf16.mxu0 %v11879_v60  ;;  %14032 = vst [vmem:[#allocation394_spill] sm:$0xff] %v11903_v37  ;;  %v2712_v60 = vld [vmem:[#allocation8 + $0x70] sm:$0xff]  ;;  %v2705_v8 = vld [vmem:[#allocation8 + $0x38] sm:$0xff]  ;;  %14034 = vst [vmem:[#allocation396_spill] sm:$0xff] %v11909_v53 }
 0x3c0   : > { %6714 = vmatprep.subr.bf16.mxu1 %v11882_v51  ;;  %v2704_v51 = vld [vmem:[#allocation8 + $0x30] sm:$0xff]  ;;  %v11918_v24 = vcombine.high %v2705_v8, %v2713_v17  ;;  %v2729_v54 = vld [vmem:[#allocation8 + $0xf8] sm:$0xff]  ;;  %v11925_v25 = vcombine.low %v2705_v8, %v2713_v17 }
 0x3c1   : > { %v11915_v0 = vcombine.high %v2704_v51, %v2712_v60  ;;  %v11939_v17 = vcombine.low %v2721_v21, %v2729_v54 }
 0x3c2   : > { %6629 = vmatpush1.bf16.msra.mxu0 %v11885_v45  ;;  %14037 = vst [vmem:[#allocation399_spill] sm:$0xff] %v11918_v24  ;;  %14039 = vst [vmem:[#allocation401_spill] sm:$0xff] %v11925_v25  ;;  %v3089_v45 = vld [vmem:[#allocation8 + $0xc38] sm:$0xff] }
 0x3c3   : > { %6715 = vmatpush1.bf16.msra.mxu1 %v11889_v2  ;;  %6630 = vmatprep.subr.bf16.mxu0 %v11891_v43  ;;  %14036 = vst [vmem:[#allocation398_spill] sm:$0xff] %v11915_v0  ;;  %v2728_v43 = vld [vmem:[#allocation8 + $0xf0] sm:$0xff]  ;;  %v11921_v2 = vcombine.low %v2704_v51, %v2712_v60  ;;  %v2737_v60 = vld [vmem:[#allocation8 + $0x138] sm:$0xff]  ;;  %14043 = vst [vmem:[#allocation405_spill] sm:$0xff] %v11939_v17 }
 0x3c4   : > { %6716 = vmatprep.subr.bf16.mxu1 %v11894_v57  ;;  %v2720_v57 = vld [vmem:[#allocation8 + $0xb0] sm:$0xff]  ;;  %v2745_v51 = vld [vmem:[#allocation8 + $0x178] sm:$0xff] }
 0x3c5   : > { %14038 = vst [vmem:[#allocation400_spill] sm:$0xff] %v11921_v2  ;;  %v11928_v48 = vcombine.high %v2720_v57, %v2728_v43 }
 0x3c6   : > { %6631 = vmatpush1.bf16.msra.mxu0 %v11897_v23  ;;  %v2777_v23 = vld [vmem:[#allocation8 + $0x278] sm:$0xff] }
 0x3c7   : > { %6717 = vmatpush1.bf16.msra.mxu1 %v11901_v58  ;;  %6632 = vmatprep.subr.bf16.mxu0 %v11903_v37  ;;  %14040 = vst [vmem:[#allocation402_spill] sm:$0xff] %v11928_v48  ;;  %v2744_v37 = vld [vmem:[#allocation8 + $0x170] sm:$0xff]  ;;  %v11931_v58 = vcombine.high %v2721_v21, %v2729_v54  ;;  %v11953_v21 = vcombine.low %v2737_v60, %v2745_v51 }
 0x3c8   : > { %6718 = vmatprep.subr.bf16.mxu1 %v11906_v18  ;;  %v2736_v18 = vld [vmem:[#allocation8 + $0x130] sm:$0xff] }
 0x3c9   : > { %14041 = vst [vmem:[#allocation403_spill] sm:$0xff] %v11931_v58  ;;  %v11941_v8 = vcombine.high %v2736_v18, %v2744_v37  ;;  %14047 = vst [vmem:[#allocation409_spill] sm:$0xff] %v11953_v21 }
 0x3ca   : > { %6633 = vmatpush1.bf16.msra.mxu0 %v11909_v53  ;;  %v2760_v53 = vld [vmem:[#allocation8 + $0x1f0] sm:$0xff] }
 0x3cb   : > { %6719 = vmatpush1.bf16.msra.mxu1 %v11913_v22  ;;  %6731 = vmatprep.subr.bf16.mxu0 %v11915_v0  ;;  %v11935_v22 = vcombine.low %v2720_v57, %v2728_v43  ;;  %14044 = vst [vmem:[#allocation406_spill] sm:$0xff] %v11941_v8  ;;  %v2752_v0 = vld [vmem:[#allocation8 + $0x1b0] sm:$0xff]  ;;  %v2753_v43 = vld [vmem:[#allocation8 + $0x1b8] sm:$0xff] }
 0x3cc   : > { %6817 = vmatprep.subr.bf16.mxu1 %v11918_v24  ;;  %v11945_v24 = vcombine.high %v2737_v60, %v2745_v51  ;;  %v2761_v57 = vld [vmem:[#allocation8 + $0x1f8] sm:$0xff] }
 0x3cd   : > { %6635 = vmatmul.mubr.bf16.vlgmr.msra.gmra.mrb[40].mxu0 %v11094_v29  ;;  %14042 = vst [vmem:[#allocation404_spill] sm:$0xff] %v11935_v22  ;;  %v11958_v54 = vcombine.high %v2753_v43, %v2761_v57 }
 0x3ce   : > { %6721 = vmatmul.mubr.bf16.vlgmr.msra.gmra.mrb[40].mxu1 %v11094_v29  ;;  %6732 = vmatpush1.bf16.msra.mxu0 %v11921_v2  ;;  %14045 = vst [vmem:[#allocation407_spill] sm:$0xff] %v11945_v24  ;;  %v11949_v2 = vcombine.low %v2736_v18, %v2744_v37  ;;  %v11961_v37 = vcombine.low %v2752_v0, %v2760_v53 }
 0x3cf   : > { %6763 = vmatprep.mubr.bf16.mxu0 %v10882_v28  ;;  %6818 = vmatpush1.bf16.msra.mxu1 %v11925_v25  ;;  %14049 = vst [vmem:[#allocation411_spill] sm:$0xff] %v11958_v54  ;;  %v2769_v25 = vld [vmem:[#allocation8 + $0x238] sm:$0xff]  ;;  %v11965_v18 = vcombine.low %v2753_v43, %v2761_v57 }
 0x3d0   : > { %6849 = vmatprep.mubr.bf16.mxu1 %v10882_v28  ;;  %6733 = vmatprep.subr.bf16.mxu0 %v11928_v48  ;;  %14046 = vst [vmem:[#allocation408_spill] sm:$0xff] %v11949_v2  ;;  %v11955_v28 = vcombine.high %v2752_v0, %v2760_v53  ;;  %v2768_v48 = vld [vmem:[#allocation8 + $0x230] sm:$0xff]  ;;  %14050 = vst [vmem:[#allocation412_spill] sm:$0xff] %v11961_v37  ;;  %v11970_v51 = vcombine.high %v2769_v25, %v2777_v23 }
 0x3d1   : > { %6819 = vmatprep.subr.bf16.mxu1 %v11931_v58  ;;  %v2776_v58 = vld [vmem:[#allocation8 + $0x270] sm:$0xff]  ;;  %14051 = vst [vmem:[#allocation413_spill] sm:$0xff] %v11965_v18  ;;  %v11977_v0 = vcombine.low %v2769_v25, %v2777_v23 }
 0x3d2   : > { %6734 = vmatpush1.bf16.msra.mxu0 %v11935_v22  ;;  %14048 = vst [vmem:[#allocation410_spill] sm:$0xff] %v11955_v28  ;;  %v11967_v60 = vcombine.high %v2768_v48, %v2776_v58  ;;  %14053 = vst [vmem:[#allocation415_spill] sm:$0xff] %v11970_v51  ;;  %v2793_v22 = vld [vmem:[#allocation8 + $0x2f8] sm:$0xff]  ;;  %v11973_v53 = vcombine.low %v2768_v48, %v2776_v58 }
 0x3d3   : > { %6820 = vmatpush1.bf16.msra.mxu1 %v11939_v17  ;;  %6735 = vmatprep.subr.bf16.mxu0 %v11941_v8  ;;  %v2792_v8 = vld [vmem:[#allocation8 + $0x2f0] sm:$0xff]  ;;  %v2785_v17 = vld [vmem:[#allocation8 + $0x2b8] sm:$0xff]  ;;  %14055 = vst [vmem:[#allocation417_spill] sm:$0xff] %v11977_v0 }
 0x3d4   : > { %6821 = vmatprep.subr.bf16.mxu1 %v11945_v24  ;;  %14052 = vst [vmem:[#allocation414_spill] sm:$0xff] %v11967_v60  ;;  %v2784_v24 = vld [vmem:[#allocation8 + $0x2b0] sm:$0xff]  ;;  %14054 = vst [vmem:[#allocation416_spill] sm:$0xff] %v11973_v53  ;;  %v11982_v57 = vcombine.high %v2785_v17, %v2793_v22  ;;  %v11989_v23 = vcombine.low %v2785_v17, %v2793_v22 }
 0x3d5   : > { %v11979_v43 = vcombine.high %v2784_v24, %v2792_v8  ;;  %v11985_v58 = vcombine.low %v2784_v24, %v2792_v8 }
 0x3d6   : > { %6736 = vmatpush1.bf16.msra.mxu0 %v11949_v2  ;;  %14057 = vst [vmem:[#allocation419_spill] sm:$0xff] %v11982_v57  ;;  %v2809_v2 = vld [vmem:[#allocation8 + $0x378] sm:$0xff]  ;;  %14059 = vst [vmem:[#allocation421_spill] sm:$0xff] %v11989_v23 }
 0x3d7   : > { %6822 = vmatpush1.bf16.msra.mxu1 %v11953_v21  ;;  %6737 = vmatprep.subr.bf16.mxu0 %v11955_v28  ;;  %14056 = vst [vmem:[#allocation418_spill] sm:$0xff] %v11979_v43  ;;  %v2808_v28 = vld [vmem:[#allocation8 + $0x370] sm:$0xff]  ;;  %v2801_v21 = vld [vmem:[#allocation8 + $0x338] sm:$0xff]  ;;  %14058 = vst [vmem:[#allocation420_spill] sm:$0xff] %v11985_v58 }
 0x3d8   : > { %6823 = vmatprep.subr.bf16.mxu1 %v11958_v54  ;;  %v2800_v54 = vld [vmem:[#allocation8 + $0x330] sm:$0xff]  ;;  %v11994_v48 = vcombine.high %v2801_v21, %v2809_v2  ;;  %v12001_v22 = vcombine.low %v2801_v21, %v2809_v2 }
 0x3d9   : > { %v11991_v25 = vcombine.high %v2800_v54, %v2808_v28  ;;  %v11997_v24 = vcombine.low %v2800_v54, %v2808_v28 }
 0x3da   : > { %6738 = vmatpush1.bf16.msra.mxu0 %v11961_v37  ;;  %14061 = vst [vmem:[#allocation423_spill] sm:$0xff] %v11994_v48  ;;  %v2825_v37 = vld [vmem:[#allocation8 + $0x3f8] sm:$0xff]  ;;  %14063 = vst [vmem:[#allocation425_spill] sm:$0xff] %v12001_v22 }
 0x3db   : > { %6824 = vmatpush1.bf16.msra.mxu1 %v11965_v18  ;;  %6739 = vmatprep.subr.bf16.mxu0 %v11967_v60  ;;  %14060 = vst [vmem:[#allocation422_spill] sm:$0xff] %v11991_v25  ;;  %v2824_v60 = vld [vmem:[#allocation8 + $0x3f0] sm:$0xff]  ;;  %v2817_v18 = vld [vmem:[#allocation8 + $0x3b8] sm:$0xff]  ;;  %14062 = vst [vmem:[#allocation424_spill] sm:$0xff] %v11997_v24 }
 0x3dc   : > { %6825 = vmatprep.subr.bf16.mxu1 %v11970_v51  ;;  %v2816_v51 = vld [vmem:[#allocation8 + $0x3b0] sm:$0xff]  ;;  %v12006_v8 = vcombine.high %v2817_v18, %v2825_v37  ;;  %v12013_v2 = vcombine.low %v2817_v18, %v2825_v37 }
 0x3dd   : > { %v12003_v17 = vcombine.high %v2816_v51, %v2824_v60  ;;  %v12009_v28 = vcombine.low %v2816_v51, %v2824_v60 }
 0x3de   : > { %6740 = vmatpush1.bf16.msra.mxu0 %v11973_v53  ;;  %14065 = vst [vmem:[#allocation427_spill] sm:$0xff] %v12006_v8  ;;  %v2841_v53 = vld [vmem:[#allocation8 + $0x478] sm:$0xff]  ;;  %14067 = vst [vmem:[#allocation429_spill] sm:$0xff] %v12013_v2 }
 0x3df   : > { %6826 = vmatpush1.bf16.msra.mxu1 %v11977_v0  ;;  %6741 = vmatprep.subr.bf16.mxu0 %v11979_v43  ;;  %14064 = vst [vmem:[#allocation426_spill] sm:$0xff] %v12003_v17  ;;  %v2840_v43 = vld [vmem:[#allocation8 + $0x470] sm:$0xff]  ;;  %v2833_v0 = vld [vmem:[#allocation8 + $0x438] sm:$0xff]  ;;  %14066 = vst [vmem:[#allocation428_spill] sm:$0xff] %v12009_v28 }
 0x3e0   : > { %6827 = vmatprep.subr.bf16.mxu1 %v11982_v57  ;;  %v2832_v57 = vld [vmem:[#allocation8 + $0x430] sm:$0xff]  ;;  %v12018_v54 = vcombine.high %v2833_v0, %v2841_v53  ;;  %v12025_v37 = vcombine.low %v2833_v0, %v2841_v53 }
 0x3e1   : > { %v12015_v21 = vcombine.high %v2832_v57, %v2840_v43  ;;  %v12021_v60 = vcombine.low %v2832_v57, %v2840_v43 }
 0x3e2   : > { %6742 = vmatpush1.bf16.msra.mxu0 %v11985_v58  ;;  %14069 = vst [vmem:[#allocation431_spill] sm:$0xff] %v12018_v54  ;;  %v2857_v58 = vld [vmem:[#allocation8 + $0x4f8] sm:$0xff]  ;;  %14071 = vst [vmem:[#allocation433_spill] sm:$0xff] %v12025_v37 }
 0x3e3   : > { %6828 = vmatpush1.bf16.msra.mxu1 %v11989_v23  ;;  %6743 = vmatprep.subr.bf16.mxu0 %v11991_v25  ;;  %14068 = vst [vmem:[#allocation430_spill] sm:$0xff] %v12015_v21  ;;  %v2856_v25 = vld [vmem:[#allocation8 + $0x4f0] sm:$0xff]  ;;  %v2849_v23 = vld [vmem:[#allocation8 + $0x4b8] sm:$0xff]  ;;  %14070 = vst [vmem:[#allocation432_spill] sm:$0xff] %v12021_v60 }
 0x3e4   : > { %6829 = vmatprep.subr.bf16.mxu1 %v11994_v48  ;;  %v2848_v48 = vld [vmem:[#allocation8 + $0x4b0] sm:$0xff]  ;;  %v12030_v51 = vcombine.high %v2849_v23, %v2857_v58  ;;  %v12037_v53 = vcombine.low %v2849_v23, %v2857_v58 }
 0x3e5   : > { %v12027_v18 = vcombine.high %v2848_v48, %v2856_v25  ;;  %v12033_v43 = vcombine.low %v2848_v48, %v2856_v25 }
 0x3e6   : > { %6744 = vmatpush1.bf16.msra.mxu0 %v11997_v24  ;;  %14073 = vst [vmem:[#allocation435_spill] sm:$0xff] %v12030_v51  ;;  %v2873_v24 = vld [vmem:[#allocation8 + $0x578] sm:$0xff]  ;;  %14075 = vst [vmem:[#allocation437_spill] sm:$0xff] %v12037_v53 }
 0x3e7   : > { %6830 = vmatpush1.bf16.msra.mxu1 %v12001_v22  ;;  %6745 = vmatprep.subr.bf16.mxu0 %v12003_v17  ;;  %14072 = vst [vmem:[#allocation434_spill] sm:$0xff] %v12027_v18  ;;  %v2872_v17 = vld [vmem:[#allocation8 + $0x570] sm:$0xff]  ;;  %v2865_v22 = vld [vmem:[#allocation8 + $0x538] sm:$0xff]  ;;  %14074 = vst [vmem:[#allocation436_spill] sm:$0xff] %v12033_v43 }
 0x3e8   : > { %6831 = vmatprep.subr.bf16.mxu1 %v12006_v8  ;;  %v2864_v8 = vld [vmem:[#allocation8 + $0x530] sm:$0xff]  ;;  %v12042_v57 = vcombine.high %v2865_v22, %v2873_v24  ;;  %v12049_v58 = vcombine.low %v2865_v22, %v2873_v24 }
 0x3e9   : > { %v12039_v0 = vcombine.high %v2864_v8, %v2872_v17  ;;  %v12045_v25 = vcombine.low %v2864_v8, %v2872_v17 }
 0x3ea   : > { %6746 = vmatpush1.bf16.msra.mxu0 %v12009_v28  ;;  %14077 = vst [vmem:[#allocation439_spill] sm:$0xff] %v12042_v57  ;;  %v2889_v28 = vld [vmem:[#allocation8 + $0x5f8] sm:$0xff]  ;;  %14079 = vst [vmem:[#allocation441_spill] sm:$0xff] %v12049_v58 }
 0x3eb   : > { %6832 = vmatpush1.bf16.msra.mxu1 %v12013_v2  ;;  %6747 = vmatprep.subr.bf16.mxu0 %v12015_v21  ;;  %14076 = vst [vmem:[#allocation438_spill] sm:$0xff] %v12039_v0  ;;  %v2888_v21 = vld [vmem:[#allocation8 + $0x5f0] sm:$0xff]  ;;  %v2881_v2 = vld [vmem:[#allocation8 + $0x5b8] sm:$0xff]  ;;  %14078 = vst [vmem:[#allocation440_spill] sm:$0xff] %v12045_v25 }
 0x3ec   : > { %6833 = vmatprep.subr.bf16.mxu1 %v12018_v54  ;;  %v2880_v54 = vld [vmem:[#allocation8 + $0x5b0] sm:$0xff]  ;;  %v12054_v48 = vcombine.high %v2881_v2, %v2889_v28  ;;  %v12061_v24 = vcombine.low %v2881_v2, %v2889_v28 }
 0x3ed   : > { %v12051_v23 = vcombine.high %v2880_v54, %v2888_v21  ;;  %v12057_v17 = vcombine.low %v2880_v54, %v2888_v21 }
 0x3ee   : > { %6748 = vmatpush1.bf16.msra.mxu0 %v12021_v60  ;;  %14081 = vst [vmem:[#allocation443_spill] sm:$0xff] %v12054_v48  ;;  %v2905_v60 = vld [vmem:[#allocation8 + $0x678] sm:$0xff]  ;;  %14083 = vst [vmem:[#allocation445_spill] sm:$0xff] %v12061_v24 }
 0x3ef   : > { %6834 = vmatpush1.bf16.msra.mxu1 %v12025_v37  ;;  %6749 = vmatprep.subr.bf16.mxu0 %v12027_v18  ;;  %14080 = vst [vmem:[#allocation442_spill] sm:$0xff] %v12051_v23  ;;  %v2904_v18 = vld [vmem:[#allocation8 + $0x670] sm:$0xff]  ;;  %v2897_v37 = vld [vmem:[#allocation8 + $0x638] sm:$0xff]  ;;  %14082 = vst [vmem:[#allocation444_spill] sm:$0xff] %v12057_v17 }
 0x3f0   : > { %6835 = vmatprep.subr.bf16.mxu1 %v12030_v51  ;;  %v2896_v51 = vld [vmem:[#allocation8 + $0x630] sm:$0xff]  ;;  %v12066_v8 = vcombine.high %v2897_v37, %v2905_v60  ;;  %v12073_v28 = vcombine.low %v2897_v37, %v2905_v60 }
 0x3f1   : > { %v12063_v22 = vcombine.high %v2896_v51, %v2904_v18  ;;  %v12069_v21 = vcombine.low %v2896_v51, %v2904_v18 }
 0x3f2   : > { %6750 = vmatpush1.bf16.msra.mxu0 %v12033_v43  ;;  %14085 = vst [vmem:[#allocation447_spill] sm:$0xff] %v12066_v8  ;;  %v2921_v43 = vld [vmem:[#allocation8 + $0x6f8] sm:$0xff]  ;;  %14087 = vst [vmem:[#allocation449_spill] sm:$0xff] %v12073_v28 }
 0x3f3   : > { %6836 = vmatpush1.bf16.msra.mxu1 %v12037_v53  ;;  %6751 = vmatprep.subr.bf16.mxu0 %v12039_v0  ;;  %14084 = vst [vmem:[#allocation446_spill] sm:$0xff] %v12063_v22  ;;  %v2920_v0 = vld [vmem:[#allocation8 + $0x6f0] sm:$0xff]  ;;  %v2913_v53 = vld [vmem:[#allocation8 + $0x6b8] sm:$0xff]  ;;  %14086 = vst [vmem:[#allocation448_spill] sm:$0xff] %v12069_v21 }
 0x3f4   : > { %6837 = vmatprep.subr.bf16.mxu1 %v12042_v57  ;;  %v2912_v57 = vld [vmem:[#allocation8 + $0x6b0] sm:$0xff]  ;;  %v12078_v54 = vcombine.high %v2913_v53, %v2921_v43  ;;  %v12085_v60 = vcombine.low %v2913_v53, %v2921_v43 }
 0x3f5   : > { %v12075_v2 = vcombine.high %v2912_v57, %v2920_v0  ;;  %v12081_v18 = vcombine.low %v2912_v57, %v2920_v0 }
 0x3f6   : > { %6752 = vmatpush1.bf16.msra.mxu0 %v12045_v25  ;;  %14089 = vst [vmem:[#allocation451_spill] sm:$0xff] %v12078_v54  ;;  %v2937_v25 = vld [vmem:[#allocation8 + $0x778] sm:$0xff]  ;;  %14091 = vst [vmem:[#allocation453_spill] sm:$0xff] %v12085_v60 }
 0x3f7   : > { %6838 = vmatpush1.bf16.msra.mxu1 %v12049_v58  ;;  %6753 = vmatprep.subr.bf16.mxu0 %v12051_v23  ;;  %14088 = vst [vmem:[#allocation450_spill] sm:$0xff] %v12075_v2  ;;  %v2936_v23 = vld [vmem:[#allocation8 + $0x770] sm:$0xff]  ;;  %v2929_v58 = vld [vmem:[#allocation8 + $0x738] sm:$0xff]  ;;  %14090 = vst [vmem:[#allocation452_spill] sm:$0xff] %v12081_v18 }
 0x3f8   : > { %6839 = vmatprep.subr.bf16.mxu1 %v12054_v48  ;;  %v2928_v48 = vld [vmem:[#allocation8 + $0x730] sm:$0xff]  ;;  %v12090_v51 = vcombine.high %v2929_v58, %v2937_v25  ;;  %v12097_v43 = vcombine.low %v2929_v58, %v2937_v25 }
 0x3f9   : > { %v12087_v37 = vcombine.high %v2928_v48, %v2936_v23  ;;  %v12093_v0 = vcombine.low %v2928_v48, %v2936_v23 }
 0x3fa   : > { %6754 = vmatpush1.bf16.msra.mxu0 %v12057_v17  ;;  %14093 = vst [vmem:[#allocation455_spill] sm:$0xff] %v12090_v51  ;;  %v2953_v17 = vld [vmem:[#allocation8 + $0x7f8] sm:$0xff]  ;;  %14095 = vst [vmem:[#allocation457_spill] sm:$0xff] %v12097_v43 }
 0x3fb   : > { %6840 = vmatpush1.bf16.msra.mxu1 %v12061_v24  ;;  %6755 = vmatprep.subr.bf16.mxu0 %v12063_v22  ;;  %14092 = vst [vmem:[#allocation454_spill] sm:$0xff] %v12087_v37  ;;  %v2952_v22 = vld [vmem:[#allocation8 + $0x7f0] sm:$0xff]  ;;  %v2945_v24 = vld [vmem:[#allocation8 + $0x7b8] sm:$0xff]  ;;  %14094 = vst [vmem:[#allocation456_spill] sm:$0xff] %v12093_v0 }
 0x3fc   : > { %6841 = vmatprep.subr.bf16.mxu1 %v12066_v8  ;;  %v2944_v8 = vld [vmem:[#allocation8 + $0x7b0] sm:$0xff]  ;;  %v12102_v57 = vcombine.high %v2945_v24, %v2953_v17  ;;  %v12109_v25 = vcombine.low %v2945_v24, %v2953_v17 }
 0x3fd   : > { %v12099_v53 = vcombine.high %v2944_v8, %v2952_v22  ;;  %v12105_v23 = vcombine.low %v2944_v8, %v2952_v22  ;;  %v2977_v22 = vld [vmem:[#allocation8 + $0x8b8] sm:$0xff] }
 0x3fe   : > { %6756 = vmatpush1.bf16.msra.mxu0 %v12069_v21  ;;  %14097 = vst [vmem:[#allocation459_spill] sm:$0xff] %v12102_v57  ;;  %v2969_v21 = vld [vmem:[#allocation8 + $0x878] sm:$0xff]  ;;  %14099 = vst [vmem:[#allocation461_spill] sm:$0xff] %v12109_v25 }
 0x3ff   : > { %6842 = vmatpush1.bf16.msra.mxu1 %v12073_v28  ;;  %6757 = vmatprep.subr.bf16.mxu0 %v12075_v2  ;;  %14096 = vst [vmem:[#allocation458_spill] sm:$0xff] %v12099_v53  ;;  %v2968_v2 = vld [vmem:[#allocation8 + $0x870] sm:$0xff]  ;;  %v2961_v28 = vld [vmem:[#allocation8 + $0x838] sm:$0xff]  ;;  %14098 = vst [vmem:[#allocation460_spill] sm:$0xff] %v12105_v23 }
 0x400   : > { %6843 = vmatprep.subr.bf16.mxu1 %v12078_v54  ;;  %v2960_v54 = vld [vmem:[#allocation8 + $0x830] sm:$0xff]  ;;  %v12114_v48 = vcombine.high %v2961_v28, %v2969_v21  ;;  %v2985_v8 = vld [vmem:[#allocation8 + $0x8f8] sm:$0xff]  ;;  %v12121_v17 = vcombine.low %v2961_v28, %v2969_v21 }
 0x401   : > { %v12111_v58 = vcombine.high %v2960_v54, %v2968_v2  ;;  %v12135_v21 = vcombine.low %v2977_v22, %v2985_v8 }
 0x402   : > { %6758 = vmatpush1.bf16.msra.mxu0 %v12081_v18  ;;  %14101 = vst [vmem:[#allocation463_spill] sm:$0xff] %v12114_v48  ;;  %14103 = vst [vmem:[#allocation465_spill] sm:$0xff] %v12121_v17 }
 0x403   : > { %6844 = vmatpush1.bf16.msra.mxu1 %v12085_v60  ;;  %6759 = vmatprep.subr.bf16.mxu0 %v12087_v37  ;;  %14100 = vst [vmem:[#allocation462_spill] sm:$0xff] %v12111_v58  ;;  %v2984_v37 = vld [vmem:[#allocation8 + $0x8f0] sm:$0xff]  ;;  %v12117_v60 = vcombine.low %v2960_v54, %v2968_v2  ;;  %v2993_v2 = vld [vmem:[#allocation8 + $0x938] sm:$0xff]  ;;  %14107 = vst [vmem:[#allocation469_spill] sm:$0xff] %v12135_v21 }
 0x404   : > { %6845 = vmatprep.subr.bf16.mxu1 %v12090_v51  ;;  %v2976_v51 = vld [vmem:[#allocation8 + $0x8b0] sm:$0xff]  ;;  %v3001_v54 = vld [vmem:[#allocation8 + $0x978] sm:$0xff] }
 0x405   : > { %14102 = vst [vmem:[#allocation464_spill] sm:$0xff] %v12117_v60  ;;  %v12124_v24 = vcombine.high %v2976_v51, %v2984_v37 }
 0x406   : > { %6760 = vmatpush1.bf16.msra.mxu0 %v12093_v0  ;;  %v3072_v0 = vld [vmem:[#allocation8 + $0xbb0] sm:$0xff] }
 0x407   : > { %6846 = vmatpush1.bf16.msra.mxu1 %v12097_v43  ;;  %6761 = vmatprep.subr.bf16.mxu0 %v12099_v53  ;;  %14104 = vst [vmem:[#allocation466_spill] sm:$0xff] %v12124_v24  ;;  %v3000_v53 = vld [vmem:[#allocation8 + $0x970] sm:$0xff]  ;;  %v12127_v43 = vcombine.high %v2977_v22, %v2985_v8  ;;  %v12149_v22 = vcombine.low %v2993_v2, %v3001_v54 }
 0x408   : > { %6847 = vmatprep.subr.bf16.mxu1 %v12102_v57  ;;  %v2992_v57 = vld [vmem:[#allocation8 + $0x930] sm:$0xff] }
 0x409   : > { %14105 = vst [vmem:[#allocation467_spill] sm:$0xff] %v12127_v43  ;;  %v12137_v28 = vcombine.high %v2992_v57, %v3000_v53  ;;  %14111 = vst [vmem:[#allocation473_spill] sm:$0xff] %v12149_v22 }
 0x40a   : > { %6762 = vmatpush1.bf16.msra.mxu0 %v12105_v23  ;;  %v3033_v23 = vld [vmem:[#allocation8 + $0xa78] sm:$0xff] }
 0x40b   : > { %6848 = vmatpush1.bf16.msra.mxu1 %v12109_v25  ;;  %6774 = vmatprep.subr.bf16.mxu0 %v12111_v58  ;;  %v12131_v25 = vcombine.low %v2976_v51, %v2984_v37  ;;  %14108 = vst [vmem:[#allocation470_spill] sm:$0xff] %v12137_v28  ;;  %v3008_v58 = vld [vmem:[#allocation8 + $0x9b0] sm:$0xff]  ;;  %v3009_v37 = vld [vmem:[#allocation8 + $0x9b8] sm:$0xff] }
 0x40c   : > { %6860 = vmatprep.subr.bf16.mxu1 %v12114_v48  ;;  %v12141_v48 = vcombine.high %v2993_v2, %v3001_v54  ;;  %v3017_v51 = vld [vmem:[#allocation8 + $0x9f8] sm:$0xff] }
 0x40d   : > { %6764 = vmatmul.mubr.bf16.vlgmr.msra.gmra.mrb[44].mxu0 %v10887_v36  ;;  %14106 = vst [vmem:[#allocation468_spill] sm:$0xff] %v12131_v25  ;;  %v12154_v8 = vcombine.high %v3009_v37, %v3017_v51 }
 0x40e   : > { %6850 = vmatmul.mubr.bf16.vlgmr.msra.gmra.mrb[44].mxu1 %v10887_v36  ;;  %6775 = vmatpush1.bf16.msra.mxu0 %v12117_v60  ;;  %14109 = vst [vmem:[#allocation471_spill] sm:$0xff] %v12141_v48  ;;  %v3016_v36 = vld [vmem:[#allocation8 + $0x9f0] sm:$0xff]  ;;  %v12145_v60 = vcombine.low %v2992_v57, %v3000_v53  ;;  %v12161_v57 = vcombine.low %v3009_v37, %v3017_v51 }
 0x40f   : > { %6806 = vmatprep.mubr.bf16.mxu0 %v10898_v7  ;;  %6861 = vmatpush1.bf16.msra.mxu1 %v12121_v17  ;;  %14113 = vst [vmem:[#allocation475_spill] sm:$0xff] %v12154_v8  ;;  %v3025_v17 = vld [vmem:[#allocation8 + $0xa38] sm:$0xff]  ;;  %v12157_v53 = vcombine.low %v3008_v58, %v3016_v36  ;;  %v3056_v51 = vld [vmem:[#allocation8 + $0xb30] sm:$0xff] }
 0x410   : > { %6892 = vmatprep.mubr.bf16.mxu1 %v10898_v7  ;;  %6776 = vmatprep.subr.bf16.mxu0 %v12124_v24  ;;  %14110 = vst [vmem:[#allocation472_spill] sm:$0xff] %v12145_v60  ;;  %v12151_v7 = vcombine.high %v3008_v58, %v3016_v36  ;;  %v3024_v24 = vld [vmem:[#allocation8 + $0xa30] sm:$0xff]  ;;  %14115 = vst [vmem:[#allocation477_spill] sm:$0xff] %v12161_v57  ;;  %v12166_v54 = vcombine.high %v3025_v17, %v3033_v23 }
 0x411   : > { %6862 = vmatprep.subr.bf16.mxu1 %v12127_v43  ;;  %v3032_v43 = vld [vmem:[#allocation8 + $0xa70] sm:$0xff]  ;;  %14114 = vst [vmem:[#allocation476_spill] sm:$0xff] %v12157_v53  ;;  %v12173_v36 = vcombine.low %v3025_v17, %v3033_v23 }
 0x412   : > { %6777 = vmatpush1.bf16.msra.mxu0 %v12131_v25  ;;  %14112 = vst [vmem:[#allocation474_spill] sm:$0xff] %v12151_v7  ;;  %v12163_v2 = vcombine.high %v3024_v24, %v3032_v43  ;;  %14117 = vst [vmem:[#allocation479_spill] sm:$0xff] %v12166_v54  ;;  %v3049_v25 = vld [vmem:[#allocation8 + $0xaf8] sm:$0xff]  ;;  %v12169_v58 = vcombine.low %v3024_v24, %v3032_v43  ;;  %v3088_v23 = vld [vmem:[#allocation8 + $0xc30] sm:$0xff] }
 0x413   : > { %6863 = vmatpush1.bf16.msra.mxu1 %v12135_v21  ;;  %6778 = vmatprep.subr.bf16.mxu0 %v12137_v28  ;;  %v3048_v28 = vld [vmem:[#allocation8 + $0xaf0] sm:$0xff]  ;;  %v3041_v21 = vld [vmem:[#allocation8 + $0xab8] sm:$0xff]  ;;  %14119 = vst [vmem:[#allocation481_spill] sm:$0xff] %v12173_v36 }
 0x414   : > { %6864 = vmatprep.subr.bf16.mxu1 %v12141_v48  ;;  %14116 = vst [vmem:[#allocation478_spill] sm:$0xff] %v12163_v2  ;;  %v3040_v48 = vld [vmem:[#allocation8 + $0xab0] sm:$0xff]  ;;  %14118 = vst [vmem:[#allocation480_spill] sm:$0xff] %v12169_v58  ;;  %v3073_v43 = vld [vmem:[#allocation8 + $0xbb8] sm:$0xff] }
 0x415   : > { %v12175_v37 = vcombine.high %v3040_v48, %v3048_v28  ;;  %v12181_v24 = vcombine.low %v3040_v48, %v3048_v28  ;;  %v3096_v17 = vld [vmem:[#allocation8 + $0xc70] sm:$0xff] }
 0x416   : > { %6779 = vmatpush1.bf16.msra.mxu0 %v12145_v60  ;;  %v3065_v60 = vld [vmem:[#allocation8 + $0xb78] sm:$0xff]  ;;  %v12204_v26 = vcombine.high %v3088_v23, %v3096_v17 }
 0x417   : > { %6865 = vmatpush1.bf16.msra.mxu1 %v12149_v22  ;;  %6780 = vmatprep.subr.bf16.mxu0 %v12151_v7  ;;  %14120 = vst [vmem:[#allocation482_spill] sm:$0xff] %v12175_v37  ;;  %v3064_v7 = vld [vmem:[#allocation8 + $0xb70] sm:$0xff]  ;;  %v3057_v22 = vld [vmem:[#allocation8 + $0xb38] sm:$0xff]  ;;  %14122 = vst [vmem:[#allocation484_spill] sm:$0xff] %v12181_v24 }
 0x418   : > { %6866 = vmatprep.subr.bf16.mxu1 %v12154_v8  ;;  %v12178_v8 = vcombine.high %v3041_v21, %v3049_v25  ;;  %v12189_v18 = vcombine.high %v3056_v51, %v3064_v7  ;;  %v12192_v48 = vcombine.low %v3057_v22, %v3065_v60  ;;  %v12194_v28 = vcombine.high %v3057_v22, %v3065_v60 }
 0x419   : > { %v12207_v22 = vcombine.low %v3088_v23, %v3096_v17 }
 0x41a   : > { %6781 = vmatpush1.bf16.msra.mxu0 %v12157_v53  ;;  %14121 = vst [vmem:[#allocation483_spill] sm:$0xff] %v12178_v8  ;;  %v3080_v53 = vld [vmem:[#allocation8 + $0xbf0] sm:$0xff]  ;;  %14124 = vst [vmem:[#allocation486_spill] sm:$0xff] %v12189_v18 }
 0x41b   : > { %6867 = vmatpush1.bf16.msra.mxu1 %v12161_v57  ;;  %6782 = vmatprep.subr.bf16.mxu0 %v12163_v2  ;;  %v3081_v2 = vld [vmem:[#allocation8 + $0xbf8] sm:$0xff]  ;;  %v12187_v57 = vcombine.low %v3056_v51, %v3064_v7  ;;  %14125 = vst [vmem:[#allocation487_spill] sm:$0xff] %v12194_v28 }
 0x41c   : > { %6868 = vmatprep.subr.bf16.mxu1 %v12166_v54  ;;  %v12185_v54 = vcombine.low %v3041_v21, %v3049_v25  ;;  %v12200_v51 = vcombine.low %v3073_v43, %v3081_v2  ;;  %v12202_v19 = vcombine.high %v3073_v43, %v3081_v2  ;;  %v12213_v43 = vcombine.high %v3089_v45, %v3097_v3 }
 0x41e   : > { %6783 = vmatpush1.bf16.msra.mxu0 %v12169_v58  ;;  %14123 = vst [vmem:[#allocation485_spill] sm:$0xff] %v12185_v54  ;;  %v3596_v58 = vld [vmem:[#allocation3 + $0xb0] sm:$0x80] }
 0x41f   : > { %6869 = vmatpush1.bf16.msra.mxu1 %v12173_v36  ;;  %6784 = vmatprep.subr.bf16.mxu0 %v12175_v37  ;;  %v12196_v36 = vcombine.low %v3072_v0, %v3080_v53  ;;  %v12198_v37 = vcombine.high %v3072_v0, %v3080_v53  ;;  %v12209_v0 = vcombine.low %v3089_v45, %v3097_v3  ;;  %v3611_v45 = vld [vmem:[#allocation3 + $0x1a8] sm:$0x7f] }
 0x420   : > { %v6464_v31 = vpop.f32.mrb[36].mxu0  ;;  %6870 = vmatprep.subr.bf16.mxu1 %v12178_v8 }
 0x421   : > { %v6940_v25 = vrot.slane %v6464_v31, 1  ;;  %v6550_v21 = vpop.f32.mrb[36].mxu1  ;;  %v6466_v7 = vpop.f32.mrb[37].mxu0 }
 0x422   : > { %v6942_v14 = vrot.slane %v6550_v21, 1  ;;  %v6941_v8 = vrot.slane %v6466_v7, 1  ;;  %v6552_v46 = vpop.f32.mrb[37].mxu1  ;;  %v6468_v60 = vpop.f32.mrb[38].mxu0  ;;  %6785 = vmatpush1.bf16.msra.mxu0 %v12181_v24 }
 0x423   : > { %v7036_v31 = vadd.f32 %v6940_v25, %v3594_v44  ;;  %v6943_v53 = vrot.slane %v6552_v46, 1  ;;  %v6960_v6 = vrot.slane %v6468_v60, 1  ;;  %v6554_v41 = vpop.f32.mrb[38].mxu1  ;;  %6871 = vmatpush1.bf16.msra.mxu1 %v12185_v54  ;;  %v6470_v2 = vpop.f32.mrb[39].mxu0  ;;  %6786 = vmatprep.subr.bf16.mxu0 %v12189_v18  ;;  %v3612_v60 = vld [vmem:[#allocation3 + $0x1b0] sm:$0x7f] }
 0x424   : > { %v7038_v21 = vadd.f32 %v6942_v14, %v3596_v58  ;;  %v7037_v7 = vadd.f32 %v6941_v8, %v3595_v27  ;;  %v6964_v16 = vrot.slane %v6554_v41, 1  ;;  %v6962_v24 = vrot.slane %v6470_v2, 1  ;;  %v6556_v23 = vpop.f32.mrb[39].mxu1  ;;  %6872 = vmatprep.subr.bf16.mxu1 %v12194_v28  ;;  %v10011_v54 = vld [vmem:[#allocation3 + $0x120] sm:$0xff]  ;;  %v10012_v58 = vld [vmem:[#allocation3 + $0x130] sm:$0xff]  ;;  %v10013_v28 = vld [vmem:[#allocation3 + $0x128] sm:$0xff] }
 0x425   : > { %v7039_v17 = vadd.f32 %v6943_v53, %v3597_v32  ;;  %v6961_v44 = vsel %vm6935_vm2, %v6940_v25, %v6960_v6  ;;  %v7068_v46 = vadd.f32 %v6960_v6, %v3610_v52  ;;  %v6966_v30 = vrot.slane %v6556_v23, 1  ;;  %v3613_v25 = vld [vmem:[#allocation3 + $0x1b8] sm:$0x7f] }
 0x426   : > { %v7052_v40 = vadd.f32 %v10011_v54, %v6961_v44  ;;  %v6965_v18 = vsel %vm6935_vm2, %v6942_v14, %v6964_v16  ;;  %v7070_v3 = vadd.f32 %v6964_v16, %v3612_v60  ;;  %v6963_v27 = vsel %vm6935_vm2, %v6941_v8, %v6962_v24  ;;  %6787 = vmatpush1.bf16.msra.mxu0 %v12187_v57  ;;  %v3104_v16 = vld [vmem:[#allocation8 + $0xcb0] sm:$0xff] }
 0x427   : > { %v7100_v41 = vpack.c.bf16 %v7068_v46, %v7068_v46  ;;  %v7054_v2 = vadd.f32 %v10012_v58, %v6965_v18  ;;  %v7053_v32 = vadd.f32 %v10013_v28, %v6963_v27  ;;  %v7069_v15 = vadd.f32 %v6962_v24, %v3611_v45  ;;  %6873 = vmatpush1.bf16.msra.mxu1 %v12192_v48  ;;  %v3112_v8 = vld [vmem:[#allocation8 + $0xcf0] sm:$0xff]  ;;  %v3105_v18 = vld [vmem:[#allocation8 + $0xcb8] sm:$0xff]  ;;  %v10014_v27 = vld [vmem:[#allocation3 + $0x138] sm:$0xff] }
 0x428   : > { %v7084_v52 = vpack.c.bf16 %v7052_v40, %v7036_v31  ;;  %v7102_v6 = vpack.c.bf16 %v7070_v3, %v7070_v3  ;;  %v6967_v54 = vsel %vm6935_vm2, %v6943_v53, %v6966_v30  ;;  %v7071_v14 = vadd.f32 %v6966_v30, %v3613_v25  ;;  %6788 = vmatprep.subr.bf16.mxu0 %v12198_v37  ;;  %v3113_v24 = vld [vmem:[#allocation8 + $0xcf8] sm:$0xff]  ;;  %v3128_v58 = vld [vmem:[#allocation8 + $0xd70] sm:$0xff] }
 0x429   : > { %v9495_v23 = vmul.bf16 3216621497, %v7100_v41  ;;  %v7086_v44 = vpack.c.bf16 %v7054_v2, %v7038_v21  ;;  %v7085_v46 = vpack.c.bf16 %v7053_v32, %v7037_v7  ;;  %v7101_v60 = vpack.c.bf16 %v7069_v15, %v7069_v15  ;;  %6874 = vmatprep.subr.bf16.mxu1 %v12202_v19  ;;  %v3120_v41 = vld [vmem:[#allocation8 + $0xd30] sm:$0xff]  ;;  %v3121_v2 = vld [vmem:[#allocation8 + $0xd38] sm:$0xff] }
 0x42a   : > { %v9487_v28 = vmul.bf16 3216621497, %v7084_v52  ;;  %v9497_v45 = vmul.bf16 3216621497, %v7102_v6  ;;  %v7055_v40 = vadd.f32 %v10014_v27, %v6967_v54  ;;  %v7103_v31 = vpack.c.bf16 %v7071_v14, %v7071_v14  ;;  %6789 = vmatpush1.bf16.msra.mxu0 %v12196_v36  ;;  %v3129_v32 = vld [vmem:[#allocation8 + $0xd78] sm:$0xff] }
 0x42b   : > { %9815 = vpow.bf16 %v9495_v23  ;;  %v9489_v30 = vmul.bf16 3216621497, %v7086_v44  ;;  %v9488_v53 = vmul.bf16 3216621497, %v7085_v46  ;;  %6875 = vmatpush1.bf16.msra.mxu1 %v12200_v51  ;;  %6790 = vmatprep.subr.bf16.mxu0 %v12204_v26  ;;  %v12227_v21 = vcombine.high %v3104_v16, %v3112_v8  ;;  %v3136_v23 = vld [vmem:[#allocation8 + $0xdb0] sm:$0xff]  ;;  %v3137_v46 = vld [vmem:[#allocation8 + $0xdb8] sm:$0xff] }
 0x42c   : > { %9817 = vpow.bf16 %v9487_v28  ;;  %v9496_v15 = vmul.bf16 3216621497, %v7101_v60  ;;  %v7087_v7 = vpack.c.bf16 %v7055_v40, %v7039_v17  ;;  %6876 = vmatprep.subr.bf16.mxu1 %v12213_v43  ;;  %v12230_v3 = vcombine.high %v3105_v18, %v3113_v24  ;;  %v3144_v44 = vld [vmem:[#allocation8 + $0xdf0] sm:$0xff]  ;;  %v3153_v27 = vld [vmem:[#allocation8 + $0xe38] sm:$0xff] }
 0x42d   : > { %9819 = vpow.bf16 %v9489_v30  ;;  %v9498_v52 = vmul.bf16 3216621497, %v7103_v31  ;;  %v12233_v6 = vcombine.low %v3104_v16, %v3112_v8  ;;  %v12237_v17 = vcombine.low %v3105_v18, %v3113_v24  ;;  %v3145_v16 = vld [vmem:[#allocation8 + $0xdf8] sm:$0xff]  ;;  %v3152_v28 = vld [vmem:[#allocation8 + $0xe30] sm:$0xff] }
 0x42e   : > { %9821 = vpow.bf16 %v9497_v45  ;;  %v9490_v25 = vmul.bf16 3216621497, %v7087_v7  ;;  %6791 = vmatpush1.bf16.msra.mxu0 %v12207_v22  ;;  %v12239_v54 = vcombine.high %v3120_v41, %v3128_v58  ;;  %v12242_v14 = vcombine.high %v3121_v2, %v3129_v32  ;;  %v3160_v45 = vld [vmem:[#allocation8 + $0xe70] sm:$0xff]  ;;  %v3161_v40 = vld [vmem:[#allocation8 + $0xe78] sm:$0xff] }
 0x42f   : > { %9823 = vpow.bf16 %v9488_v53  ;;  %6877 = vmatpush1.bf16.msra.mxu1 %v12209_v0  ;;  %6792 = vmatprep.subr.bf16.mxu0 %v12227_v21  ;;  %v12245_v8 = vcombine.low %v3120_v41, %v3128_v58  ;;  %v12249_v60 = vcombine.low %v3121_v2, %v3129_v32  ;;  %v12251_v18 = vcombine.high %v3136_v23, %v3144_v44 }
 0x430   : > { %9825 = vpow.bf16 %v9496_v15  ;;  %6878 = vmatprep.subr.bf16.mxu1 %v12230_v3  ;;  %14126 = vst [vmem:[#allocation488_spill] sm:$0xff] %v12242_v14  ;;  %v12254_v24 = vcombine.high %v3137_v46, %v3145_v16  ;;  %v12257_v30 = vcombine.low %v3136_v23, %v3144_v44  ;;  %v12261_v7 = vcombine.low %v3137_v46, %v3145_v16 }
 0x431   : > { %9827 = vpow.bf16 %v9490_v25  ;;  %14127 = vst [vmem:[#allocation489_spill] sm:$0xff] %v12245_v8  ;;  %14128 = vst [vmem:[#allocation490_spill] sm:$0xff] %v12249_v60  ;;  %v12263_v41 = vcombine.high %v3152_v28, %v3160_v45  ;;  %v12266_v32 = vcombine.high %v3153_v27, %v3161_v40  ;;  %v3168_v25 = vld [vmem:[#allocation8 + $0xeb0] sm:$0xff]  ;;  %v12269_v46 = vcombine.low %v3152_v28, %v3160_v45 }
 0x432   : > { %9829 = vpow.bf16 %v9498_v52  ;;  %6793 = vmatpush1.bf16.msra.mxu0 %v12233_v6  ;;  %14129 = vst [vmem:[#allocation491_spill] sm:$0xff] %v12251_v18  ;;  %14130 = vst [vmem:[#allocation492_spill] sm:$0xff] %v12254_v24  ;;  %v3176_v52 = vld [vmem:[#allocation8 + $0xef0] sm:$0xff] }
 0x433   : > { %6879 = vmatpush1.bf16.msra.mxu1 %v12237_v17  ;;  %6794 = vmatprep.subr.bf16.mxu0 %v12239_v54  ;;  %14131 = vst [vmem:[#allocation493_spill] sm:$0xff] %v12261_v7  ;;  %14132 = vst [vmem:[#allocation494_spill] sm:$0xff] %v12263_v41  ;;  %v3184_v28 = vld [vmem:[#allocation8 + $0xf30] sm:$0xff] }
 0x434   : > { %6880 = vmatprep.subr.bf16.mxu1 %v12242_v14  ;;  %14133 = vst [vmem:[#allocation495_spill] sm:$0xff] %v12269_v46  ;;  %v3192_v45 = vld [vmem:[#allocation8 + $0xf70] sm:$0xff] }
 0x436   : > { %v9816_v31 = vpop.eup %9815  ;;  %6795 = vmatpush1.bf16.msra.mxu0 %v12245_v8  ;;  %v3177_v8 = vld [vmem:[#allocation8 + $0xef8] sm:$0xff] }
 0x437   : > { %v9818_v53 = vpop.eup %9817  ;;  %v7188_v15 = vadd.bf16 1065369472, %v9816_v31  ;;  %6881 = vmatpush1.bf16.msra.mxu1 %v12249_v60  ;;  %6796 = vmatprep.subr.bf16.mxu0 %v12251_v18  ;;  %v3169_v31 = vld [vmem:[#allocation8 + $0xeb8] sm:$0xff] }
 0x438   : > { %v9820_v58 = vpop.eup %9819  ;;  %v7180_v2 = vadd.bf16 1065369472, %v9818_v53  ;;  %6882 = vmatprep.subr.bf16.mxu1 %v12254_v24  ;;  %v12273_v24 = vcombine.low %v3153_v27, %v3161_v40  ;;  %v12281_v27 = vcombine.low %v3168_v25, %v3176_v52  ;;  %v12287_v40 = vcombine.high %v3184_v28, %v3192_v45 }
 0x439   : > { %v9822_v23 = vpop.eup %9821  ;;  %9831 = vrcp.bf16 %v7188_v15  ;;  %v7182_v44 = vadd.bf16 1065369472, %v9820_v58  ;;  %v12275_v15 = vcombine.high %v3168_v25, %v3176_v52  ;;  %v12293_v25 = vcombine.low %v3184_v28, %v3192_v45 }
 0x43a   : > { %v9824_v60 = vpop.eup %9823  ;;  %9833 = vrcp.bf16 %v7180_v2  ;;  %v7190_v18 = vadd.bf16 1065369472, %v9822_v23  ;;  %6797 = vmatpush1.bf16.msra.mxu0 %v12257_v30  ;;  %14134 = vst [vmem:[#allocation496_spill] sm:$0xff] %v12273_v24  ;;  %v12278_v2 = vcombine.high %v3169_v31, %v3177_v8  ;;  %14137 = vst [vmem:[#allocation499_spill] sm:$0xff] %v12281_v27 }
 0x43b   : > { %v9826_v16 = vpop.eup %9825  ;;  %9835 = vrcp.bf16 %v7182_v44  ;;  %v7181_v53 = vadd.bf16 1065369472, %v9824_v60  ;;  %6883 = vmatpush1.bf16.msra.mxu1 %v12261_v7  ;;  %6798 = vmatprep.subr.bf16.mxu0 %v12263_v41  ;;  %14135 = vst [vmem:[#allocation497_spill] sm:$0xff] %v12275_v15  ;;  %v3185_v44 = vld [vmem:[#allocation8 + $0xf38] sm:$0xff]  ;;  %14139 = vst [vmem:[#allocation501_spill] sm:$0xff] %v12287_v40 }
 0x43c   : > { %v9828_v58 = vpop.eup %9827  ;;  %9837 = vrcp.bf16 %v7190_v18  ;;  %v7189_v14 = vadd.bf16 1065369472, %v9826_v16  ;;  %6884 = vmatprep.subr.bf16.mxu1 %v12266_v32  ;;  %14136 = vst [vmem:[#allocation498_spill] sm:$0xff] %v12278_v2  ;;  %v3193_v7 = vld [vmem:[#allocation8 + $0xf78] sm:$0xff]  ;;  %v12285_v18 = vcombine.low %v3169_v31, %v3177_v8  ;;  %14141 = vst [vmem:[#allocation503_spill] sm:$0xff] %v12293_v25 }
 0x43d   : > { %v9830_v23 = vpop.eup %9829  ;;  %9839 = vrcp.bf16 %v7181_v53  ;;  %v7183_v60 = vadd.bf16 1065369472, %v9828_v58  ;;  %v12290_v16 = vcombine.high %v3185_v44, %v3193_v7  ;;  %v3208_v53 = vld [vmem:[#allocation8 + $0xff0] sm:$0xff]  ;;  %v3201_v58 = vld [vmem:[#allocation8 + $0xfb8] sm:$0xff]  ;;  %v12297_v8 = vcombine.low %v3185_v44, %v3193_v7 }
 0x43e   : > { %9841 = vrcp.bf16 %v7189_v14  ;;  %v7191_v41 = vadd.bf16 1065369472, %v9830_v23  ;;  %6799 = vmatpush1.bf16.msra.mxu0 %v12269_v46  ;;  %14138 = vst [vmem:[#allocation500_spill] sm:$0xff] %v12285_v18  ;;  %v3200_v14 = vld [vmem:[#allocation8 + $0xfb0] sm:$0xff]  ;;  %v3209_v23 = vld [vmem:[#allocation8 + $0xff8] sm:$0xff] }
 0x43f   : > { %9843 = vrcp.bf16 %v7183_v60  ;;  %6885 = vmatpush1.bf16.msra.mxu1 %v12273_v24  ;;  %6800 = vmatprep.subr.bf16.mxu0 %v12275_v15  ;;  %14140 = vst [vmem:[#allocation502_spill] sm:$0xff] %v12290_v16  ;;  %14142 = vst [vmem:[#allocation504_spill] sm:$0xff] %v12297_v8  ;;  %v12299_v52 = vcombine.high %v3200_v14, %v3208_v53  ;;  %v12302_v31 = vcombine.high %v3201_v58, %v3209_v23 }
 0x440   : > { %9845 = vrcp.bf16 %v7191_v41  ;;  %6886 = vmatprep.subr.bf16.mxu1 %v12278_v2  ;;  %v12305_v28 = vcombine.low %v3200_v14, %v3208_v53  ;;  %v12309_v7 = vcombine.low %v3201_v58, %v3209_v23 }
 0x441   : > { %14143 = vst [vmem:[#allocation505_spill] sm:$0xff] %v12302_v31 }
 0x442   : > { %6801 = vmatpush1.bf16.msra.mxu0 %v12281_v27  ;;  %14144 = vst [vmem:[#allocation506_spill] sm:$0xff] %v12305_v28  ;;  %14145 = vst [vmem:[#allocation507_spill] sm:$0xff] %v12309_v7 }
 0x443   : > { %6887 = vmatpush1.bf16.msra.mxu1 %v12285_v18  ;;  %6802 = vmatprep.subr.bf16.mxu0 %v12287_v40 }
 0x444   : > { %v9832_v41 = vpop.eup %9831  ;;  %6888 = vmatprep.subr.bf16.mxu1 %v12290_v16 }
 0x445   : > { %v9834_v60 = vpop.eup %9833  ;;  %v7217_v2 = vmul.bf16 1065369472, %v9832_v41 }
 0x446   : > { %v9836_v15 = vpop.eup %9835  ;;  %v7201_v24 = vmul.bf16 1065369472, %v9834_v60  ;;  %6803 = vmatpush1.bf16.msra.mxu0 %v12293_v25 }
 0x447   : > { %v9838_v45 = vpop.eup %9837  ;;  %v7308_v18 = vunpack.c.l.bf16 %v7217_v2  ;;  %v7205_v40 = vmul.bf16 1065369472, %v9836_v15  ;;  %6889 = vmatpush1.bf16.msra.mxu1 %v12297_v8  ;;  %6804 = vmatprep.subr.bf16.mxu0 %v12299_v52  ;;  %v14146_v2 = vrot.slane %v10784_v50, 7 }
 0x448   : > { %v9840_v44 = vpop.eup %9839  ;;  %v7300_v16 = vunpack.c.l.bf16 %v7201_v24  ;;  %v7304_v27 = vunpack.c.h.bf16 %v7201_v24  ;;  %v7221_v46 = vmul.bf16 1065369472, %v9838_v45  ;;  %6890 = vmatprep.subr.bf16.mxu1 %v12302_v31  ;;  %v14147_v31 = vrot.slane %v10796_v20, 7 }
 0x449   : > { %v9842_v41 = vpop.eup %9841  ;;  %v7302_v60 = vunpack.c.l.bf16 %v7205_v40  ;;  %v7306_v25 = vunpack.c.h.bf16 %v7205_v40  ;;  %v7203_v14 = vmul.bf16 1065369472, %v9840_v44  ;;  %v12313_v53 = vmul.f32 %v10816_v49, %v7308_v18 }
 0x44a   : > { %v9844_v15 = vpop.eup %9843  ;;  %v12317_v8 = vmul.f32 %v14146_v2, %v7300_v16  ;;  %v7310_v58 = vunpack.c.l.bf16 %v7221_v46  ;;  %v7219_v23 = vmul.bf16 1065369472, %v9842_v41  ;;  %6805 = vmatpush1.bf16.msra.mxu0 %v12305_v28  ;;  %v12321_v24 = vmul.f32 %v10813_v5, %v7304_v27  ;;  %v14165_v2 = vld [vmem:[#allocation28_spill] sm:$0xff] }
 0x44b   : > { %v9846_v45 = vpop.eup %9845  ;;  %v12325_v40 = vmul.f32 %v14147_v31, %v7302_v60  ;;  %v7301_v44 = vunpack.c.l.bf16 %v7203_v14  ;;  %v7305_v49 = vunpack.c.h.bf16 %v7203_v14  ;;  %v7207_v18 = vmul.bf16 1065369472, %v9844_v15  ;;  %6891 = vmatpush1.bf16.msra.mxu1 %v12309_v7  ;;  %7554 = vmatprep.subr.bf16.mxu0 %v10520_v34  ;;  %v14163_v14 = vld [vmem:[#allocation27_spill] sm:$0xff]  ;;  %v14164_v15 = vld [vmem:[#allocation29_spill] sm:$0xff] }
 0x44c   : > { %v7309_v50 = vunpack.c.l.bf16 %v7219_v23  ;;  %v7223_v46 = vmul.bf16 1065369472, %v9846_v45  ;;  %v12330_v16 = vmul.f32 %v10833_v12, %v7306_v25  ;;  %v12333_v5 = vmul.f32 %v10836_v47, %v7310_v58  ;;  %7640 = vmatprep.subr.bf16.mxu1 %v10524_v39  ;;  %v14162_v25 = vld [vmem:[#allocation26_spill] sm:$0xff]  ;;  %v14167_v23 = vld [vmem:[#allocation31_spill] sm:$0xff]  ;;  %v14168_v45 = vld [vmem:[#allocation33_spill] sm:$0xff] }
 0x44d   : > { %v14148_v20 = vrot.slane %v10805_v13, 7  ;;  %v7303_v31 = vunpack.c.l.bf16 %v7207_v18  ;;  %v7307_v41 = vunpack.c.h.bf16 %v7207_v18  ;;  %6807 = vmatmul.mubr.bf16.vlgmr.msra.gmra.mrb[44].mxu0 %v11094_v29  ;;  %v12342_v34 = vmul.f32 %v10845_v11, %v7305_v49  ;;  %v14166_v58 = vld [vmem:[#allocation30_spill] sm:$0xff]  ;;  %v14171_v18 = vld [vmem:[#allocation35_spill] sm:$0xff] }
 0x44e   : > { %v7311_v60 = vunpack.c.l.bf16 %v7223_v46  ;;  %6893 = vmatmul.mubr.bf16.vlgmr.msra.gmra.mrb[44].mxu1 %v11094_v29  ;;  %v12346_v12 = vmul.f32 %v10848_v59, %v7309_v50  ;;  %7555 = vmatpush1.bf16.msra.mxu0 %v10518_v33  ;;  %v14149_v39 = vrot.slane %v10807_v1, 7  ;;  %v14150_v33 = vld [vmem:[#allocation15_spill] sm:$0xff]  ;;  %v14151_v1 = vld [vmem:[#allocation14_spill] sm:$0xff]  ;;  %v14152_v59 = vld [vmem:[#allocation16_spill] sm:$0xff] }
 0x44f   : > { %v12338_v27 = vmul.f32 %v14148_v20, %v7301_v44  ;;  %v12354_v47 = vmul.f32 %v10853_v9, %v7307_v41  ;;  %7641 = vmatpush1.bf16.msra.mxu1 %v10522_v38  ;;  %7556 = vmatprep.subr.bf16.mxu0 %v10536_v56  ;;  %v14153_v38 = vld [vmem:[#allocation17_spill] sm:$0xff]  ;;  %v14154_v56 = vld [vmem:[#allocation20_spill] sm:$0xff]  ;;  %v14155_v9 = vld [vmem:[#allocation18_spill] sm:$0xff] }
 0x450   : > { %v12351_v13 = vmul.f32 %v14149_v39, %v7303_v31  ;;  %v12359_v11 = vmul.f32 %v10856_v63, %v7311_v60  ;;  %7642 = vmatprep.subr.bf16.mxu1 %v10542_v62  ;;  %v14156_v63 = vld [vmem:[#allocation19_spill] sm:$0xff]  ;;  %v14157_v62 = vld [vmem:[#allocation22_spill] sm:$0xff]  ;;  %v14161_v29 = vld [vmem:[#allocation25_spill] sm:$0xff] }
 0x451   : > { %v14169_v44 = vld [vmem:[#allocation32_spill] sm:$0xff]  ;;  %v14170_v49 = vld [vmem:[#allocation34_spill] sm:$0xff]  ;;  %v14172_v50 = vld [vmem:[#allocation37_spill] sm:$0xff] }
 0x452   : > { %7557 = vmatpush1.bf16.msra.mxu0 %v10534_v55  ;;  %v14158_v55 = vld [vmem:[#allocation23_spill] sm:$0xff]  ;;  %v14173_v46 = vld [vmem:[#allocation36_spill] sm:$0xff]  ;;  %v14174_v20 = vld [vmem:[#allocation38_spill] sm:$0xff] }
 0x453   : > { %7643 = vmatpush1.bf16.msra.mxu1 %v10540_v61  ;;  %7558 = vmatprep.subr.bf16.mxu0 %v10551_v4  ;;  %v14159_v61 = vld [vmem:[#allocation21_spill] sm:$0xff]  ;;  %v14160_v4 = vld [vmem:[#allocation24_spill] sm:$0xff]  ;;  %v14175_v31 = vld [vmem:[#allocation39_spill] sm:$0xff] }
 0x454   : > { %7644 = vmatprep.subr.bf16.mxu1 %v14150_v33  ;;  %v14176_v41 = vld [vmem:[#allocation41_spill] sm:$0xff]  ;;  %v14177_v60 = vld [vmem:[#allocation40_spill] sm:$0xff]  ;;  %v14178_v39 = vld [vmem:[#allocation42_spill] sm:$0xff] }
 0x455   : > { %v14179_v33 = vld [vmem:[#allocation43_spill] sm:$0xff] }
 0x456   : > { %7559 = vmatpush1.bf16.msra.mxu0 %v14151_v1  ;;  %v14180_v1 = vld [vmem:[#allocation45_spill] sm:$0xff] }
 0x457   : > { %7645 = vmatpush1.bf16.msra.mxu1 %v14152_v59  ;;  %7560 = vmatprep.subr.bf16.mxu0 %v14153_v38  ;;  %v14181_v59 = vld [vmem:[#allocation44_spill] sm:$0xff]  ;;  %v14182_v38 = vld [vmem:[#allocation46_spill] sm:$0xff] }
 0x458   : > { %7646 = vmatprep.subr.bf16.mxu1 %v14154_v56  ;;  %v14183_v56 = vld [vmem:[#allocation47_spill] sm:$0xff] }
 0x45a   : > { %7561 = vmatpush1.bf16.msra.mxu0 %v14155_v9  ;;  %v14184_v9 = vld [vmem:[#allocation49_spill] sm:$0xff] }
 0x45b   : > { %7647 = vmatpush1.bf16.msra.mxu1 %v14156_v63  ;;  %7562 = vmatprep.subr.bf16.mxu0 %v14157_v62  ;;  %v14185_v63 = vld [vmem:[#allocation48_spill] sm:$0xff]  ;;  %v14186_v62 = vld [vmem:[#allocation50_spill] sm:$0xff] }
 0x45c   : > { %7648 = vmatprep.subr.bf16.mxu1 %v14158_v55  ;;  %v14187_v55 = vld [vmem:[#allocation51_spill] sm:$0xff] }
 0x45e   : > { %7563 = vmatpush1.bf16.msra.mxu0 %v14159_v61  ;;  %v14188_v61 = vld [vmem:[#allocation53_spill] sm:$0xff] }
 0x45f   : > { %7649 = vmatpush1.bf16.msra.mxu1 %v14160_v4  ;;  %7564 = vmatprep.subr.bf16.mxu0 %v14161_v29  ;;  %v14189_v4 = vld [vmem:[#allocation52_spill] sm:$0xff]  ;;  %v14190_v29 = vld [vmem:[#allocation54_spill] sm:$0xff] }
 0x460   : > { %7650 = vmatprep.subr.bf16.mxu1 %v14162_v25  ;;  %v3606_v25 = vld [vmem:[#allocation3 + $0x180] sm:$0x7f] }
 0x462   : > { %7565 = vmatpush1.bf16.msra.mxu0 %v14163_v14  ;;  %v14191_v14 = vld [vmem:[#allocation55_spill] sm:$0xff] }
 0x463   : > { %7651 = vmatpush1.bf16.msra.mxu1 %v14164_v15  ;;  %7566 = vmatprep.subr.bf16.mxu0 %v14165_v2  ;;  %v14192_v15 = vrot.slane %v11754_v35, 1  ;;  %v14200_v35 = vrot.slane %v11768_v42, 1  ;;  %v14209_v42 = vld [vmem:[#allocation362_spill] sm:$0xff] }
 0x464   : > { %7652 = vmatprep.subr.bf16.mxu1 %v14166_v58  ;;  %v14193_v58 = vld [vmem:[#allocation57_spill] sm:$0xff] }
 0x465   : > { %v7064_v2 = vadd.f32 %v14192_v15, %v3606_v25  ;;  %v14212_v15 = vld [vmem:[#allocation355_spill] sm:$0xff] }
 0x466   : > { %7567 = vmatpush1.bf16.msra.mxu0 %v14167_v23  ;;  %v14194_v23 = vld [vmem:[#allocation56_spill] sm:$0xff] }
 0x467   : > { %7653 = vmatpush1.bf16.msra.mxu1 %v14168_v45  ;;  %7568 = vmatprep.subr.bf16.mxu0 %v14169_v44  ;;  %v14195_v45 = vld [vmem:[#allocation58_spill] sm:$0xff]  ;;  %v3608_v44 = vld [vmem:[#allocation3 + $0x190] sm:$0x7f] }
 0x468   : > { %7654 = vmatprep.subr.bf16.mxu1 %v14170_v49  ;;  %v14196_v49 = vrot.slane %v11756_v10, 1  ;;  %v14204_v10 = vld [vmem:[#allocation64_spill] sm:$0xff] }
 0x46a   : > { %7569 = vmatpush1.bf16.msra.mxu0 %v14171_v18  ;;  %v7066_v18 = vadd.f32 %v14196_v49, %v3608_v44  ;;  %v14215_v44 = vld [vmem:[#allocation364_spill] sm:$0xff]  ;;  %v14216_v49 = vld [vmem:[#allocation363_spill] sm:$0xff] }
 0x46b   : > { %7655 = vmatpush1.bf16.msra.mxu1 %v14172_v50  ;;  %7570 = vmatprep.subr.bf16.mxu0 %v14173_v46  ;;  %v14197_v50 = vld [vmem:[#allocation59_spill] sm:$0xff]  ;;  %v7096_v46 = vpack.c.bf16 %v7064_v2, %v7064_v2  ;;  %v14213_v2 = vrot.slane %v14212_v15, 1 }
 0x46c   : > { %7656 = vmatprep.subr.bf16.mxu1 %v14174_v20  ;;  %v3607_v20 = vld [vmem:[#allocation3 + $0x188] sm:$0x7f] }
 0x46e   : > { %7571 = vmatpush1.bf16.msra.mxu0 %v14175_v31  ;;  %v14198_v31 = vld [vmem:[#allocation61_spill] sm:$0xff] }
 0x46f   : > { %7657 = vmatpush1.bf16.msra.mxu1 %v14176_v41  ;;  %7572 = vmatprep.subr.bf16.mxu0 %v14177_v60  ;;  %v14199_v41 = vld [vmem:[#allocation60_spill] sm:$0xff]  ;;  %v7065_v60 = vadd.f32 %v14200_v35, %v3607_v20  ;;  %v14219_v20 = vld [vmem:[#allocation70_spill] sm:$0xff] }
 0x470   : > { %7658 = vmatprep.subr.bf16.mxu1 %v14178_v39  ;;  %v14201_v39 = vld [vmem:[#allocation62_spill] sm:$0xff] }
 0x472   : > { %7573 = vmatpush1.bf16.msra.mxu0 %v14179_v33  ;;  %v7098_v33 = vpack.c.bf16 %v7066_v18, %v7066_v18  ;;  %v14217_v18 = vpack.c.bf16 %v14215_v44, %v14216_v49  ;;  %v3600_v44 = vld [vmem:[#allocation3 + $0xd0] sm:$0x80] }
 0x473   : > { %7659 = vmatpush1.bf16.msra.mxu1 %v14180_v1  ;;  %7574 = vmatprep.subr.bf16.mxu0 %v14181_v59  ;;  %v14202_v1 = vld [vmem:[#allocation63_spill] sm:$0xff]  ;;  %v9491_v59 = vmul.bf16 3216621497, %v7096_v46  ;;  %v14218_v46 = vld [vmem:[#allocation68_spill] sm:$0xff] }
 0x474   : > { %7660 = vmatprep.subr.bf16.mxu1 %v14182_v38  ;;  %v14203_v38 = vld [vmem:[#allocation65_spill] sm:$0xff] }
 0x475   : > { %9847 = vpow.bf16 %v9491_v59 }
 0x476   : > { %7575 = vmatpush1.bf16.msra.mxu0 %v14183_v56  ;;  %v14205_v56 = vld [vmem:[#allocation361_spill] sm:$0xff] }
 0x477   : > { %7661 = vmatpush1.bf16.msra.mxu1 %v14184_v9  ;;  %7576 = vmatprep.subr.bf16.mxu0 %v14185_v63  ;;  %v14206_v9 = vld [vmem:[#allocation358_spill] sm:$0xff] }
 0x478   : > { %7662 = vmatprep.subr.bf16.mxu1 %v14186_v62  ;;  %v14207_v63 = vpack.c.bf16 %v14205_v56, %v14206_v9 }
 0x47a   : > { %7577 = vmatpush1.bf16.msra.mxu0 %v14187_v55  ;;  %v9483_v62 = vmul.bf16 3216621497, %v14207_v63  ;;  %v7097_v55 = vpack.c.bf16 %v7065_v60, %v7065_v60  ;;  %v14221_v60 = vld [vmem:[#allocation367_spill] sm:$0xff] }
 0x47b   : > { %7663 = vmatpush1.bf16.msra.mxu1 %v14188_v61  ;;  %7578 = vmatprep.subr.bf16.mxu0 %v14189_v4  ;;  %v3609_v61 = vld [vmem:[#allocation3 + $0x198] sm:$0x7f]  ;;  %v14208_v4 = vld [vmem:[#allocation66_spill] sm:$0xff] }
 0x47c   : > { %7664 = vmatprep.subr.bf16.mxu1 %v14190_v29  ;;  %v14210_v29 = vld [vmem:[#allocation360_spill] sm:$0xff]  ;;  %9849 = vpow.bf16 %v9483_v62 }
 0x47d   : > { %v14211_v25 = vpack.c.bf16 %v14209_v42, %v14210_v29 }
 0x47e   : > { %7579 = vmatpush1.bf16.msra.mxu0 %v14191_v14 }
 0x47f   : > { %7665 = vmatpush1.bf16.msra.mxu1 %v14193_v58  ;;  %7580 = vmatprep.subr.bf16.mxu0 %v14194_v23  ;;  %v9485_v14 = vmul.bf16 3216621497, %v14211_v25  ;;  %v7067_v58 = vadd.f32 %v14213_v2, %v3609_v61  ;;  %v9493_v23 = vmul.bf16 3216621497, %v7098_v33 }
 0x480   : > { %7666 = vmatprep.subr.bf16.mxu1 %v14195_v45  ;;  %v14214_v45 = vld [vmem:[#allocation67_spill] sm:$0xff] }
 0x481   : > { %9851 = vpow.bf16 %v9485_v14  ;;  %v7099_v35 = vpack.c.bf16 %v7067_v58, %v7067_v58  ;;  %v3598_v58 = vld [vmem:[#allocation3 + $0xc0] sm:$0x80] }
 0x482   : > { %7581 = vmatpush1.bf16.msra.mxu0 %v14197_v50  ;;  %v9484_v50 = vmul.bf16 3216621497, %v14217_v18  ;;  %9853 = vpow.bf16 %v9493_v23 }
 0x483   : > { %7667 = vmatpush1.bf16.msra.mxu1 %v14198_v31  ;;  %7582 = vmatprep.subr.bf16.mxu0 %v14199_v41  ;;  %v9492_v31 = vmul.bf16 3216621497, %v7097_v55  ;;  %v14220_v41 = vld [vmem:[#allocation72_spill] sm:$0xff]  ;;  %v9494_v59 = vmul.bf16 3216621497, %v7099_v35 }
 0x484   : > { %7668 = vmatprep.subr.bf16.mxu1 %v14201_v39  ;;  %v14222_v39 = vld [vmem:[#allocation366_spill] sm:$0xff]  ;;  %9855 = vpow.bf16 %v9484_v50 }
 0x485   : > { %v14223_v33 = vpack.c.bf16 %v14221_v60, %v14222_v39  ;;  %9857 = vpow.bf16 %v9492_v31 }
 0x486   : > { %7583 = vmatpush1.bf16.msra.mxu0 %v14202_v1 }
 0x487   : > { %7669 = vmatpush1.bf16.msra.mxu1 %v14203_v38  ;;  %7584 = vmatprep.subr.bf16.mxu0 %v14204_v10  ;;  %v9486_v1 = vmul.bf16 3216621497, %v14223_v33  ;;  %v9848_v38 = vpop.eup %9847 }
 0x488   : > { %7670 = vmatprep.subr.bf16.mxu1 %v14208_v4  ;;  %v9850_v10 = vpop.eup %9849  ;;  %v7184_v63 = vadd.bf16 1065369472, %v9848_v38 }
 0x489   : > { %9859 = vpow.bf16 %v9486_v1  ;;  %v7176_v55 = vadd.bf16 1065369472, %v9850_v10  ;;  %v3614_v10 = vld [vmem:[#allocation3 + $0x1c0] sm:$0x7f] }
 0x48a   : > { %7585 = vmatpush1.bf16.msra.mxu0 %v14214_v45  ;;  %9861 = vpow.bf16 %v9494_v59 }
 0x48b   : > { %7671 = vmatpush1.bf16.msra.mxu1 %v14218_v46  ;;  %7597 = vmatprep.subr.bf16.mxu0 %v14219_v20  ;;  %9863 = vrcp.bf16 %v7184_v63  ;;  %v3599_v46 = vld [vmem:[#allocation3 + $0xc8] sm:$0x80] }
 0x48c   : > { %7683 = vmatprep.subr.bf16.mxu1 %v14220_v41  ;;  %v9852_v56 = vpop.eup %9851  ;;  %9865 = vrcp.bf16 %v7176_v55 }
 0x48d   : > { %v9854_v9 = vpop.eup %9853  ;;  %v7178_v4 = vadd.bf16 1065369472, %v9852_v56 }
 0x48e   : > { %v7186_v29 = vadd.bf16 1065369472, %v9854_v9 }
 0x48f   : > { %v9856_v62 = vpop.eup %9855  ;;  %9867 = vrcp.bf16 %v7178_v4  ;;  %v3616_v4 = vld [vmem:[#allocation3 + $0x1d0] sm:$0x7f] }
 0x490   : > { %v9858_v61 = vpop.eup %9857  ;;  %v7177_v25 = vadd.bf16 1065369472, %v9856_v62  ;;  %9869 = vrcp.bf16 %v7186_v29  ;;  %v3601_v29 = vld [vmem:[#allocation3 + $0xd8] sm:$0x80] }
 0x491   : > { %v7185_v14 = vadd.bf16 1065369472, %v9858_v61 }
 0x492   : > { %9871 = vrcp.bf16 %v7177_v25  ;;  %v10015_v25 = vld [vmem:[#allocation3 + $0x140] sm:$0xff] }
 0x493   : > { %9873 = vrcp.bf16 %v7185_v14 }
 0x494   : > { %v9860_v42 = vpop.eup %9859 }
 0x495   : > { %v7179_v15 = vadd.bf16 1065369472, %v9860_v42  ;;  %v9862_v2 = vpop.eup %9861 }
 0x496   : > { %v7187_v35 = vadd.bf16 1065369472, %v9862_v2 }
 0x497   : > { %9875 = vrcp.bf16 %v7179_v15 }
 0x498   : > { %9877 = vrcp.bf16 %v7187_v35 }
 0x4a0   : > { %v6636_v23 = vpop.f32.mrb[40].mxu0 }
 0x4a1   : > { %v6944_v45 = vrot.slane %v6636_v23, 1  ;;  %v6722_v49 = vpop.f32.mrb[40].mxu1  ;;  %v6638_v18 = vpop.f32.mrb[41].mxu0 }
 0x4a2   : > { %v6946_v50 = vrot.slane %v6722_v49, 1  ;;  %v6945_v20 = vrot.slane %v6638_v18, 1  ;;  %v6724_v31 = vpop.f32.mrb[41].mxu1  ;;  %v6640_v41 = vpop.f32.mrb[42].mxu0  ;;  %v10016_v49 = vld [vmem:[#allocation3 + $0x150] sm:$0xff] }
 0x4a3   : > { %v7040_v60 = vadd.f32 %v6944_v45, %v3598_v58  ;;  %v6968_v39 = vrot.slane %v6640_v41, 1  ;;  %v6726_v33 = vpop.f32.mrb[42].mxu1  ;;  %v6642_v1 = vpop.f32.mrb[43].mxu0  ;;  %v6947_v38 = vrot.slane %v6724_v31, 1  ;;  %v3615_v58 = vld [vmem:[#allocation3 + $0x1c8] sm:$0x7f] }
 0x4a4   : > { %v7042_v59 = vadd.f32 %v6946_v50, %v3600_v44  ;;  %v6972_v56 = vrot.slane %v6726_v33, 1  ;;  %v6970_v9 = vrot.slane %v6642_v1, 1  ;;  %v6728_v63 = vpop.f32.mrb[43].mxu1  ;;  %v7041_v62 = vadd.f32 %v6945_v20, %v3599_v46  ;;  %v10017_v31 = vld [vmem:[#allocation3 + $0x148] sm:$0xff]  ;;  %v9864_v33 = vpop.eup %9863 }
 0x4a5   : > { %v6969_v55 = vsel %vm6935_vm2, %v6944_v45, %v6968_v39  ;;  %v7072_v61 = vadd.f32 %v6968_v39, %v3614_v10  ;;  %v6974_v42 = vrot.slane %v6728_v63, 1  ;;  %v9866_v10 = vpop.eup %9865  ;;  %v7043_v63 = vadd.f32 %v6947_v38, %v3601_v29 }
 0x4a6   : > { %v7056_v14 = vadd.f32 %v10015_v25, %v6969_v55  ;;  %v6973_v15 = vsel %vm6935_vm2, %v6946_v50, %v6972_v56  ;;  %v7074_v2 = vadd.f32 %v6972_v56, %v3616_v4  ;;  %v6971_v23 = vsel %vm6935_vm2, %v6945_v20, %v6970_v9  ;;  %v3617_v55 = vld [vmem:[#allocation3 + $0x1d8] sm:$0x7f]  ;;  %v9868_v4 = vpop.eup %9867 }
 0x4a7   : > { %v7104_v44 = vpack.c.bf16 %v7072_v61, %v7072_v61  ;;  %v7058_v18 = vadd.f32 %v10016_v49, %v6973_v15  ;;  %v7057_v41 = vadd.f32 %v10017_v31, %v6971_v23  ;;  %v7073_v46 = vadd.f32 %v6970_v9, %v3615_v58  ;;  %v10018_v61 = vld [vmem:[#allocation3 + $0x158] sm:$0xff]  ;;  %v9870_v23 = vpop.eup %9869 }
 0x4a8   : > { %v7088_v45 = vpack.c.bf16 %v7056_v14, %v7040_v60  ;;  %v7106_v39 = vpack.c.bf16 %v7074_v2, %v7074_v2  ;;  %v6975_v1 = vsel %vm6935_vm2, %v6947_v38, %v6974_v42  ;;  %v7075_v15 = vadd.f32 %v6974_v42, %v3617_v55  ;;  %v9872_v9 = vpop.eup %9871 }
 0x4a9   : > { %9879 = vtanh.bf16 %v7104_v44  ;;  %v7090_v50 = vpack.c.bf16 %v7058_v18, %v7042_v59  ;;  %v7089_v56 = vpack.c.bf16 %v7057_v41, %v7041_v62  ;;  %v7105_v20 = vpack.c.bf16 %v7073_v46, %v7073_v46  ;;  %v9874_v60 = vpop.eup %9873 }
 0x4aa   : > { %9881 = vtanh.bf16 %v7088_v45  ;;  %v7059_v25 = vadd.f32 %v10018_v61, %v6975_v1  ;;  %v9876_v14 = vpop.eup %9875  ;;  %v7107_v38 = vpack.c.bf16 %v7075_v15, %v7075_v15  ;;  %v7193_v59 = vmul.bf16 1065369472, %v9866_v10 }
 0x4ab   : > { %9883 = vtanh.bf16 %v7090_v50  ;;  %v7209_v62 = vmul.bf16 1065369472, %v9864_v33  ;;  %v7197_v29 = vmul.bf16 1065369472, %v9868_v4  ;;  %v7213_v2 = vmul.bf16 1065369472, %v9870_v23  ;;  %v9878_v44 = vpop.eup %9877 }
 0x4ac   : > { %9885 = vtanh.bf16 %v7106_v39  ;;  %v7091_v35 = vpack.c.bf16 %v7059_v25, %v7043_v63  ;;  %v7195_v58 = vmul.bf16 1065369472, %v9872_v9  ;;  %v7288_v42 = vunpack.c.l.bf16 %v7193_v59 }
 0x4ad   : > { %9887 = vtanh.bf16 %v7089_v56  ;;  %v7292_v18 = vunpack.c.h.bf16 %v7193_v59  ;;  %v7296_v31 = vunpack.c.l.bf16 %v7209_v62  ;;  %v7290_v46 = vunpack.c.l.bf16 %v7197_v29 }
 0x4ae   : > { %9889 = vtanh.bf16 %v7105_v20  ;;  %v7294_v45 = vunpack.c.h.bf16 %v7197_v29  ;;  %v7211_v39 = vmul.bf16 1065369472, %v9874_v60  ;;  %v7289_v50 = vunpack.c.l.bf16 %v7195_v58 }
 0x4af   : > { %9891 = vtanh.bf16 %v7091_v35  ;;  %v7298_v10 = vunpack.c.l.bf16 %v7213_v2  ;;  %v7293_v4 = vunpack.c.h.bf16 %v7195_v58  ;;  %v7199_v23 = vmul.bf16 1065369472, %v9876_v14 }
 0x4b0   : > { %9893 = vtanh.bf16 %v7107_v38  ;;  %v7215_v14 = vmul.bf16 1065369472, %v9878_v44 }
 0x4b4   : > { %v9880_v49 = vpop.eup %9879 }
 0x4b5   : > { %v9882_v41 = vpop.eup %9881  ;;  %v7377_v1 = vunpack.c.l.bf16 %v9880_v49 }
 0x4b6   : > { %v9884_v63 = vpop.eup %9883  ;;  %v7369_v56 = vunpack.c.l.bf16 %v9882_v41  ;;  %v7373_v55 = vunpack.c.h.bf16 %v9882_v41 }
 0x4b7   : > { %v9886_v33 = vpop.eup %9885  ;;  %v7389_v20 = vmul.f32 %v7377_v1, %v7296_v31  ;;  %v7371_v61 = vunpack.c.l.bf16 %v9884_v63  ;;  %v7375_v25 = vunpack.c.h.bf16 %v9884_v63 }
 0x4b8   : > { %v9888_v15 = vpop.eup %9887  ;;  %v7381_v9 = vmul.f32 %v7369_v56, %v7288_v42  ;;  %v7385_v35 = vmul.f32 %v7373_v55, %v7292_v18  ;;  %v7379_v38 = vunpack.c.l.bf16 %v9886_v33  ;;  %v7295_v55 = vunpack.c.h.bf16 %v7199_v23 }
 0x4b9   : > { %v9890_v59 = vpop.eup %9889  ;;  %v12447_v62 = vadd.f32 %v7389_v20, %v12313_v53  ;;  %v7383_v60 = vmul.f32 %v7371_v61, %v7290_v46  ;;  %v7387_v29 = vmul.f32 %v7375_v25, %v7294_v45  ;;  %v7370_v49 = vunpack.c.l.bf16 %v9888_v15 }
 0x4ba   : > { %v9892_v7 = vpop.eup %9891  ;;  %v12450_v2 = vadd.f32 %v7381_v9, %v12317_v8  ;;  %v12453_v58 = vadd.f32 %v7385_v35, %v12321_v24  ;;  %v7391_v31 = vmul.f32 %v7379_v38, %v7298_v10  ;;  %v7374_v41 = vunpack.c.h.bf16 %v9888_v15 }
 0x4bb   : > { %v12456_v42 = vadd.f32 %v7383_v60, %v12325_v40  ;;  %v12459_v18 = vadd.f32 %v7387_v29, %v12330_v16  ;;  %v7297_v53 = vunpack.c.l.bf16 %v7211_v39  ;;  %v7378_v8 = vunpack.c.l.bf16 %v9890_v59  ;;  %v9894_v24 = vpop.eup %9893 }
 0x4bc   : > { %v7405_v46 = vpack.c.bf16 %v12453_v58, %v12450_v2  ;;  %v12464_v45 = vadd.f32 %v7391_v31, %v12333_v5  ;;  %v7382_v1 = vmul.f32 %v7370_v49, %v7289_v50  ;;  %v7386_v44 = vmul.f32 %v7374_v41, %v7293_v4  ;;  %v10019_v4 = vld [vmem:[#allocation3 + $0x160] sm:$0xff] }
 0x4bd   : > { %v7372_v56 = vunpack.c.l.bf16 %v9892_v7  ;;  %v7291_v40 = vunpack.c.l.bf16 %v7199_v23  ;;  %v7390_v10 = vmul.f32 %v7378_v8, %v7297_v53  ;;  %v8418_v16 = vrot.slane %v12447_v62, 7 }
 0x4be   : > { %v12470_v39 = vadd.f32 %v7382_v1, %v12338_v27  ;;  %v12473_v33 = vadd.f32 %v7386_v44, %v12342_v34  ;;  %v7376_v5 = vunpack.c.h.bf16 %v9892_v7  ;;  %v7299_v20 = vunpack.c.l.bf16 %v7215_v14 }
 0x4bf   : > { %v12476_v50 = vadd.f32 %v7390_v10, %v12346_v12  ;;  %v7380_v61 = vunpack.c.l.bf16 %v9894_v24  ;;  %v7384_v25 = vmul.f32 %v7372_v56, %v7291_v40  ;;  %v8406_v23 = vrot.slane %v12450_v2, 7  ;;  %v3602_v56 = vld [vmem:[#allocation3 + $0xe0] sm:$0x80] }
 0x4c0   : > { %v7388_v15 = vmul.f32 %v7376_v5, %v7295_v55  ;;  %v8407_v9 = vrot.slane %v12453_v58, 7  ;;  %v8422_v27 = vrot.slane %v12464_v45, 7  ;;  %v8412_v29 = vrot.slane %v12456_v42, 7  ;;  %v3604_v55 = vld [vmem:[#allocation3 + $0xf0] sm:$0x80] }
 0x4c1   : > { %v7392_v35 = vmul.f32 %v7380_v61, %v7299_v20  ;;  %v12484_v34 = vadd.f32 %v7384_v25, %v12351_v13  ;;  %v8420_v7 = vrot.slane %v12476_v50, 7  ;;  %v8413_v49 = vrot.slane %v12459_v18, 7  ;;  %v3603_v5 = vld [vmem:[#allocation3 + $0xe8] sm:$0x80] }
 0x4c2   : > { %v12488_v12 = vadd.f32 %v7388_v15, %v12354_v47  ;;  %v12491_v38 = vsel %vm7324_vm0, %v8406_v23, %v8407_v9  ;;  %v12494_v59 = vsel %vm7324_vm0, %v8407_v9, %v8418_v16  ;;  %v8409_v2 = vrot.slane %v12470_v39, 7  ;;  %v3605_v15 = vld [vmem:[#allocation3 + $0xf8] sm:$0x80] }
 0x4c3   : > { %v12497_v60 = vadd.f32 %v7392_v35, %v12359_v11  ;;  %v8410_v47 = vrot.slane %v12473_v33, 7  ;;  %v8415_v58 = vrot.slane %v12484_v34, 7  ;;  %v12508_v41 = vsel %vm7324_vm0, %v8412_v29, %v8413_v49 }
 0x4c4   : > { %v12511_v11 = vsel %vm7324_vm0, %v8413_v49, %v8422_v27  ;;  %v8416_v8 = vrot.slane %v12488_v12, 7  ;;  %v7409_v44 = vpack.c.bf16 %v12447_v62, %v12447_v62 }
 0x4c5   : > { %v8424_v31 = vrot.slane %v12497_v60, 7  ;;  %v12514_v14 = vsel %vm7324_vm0, %v8409_v2, %v8410_v47  ;;  %v12517_v53 = vsel %vm7324_vm0, %v8410_v47, %v8420_v7  ;;  %v3618_v47 = vld [vmem:[#allocation3 + $0x1e0] sm:$0x7f] }
 0x4c6   : > { %14224 = vst [vmem:[#allocation15_spill] sm:$0xff] %v12517_v53  ;;  %v12521_v1 = vsel %vm7324_vm0, %v8415_v58, %v8416_v8  ;;  %9895 = vtanh.bf16 %v7409_v44  ;;  %v10022_v53 = vld [vmem:[#allocation3 + $0x178] sm:$0xff] }
 0x4c7   : > { %14225 = vst [vmem:[#allocation14_spill] sm:$0xff] %v12521_v1  ;;  %v12524_v24 = vsel %vm7324_vm0, %v8416_v8, %v8424_v31  ;;  %9897 = vtanh.bf16 %v7405_v46 }
 0x4c8   : > { %14226 = vst [vmem:[#allocation16_spill] sm:$0xff] %v12524_v24 }
 0x520   : > { %v6808_v40 = vpop.f32.mrb[44].mxu0 }
 0x521   : > { %v6948_v10 = vrot.slane %v6808_v40, 1  ;;  %v6894_v16 = vpop.f32.mrb[44].mxu1  ;;  %v6810_v20 = vpop.f32.mrb[45].mxu0 }
 0x522   : > { %v6950_v61 = vrot.slane %v6894_v16, 1  ;;  %v6949_v25 = vrot.slane %v6810_v20, 1  ;;  %v6896_v23 = vpop.f32.mrb[45].mxu1  ;;  %v6812_v9 = vpop.f32.mrb[46].mxu0  ;;  %v3620_v20 = vld [vmem:[#allocation3 + $0x1f0] sm:$0x7f] }
 0x523   : > { %v7044_v27 = vadd.f32 %v6948_v10, %v3602_v56  ;;  %v6951_v35 = vrot.slane %v6896_v23, 1  ;;  %v6976_v7 = vrot.slane %v6812_v9, 1  ;;  %v6898_v29 = vpop.f32.mrb[46].mxu1  ;;  %v6814_v49 = vpop.f32.mrb[47].mxu0  ;;  %v3619_v23 = vld [vmem:[#allocation3 + $0x1e8] sm:$0x7f] }
 0x524   : > { %v7046_v62 = vadd.f32 %v6950_v61, %v3604_v55  ;;  %v7045_v2 = vadd.f32 %v6949_v25, %v3603_v5  ;;  %v6980_v58 = vrot.slane %v6898_v29, 1  ;;  %v6978_v31 = vrot.slane %v6814_v49, 1  ;;  %v6900_v8 = vpop.f32.mrb[47].mxu1  ;;  %v10020_v5 = vld [vmem:[#allocation3 + $0x170] sm:$0xff]  ;;  %v10021_v29 = vld [vmem:[#allocation3 + $0x168] sm:$0xff] }
 0x525   : > { %v7047_v40 = vadd.f32 %v6951_v35, %v3605_v15  ;;  %v6977_v44 = vsel %vm6935_vm2, %v6948_v10, %v6976_v7  ;;  %v7076_v16 = vadd.f32 %v6976_v7, %v3618_v47  ;;  %v6982_v13 = vrot.slane %v6900_v8, 1  ;;  %v3621_v15 = vld [vmem:[#allocation3 + $0x1f8] sm:$0x7f] }
 0x526   : > { %v7060_v63 = vadd.f32 %v10019_v4, %v6977_v44  ;;  %v6981_v46 = vsel %vm6935_vm2, %v6950_v61, %v6980_v58  ;;  %v7078_v56 = vadd.f32 %v6980_v58, %v3620_v20  ;;  %v6979_v9 = vsel %vm6935_vm2, %v6949_v25, %v6978_v31 }
 0x527   : > { %v7108_v55 = vpack.c.bf16 %v7076_v16, %v7076_v16  ;;  %v7062_v28 = vadd.f32 %v10020_v5, %v6981_v46  ;;  %v7061_v49 = vadd.f32 %v10021_v29, %v6979_v9  ;;  %v7077_v24 = vadd.f32 %v6978_v31, %v3619_v23 }
 0x528   : > { %v7092_v1 = vpack.c.bf16 %v7060_v63, %v7044_v27  ;;  %v7110_v10 = vpack.c.bf16 %v7078_v56, %v7078_v56  ;;  %v6983_v7 = vsel %vm6935_vm2, %v6951_v35, %v6982_v13  ;;  %v7079_v47 = vadd.f32 %v6982_v13, %v3621_v15  ;;  %v12532_v63 = vpop.eup %9895 }
 0x529   : > { %v9503_v8 = vmul.bf16 3216621497, %v7108_v55  ;;  %v7094_v4 = vpack.c.bf16 %v7062_v28, %v7046_v62  ;;  %v7093_v44 = vpack.c.bf16 %v7061_v49, %v7045_v2  ;;  %v7109_v61 = vpack.c.bf16 %v7077_v24, %v7077_v24  ;;  %v12534_v27 = vpop.eup %9897 }
 0x52a   : > { %v9499_v58 = vmul.bf16 3216621497, %v7092_v1  ;;  %v9505_v20 = vmul.bf16 3216621497, %v7110_v10  ;;  %v7063_v25 = vadd.f32 %v10022_v53, %v6983_v7  ;;  %v7111_v16 = vpack.c.bf16 %v7079_v47, %v7079_v47 }
 0x52b   : > { %9899 = vpow.bf16 %v9503_v8  ;;  %v9501_v46 = vmul.bf16 3216621497, %v7094_v4  ;;  %v9500_v5 = vmul.bf16 3216621497, %v7093_v44  ;;  %v9504_v31 = vmul.bf16 3216621497, %v7109_v61 }
 0x52c   : > { %9901 = vpow.bf16 %v9499_v58  ;;  %v7095_v23 = vpack.c.bf16 %v7063_v25, %v7047_v40  ;;  %v9506_v13 = vmul.bf16 3216621497, %v7111_v16  ;;  %v7411_v1 = vpack.c.bf16 %v12464_v45, %v12464_v45 }
 0x52d   : > { %9903 = vpow.bf16 %v9501_v46  ;;  %v7410_v53 = vpack.c.bf16 %v12476_v50, %v12476_v50  ;;  %v14227_v24 = vpack.c.bf16 %v12459_v18, %v12456_v42  ;;  %v7412_v35 = vpack.c.bf16 %v12497_v60, %v12497_v60 }
 0x52e   : > { %9905 = vpow.bf16 %v9505_v20  ;;  %v9502_v28 = vmul.bf16 3216621497, %v7095_v23  ;;  %v14228_v62 = vpack.c.bf16 %v12473_v33, %v12470_v39  ;;  %v14229_v40 = vpack.c.bf16 %v12488_v12, %v12484_v34 }
 0x52f   : > { %9907 = vpow.bf16 %v9500_v5  ;;  %v7433_v58 = vunpack.c.l.bf16 %v12534_v27  ;;  %v7437_v20 = vunpack.c.h.bf16 %v12534_v27  ;;  %v7441_v25 = vunpack.c.l.bf16 %v12532_v63 }
 0x530   : > { %9909 = vpow.bf16 %v9504_v31 }
 0x531   : > { %9911 = vpow.bf16 %v9502_v28 }
 0x532   : > { %9913 = vpow.bf16 %v9506_v13 }
 0x533   : > { %9915 = vtanh.bf16 %v14227_v24 }
 0x534   : > { %9917 = vtanh.bf16 %v7411_v1 }
 0x535   : > { %9919 = vtanh.bf16 %v14228_v62 }
 0x536   : > { %v9900_v2 = vpop.eup %9899  ;;  %9921 = vtanh.bf16 %v7410_v53 }
 0x537   : > { %v9902_v45 = vpop.eup %9901  ;;  %9923 = vtanh.bf16 %v14229_v40  ;;  %v7268_v50 = vadd.bf16 1065369472, %v9900_v2 }
 0x538   : > { %v9904_v56 = vpop.eup %9903  ;;  %9925 = vtanh.bf16 %v7412_v35  ;;  %v7264_v42 = vadd.bf16 1065369472, %v9902_v45 }
 0x539   : > { %v9906_v18 = vpop.eup %9905  ;;  %9927 = vrcp.bf16 %v7268_v50  ;;  %v7266_v9 = vadd.bf16 1065369472, %v9904_v56 }
 0x53a   : > { %v9908_v55 = vpop.eup %9907  ;;  %9929 = vrcp.bf16 %v7264_v42  ;;  %v7270_v60 = vadd.bf16 1065369472, %v9906_v18 }
 0x53b   : > { %v9910_v29 = vpop.eup %9909  ;;  %9931 = vrcp.bf16 %v7266_v9  ;;  %v7265_v39 = vadd.bf16 1065369472, %v9908_v55 }
 0x53c   : > { %v9912_v33 = vpop.eup %9911  ;;  %9933 = vrcp.bf16 %v7270_v60  ;;  %v7269_v49 = vadd.bf16 1065369472, %v9910_v29 }
 0x53d   : > { %v9914_v15 = vpop.eup %9913  ;;  %9935 = vrcp.bf16 %v7265_v39  ;;  %v7267_v34 = vadd.bf16 1065369472, %v9912_v33 }
 0x53e   : > { %v9916_v12 = vpop.eup %9915  ;;  %9937 = vrcp.bf16 %v7269_v49  ;;  %v7271_v10 = vadd.bf16 1065369472, %v9914_v15 }
 0x53f   : > { %v9918_v7 = vpop.eup %9917  ;;  %9939 = vrcp.bf16 %v7267_v34  ;;  %v7435_v5 = vunpack.c.l.bf16 %v9916_v12  ;;  %v7439_v31 = vunpack.c.h.bf16 %v9916_v12 }
 0x540   : > { %v9920_v47 = vpop.eup %9919  ;;  %9941 = vrcp.bf16 %v7271_v10  ;;  %v7443_v23 = vunpack.c.l.bf16 %v9918_v7 }
 0x541   : > { %v9922_v8 = vpop.eup %9921  ;;  %v7434_v1 = vunpack.c.l.bf16 %v9920_v47  ;;  %v7438_v53 = vunpack.c.h.bf16 %v9920_v47 }
 0x542   : > { %v12551_v4 = vpop.eup %9923  ;;  %v7442_v24 = vunpack.c.l.bf16 %v9922_v8 }
 0x543   : > { %v12553_v44 = vpop.eup %9925  ;;  %v7436_v45 = vunpack.c.l.bf16 %v12551_v4  ;;  %v7440_v40 = vunpack.c.h.bf16 %v12551_v4 }
 0x544   : > { %v9928_v61 = vpop.eup %9927  ;;  %v7444_v42 = vunpack.c.l.bf16 %v12553_v44 }
 0x545   : > { %v9930_v16 = vpop.eup %9929  ;;  %v7281_v46 = vmul.bf16 1065369472, %v9928_v61 }
 0x546   : > { %v9932_v28 = vpop.eup %9931  ;;  %v7273_v13 = vmul.bf16 1065369472, %v9930_v16 }
 0x547   : > { %v9934_v35 = vpop.eup %9933  ;;  %v7421_v62 = vunpack.c.l.bf16 %v7281_v46  ;;  %v7277_v2 = vmul.bf16 1065369472, %v9932_v28 }
 0x548   : > { %v9936_v27 = vpop.eup %9935  ;;  %v7413_v50 = vunpack.c.l.bf16 %v7273_v13  ;;  %v7417_v63 = vunpack.c.h.bf16 %v7273_v13  ;;  %v7285_v56 = vmul.bf16 1065369472, %v9934_v35 }
 0x549   : > { %v9938_v18 = vpop.eup %9937  ;;  %v7453_v9 = vmul.f32 %v7441_v25, %v7421_v62  ;;  %v7415_v55 = vunpack.c.l.bf16 %v7277_v2  ;;  %v7419_v60 = vunpack.c.h.bf16 %v7277_v2  ;;  %v7275_v29 = vmul.bf16 1065369472, %v9936_v27 }
 0x54a   : > { %v7445_v39 = vmul.f32 %v7433_v58, %v7413_v50  ;;  %v7449_v33 = vmul.f32 %v7437_v20, %v7417_v63  ;;  %v7423_v49 = vunpack.c.l.bf16 %v7285_v56  ;;  %v7283_v15 = vmul.bf16 1065369472, %v9938_v18  ;;  %v9940_v34 = vpop.eup %9939 }
 0x54b   : > { %v7477_v12 = vpack.c.bf16 %v7453_v9, %v7453_v9  ;;  %v7447_v10 = vmul.f32 %v7435_v5, %v7415_v55  ;;  %v7451_v7 = vmul.f32 %v7439_v31, %v7419_v60  ;;  %v7414_v47 = vunpack.c.l.bf16 %v7275_v29  ;;  %v9942_v8 = vpop.eup %9941 }
 0x54c   : > { %v7473_v4 = vpack.c.bf16 %v7449_v33, %v7445_v39  ;;  %v7455_v61 = vmul.f32 %v7443_v23, %v7423_v49  ;;  %v7418_v16 = vunpack.c.h.bf16 %v7275_v29  ;;  %v7422_v46 = vunpack.c.l.bf16 %v7283_v15 }
 0x54d   : > { %v7491_v44 = vshrl.u32 %v7477_v12, 16  ;;  %v7494_v28 = vshll.u32 %v7477_v12, 16  ;;  %v7475_v25 = vpack.c.bf16 %v7451_v7, %v7447_v10  ;;  %v7446_v13 = vmul.f32 %v7434_v1, %v7414_v47 }
 0x54e   : > { %v7479_v35 = vpack.c.bf16 %v7455_v61, %v7455_v61  ;;  %v7450_v62 = vmul.f32 %v7438_v53, %v7418_v16  ;;  %v7454_v58 = vmul.f32 %v7442_v24, %v7422_v46  ;;  %v7279_v20 = vmul.bf16 1065369472, %v9940_v34 }
 0x54f   : > { %v7493_v2 = vrot.slane %v7491_v44, 3  ;;  %v7496_v27 = vrot.slane %v7494_v28, 4  ;;  %v7287_v50 = vmul.bf16 1065369472, %v9942_v8  ;;  %v7483_v55 = vshrl.u32 %v7473_v4, 16 }
 0x550   : > { %v7525_v5 = vshrl.u32 %v7479_v35, 16  ;;  %v7528_v31 = vshll.u32 %v7479_v35, 16  ;;  %v7474_v63 = vpack.c.bf16 %v7450_v62, %v7446_v13  ;;  %v7478_v56 = vpack.c.bf16 %v7454_v58, %v7454_v58 }
 0x551   : > { %v7416_v18 = vunpack.c.l.bf16 %v7279_v20  ;;  %v7420_v23 = vunpack.c.h.bf16 %v7279_v20  ;;  %v7424_v9 = vunpack.c.l.bf16 %v7287_v50  ;;  %v7497_v60 = vor.u32 %v7496_v27, %v7493_v2 }
 0x552   : > { %v7527_v29 = vrot.slane %v7525_v5, 3  ;;  %v7508_v39 = vshrl.u32 %v7478_v56, 16  ;;  %v7511_v1 = vshll.u32 %v7478_v56, 16  ;;  %v7500_v49 = vshrl.u32 %v7474_v63, 16 }
 0x553   : > { %v7448_v33 = vmul.f32 %v7436_v45, %v7416_v18  ;;  %v7452_v53 = vmul.f32 %v7440_v40, %v7420_v23  ;;  %v7456_v24 = vmul.f32 %v7444_v42, %v7424_v9  ;;  %v7530_v15 = vrot.slane %v7528_v31, 4 }
 0x554   : > { %v7510_v34 = vrot.slane %v7508_v39, 3  ;;  %v7513_v12 = vrot.slane %v7511_v1, 4  ;;  %v7503_v10 = vshll.u32 %v7474_v63, 16  ;;  %v7502_v8 = vrot.slane %v7500_v49, 3  ;;  %v14231_v39 = vld [vmem:[#allocation71_spill] sm:$0xff]  ;;  %v14236_v49 = vld [vmem:[#allocation77_spill] sm:$0xff] }
 0x555   : > { %v7476_v7 = vpack.c.bf16 %v7452_v53, %v7448_v33  ;;  %v7480_v47 = vpack.c.bf16 %v7456_v24, %v7456_v24  ;;  %v7485_v61 = vrot.slane %v7483_v55, 3  ;;  %v7486_v44 = vshll.u32 %v7473_v4, 16  ;;  %v14233_v33 = vld [vmem:[#allocation74_spill] sm:$0xff]  ;;  %v14234_v53 = vld [vmem:[#allocation75_spill] sm:$0xff]  ;;  %v14235_v24 = vld [vmem:[#allocation76_spill] sm:$0xff] }
 0x556   : > { %v7514_v16 = vor.u32 %v7513_v12, %v7510_v34  ;;  %v7505_v46 = vrot.slane %v7503_v10, 4  ;;  %v7517_v28 = vshrl.u32 %v7475_v25, 16  ;;  %v7520_v20 = vshll.u32 %v7475_v25, 16  ;;  %v14238_v34 = vld [vmem:[#allocation79_spill] sm:$0xff]  ;;  %v14239_v12 = vld [vmem:[#allocation80_spill] sm:$0xff]  ;;  %v14240_v10 = vld [vmem:[#allocation81_spill] sm:$0xff] }
 0x557   : > { %v7542_v13 = vshrl.u32 %v7480_v47, 16  ;;  %v7545_v35 = vshll.u32 %v7480_v47, 16  ;;  %v7534_v62 = vshrl.u32 %v7476_v7, 16  ;;  %v7537_v58 = vshll.u32 %v7476_v7, 16  ;;  %v14241_v7 = vld [vmem:[#allocation82_spill] sm:$0xff]  ;;  %v14242_v47 = vld [vmem:[#allocation83_spill] sm:$0xff] }
 0x558   : > { %v7506_v45 = vor.u32 %v7505_v46, %v7502_v8  ;;  %v7488_v40 = vrot.slane %v7486_v44, 4  ;;  %v7519_v42 = vrot.slane %v7517_v28, 3  ;;  %v7531_v31 = vor.u32 %v7530_v15, %v7527_v29  ;;  %v14230_v29 = vld [vmem:[#allocation69_spill] sm:$0xff]  ;;  %v14237_v15 = vld [vmem:[#allocation78_spill] sm:$0xff]  ;;  %v14243_v8 = vld [vmem:[#allocation84_spill] sm:$0xff] }
 0x559   : > { %v7544_v2 = vrot.slane %v7542_v13, 3  ;;  %v7547_v27 = vrot.slane %v7545_v35, 4  ;;  %v7536_v50 = vrot.slane %v7534_v62, 3  ;;  %v7539_v5 = vrot.slane %v7537_v58, 4  ;;  %v14246_v46 = vld [vmem:[#allocation87_spill] sm:$0xff]  ;;  %v14247_v44 = vld [vmem:[#allocation88_spill] sm:$0xff] }
 0x55a   : > { %v12562_v63 = vsel %vm7481_vm3, %v7506_v45, %v7514_v16  ;;  %v7489_v56 = vor.u32 %v7488_v40, %v7485_v61  ;;  %v7522_v18 = vrot.slane %v7520_v20, 4  ;;  %v14244_v61 = vld [vmem:[#allocation85_spill] sm:$0xff]  ;;  %v14245_v16 = vld [vmem:[#allocation86_spill] sm:$0xff]  ;;  %v14250_v35 = vld [vmem:[#allocation91_spill] sm:$0xff] }
 0x55b   : > { %v7548_v4 = vor.u32 %v7547_v27, %v7544_v2  ;;  %7586 = vmatprep.mubr.bf16.mxu0 %v12562_v63  ;;  %7672 = vmatprep.mubr.bf16.mxu1 %v12562_v63  ;;  %v7540_v23 = vor.u32 %v7539_v5, %v7536_v50  ;;  %v14248_v28 = vld [vmem:[#allocation89_spill] sm:$0xff]  ;;  %v14249_v13 = vld [vmem:[#allocation90_spill] sm:$0xff]  ;;  %v14251_v62 = vld [vmem:[#allocation92_spill] sm:$0xff] }
 0x55c   : > { %v12567_v9 = vsel %vm7481_vm3, %v7489_v56, %v7497_v60  ;;  %v7523_v25 = vor.u32 %v7522_v18, %v7519_v42  ;;  %v14232_v60 = vld [vmem:[#allocation73_spill] sm:$0xff]  ;;  %v14253_v45 = vld [vmem:[#allocation94_spill] sm:$0xff]  ;;  %v14254_v40 = vld [vmem:[#allocation95_spill] sm:$0xff] }
 0x55d   : > { %7587 = vmatmul.mubr.bf16.vlgmr.msra.gmra.mrb[48].mxu0 %v12567_v9  ;;  %7673 = vmatmul.mubr.bf16.vlgmr.msra.gmra.mrb[48].mxu1 %v12567_v9  ;;  %v12572_v55 = vsel %vm7481_vm3, %v7540_v23, %v7548_v4  ;;  %v14252_v58 = vld [vmem:[#allocation93_spill] sm:$0xff]  ;;  %v14255_v42 = vld [vmem:[#allocation96_spill] sm:$0xff]  ;;  %v14257_v2 = vld [vmem:[#allocation98_spill] sm:$0xff] }
 0x55e   : > { %7598 = vmatpush1.bf16.msra.mxu0 %v14230_v29  ;;  %7684 = vmatpush1.bf16.msra.mxu1 %v14231_v39  ;;  %v12577_v1 = vsel %vm7481_vm3, %v7523_v25, %v7531_v31  ;;  %v14256_v20 = vld [vmem:[#allocation97_spill] sm:$0xff]  ;;  %v14258_v27 = vld [vmem:[#allocation99_spill] sm:$0xff]  ;;  %v14259_v50 = vld [vmem:[#allocation100_spill] sm:$0xff] }
 0x55f   : > { %7629 = vmatprep.mubr.bf16.mxu0 %v12572_v55  ;;  %7715 = vmatprep.mubr.bf16.mxu1 %v12572_v55  ;;  %v14260_v5 = vld [vmem:[#allocation101_spill] sm:$0xff]  ;;  %v14261_v31 = vld [vmem:[#allocation102_spill] sm:$0xff]  ;;  %v14262_v56 = vld [vmem:[#allocation103_spill] sm:$0xff] }
 0x560   : > { %7599 = vmatprep.subr.bf16.mxu0 %v14232_v60  ;;  %7685 = vmatprep.subr.bf16.mxu1 %v14233_v33  ;;  %v14263_v18 = vld [vmem:[#allocation104_spill] sm:$0xff]  ;;  %v14264_v4 = vld [vmem:[#allocation105_spill] sm:$0xff]  ;;  %v14265_v23 = vld [vmem:[#allocation106_spill] sm:$0xff] }
 0x561   : > { %v14266_v25 = vld [vmem:[#allocation107_spill] sm:$0xff]  ;;  %v14267_v29 = vld [vmem:[#allocation108_spill] sm:$0xff]  ;;  %v14268_v39 = vld [vmem:[#allocation109_spill] sm:$0xff] }
 0x562   : > { %7600 = vmatpush1.bf16.msra.mxu0 %v14234_v53  ;;  %7686 = vmatpush1.bf16.msra.mxu1 %v14235_v24  ;;  %v14269_v60 = vld [vmem:[#allocation110_spill] sm:$0xff]  ;;  %v14270_v33 = vld [vmem:[#allocation111_spill] sm:$0xff]  ;;  %v14271_v53 = vld [vmem:[#allocation112_spill] sm:$0xff] }
 0x563   : > { %7601 = vmatprep.subr.bf16.mxu0 %v14236_v49  ;;  %7687 = vmatprep.subr.bf16.mxu1 %v14237_v15  ;;  %v14272_v24 = vld [vmem:[#allocation113_spill] sm:$0xff]  ;;  %v14273_v49 = vld [vmem:[#allocation114_spill] sm:$0xff]  ;;  %v14274_v15 = vld [vmem:[#allocation115_spill] sm:$0xff] }
 0x566   : > { %7602 = vmatpush1.bf16.msra.mxu0 %v14238_v34  ;;  %7688 = vmatpush1.bf16.msra.mxu1 %v14239_v12  ;;  %v14275_v34 = vld [vmem:[#allocation116_spill] sm:$0xff]  ;;  %v14276_v12 = vld [vmem:[#allocation117_spill] sm:$0xff] }
 0x567   : > { %7603 = vmatprep.subr.bf16.mxu0 %v14240_v10  ;;  %7689 = vmatprep.subr.bf16.mxu1 %v14241_v7  ;;  %v14277_v10 = vld [vmem:[#allocation118_spill] sm:$0xff]  ;;  %v14278_v7 = vld [vmem:[#allocation119_spill] sm:$0xff] }
 0x56a   : > { %7604 = vmatpush1.bf16.msra.mxu0 %v14242_v47  ;;  %7690 = vmatpush1.bf16.msra.mxu1 %v14243_v8  ;;  %v14279_v47 = vld [vmem:[#allocation120_spill] sm:$0xff]  ;;  %v14280_v8 = vld [vmem:[#allocation121_spill] sm:$0xff] }
 0x56b   : > { %7605 = vmatprep.subr.bf16.mxu0 %v14244_v61  ;;  %7691 = vmatprep.subr.bf16.mxu1 %v14245_v16  ;;  %v14281_v61 = vld [vmem:[#allocation122_spill] sm:$0xff]  ;;  %v14282_v16 = vld [vmem:[#allocation123_spill] sm:$0xff] }
 0x56e   : > { %7606 = vmatpush1.bf16.msra.mxu0 %v14246_v46  ;;  %7692 = vmatpush1.bf16.msra.mxu1 %v14247_v44  ;;  %v14283_v46 = vld [vmem:[#allocation124_spill] sm:$0xff]  ;;  %v14284_v44 = vld [vmem:[#allocation125_spill] sm:$0xff] }
 0x56f   : > { %7607 = vmatprep.subr.bf16.mxu0 %v14248_v28  ;;  %7693 = vmatprep.subr.bf16.mxu1 %v14249_v13  ;;  %v14285_v28 = vld [vmem:[#allocation126_spill] sm:$0xff]  ;;  %v14286_v13 = vld [vmem:[#allocation127_spill] sm:$0xff] }
 0x572   : > { %7608 = vmatpush1.bf16.msra.mxu0 %v14250_v35  ;;  %7694 = vmatpush1.bf16.msra.mxu1 %v14251_v62  ;;  %v14287_v35 = vld [vmem:[#allocation128_spill] sm:$0xff]  ;;  %v14288_v62 = vld [vmem:[#allocation129_spill] sm:$0xff] }
 0x573   : > { %7609 = vmatprep.subr.bf16.mxu0 %v14252_v58  ;;  %7695 = vmatprep.subr.bf16.mxu1 %v14253_v45  ;;  %v14289_v58 = vld [vmem:[#allocation130_spill] sm:$0xff]  ;;  %v14290_v45 = vld [vmem:[#allocation131_spill] sm:$0xff] }
 0x576   : > { %7610 = vmatpush1.bf16.msra.mxu0 %v14254_v40  ;;  %7696 = vmatpush1.bf16.msra.mxu1 %v14255_v42  ;;  %v14291_v40 = vld [vmem:[#allocation132_spill] sm:$0xff]  ;;  %v14292_v42 = vld [vmem:[#allocation133_spill] sm:$0xff] }
 0x577   : > { %7611 = vmatprep.subr.bf16.mxu0 %v14256_v20  ;;  %7697 = vmatprep.subr.bf16.mxu1 %v14257_v2  ;;  %v14293_v20 = vld [vmem:[#allocation134_spill] sm:$0xff]  ;;  %v14294_v2 = vld [vmem:[#allocation135_spill] sm:$0xff] }
 0x57a   : > { %7612 = vmatpush1.bf16.msra.mxu0 %v14258_v27  ;;  %7698 = vmatpush1.bf16.msra.mxu1 %v14259_v50  ;;  %v14295_v27 = vld [vmem:[#allocation136_spill] sm:$0xff]  ;;  %v14296_v50 = vld [vmem:[#allocation137_spill] sm:$0xff] }
 0x57b   : > { %7613 = vmatprep.subr.bf16.mxu0 %v14260_v5  ;;  %7699 = vmatprep.subr.bf16.mxu1 %v14261_v31  ;;  %v14297_v5 = vld [vmem:[#allocation138_spill] sm:$0xff]  ;;  %v14298_v31 = vld [vmem:[#allocation139_spill] sm:$0xff] }
 0x57e   : > { %7614 = vmatpush1.bf16.msra.mxu0 %v14262_v56  ;;  %7700 = vmatpush1.bf16.msra.mxu1 %v14263_v18  ;;  %v14299_v56 = vld [vmem:[#allocation140_spill] sm:$0xff]  ;;  %v14300_v18 = vld [vmem:[#allocation141_spill] sm:$0xff] }
 0x57f   : > { %7615 = vmatprep.subr.bf16.mxu0 %v14264_v4  ;;  %7701 = vmatprep.subr.bf16.mxu1 %v14265_v23  ;;  %v14301_v4 = vld [vmem:[#allocation142_spill] sm:$0xff]  ;;  %v14302_v23 = vld [vmem:[#allocation143_spill] sm:$0xff] }
 0x582   : > { %7616 = vmatpush1.bf16.msra.mxu0 %v14266_v25  ;;  %7702 = vmatpush1.bf16.msra.mxu1 %v14267_v29  ;;  %v14303_v25 = vld [vmem:[#allocation144_spill] sm:$0xff]  ;;  %v14304_v29 = vld [vmem:[#allocation145_spill] sm:$0xff] }
 0x583   : > { %7617 = vmatprep.subr.bf16.mxu0 %v14268_v39  ;;  %7703 = vmatprep.subr.bf16.mxu1 %v14269_v60  ;;  %v14305_v39 = vld [vmem:[#allocation146_spill] sm:$0xff]  ;;  %v14306_v60 = vld [vmem:[#allocation147_spill] sm:$0xff] }
 0x586   : > { %7618 = vmatpush1.bf16.msra.mxu0 %v14270_v33  ;;  %7704 = vmatpush1.bf16.msra.mxu1 %v14271_v53  ;;  %v14307_v33 = vld [vmem:[#allocation148_spill] sm:$0xff]  ;;  %v14308_v53 = vld [vmem:[#allocation149_spill] sm:$0xff] }
 0x587   : > { %7619 = vmatprep.subr.bf16.mxu0 %v14272_v24  ;;  %7705 = vmatprep.subr.bf16.mxu1 %v14273_v49  ;;  %v14309_v24 = vld [vmem:[#allocation150_spill] sm:$0xff]  ;;  %v14310_v49 = vld [vmem:[#allocation151_spill] sm:$0xff] }
 0x58a   : > { %7620 = vmatpush1.bf16.msra.mxu0 %v14274_v15  ;;  %7706 = vmatpush1.bf16.msra.mxu1 %v14275_v34  ;;  %v14311_v15 = vld [vmem:[#allocation152_spill] sm:$0xff]  ;;  %v14312_v34 = vld [vmem:[#allocation153_spill] sm:$0xff] }
 0x58b   : > { %7621 = vmatprep.subr.bf16.mxu0 %v14276_v12  ;;  %7707 = vmatprep.subr.bf16.mxu1 %v14277_v10  ;;  %v14313_v12 = vld [vmem:[#allocation154_spill] sm:$0xff]  ;;  %v14314_v10 = vld [vmem:[#allocation155_spill] sm:$0xff] }
 0x58e   : > { %7622 = vmatpush1.bf16.msra.mxu0 %v14278_v7  ;;  %7708 = vmatpush1.bf16.msra.mxu1 %v14279_v47  ;;  %v14315_v7 = vld [vmem:[#allocation156_spill] sm:$0xff]  ;;  %v14316_v47 = vld [vmem:[#allocation157_spill] sm:$0xff] }
 0x58f   : > { %7623 = vmatprep.subr.bf16.mxu0 %v14280_v8  ;;  %7709 = vmatprep.subr.bf16.mxu1 %v14281_v61  ;;  %v14317_v8 = vld [vmem:[#allocation158_spill] sm:$0xff]  ;;  %v14318_v61 = vld [vmem:[#allocation159_spill] sm:$0xff] }
 0x592   : > { %7624 = vmatpush1.bf16.msra.mxu0 %v14282_v16  ;;  %7710 = vmatpush1.bf16.msra.mxu1 %v14283_v46  ;;  %v14319_v16 = vld [vmem:[#allocation160_spill] sm:$0xff]  ;;  %v14320_v46 = vld [vmem:[#allocation161_spill] sm:$0xff] }
 0x593   : > { %7625 = vmatprep.subr.bf16.mxu0 %v14284_v44  ;;  %7711 = vmatprep.subr.bf16.mxu1 %v14285_v28  ;;  %v14321_v44 = vld [vmem:[#allocation162_spill] sm:$0xff]  ;;  %v14322_v28 = vld [vmem:[#allocation163_spill] sm:$0xff] }
 0x596   : > { %7626 = vmatpush1.bf16.msra.mxu0 %v14286_v13  ;;  %7712 = vmatpush1.bf16.msra.mxu1 %v14287_v35  ;;  %v14323_v13 = vld [vmem:[#allocation164_spill] sm:$0xff]  ;;  %v14324_v35 = vld [vmem:[#allocation165_spill] sm:$0xff] }
 0x597   : > { %7627 = vmatprep.subr.bf16.mxu0 %v14288_v62  ;;  %7713 = vmatprep.subr.bf16.mxu1 %v14289_v58  ;;  %v14325_v62 = vld [vmem:[#allocation166_spill] sm:$0xff]  ;;  %v14326_v58 = vld [vmem:[#allocation167_spill] sm:$0xff] }
 0x59a   : > { %7628 = vmatpush1.bf16.msra.mxu0 %v14290_v45  ;;  %7714 = vmatpush1.bf16.msra.mxu1 %v14291_v40  ;;  %v14327_v45 = vld [vmem:[#allocation168_spill] sm:$0xff]  ;;  %v14328_v40 = vld [vmem:[#allocation169_spill] sm:$0xff] }
 0x59b   : > { %7726 = vmatprep.subr.bf16.mxu0 %v14292_v42  ;;  %7812 = vmatprep.subr.bf16.mxu1 %v14293_v20  ;;  %v14329_v42 = vld [vmem:[#allocation170_spill] sm:$0xff]  ;;  %v14330_v20 = vld [vmem:[#allocation171_spill] sm:$0xff] }
 0x59d   : > { %7630 = vmatmul.mubr.bf16.vlgmr.msra.gmra.mrb[48].mxu0 %v12577_v1  ;;  %7716 = vmatmul.mubr.bf16.vlgmr.msra.gmra.mrb[48].mxu1 %v12577_v1 }
 0x59e   : > { %7727 = vmatpush1.bf16.msra.mxu0 %v14294_v2  ;;  %7758 = vmatprep.mubr.bf16.mxu0 %v12562_v63  ;;  %v14331_v2 = vld [vmem:[#allocation172_spill] sm:$0xff] }
 0x59f   : > { %7813 = vmatpush1.bf16.msra.mxu1 %v14295_v27  ;;  %7844 = vmatprep.mubr.bf16.mxu1 %v12562_v63  ;;  %v14332_v27 = vld [vmem:[#allocation173_spill] sm:$0xff] }
 0x5a0   : > { %7728 = vmatprep.subr.bf16.mxu0 %v14296_v50  ;;  %7814 = vmatprep.subr.bf16.mxu1 %v14297_v5  ;;  %v14333_v50 = vld [vmem:[#allocation174_spill] sm:$0xff]  ;;  %v14334_v5 = vld [vmem:[#allocation175_spill] sm:$0xff] }
 0x5a2   : > { %7729 = vmatpush1.bf16.msra.mxu0 %v14298_v31  ;;  %v14335_v31 = vld [vmem:[#allocation176_spill] sm:$0xff] }
 0x5a3   : > { %7815 = vmatpush1.bf16.msra.mxu1 %v14299_v56  ;;  %7730 = vmatprep.subr.bf16.mxu0 %v14300_v18  ;;  %v14336_v56 = vld [vmem:[#allocation177_spill] sm:$0xff]  ;;  %v14337_v18 = vld [vmem:[#allocation178_spill] sm:$0xff] }
 0x5a4   : > { %7816 = vmatprep.subr.bf16.mxu1 %v14301_v4  ;;  %v14338_v4 = vld [vmem:[#allocation179_spill] sm:$0xff] }
 0x5a6   : > { %7731 = vmatpush1.bf16.msra.mxu0 %v14302_v23  ;;  %v14339_v23 = vld [vmem:[#allocation180_spill] sm:$0xff] }
 0x5a7   : > { %7817 = vmatpush1.bf16.msra.mxu1 %v14303_v25  ;;  %7732 = vmatprep.subr.bf16.mxu0 %v14304_v29  ;;  %v14340_v25 = vld [vmem:[#allocation181_spill] sm:$0xff]  ;;  %v14341_v29 = vld [vmem:[#allocation182_spill] sm:$0xff] }
 0x5a8   : > { %7818 = vmatprep.subr.bf16.mxu1 %v14305_v39  ;;  %v14342_v39 = vld [vmem:[#allocation183_spill] sm:$0xff] }
 0x5aa   : > { %7733 = vmatpush1.bf16.msra.mxu0 %v14306_v60  ;;  %v14343_v60 = vld [vmem:[#allocation184_spill] sm:$0xff] }
 0x5ab   : > { %7819 = vmatpush1.bf16.msra.mxu1 %v14307_v33  ;;  %7734 = vmatprep.subr.bf16.mxu0 %v14308_v53  ;;  %v14344_v33 = vld [vmem:[#allocation185_spill] sm:$0xff]  ;;  %v14345_v53 = vld [vmem:[#allocation186_spill] sm:$0xff] }
 0x5ac   : > { %7820 = vmatprep.subr.bf16.mxu1 %v14309_v24  ;;  %v14346_v24 = vld [vmem:[#allocation187_spill] sm:$0xff] }
 0x5ae   : > { %7735 = vmatpush1.bf16.msra.mxu0 %v14310_v49  ;;  %v14347_v49 = vld [vmem:[#allocation188_spill] sm:$0xff] }
 0x5af   : > { %7821 = vmatpush1.bf16.msra.mxu1 %v14311_v15  ;;  %7736 = vmatprep.subr.bf16.mxu0 %v14312_v34  ;;  %v14348_v15 = vld [vmem:[#allocation189_spill] sm:$0xff]  ;;  %v14349_v34 = vld [vmem:[#allocation190_spill] sm:$0xff] }
 0x5b0   : > { %7822 = vmatprep.subr.bf16.mxu1 %v14313_v12  ;;  %v14350_v12 = vld [vmem:[#allocation191_spill] sm:$0xff] }
 0x5b2   : > { %7737 = vmatpush1.bf16.msra.mxu0 %v14314_v10  ;;  %v14351_v10 = vld [vmem:[#allocation192_spill] sm:$0xff] }
 0x5b3   : > { %7823 = vmatpush1.bf16.msra.mxu1 %v14315_v7  ;;  %7738 = vmatprep.subr.bf16.mxu0 %v14316_v47  ;;  %v14352_v7 = vld [vmem:[#allocation193_spill] sm:$0xff]  ;;  %v14353_v47 = vld [vmem:[#allocation194_spill] sm:$0xff] }
 0x5b4   : > { %7824 = vmatprep.subr.bf16.mxu1 %v14317_v8  ;;  %v14354_v8 = vld [vmem:[#allocation195_spill] sm:$0xff] }
 0x5b6   : > { %7739 = vmatpush1.bf16.msra.mxu0 %v14318_v61  ;;  %v14355_v61 = vld [vmem:[#allocation196_spill] sm:$0xff] }
 0x5b7   : > { %7825 = vmatpush1.bf16.msra.mxu1 %v14319_v16  ;;  %7740 = vmatprep.subr.bf16.mxu0 %v14320_v46  ;;  %v14356_v16 = vld [vmem:[#allocation197_spill] sm:$0xff]  ;;  %v14357_v46 = vld [vmem:[#allocation198_spill] sm:$0xff] }
 0x5b8   : > { %7826 = vmatprep.subr.bf16.mxu1 %v14321_v44  ;;  %v14358_v44 = vld [vmem:[#allocation199_spill] sm:$0xff] }
 0x5ba   : > { %7741 = vmatpush1.bf16.msra.mxu0 %v14322_v28  ;;  %v14359_v28 = vld [vmem:[#allocation200_spill] sm:$0xff] }
 0x5bb   : > { %7827 = vmatpush1.bf16.msra.mxu1 %v14323_v13  ;;  %7742 = vmatprep.subr.bf16.mxu0 %v14324_v35  ;;  %v14360_v13 = vld [vmem:[#allocation201_spill] sm:$0xff]  ;;  %v14361_v35 = vld [vmem:[#allocation202_spill] sm:$0xff] }
 0x5bc   : > { %7828 = vmatprep.subr.bf16.mxu1 %v14325_v62  ;;  %v14362_v62 = vld [vmem:[#allocation203_spill] sm:$0xff] }
 0x5be   : > { %7743 = vmatpush1.bf16.msra.mxu0 %v14326_v58  ;;  %v14363_v58 = vld [vmem:[#allocation204_spill] sm:$0xff] }
 0x5bf   : > { %7829 = vmatpush1.bf16.msra.mxu1 %v14327_v45  ;;  %7744 = vmatprep.subr.bf16.mxu0 %v14328_v40  ;;  %v14364_v45 = vld [vmem:[#allocation205_spill] sm:$0xff]  ;;  %v14365_v40 = vld [vmem:[#allocation206_spill] sm:$0xff] }
 0x5c0   : > { %7830 = vmatprep.subr.bf16.mxu1 %v14329_v42  ;;  %v14366_v42 = vld [vmem:[#allocation207_spill] sm:$0xff] }
 0x5c2   : > { %7745 = vmatpush1.bf16.msra.mxu0 %v14330_v20  ;;  %v14367_v20 = vld [vmem:[#allocation208_spill] sm:$0xff] }
 0x5c3   : > { %7831 = vmatpush1.bf16.msra.mxu1 %v14331_v2  ;;  %7746 = vmatprep.subr.bf16.mxu0 %v14332_v27  ;;  %v14368_v2 = vld [vmem:[#allocation209_spill] sm:$0xff]  ;;  %v14369_v27 = vld [vmem:[#allocation210_spill] sm:$0xff] }
 0x5c4   : > { %7832 = vmatprep.subr.bf16.mxu1 %v14333_v50  ;;  %v14370_v50 = vld [vmem:[#allocation211_spill] sm:$0xff] }
 0x5c6   : > { %7747 = vmatpush1.bf16.msra.mxu0 %v14334_v5  ;;  %v14371_v5 = vld [vmem:[#allocation212_spill] sm:$0xff] }
 0x5c7   : > { %7833 = vmatpush1.bf16.msra.mxu1 %v14335_v31  ;;  %7748 = vmatprep.subr.bf16.mxu0 %v14336_v56  ;;  %v14372_v31 = vld [vmem:[#allocation213_spill] sm:$0xff]  ;;  %v14373_v56 = vld [vmem:[#allocation214_spill] sm:$0xff] }
 0x5c8   : > { %7834 = vmatprep.subr.bf16.mxu1 %v14337_v18  ;;  %v14374_v18 = vld [vmem:[#allocation215_spill] sm:$0xff] }
 0x5ca   : > { %7749 = vmatpush1.bf16.msra.mxu0 %v14338_v4  ;;  %v14375_v4 = vld [vmem:[#allocation216_spill] sm:$0xff] }
 0x5cb   : > { %7835 = vmatpush1.bf16.msra.mxu1 %v14339_v23  ;;  %7750 = vmatprep.subr.bf16.mxu0 %v14340_v25  ;;  %v14376_v23 = vld [vmem:[#allocation217_spill] sm:$0xff]  ;;  %v14377_v25 = vld [vmem:[#allocation218_spill] sm:$0xff] }
 0x5cc   : > { %7836 = vmatprep.subr.bf16.mxu1 %v14341_v29  ;;  %v14378_v29 = vld [vmem:[#allocation219_spill] sm:$0xff] }
 0x5ce   : > { %7751 = vmatpush1.bf16.msra.mxu0 %v14342_v39  ;;  %v14379_v39 = vld [vmem:[#allocation220_spill] sm:$0xff] }
 0x5cf   : > { %7837 = vmatpush1.bf16.msra.mxu1 %v14343_v60  ;;  %7752 = vmatprep.subr.bf16.mxu0 %v14344_v33  ;;  %v14380_v60 = vld [vmem:[#allocation221_spill] sm:$0xff]  ;;  %v14381_v33 = vld [vmem:[#allocation222_spill] sm:$0xff] }
 0x5d0   : > { %7838 = vmatprep.subr.bf16.mxu1 %v14345_v53  ;;  %v14382_v53 = vld [vmem:[#allocation223_spill] sm:$0xff] }
 0x5d2   : > { %7753 = vmatpush1.bf16.msra.mxu0 %v14346_v24  ;;  %v14383_v24 = vld [vmem:[#allocation224_spill] sm:$0xff] }
 0x5d3   : > { %7839 = vmatpush1.bf16.msra.mxu1 %v14347_v49  ;;  %7754 = vmatprep.subr.bf16.mxu0 %v14348_v15  ;;  %v14384_v49 = vld [vmem:[#allocation225_spill] sm:$0xff]  ;;  %v14385_v15 = vld [vmem:[#allocation226_spill] sm:$0xff] }
 0x5d4   : > { %7840 = vmatprep.subr.bf16.mxu1 %v14349_v34  ;;  %v14386_v34 = vld [vmem:[#allocation227_spill] sm:$0xff] }
 0x5d6   : > { %7755 = vmatpush1.bf16.msra.mxu0 %v14350_v12  ;;  %v14387_v12 = vld [vmem:[#allocation228_spill] sm:$0xff] }
 0x5d7   : > { %7841 = vmatpush1.bf16.msra.mxu1 %v14351_v10  ;;  %7756 = vmatprep.subr.bf16.mxu0 %v14352_v7  ;;  %v14388_v10 = vld [vmem:[#allocation229_spill] sm:$0xff]  ;;  %v14389_v7 = vld [vmem:[#allocation230_spill] sm:$0xff] }
 0x5d8   : > { %7842 = vmatprep.subr.bf16.mxu1 %v14353_v47  ;;  %v14390_v47 = vld [vmem:[#allocation231_spill] sm:$0xff] }
 0x5da   : > { %7757 = vmatpush1.bf16.msra.mxu0 %v14354_v8  ;;  %v14391_v8 = vld [vmem:[#allocation232_spill] sm:$0xff] }
 0x5db   : > { %7843 = vmatpush1.bf16.msra.mxu1 %v14355_v61  ;;  %7769 = vmatprep.subr.bf16.mxu0 %v14356_v16  ;;  %v14392_v61 = vld [vmem:[#allocation233_spill] sm:$0xff]  ;;  %v14393_v16 = vld [vmem:[#allocation234_spill] sm:$0xff] }
 0x5dc   : > { %7855 = vmatprep.subr.bf16.mxu1 %v14357_v46  ;;  %v14394_v46 = vld [vmem:[#allocation235_spill] sm:$0xff] }
 0x5dd   : > { %7759 = vmatmul.mubr.bf16.vlgmr.msra.gmra.mrb[52].mxu0 %v12567_v9 }
 0x5de   : > { %7845 = vmatmul.mubr.bf16.vlgmr.msra.gmra.mrb[52].mxu1 %v12567_v9  ;;  %7770 = vmatpush1.bf16.msra.mxu0 %v14358_v44  ;;  %v14395_v44 = vld [vmem:[#allocation236_spill] sm:$0xff] }
 0x5df   : > { %7801 = vmatprep.mubr.bf16.mxu0 %v12572_v55  ;;  %7856 = vmatpush1.bf16.msra.mxu1 %v14359_v28  ;;  %v14396_v28 = vld [vmem:[#allocation237_spill] sm:$0xff] }
 0x5e0   : > { %7887 = vmatprep.mubr.bf16.mxu1 %v12572_v55  ;;  %7771 = vmatprep.subr.bf16.mxu0 %v14360_v13  ;;  %v14397_v13 = vld [vmem:[#allocation238_spill] sm:$0xff] }
 0x5e1   : > { %7857 = vmatprep.subr.bf16.mxu1 %v14361_v35  ;;  %v14398_v35 = vld [vmem:[#allocation239_spill] sm:$0xff] }
 0x5e2   : > { %7772 = vmatpush1.bf16.msra.mxu0 %v14362_v62  ;;  %v14399_v62 = vld [vmem:[#allocation240_spill] sm:$0xff] }
 0x5e3   : > { %7858 = vmatpush1.bf16.msra.mxu1 %v14363_v58  ;;  %7773 = vmatprep.subr.bf16.mxu0 %v14364_v45  ;;  %v14400_v58 = vld [vmem:[#allocation241_spill] sm:$0xff]  ;;  %v14401_v45 = vld [vmem:[#allocation242_spill] sm:$0xff] }
 0x5e4   : > { %7859 = vmatprep.subr.bf16.mxu1 %v14365_v40  ;;  %v14402_v40 = vld [vmem:[#allocation243_spill] sm:$0xff] }
 0x5e6   : > { %7774 = vmatpush1.bf16.msra.mxu0 %v14366_v42  ;;  %v14403_v42 = vld [vmem:[#allocation244_spill] sm:$0xff] }
 0x5e7   : > { %7860 = vmatpush1.bf16.msra.mxu1 %v14367_v20  ;;  %7775 = vmatprep.subr.bf16.mxu0 %v14368_v2  ;;  %v14404_v20 = vld [vmem:[#allocation245_spill] sm:$0xff]  ;;  %v14405_v2 = vld [vmem:[#allocation246_spill] sm:$0xff] }
 0x5e8   : > { %7861 = vmatprep.subr.bf16.mxu1 %v14369_v27  ;;  %v14406_v27 = vld [vmem:[#allocation247_spill] sm:$0xff] }
 0x5ea   : > { %7776 = vmatpush1.bf16.msra.mxu0 %v14370_v50  ;;  %v14407_v50 = vld [vmem:[#allocation248_spill] sm:$0xff] }
 0x5eb   : > { %7862 = vmatpush1.bf16.msra.mxu1 %v14371_v5  ;;  %7777 = vmatprep.subr.bf16.mxu0 %v14372_v31  ;;  %v14408_v5 = vld [vmem:[#allocation249_spill] sm:$0xff]  ;;  %v14409_v31 = vld [vmem:[#allocation250_spill] sm:$0xff] }
 0x5ec   : > { %7863 = vmatprep.subr.bf16.mxu1 %v14373_v56  ;;  %v14410_v56 = vld [vmem:[#allocation251_spill] sm:$0xff] }
 0x5ee   : > { %7778 = vmatpush1.bf16.msra.mxu0 %v14374_v18  ;;  %v14411_v18 = vld [vmem:[#allocation252_spill] sm:$0xff] }
 0x5ef   : > { %7864 = vmatpush1.bf16.msra.mxu1 %v14375_v4  ;;  %7779 = vmatprep.subr.bf16.mxu0 %v14376_v23  ;;  %v14412_v4 = vld [vmem:[#allocation253_spill] sm:$0xff]  ;;  %v14413_v23 = vld [vmem:[#allocation254_spill] sm:$0xff] }
 0x5f0   : > { %7865 = vmatprep.subr.bf16.mxu1 %v14377_v25  ;;  %v14414_v25 = vld [vmem:[#allocation255_spill] sm:$0xff] }
 0x5f2   : > { %7780 = vmatpush1.bf16.msra.mxu0 %v14378_v29  ;;  %v14415_v29 = vld [vmem:[#allocation256_spill] sm:$0xff] }
 0x5f3   : > { %7866 = vmatpush1.bf16.msra.mxu1 %v14379_v39  ;;  %7781 = vmatprep.subr.bf16.mxu0 %v14380_v60  ;;  %v14416_v39 = vld [vmem:[#allocation257_spill] sm:$0xff]  ;;  %v14417_v60 = vld [vmem:[#allocation258_spill] sm:$0xff] }
 0x5f4   : > { %7867 = vmatprep.subr.bf16.mxu1 %v14381_v33  ;;  %v14418_v33 = vld [vmem:[#allocation259_spill] sm:$0xff] }
 0x5f6   : > { %7782 = vmatpush1.bf16.msra.mxu0 %v14382_v53  ;;  %v14419_v53 = vld [vmem:[#allocation260_spill] sm:$0xff] }
 0x5f7   : > { %7868 = vmatpush1.bf16.msra.mxu1 %v14383_v24  ;;  %7783 = vmatprep.subr.bf16.mxu0 %v14384_v49  ;;  %v14420_v24 = vld [vmem:[#allocation261_spill] sm:$0xff]  ;;  %v14421_v49 = vld [vmem:[#allocation262_spill] sm:$0xff] }
 0x5f8   : > { %7869 = vmatprep.subr.bf16.mxu1 %v14385_v15  ;;  %v14422_v15 = vld [vmem:[#allocation263_spill] sm:$0xff] }
 0x5fa   : > { %7784 = vmatpush1.bf16.msra.mxu0 %v14386_v34  ;;  %v14423_v34 = vld [vmem:[#allocation264_spill] sm:$0xff] }
 0x5fb   : > { %7870 = vmatpush1.bf16.msra.mxu1 %v14387_v12  ;;  %7785 = vmatprep.subr.bf16.mxu0 %v14388_v10  ;;  %v14424_v12 = vld [vmem:[#allocation265_spill] sm:$0xff]  ;;  %v14425_v10 = vld [vmem:[#allocation266_spill] sm:$0xff] }
 0x5fc   : > { %7871 = vmatprep.subr.bf16.mxu1 %v14389_v7  ;;  %v14426_v7 = vld [vmem:[#allocation267_spill] sm:$0xff] }
 0x5fe   : > { %7786 = vmatpush1.bf16.msra.mxu0 %v14390_v47  ;;  %v14427_v47 = vld [vmem:[#allocation268_spill] sm:$0xff] }
 0x5ff   : > { %7872 = vmatpush1.bf16.msra.mxu1 %v14391_v8  ;;  %7787 = vmatprep.subr.bf16.mxu0 %v14392_v61  ;;  %v14428_v8 = vld [vmem:[#allocation269_spill] sm:$0xff]  ;;  %v14429_v61 = vld [vmem:[#allocation270_spill] sm:$0xff] }
 0x600   : > { %7873 = vmatprep.subr.bf16.mxu1 %v14393_v16  ;;  %v14430_v16 = vld [vmem:[#allocation271_spill] sm:$0xff] }
 0x602   : > { %7788 = vmatpush1.bf16.msra.mxu0 %v14394_v46  ;;  %v14431_v46 = vld [vmem:[#allocation272_spill] sm:$0xff] }
 0x603   : > { %7874 = vmatpush1.bf16.msra.mxu1 %v14395_v44  ;;  %7789 = vmatprep.subr.bf16.mxu0 %v14396_v28  ;;  %v14432_v44 = vld [vmem:[#allocation273_spill] sm:$0xff]  ;;  %v14433_v28 = vld [vmem:[#allocation274_spill] sm:$0xff] }
 0x604   : > { %7875 = vmatprep.subr.bf16.mxu1 %v14397_v13  ;;  %v14434_v13 = vld [vmem:[#allocation275_spill] sm:$0xff] }
 0x606   : > { %7790 = vmatpush1.bf16.msra.mxu0 %v14398_v35  ;;  %v14435_v35 = vld [vmem:[#allocation276_spill] sm:$0xff] }
 0x607   : > { %7876 = vmatpush1.bf16.msra.mxu1 %v14399_v62  ;;  %7791 = vmatprep.subr.bf16.mxu0 %v14400_v58  ;;  %v14436_v62 = vld [vmem:[#allocation277_spill] sm:$0xff]  ;;  %v14437_v58 = vld [vmem:[#allocation278_spill] sm:$0xff] }
 0x608   : > { %7877 = vmatprep.subr.bf16.mxu1 %v14401_v45  ;;  %v14438_v45 = vld [vmem:[#allocation279_spill] sm:$0xff] }
 0x60a   : > { %7792 = vmatpush1.bf16.msra.mxu0 %v14402_v40  ;;  %v14439_v40 = vld [vmem:[#allocation280_spill] sm:$0xff] }
 0x60b   : > { %7878 = vmatpush1.bf16.msra.mxu1 %v14403_v42  ;;  %7793 = vmatprep.subr.bf16.mxu0 %v14404_v20  ;;  %v14440_v42 = vld [vmem:[#allocation281_spill] sm:$0xff]  ;;  %v14441_v20 = vld [vmem:[#allocation282_spill] sm:$0xff] }
 0x60c   : > { %7879 = vmatprep.subr.bf16.mxu1 %v14405_v2  ;;  %v14442_v2 = vld [vmem:[#allocation283_spill] sm:$0xff] }
 0x60e   : > { %7794 = vmatpush1.bf16.msra.mxu0 %v14406_v27  ;;  %v14443_v27 = vld [vmem:[#allocation284_spill] sm:$0xff] }
 0x60f   : > { %7880 = vmatpush1.bf16.msra.mxu1 %v14407_v50  ;;  %7795 = vmatprep.subr.bf16.mxu0 %v14408_v5  ;;  %v14444_v50 = vld [vmem:[#allocation285_spill] sm:$0xff]  ;;  %v14445_v5 = vld [vmem:[#allocation286_spill] sm:$0xff] }
 0x610   : > { %7881 = vmatprep.subr.bf16.mxu1 %v14409_v31  ;;  %v14446_v31 = vld [vmem:[#allocation287_spill] sm:$0xff] }
 0x612   : > { %7796 = vmatpush1.bf16.msra.mxu0 %v14410_v56  ;;  %v14447_v56 = vld [vmem:[#allocation288_spill] sm:$0xff] }
 0x613   : > { %7882 = vmatpush1.bf16.msra.mxu1 %v14411_v18  ;;  %7797 = vmatprep.subr.bf16.mxu0 %v14412_v4  ;;  %v14448_v18 = vld [vmem:[#allocation289_spill] sm:$0xff]  ;;  %v14449_v4 = vld [vmem:[#allocation290_spill] sm:$0xff] }
 0x614   : > { %7883 = vmatprep.subr.bf16.mxu1 %v14413_v23  ;;  %v14450_v23 = vld [vmem:[#allocation291_spill] sm:$0xff] }
 0x616   : > { %7798 = vmatpush1.bf16.msra.mxu0 %v14414_v25  ;;  %v14451_v25 = vld [vmem:[#allocation292_spill] sm:$0xff] }
 0x617   : > { %7884 = vmatpush1.bf16.msra.mxu1 %v14415_v29  ;;  %7799 = vmatprep.subr.bf16.mxu0 %v14416_v39  ;;  %v14452_v29 = vld [vmem:[#allocation293_spill] sm:$0xff]  ;;  %v14453_v39 = vld [vmem:[#allocation294_spill] sm:$0xff] }
 0x618   : > { %7885 = vmatprep.subr.bf16.mxu1 %v14417_v60  ;;  %v14454_v60 = vld [vmem:[#allocation295_spill] sm:$0xff] }
 0x61a   : > { %7800 = vmatpush1.bf16.msra.mxu0 %v14418_v33  ;;  %v14455_v33 = vld [vmem:[#allocation296_spill] sm:$0xff] }
 0x61b   : > { %7886 = vmatpush1.bf16.msra.mxu1 %v14419_v53  ;;  %7898 = vmatprep.subr.bf16.mxu0 %v14420_v24  ;;  %v14456_v53 = vld [vmem:[#allocation297_spill] sm:$0xff]  ;;  %v14457_v24 = vld [vmem:[#allocation298_spill] sm:$0xff] }
 0x61c   : > { %7984 = vmatprep.subr.bf16.mxu1 %v14421_v49  ;;  %v14458_v49 = vld [vmem:[#allocation299_spill] sm:$0xff] }
 0x61d   : > { %7802 = vmatmul.mubr.bf16.vlgmr.msra.gmra.mrb[52].mxu0 %v12577_v1 }
 0x61e   : > { %7888 = vmatmul.mubr.bf16.vlgmr.msra.gmra.mrb[52].mxu1 %v12577_v1  ;;  %7899 = vmatpush1.bf16.msra.mxu0 %v14422_v15  ;;  %v14459_v15 = vld [vmem:[#allocation300_spill] sm:$0xff] }
 0x61f   : > { %7930 = vmatprep.mubr.bf16.mxu0 %v12562_v63  ;;  %7985 = vmatpush1.bf16.msra.mxu1 %v14423_v34  ;;  %v14460_v34 = vld [vmem:[#allocation301_spill] sm:$0xff] }
 0x620   : > { %8016 = vmatprep.mubr.bf16.mxu1 %v12562_v63  ;;  %7900 = vmatprep.subr.bf16.mxu0 %v14424_v12  ;;  %v14461_v12 = vld [vmem:[#allocation302_spill] sm:$0xff] }
 0x621   : > { %7986 = vmatprep.subr.bf16.mxu1 %v14425_v10  ;;  %v14462_v10 = vld [vmem:[#allocation303_spill] sm:$0xff] }
 0x622   : > { %7901 = vmatpush1.bf16.msra.mxu0 %v14426_v7  ;;  %v14463_v7 = vld [vmem:[#allocation304_spill] sm:$0xff] }
 0x623   : > { %7987 = vmatpush1.bf16.msra.mxu1 %v14427_v47  ;;  %7902 = vmatprep.subr.bf16.mxu0 %v14428_v8  ;;  %v14464_v47 = vld [vmem:[#allocation305_spill] sm:$0xff]  ;;  %v14465_v8 = vld [vmem:[#allocation306_spill] sm:$0xff] }
 0x624   : > { %7988 = vmatprep.subr.bf16.mxu1 %v14429_v61  ;;  %v14466_v61 = vld [vmem:[#allocation307_spill] sm:$0xff] }
 0x626   : > { %7903 = vmatpush1.bf16.msra.mxu0 %v14430_v16  ;;  %v14467_v16 = vld [vmem:[#allocation308_spill] sm:$0xff] }
 0x627   : > { %7989 = vmatpush1.bf16.msra.mxu1 %v14431_v46  ;;  %7904 = vmatprep.subr.bf16.mxu0 %v14432_v44  ;;  %v14468_v46 = vld [vmem:[#allocation309_spill] sm:$0xff]  ;;  %v14469_v44 = vld [vmem:[#allocation310_spill] sm:$0xff] }
 0x628   : > { %7990 = vmatprep.subr.bf16.mxu1 %v14433_v28  ;;  %v14470_v28 = vld [vmem:[#allocation311_spill] sm:$0xff] }
 0x62a   : > { %7905 = vmatpush1.bf16.msra.mxu0 %v14434_v13  ;;  %v14471_v13 = vld [vmem:[#allocation312_spill] sm:$0xff] }
 0x62b   : > { %7991 = vmatpush1.bf16.msra.mxu1 %v14435_v35  ;;  %7906 = vmatprep.subr.bf16.mxu0 %v14436_v62  ;;  %v14472_v35 = vld [vmem:[#allocation313_spill] sm:$0xff]  ;;  %v14473_v62 = vld [vmem:[#allocation314_spill] sm:$0xff] }
 0x62c   : > { %7992 = vmatprep.subr.bf16.mxu1 %v14437_v58  ;;  %v14474_v58 = vld [vmem:[#allocation315_spill] sm:$0xff] }
 0x62e   : > { %7907 = vmatpush1.bf16.msra.mxu0 %v14438_v45  ;;  %v14475_v45 = vld [vmem:[#allocation316_spill] sm:$0xff] }
 0x62f   : > { %7993 = vmatpush1.bf16.msra.mxu1 %v14439_v40  ;;  %7908 = vmatprep.subr.bf16.mxu0 %v14440_v42  ;;  %v14476_v40 = vld [vmem:[#allocation317_spill] sm:$0xff]  ;;  %v14477_v42 = vld [vmem:[#allocation318_spill] sm:$0xff] }
 0x630   : > { %7994 = vmatprep.subr.bf16.mxu1 %v14441_v20  ;;  %v14478_v20 = vld [vmem:[#allocation319_spill] sm:$0xff] }
 0x632   : > { %7909 = vmatpush1.bf16.msra.mxu0 %v14442_v2  ;;  %v14479_v2 = vld [vmem:[#allocation320_spill] sm:$0xff] }
 0x633   : > { %7995 = vmatpush1.bf16.msra.mxu1 %v14443_v27  ;;  %7910 = vmatprep.subr.bf16.mxu0 %v14444_v50  ;;  %v14480_v27 = vld [vmem:[#allocation321_spill] sm:$0xff]  ;;  %v14481_v50 = vld [vmem:[#allocation322_spill] sm:$0xff] }
 0x634   : > { %7996 = vmatprep.subr.bf16.mxu1 %v14445_v5  ;;  %v14482_v5 = vld [vmem:[#allocation323_spill] sm:$0xff] }
 0x636   : > { %7911 = vmatpush1.bf16.msra.mxu0 %v14446_v31  ;;  %v14483_v31 = vld [vmem:[#allocation324_spill] sm:$0xff] }
 0x637   : > { %7997 = vmatpush1.bf16.msra.mxu1 %v14447_v56  ;;  %7912 = vmatprep.subr.bf16.mxu0 %v14448_v18  ;;  %v14484_v56 = vld [vmem:[#allocation325_spill] sm:$0xff]  ;;  %v14485_v18 = vld [vmem:[#allocation326_spill] sm:$0xff] }
 0x638   : > { %7998 = vmatprep.subr.bf16.mxu1 %v14449_v4  ;;  %v14486_v4 = vld [vmem:[#allocation327_spill] sm:$0xff] }
 0x63a   : > { %7913 = vmatpush1.bf16.msra.mxu0 %v14450_v23  ;;  %v14487_v23 = vld [vmem:[#allocation328_spill] sm:$0xff] }
 0x63b   : > { %7999 = vmatpush1.bf16.msra.mxu1 %v14451_v25  ;;  %7914 = vmatprep.subr.bf16.mxu0 %v14452_v29  ;;  %v14488_v25 = vld [vmem:[#allocation329_spill] sm:$0xff]  ;;  %v14489_v29 = vld [vmem:[#allocation330_spill] sm:$0xff] }
 0x63c   : > { %8000 = vmatprep.subr.bf16.mxu1 %v14453_v39  ;;  %v14490_v39 = vld [vmem:[#allocation331_spill] sm:$0xff] }
 0x63e   : > { %7915 = vmatpush1.bf16.msra.mxu0 %v14454_v60  ;;  %v14491_v60 = vld [vmem:[#allocation332_spill] sm:$0xff] }
 0x63f   : > { %8001 = vmatpush1.bf16.msra.mxu1 %v14455_v33  ;;  %7916 = vmatprep.subr.bf16.mxu0 %v14456_v53  ;;  %v14492_v33 = vld [vmem:[#allocation333_spill] sm:$0xff]  ;;  %v14493_v53 = vld [vmem:[#allocation334_spill] sm:$0xff] }
 0x640   : > { %8002 = vmatprep.subr.bf16.mxu1 %v14457_v24  ;;  %v14494_v24 = vld [vmem:[#allocation335_spill] sm:$0xff] }
 0x642   : > { %7917 = vmatpush1.bf16.msra.mxu0 %v14458_v49  ;;  %v14495_v49 = vld [vmem:[#allocation336_spill] sm:$0xff] }
 0x643   : > { %8003 = vmatpush1.bf16.msra.mxu1 %v14459_v15  ;;  %7918 = vmatprep.subr.bf16.mxu0 %v14460_v34  ;;  %v14496_v15 = vld [vmem:[#allocation337_spill] sm:$0xff]  ;;  %v14497_v34 = vld [vmem:[#allocation338_spill] sm:$0xff] }
 0x644   : > { %8004 = vmatprep.subr.bf16.mxu1 %v14461_v12  ;;  %v14498_v12 = vld [vmem:[#allocation339_spill] sm:$0xff] }
 0x646   : > { %7919 = vmatpush1.bf16.msra.mxu0 %v14462_v10  ;;  %v14499_v10 = vld [vmem:[#allocation340_spill] sm:$0xff] }
 0x647   : > { %8005 = vmatpush1.bf16.msra.mxu1 %v14463_v7  ;;  %7920 = vmatprep.subr.bf16.mxu0 %v14464_v47  ;;  %v14500_v7 = vld [vmem:[#allocation341_spill] sm:$0xff]  ;;  %v14501_v47 = vld [vmem:[#allocation342_spill] sm:$0xff] }
 0x648   : > { %8006 = vmatprep.subr.bf16.mxu1 %v14465_v8  ;;  %v14502_v8 = vld [vmem:[#allocation343_spill] sm:$0xff] }
 0x64a   : > { %7921 = vmatpush1.bf16.msra.mxu0 %v14466_v61  ;;  %v14503_v61 = vld [vmem:[#allocation344_spill] sm:$0xff] }
 0x64b   : > { %8007 = vmatpush1.bf16.msra.mxu1 %v14467_v16  ;;  %7922 = vmatprep.subr.bf16.mxu0 %v14468_v46  ;;  %v14504_v16 = vld [vmem:[#allocation345_spill] sm:$0xff] }
 0x64c   : > { %8008 = vmatprep.subr.bf16.mxu1 %v14469_v44 }
 0x64e   : > { %7923 = vmatpush1.bf16.msra.mxu0 %v14470_v28  ;;  %v14505_v28 = vld [vmem:[#allocation346_spill] sm:$0xff] }
 0x64f   : > { %8009 = vmatpush1.bf16.msra.mxu1 %v14471_v13  ;;  %7924 = vmatprep.subr.bf16.mxu0 %v14472_v35 }
 0x650   : > { %8010 = vmatprep.subr.bf16.mxu1 %v14473_v62  ;;  %v10023_v62 = vld [vmem:[#allocation3 + $0x100] sm:$0xff] }
 0x652   : > { %7925 = vmatpush1.bf16.msra.mxu0 %v14474_v58 }
 0x653   : > { %8011 = vmatpush1.bf16.msra.mxu1 %v14475_v45  ;;  %7926 = vmatprep.subr.bf16.mxu0 %v14476_v40  ;;  %v7457_v45 = vld [vmem:[#allocation3 + $0x180] sm:$0xff] }
 0x654   : > { %8012 = vmatprep.subr.bf16.mxu1 %v14477_v42  ;;  %v7459_v42 = vld [vmem:[#allocation3 + $0x190] sm:$0xff] }
 0x656   : > { %7927 = vmatpush1.bf16.msra.mxu0 %v14478_v20 }
 0x657   : > { %8013 = vmatpush1.bf16.msra.mxu1 %v14479_v2  ;;  %7928 = vmatprep.subr.bf16.mxu0 %v14480_v27  ;;  %v14506_v2 = vld [vmem:[#allocation347_spill] sm:$0xff]  ;;  %v10024_v27 = vld [vmem:[#allocation3 + $0x110] sm:$0xff] }
 0x658   : > { %8014 = vmatprep.subr.bf16.mxu1 %v14481_v50 }
 0x65a   : > { %7929 = vmatpush1.bf16.msra.mxu0 %v14482_v5 }
 0x65b   : > { %8015 = vmatpush1.bf16.msra.mxu1 %v14483_v31  ;;  %7941 = vmatprep.subr.bf16.mxu0 %v14484_v56  ;;  %v14507_v56 = vld [vmem:[#allocation348_spill] sm:$0xff] }
 0x65c   : > { %8027 = vmatprep.subr.bf16.mxu1 %v14485_v18  ;;  %v7458_v18 = vld [vmem:[#allocation3 + $0x188] sm:$0xff] }
 0x65d   : > { %7931 = vmatmul.mubr.bf16.vlgmr.msra.gmra.mrb[56].mxu0 %v12567_v9 }
 0x65e   : > { %8017 = vmatmul.mubr.bf16.vlgmr.msra.gmra.mrb[56].mxu1 %v12567_v9  ;;  %7942 = vmatpush1.bf16.msra.mxu0 %v14486_v4 }
 0x65f   : > { %7973 = vmatprep.mubr.bf16.mxu0 %v12572_v55  ;;  %8028 = vmatpush1.bf16.msra.mxu1 %v14487_v23  ;;  %v7460_v23 = vld [vmem:[#allocation3 + $0x198] sm:$0xff] }
 0x660   : > { %8059 = vmatprep.mubr.bf16.mxu1 %v12572_v55  ;;  %7943 = vmatprep.subr.bf16.mxu0 %v14488_v25 }
 0x661   : > { %8029 = vmatprep.subr.bf16.mxu1 %v14489_v29  ;;  %v14508_v29 = vld [vmem:[#allocation349_spill] sm:$0xff] }
 0x662   : > { %7944 = vmatpush1.bf16.msra.mxu0 %v14490_v39  ;;  %v10025_v39 = vld [vmem:[#allocation3 + $0x108] sm:$0xff] }
 0x663   : > { %8030 = vmatpush1.bf16.msra.mxu1 %v14491_v60  ;;  %7945 = vmatprep.subr.bf16.mxu0 %v14492_v33  ;;  %v10026_v33 = vld [vmem:[#allocation3 + $0x118] sm:$0xff] }
 0x664   : > { %8031 = vmatprep.subr.bf16.mxu1 %v14493_v53 }
 0x666   : > { %7946 = vmatpush1.bf16.msra.mxu0 %v14494_v24 }
 0x667   : > { %8032 = vmatpush1.bf16.msra.mxu1 %v14495_v49  ;;  %7947 = vmatprep.subr.bf16.mxu0 %v14496_v15  ;;  %v14509_v15 = vld [vmem:[#allocation350_spill] sm:$0xff] }
 0x668   : > { %8033 = vmatprep.subr.bf16.mxu1 %v14497_v34 }
 0x66a   : > { %7948 = vmatpush1.bf16.msra.mxu0 %v14498_v12 }
 0x66b   : > { %8034 = vmatpush1.bf16.msra.mxu1 %v14499_v10  ;;  %7949 = vmatprep.subr.bf16.mxu0 %v14500_v7 }
 0x66c   : > { %8035 = vmatprep.subr.bf16.mxu1 %v14501_v47  ;;  %v14510_v47 = vld [vmem:[#allocation351_spill] sm:$0xff] }
 0x66e   : > { %7950 = vmatpush1.bf16.msra.mxu0 %v14502_v8  ;;  %v14511_v8 = vld [vmem:[#allocation352_spill] sm:$0xff] }
 0x66f   : > { %8036 = vmatpush1.bf16.msra.mxu1 %v14503_v61  ;;  %7951 = vmatprep.subr.bf16.mxu0 %v14504_v16  ;;  %v14512_v61 = vld [vmem:[#allocation354_spill] sm:$0xff]  ;;  %v14513_v16 = vld [vmem:[#allocation357_spill] sm:$0xff] }
 0x670   : > { %v7631_v46 = vpop.f32.mrb[48].mxu0  ;;  %v7717_v44 = vpop.f32.mrb[48].mxu1  ;;  %8037 = vmatprep.subr.bf16.mxu1 %v14505_v28  ;;  %v14516_v28 = vld [vmem:[#allocation359_spill] sm:$0xff] }
 0x671   : > { %v7633_v13 = vpop.f32.mrb[49].mxu0  ;;  %v7719_v35 = vpop.f32.mrb[49].mxu1  ;;  %v12871_v58 = vadd.f32 %v10023_v62, %v7631_v46  ;;  %v12874_v50 = vadd.f32 %v10024_v27, %v7717_v44  ;;  %v14514_v46 = vld [vmem:[#allocation353_spill] sm:$0xff]  ;;  %v14515_v44 = vld [vmem:[#allocation356_spill] sm:$0xff]  ;;  %v14525_v27 = vld [vmem:[#allocation375_spill] sm:$0xff] }
 0x672   : > { %v7635_v40 = vpop.f32.mrb[50].mxu0  ;;  %v7721_v20 = vpop.f32.mrb[50].mxu1  ;;  %7952 = vmatpush1.bf16.msra.mxu0 %v14506_v2  ;;  %v12882_v60 = vadd.f32 %v10025_v39, %v7633_v13  ;;  %v12884_v53 = vadd.f32 %v10026_v33, %v7719_v35  ;;  %v14517_v13 = vld [vmem:[#allocation365_spill] sm:$0xff]  ;;  %v14518_v35 = vld [vmem:[#allocation368_spill] sm:$0xff]  ;;  %v14524_v2 = vld [vmem:[#allocation374_spill] sm:$0xff] }
 0x673   : > { %v12876_v5 = vadd.f32 %v7635_v40, %v7457_v45  ;;  %v12878_v31 = vadd.f32 %v7721_v20, %v7459_v42  ;;  %8038 = vmatpush1.bf16.msra.mxu1 %v14507_v56  ;;  %v7637_v4 = vpop.f32.mrb[51].mxu0  ;;  %v7723_v25 = vpop.f32.mrb[51].mxu1  ;;  %7953 = vmatprep.subr.bf16.mxu0 %v14508_v29  ;;  %v14519_v62 = vld [vmem:[#allocation369_spill] sm:$0xff]  ;;  %v14520_v45 = vld [vmem:[#allocation370_spill] sm:$0xff]  ;;  %v14521_v40 = vld [vmem:[#allocation371_spill] sm:$0xff] }
 0x674   : > { %v12886_v24 = vadd.f32 %v7637_v4, %v7458_v18  ;;  %v12888_v49 = vadd.f32 %v7723_v25, %v7460_v23  ;;  %8039 = vmatprep.subr.bf16.mxu1 %v14509_v15  ;;  %v14522_v42 = vld [vmem:[#allocation372_spill] sm:$0xff]  ;;  %v14523_v20 = vld [vmem:[#allocation373_spill] sm:$0xff]  ;;  %v14528_v4 = vld [vmem:[#allocation378_spill] sm:$0xff] }
 0x675   : > { %v8274_v34 = vpack.c.bf16 %v12876_v5, %v12871_v58  ;;  %v8276_v12 = vpack.c.bf16 %v12878_v31, %v12874_v50  ;;  %v14526_v56 = vld [vmem:[#allocation376_spill] sm:$0xff]  ;;  %v14527_v18 = vld [vmem:[#allocation377_spill] sm:$0xff]  ;;  %v14529_v23 = vld [vmem:[#allocation379_spill] sm:$0xff] }
 0x676   : > { %v8275_v10 = vpack.c.bf16 %v12886_v24, %v12882_v60  ;;  %v8277_v7 = vpack.c.bf16 %v12888_v49, %v12884_v53  ;;  %7954 = vmatpush1.bf16.msra.mxu0 %v14510_v47  ;;  %v14530_v25 = vld [vmem:[#allocation380_spill] sm:$0xff]  ;;  %v14531_v29 = vld [vmem:[#allocation381_spill] sm:$0xff]  ;;  %v14532_v39 = vld [vmem:[#allocation382_spill] sm:$0xff] }
 0x677   : > { %8040 = vmatpush1.bf16.msra.mxu1 %v14511_v8  ;;  %7955 = vmatprep.subr.bf16.mxu0 %v14512_v61  ;;  %v14533_v33 = vld [vmem:[#allocation383_spill] sm:$0xff]  ;;  %v14534_v15 = vld [vmem:[#allocation384_spill] sm:$0xff]  ;;  %v14535_v47 = vld [vmem:[#allocation385_spill] sm:$0xff] }
 0x678   : > { %8041 = vmatprep.subr.bf16.mxu1 %v14513_v16  ;;  %v14536_v8 = vld [vmem:[#allocation386_spill] sm:$0xff]  ;;  %v14537_v61 = vld [vmem:[#allocation387_spill] sm:$0xff]  ;;  %v14538_v16 = vld [vmem:[#allocation388_spill] sm:$0xff] }
 0x679   : > { %v7465_v49 = vld [vmem:[#allocation3 + $0x1c0] sm:$0xff] }
 0x67a   : > { %7956 = vmatpush1.bf16.msra.mxu0 %v14514_v46  ;;  %v14539_v46 = vld [vmem:[#allocation389_spill] sm:$0xff] }
 0x67b   : > { %8042 = vmatpush1.bf16.msra.mxu1 %v14515_v44  ;;  %7957 = vmatprep.subr.bf16.mxu0 %v14516_v28  ;;  %v14540_v44 = vld [vmem:[#allocation390_spill] sm:$0xff]  ;;  %v14541_v28 = vld [vmem:[#allocation391_spill] sm:$0xff] }
 0x67c   : > { %8043 = vmatprep.subr.bf16.mxu1 %v14517_v13  ;;  %v14542_v13 = vld [vmem:[#allocation392_spill] sm:$0xff] }
 0x67e   : > { %7958 = vmatpush1.bf16.msra.mxu0 %v14518_v35  ;;  %v14543_v35 = vld [vmem:[#allocation393_spill] sm:$0xff] }
 0x67f   : > { %8044 = vmatpush1.bf16.msra.mxu1 %v14519_v62  ;;  %7959 = vmatprep.subr.bf16.mxu0 %v14520_v45  ;;  %v14544_v62 = vld [vmem:[#allocation394_spill] sm:$0xff]  ;;  %v14545_v45 = vld [vmem:[#allocation395_spill] sm:$0xff] }
 0x680   : > { %8045 = vmatprep.subr.bf16.mxu1 %v14521_v40  ;;  %v14546_v40 = vld [vmem:[#allocation396_spill] sm:$0xff] }
 0x682   : > { %7960 = vmatpush1.bf16.msra.mxu0 %v14522_v42  ;;  %v14547_v42 = vld [vmem:[#allocation397_spill] sm:$0xff] }
 0x683   : > { %8046 = vmatpush1.bf16.msra.mxu1 %v14523_v20  ;;  %7961 = vmatprep.subr.bf16.mxu0 %v14524_v2  ;;  %v14548_v20 = vld [vmem:[#allocation398_spill] sm:$0xff]  ;;  %v14549_v2 = vld [vmem:[#allocation399_spill] sm:$0xff] }
 0x684   : > { %8047 = vmatprep.subr.bf16.mxu1 %v14525_v27  ;;  %v14550_v27 = vld [vmem:[#allocation400_spill] sm:$0xff] }
 0x686   : > { %7962 = vmatpush1.bf16.msra.mxu0 %v14526_v56  ;;  %v14551_v56 = vld [vmem:[#allocation401_spill] sm:$0xff] }
 0x687   : > { %8048 = vmatpush1.bf16.msra.mxu1 %v14527_v18  ;;  %7963 = vmatprep.subr.bf16.mxu0 %v14528_v4  ;;  %v14552_v18 = vld [vmem:[#allocation402_spill] sm:$0xff]  ;;  %v14553_v4 = vld [vmem:[#allocation403_spill] sm:$0xff] }
 0x688   : > { %8049 = vmatprep.subr.bf16.mxu1 %v14529_v23  ;;  %v14554_v23 = vld [vmem:[#allocation404_spill] sm:$0xff] }
 0x68a   : > { %7964 = vmatpush1.bf16.msra.mxu0 %v14530_v25  ;;  %v14555_v25 = vld [vmem:[#allocation405_spill] sm:$0xff] }
 0x68b   : > { %8050 = vmatpush1.bf16.msra.mxu1 %v14531_v29  ;;  %7965 = vmatprep.subr.bf16.mxu0 %v14532_v39  ;;  %v14556_v29 = vld [vmem:[#allocation406_spill] sm:$0xff]  ;;  %v14557_v39 = vld [vmem:[#allocation407_spill] sm:$0xff] }
 0x68c   : > { %8051 = vmatprep.subr.bf16.mxu1 %v14533_v33  ;;  %v14558_v33 = vld [vmem:[#allocation408_spill] sm:$0xff] }
 0x68e   : > { %7966 = vmatpush1.bf16.msra.mxu0 %v14534_v15  ;;  %v14559_v15 = vld [vmem:[#allocation409_spill] sm:$0xff] }
 0x68f   : > { %8052 = vmatpush1.bf16.msra.mxu1 %v14535_v47  ;;  %7967 = vmatprep.subr.bf16.mxu0 %v14536_v8  ;;  %v14560_v47 = vld [vmem:[#allocation410_spill] sm:$0xff]  ;;  %v14561_v8 = vld [vmem:[#allocation411_spill] sm:$0xff] }
 0x690   : > { %8053 = vmatprep.subr.bf16.mxu1 %v14537_v61  ;;  %v14563_v61 = vld [vmem:[#allocation413_spill] sm:$0xff] }
 0x692   : > { %7968 = vmatpush1.bf16.msra.mxu0 %v14538_v16  ;;  %v14564_v16 = vld [vmem:[#allocation414_spill] sm:$0xff] }
 0x693   : > { %8054 = vmatpush1.bf16.msra.mxu1 %v14539_v46  ;;  %7969 = vmatprep.subr.bf16.mxu0 %v14540_v44  ;;  %v14565_v46 = vld [vmem:[#allocation415_spill] sm:$0xff]  ;;  %v14566_v44 = vld [vmem:[#allocation416_spill] sm:$0xff] }
 0x694   : > { %8055 = vmatprep.subr.bf16.mxu1 %v14541_v28  ;;  %v14567_v28 = vld [vmem:[#allocation417_spill] sm:$0xff] }
 0x696   : > { %7970 = vmatpush1.bf16.msra.mxu0 %v14542_v13  ;;  %v14568_v13 = vld [vmem:[#allocation418_spill] sm:$0xff] }
 0x697   : > { %8056 = vmatpush1.bf16.msra.mxu1 %v14543_v35  ;;  %7971 = vmatprep.subr.bf16.mxu0 %v14544_v62  ;;  %v14569_v35 = vld [vmem:[#allocation419_spill] sm:$0xff]  ;;  %v14570_v62 = vld [vmem:[#allocation420_spill] sm:$0xff] }
 0x698   : > { %8057 = vmatprep.subr.bf16.mxu1 %v14545_v45  ;;  %v14571_v45 = vld [vmem:[#allocation421_spill] sm:$0xff] }
 0x69a   : > { %7972 = vmatpush1.bf16.msra.mxu0 %v14546_v40  ;;  %v14572_v40 = vld [vmem:[#allocation422_spill] sm:$0xff] }
 0x69b   : > { %8058 = vmatpush1.bf16.msra.mxu1 %v14547_v42  ;;  %8070 = vmatprep.subr.bf16.mxu0 %v14548_v20  ;;  %v14573_v42 = vld [vmem:[#allocation423_spill] sm:$0xff]  ;;  %v14574_v20 = vld [vmem:[#allocation424_spill] sm:$0xff] }
 0x69c   : > { %8156 = vmatprep.subr.bf16.mxu1 %v14549_v2  ;;  %v14575_v2 = vld [vmem:[#allocation425_spill] sm:$0xff] }
 0x69d   : > { %7974 = vmatmul.mubr.bf16.vlgmr.msra.gmra.mrb[56].mxu0 %v12577_v1 }
 0x69e   : > { %8060 = vmatmul.mubr.bf16.vlgmr.msra.gmra.mrb[56].mxu1 %v12577_v1  ;;  %8071 = vmatpush1.bf16.msra.mxu0 %v14550_v27  ;;  %v14576_v27 = vld [vmem:[#allocation426_spill] sm:$0xff] }
 0x69f   : > { %8102 = vmatprep.mubr.bf16.mxu0 %v12562_v63  ;;  %8157 = vmatpush1.bf16.msra.mxu1 %v14551_v56  ;;  %v14577_v56 = vld [vmem:[#allocation427_spill] sm:$0xff] }
 0x6a0   : > { %8188 = vmatprep.mubr.bf16.mxu1 %v12562_v63  ;;  %8072 = vmatprep.subr.bf16.mxu0 %v14552_v18  ;;  %v14562_v63 = vld [vmem:[#allocation412_spill] sm:$0xff] }
 0x6a1   : > { %8158 = vmatprep.subr.bf16.mxu1 %v14553_v4  ;;  %v14578_v18 = vld [vmem:[#allocation428_spill] sm:$0xff]  ;;  %v14579_v4 = vld [vmem:[#allocation429_spill] sm:$0xff] }
 0x6a2   : > { %8073 = vmatpush1.bf16.msra.mxu0 %v14554_v23  ;;  %v14580_v23 = vld [vmem:[#allocation430_spill] sm:$0xff] }
 0x6a3   : > { %8159 = vmatpush1.bf16.msra.mxu1 %v14555_v25  ;;  %8074 = vmatprep.subr.bf16.mxu0 %v14556_v29  ;;  %v14581_v25 = vld [vmem:[#allocation431_spill] sm:$0xff]  ;;  %v14582_v29 = vld [vmem:[#allocation432_spill] sm:$0xff] }
 0x6a4   : > { %8160 = vmatprep.subr.bf16.mxu1 %v14557_v39  ;;  %v14583_v39 = vld [vmem:[#allocation433_spill] sm:$0xff] }
 0x6a6   : > { %8075 = vmatpush1.bf16.msra.mxu0 %v14558_v33  ;;  %v14584_v33 = vld [vmem:[#allocation434_spill] sm:$0xff] }
 0x6a7   : > { %8161 = vmatpush1.bf16.msra.mxu1 %v14559_v15  ;;  %8076 = vmatprep.subr.bf16.mxu0 %v14560_v47  ;;  %v14585_v15 = vld [vmem:[#allocation435_spill] sm:$0xff]  ;;  %v14586_v47 = vld [vmem:[#allocation436_spill] sm:$0xff] }
 0x6a8   : > { %8162 = vmatprep.subr.bf16.mxu1 %v14561_v8  ;;  %v14587_v8 = vld [vmem:[#allocation437_spill] sm:$0xff] }
 0x6aa   : > { %8077 = vmatpush1.bf16.msra.mxu0 %v14562_v63  ;;  %v14588_v63 = vld [vmem:[#allocation438_spill] sm:$0xff] }
 0x6ab   : > { %8163 = vmatpush1.bf16.msra.mxu1 %v14563_v61  ;;  %8078 = vmatprep.subr.bf16.mxu0 %v14564_v16  ;;  %v14589_v61 = vld [vmem:[#allocation439_spill] sm:$0xff]  ;;  %v14590_v16 = vld [vmem:[#allocation440_spill] sm:$0xff] }
 0x6ac   : > { %8164 = vmatprep.subr.bf16.mxu1 %v14565_v46  ;;  %v14591_v46 = vld [vmem:[#allocation441_spill] sm:$0xff] }
 0x6ae   : > { %8079 = vmatpush1.bf16.msra.mxu0 %v14566_v44  ;;  %v14592_v44 = vld [vmem:[#allocation442_spill] sm:$0xff] }
 0x6af   : > { %8165 = vmatpush1.bf16.msra.mxu1 %v14567_v28  ;;  %8080 = vmatprep.subr.bf16.mxu0 %v14568_v13  ;;  %v14593_v28 = vld [vmem:[#allocation443_spill] sm:$0xff]  ;;  %v14594_v13 = vld [vmem:[#allocation444_spill] sm:$0xff] }
 0x6b0   : > { %8166 = vmatprep.subr.bf16.mxu1 %v14569_v35  ;;  %v14595_v35 = vld [vmem:[#allocation445_spill] sm:$0xff] }
 0x6b2   : > { %8081 = vmatpush1.bf16.msra.mxu0 %v14570_v62  ;;  %v14596_v62 = vld [vmem:[#allocation446_spill] sm:$0xff] }
 0x6b3   : > { %8167 = vmatpush1.bf16.msra.mxu1 %v14571_v45  ;;  %8082 = vmatprep.subr.bf16.mxu0 %v14572_v40  ;;  %v14597_v45 = vld [vmem:[#allocation447_spill] sm:$0xff]  ;;  %v14598_v40 = vld [vmem:[#allocation448_spill] sm:$0xff] }
 0x6b4   : > { %8168 = vmatprep.subr.bf16.mxu1 %v14573_v42  ;;  %v14599_v42 = vld [vmem:[#allocation449_spill] sm:$0xff] }
 0x6b6   : > { %8083 = vmatpush1.bf16.msra.mxu0 %v14574_v20  ;;  %v14600_v20 = vld [vmem:[#allocation450_spill] sm:$0xff] }
 0x6b7   : > { %8169 = vmatpush1.bf16.msra.mxu1 %v14575_v2  ;;  %8084 = vmatprep.subr.bf16.mxu0 %v14576_v27  ;;  %v14601_v2 = vld [vmem:[#allocation451_spill] sm:$0xff]  ;;  %v14602_v27 = vld [vmem:[#allocation452_spill] sm:$0xff] }
 0x6b8   : > { %8170 = vmatprep.subr.bf16.mxu1 %v14577_v56  ;;  %v14603_v56 = vld [vmem:[#allocation453_spill] sm:$0xff] }
 0x6ba   : > { %8085 = vmatpush1.bf16.msra.mxu0 %v14578_v18  ;;  %v14604_v18 = vld [vmem:[#allocation454_spill] sm:$0xff] }
 0x6bb   : > { %8171 = vmatpush1.bf16.msra.mxu1 %v14579_v4  ;;  %8086 = vmatprep.subr.bf16.mxu0 %v14580_v23  ;;  %v14605_v4 = vld [vmem:[#allocation455_spill] sm:$0xff]  ;;  %v14606_v23 = vld [vmem:[#allocation456_spill] sm:$0xff] }
 0x6bc   : > { %8172 = vmatprep.subr.bf16.mxu1 %v14581_v25  ;;  %v14607_v25 = vld [vmem:[#allocation457_spill] sm:$0xff] }
 0x6be   : > { %8087 = vmatpush1.bf16.msra.mxu0 %v14582_v29  ;;  %v14608_v29 = vld [vmem:[#allocation458_spill] sm:$0xff] }
 0x6bf   : > { %8173 = vmatpush1.bf16.msra.mxu1 %v14583_v39  ;;  %8088 = vmatprep.subr.bf16.mxu0 %v14584_v33  ;;  %v14609_v39 = vld [vmem:[#allocation459_spill] sm:$0xff]  ;;  %v14610_v33 = vld [vmem:[#allocation460_spill] sm:$0xff] }
 0x6c0   : > { %8174 = vmatprep.subr.bf16.mxu1 %v14585_v15  ;;  %v14611_v15 = vld [vmem:[#allocation461_spill] sm:$0xff] }
 0x6c2   : > { %8089 = vmatpush1.bf16.msra.mxu0 %v14586_v47  ;;  %v14612_v47 = vld [vmem:[#allocation462_spill] sm:$0xff] }
 0x6c3   : > { %8175 = vmatpush1.bf16.msra.mxu1 %v14587_v8  ;;  %8090 = vmatprep.subr.bf16.mxu0 %v14588_v63  ;;  %v14613_v8 = vld [vmem:[#allocation463_spill] sm:$0xff]  ;;  %v14614_v63 = vld [vmem:[#allocation464_spill] sm:$0xff] }
 0x6c4   : > { %8176 = vmatprep.subr.bf16.mxu1 %v14589_v61  ;;  %v14615_v61 = vld [vmem:[#allocation465_spill] sm:$0xff] }
 0x6c6   : > { %8091 = vmatpush1.bf16.msra.mxu0 %v14590_v16  ;;  %v14616_v16 = vld [vmem:[#allocation466_spill] sm:$0xff] }
 0x6c7   : > { %8177 = vmatpush1.bf16.msra.mxu1 %v14591_v46  ;;  %8092 = vmatprep.subr.bf16.mxu0 %v14592_v44  ;;  %v14617_v46 = vld [vmem:[#allocation467_spill] sm:$0xff]  ;;  %v14618_v44 = vld [vmem:[#allocation468_spill] sm:$0xff] }
 0x6c8   : > { %8178 = vmatprep.subr.bf16.mxu1 %v14593_v28  ;;  %v14619_v28 = vld [vmem:[#allocation469_spill] sm:$0xff] }
 0x6ca   : > { %8093 = vmatpush1.bf16.msra.mxu0 %v14594_v13  ;;  %v14620_v13 = vld [vmem:[#allocation470_spill] sm:$0xff] }
 0x6cb   : > { %8179 = vmatpush1.bf16.msra.mxu1 %v14595_v35  ;;  %8094 = vmatprep.subr.bf16.mxu0 %v14596_v62  ;;  %v14621_v35 = vld [vmem:[#allocation471_spill] sm:$0xff]  ;;  %v14623_v62 = vld [vmem:[#allocation473_spill] sm:$0xff] }
 0x6cc   : > { %8180 = vmatprep.subr.bf16.mxu1 %v14597_v45  ;;  %v14624_v45 = vld [vmem:[#allocation474_spill] sm:$0xff] }
 0x6ce   : > { %8095 = vmatpush1.bf16.msra.mxu0 %v14598_v40  ;;  %v14625_v40 = vld [vmem:[#allocation475_spill] sm:$0xff] }
 0x6cf   : > { %8181 = vmatpush1.bf16.msra.mxu1 %v14599_v42  ;;  %8096 = vmatprep.subr.bf16.mxu0 %v14600_v20  ;;  %v14627_v42 = vld [vmem:[#allocation477_spill] sm:$0xff]  ;;  %v14628_v20 = vld [vmem:[#allocation478_spill] sm:$0xff] }
 0x6d0   : > { %8182 = vmatprep.subr.bf16.mxu1 %v14601_v2  ;;  %v14629_v2 = vld [vmem:[#allocation479_spill] sm:$0xff] }
 0x6d2   : > { %8097 = vmatpush1.bf16.msra.mxu0 %v14602_v27  ;;  %v14630_v27 = vld [vmem:[#allocation480_spill] sm:$0xff] }
 0x6d3   : > { %8183 = vmatpush1.bf16.msra.mxu1 %v14603_v56  ;;  %8098 = vmatprep.subr.bf16.mxu0 %v14604_v18  ;;  %v14631_v56 = vld [vmem:[#allocation481_spill] sm:$0xff]  ;;  %v14632_v18 = vld [vmem:[#allocation482_spill] sm:$0xff] }
 0x6d4   : > { %8184 = vmatprep.subr.bf16.mxu1 %v14605_v4 }
 0x6d6   : > { %8099 = vmatpush1.bf16.msra.mxu0 %v14606_v23  ;;  %v14633_v23 = vld [vmem:[#allocation483_spill] sm:$0xff] }
 0x6d7   : > { %8185 = vmatpush1.bf16.msra.mxu1 %v14607_v25  ;;  %8100 = vmatprep.subr.bf16.mxu0 %v14608_v29 }
 0x6d8   : > { %8186 = vmatprep.subr.bf16.mxu1 %v14609_v39 }
 0x6da   : > { %8101 = vmatpush1.bf16.msra.mxu0 %v14610_v33  ;;  %v7461_v33 = vld [vmem:[#allocation3 + $0x1a0] sm:$0xff] }
 0x6db   : > { %8187 = vmatpush1.bf16.msra.mxu1 %v14611_v15  ;;  %8113 = vmatprep.subr.bf16.mxu0 %v14612_v47  ;;  %v14634_v47 = vld [vmem:[#allocation484_spill] sm:$0xff] }
 0x6dc   : > { %8199 = vmatprep.subr.bf16.mxu1 %v14613_v8  ;;  %v10027_v8 = vld [vmem:[#allocation3 + $0x120] sm:$0xff] }
 0x6dd   : > { %8103 = vmatmul.mubr.bf16.vlgmr.msra.gmra.mrb[60].mxu0 %v12567_v9 }
 0x6de   : > { %8189 = vmatmul.mubr.bf16.vlgmr.msra.gmra.mrb[60].mxu1 %v12567_v9  ;;  %8114 = vmatpush1.bf16.msra.mxu0 %v14614_v63  ;;  %v14622_v9 = vld [vmem:[#allocation472_spill] sm:$0xff] }
 0x6df   : > { %8145 = vmatprep.mubr.bf16.mxu0 %v12572_v55  ;;  %8200 = vmatpush1.bf16.msra.mxu1 %v14615_v61 }
 0x6e0   : > { %8231 = vmatprep.mubr.bf16.mxu1 %v12572_v55  ;;  %8115 = vmatprep.subr.bf16.mxu0 %v14616_v16  ;;  %v14626_v55 = vld [vmem:[#allocation476_spill] sm:$0xff] }
 0x6e1   : > { %8201 = vmatprep.subr.bf16.mxu1 %v14617_v46  ;;  %v7463_v16 = vld [vmem:[#allocation3 + $0x1b0] sm:$0xff] }
 0x6e2   : > { %8116 = vmatpush1.bf16.msra.mxu0 %v14618_v44  ;;  %v14635_v44 = vld [vmem:[#allocation485_spill] sm:$0xff] }
 0x6e3   : > { %8202 = vmatpush1.bf16.msra.mxu1 %v14619_v28  ;;  %8117 = vmatprep.subr.bf16.mxu0 %v14620_v13  ;;  %v7462_v28 = vld [vmem:[#allocation3 + $0x1a8] sm:$0xff] }
 0x6e4   : > { %8203 = vmatprep.subr.bf16.mxu1 %v14621_v35  ;;  %v14636_v35 = vld [vmem:[#allocation486_spill] sm:$0xff] }
 0x6e6   : > { %8118 = vmatpush1.bf16.msra.mxu0 %v14622_v9  ;;  %v10028_v9 = vld [vmem:[#allocation3 + $0x130] sm:$0xff] }
 0x6e7   : > { %8204 = vmatpush1.bf16.msra.mxu1 %v14623_v62  ;;  %8119 = vmatprep.subr.bf16.mxu0 %v14624_v45  ;;  %v10029_v45 = vld [vmem:[#allocation3 + $0x128] sm:$0xff] }
 0x6e8   : > { %8205 = vmatprep.subr.bf16.mxu1 %v14625_v40 }
 0x6ea   : > { %8120 = vmatpush1.bf16.msra.mxu0 %v14626_v55 }
 0x6eb   : > { %8206 = vmatpush1.bf16.msra.mxu1 %v14627_v42  ;;  %8121 = vmatprep.subr.bf16.mxu0 %v14628_v20  ;;  %v7464_v20 = vld [vmem:[#allocation3 + $0x1b8] sm:$0xff] }
 0x6ec   : > { %8207 = vmatprep.subr.bf16.mxu1 %v14629_v2 }
 0x6ee   : > { %8122 = vmatpush1.bf16.msra.mxu0 %v14630_v27  ;;  %v14637_v27 = vld [vmem:[#allocation487_spill] sm:$0xff] }
 0x6ef   : > { %8208 = vmatpush1.bf16.msra.mxu1 %v14631_v56  ;;  %8123 = vmatprep.subr.bf16.mxu0 %v14632_v18  ;;  %v10030_v56 = vld [vmem:[#allocation3 + $0x138] sm:$0xff] }
 0x6f0   : > { %v7803_v4 = vpop.f32.mrb[52].mxu0  ;;  %8209 = vmatprep.subr.bf16.mxu1 %v14633_v23 }
 0x6f1   : > { %v7889_v25 = vpop.f32.mrb[52].mxu1  ;;  %v7805_v29 = vpop.f32.mrb[53].mxu0  ;;  %v8246_v63 = vadd.f32 %v10027_v8, %v7803_v4 }
 0x6f2   : > { %v7891_v39 = vpop.f32.mrb[53].mxu1  ;;  %v7807_v15 = vpop.f32.mrb[54].mxu0  ;;  %8124 = vmatpush1.bf16.msra.mxu0 %v14634_v47  ;;  %v8248_v62 = vadd.f32 %v10028_v9, %v7889_v25  ;;  %v8247_v40 = vadd.f32 %v10029_v45, %v7805_v29  ;;  %v14651_v9 = vld [vmem:[#allocation501_spill] sm:$0xff] }
 0x6f3   : > { %v8262_v61 = vadd.f32 %v7807_v15, %v7461_v33  ;;  %v7893_v46 = vpop.f32.mrb[54].mxu1  ;;  %8210 = vmatpush1.bf16.msra.mxu1 %v14635_v44  ;;  %v7809_v13 = vpop.f32.mrb[55].mxu0  ;;  %8125 = vmatprep.subr.bf16.mxu0 %v14636_v35  ;;  %v8249_v18 = vadd.f32 %v10030_v56, %v7891_v39  ;;  %v14645_v39 = vld [vmem:[#allocation495_spill] sm:$0xff] }
 0x6f4   : > { %v8264_v55 = vadd.f32 %v7893_v46, %v7463_v16  ;;  %v8263_v42 = vadd.f32 %v7809_v13, %v7462_v28  ;;  %v7895_v2 = vpop.f32.mrb[55].mxu1  ;;  %8211 = vmatprep.subr.bf16.mxu1 %v14637_v27  ;;  %v14648_v46 = vld [vmem:[#allocation498_spill] sm:$0xff]  ;;  %v14649_v28 = vld [vmem:[#allocation499_spill] sm:$0xff] }
 0x6f5   : > { %v8278_v4 = vpack.c.bf16 %v8262_v61, %v8246_v63  ;;  %v8265_v23 = vadd.f32 %v7895_v2, %v7464_v20  ;;  %v14646_v63 = vld [vmem:[#allocation496_spill] sm:$0xff]  ;;  %v14647_v61 = vld [vmem:[#allocation497_spill] sm:$0xff] }
 0x6f6   : > { %v8280_v33 = vpack.c.bf16 %v8264_v55, %v8248_v62  ;;  %v8279_v15 = vpack.c.bf16 %v8263_v42, %v8247_v40  ;;  %8126 = vmatpush1.bf16.msra.mxu0 %v12187_v57  ;;  %v14638_v57 = vld [vmem:[#allocation488_spill] sm:$0xff] }
 0x6f7   : > { %v9511_v47 = vmul.bf16 3216621497, %v8278_v4  ;;  %v8281_v8 = vpack.c.bf16 %v8265_v23, %v8249_v18  ;;  %8212 = vmatpush1.bf16.msra.mxu1 %v12192_v48  ;;  %8127 = vmatprep.subr.bf16.mxu0 %v12198_v37  ;;  %v14653_v18 = vld [vmem:[#allocation503_spill] sm:$0xff] }
 0x6f8   : > { %v9513_v25 = vmul.bf16 3216621497, %v8280_v33  ;;  %v9512_v29 = vmul.bf16 3216621497, %v8279_v15  ;;  %8213 = vmatprep.subr.bf16.mxu1 %v12202_v19 }
 0x6f9   : > { %9943 = vpow.bf16 %v9511_v47  ;;  %v9514_v16 = vmul.bf16 3216621497, %v8281_v8  ;;  %v14654_v47 = vld [vmem:[#allocation504_spill] sm:$0xff] }
 0x6fa   : > { %9945 = vpow.bf16 %v9513_v25  ;;  %8128 = vmatpush1.bf16.msra.mxu0 %v12196_v36 }
 0x6fb   : > { %9947 = vpow.bf16 %v9512_v29  ;;  %8214 = vmatpush1.bf16.msra.mxu1 %v12200_v51  ;;  %8129 = vmatprep.subr.bf16.mxu0 %v12204_v26  ;;  %v14639_v51 = vld [vmem:[#allocation489_spill] sm:$0xff] }
 0x6fc   : > { %9949 = vpow.bf16 %v9514_v16  ;;  %8215 = vmatprep.subr.bf16.mxu1 %v12213_v43  ;;  %v14640_v43 = vld [vmem:[#allocation490_spill] sm:$0xff] }
 0x6fe   : > { %8130 = vmatpush1.bf16.msra.mxu0 %v12207_v22 }
 0x6ff   : > { %8216 = vmatpush1.bf16.msra.mxu1 %v12209_v0  ;;  %8131 = vmatprep.subr.bf16.mxu0 %v12227_v21  ;;  %v14641_v21 = vld [vmem:[#allocation491_spill] sm:$0xff] }
 0x700   : > { %8217 = vmatprep.subr.bf16.mxu1 %v12230_v3 }
 0x702   : > { %8132 = vmatpush1.bf16.msra.mxu0 %v12233_v6  ;;  %v14642_v6 = vld [vmem:[#allocation492_spill] sm:$0xff] }
 0x703   : > { %8218 = vmatpush1.bf16.msra.mxu1 %v12237_v17  ;;  %8133 = vmatprep.subr.bf16.mxu0 %v12239_v54  ;;  %v14643_v17 = vld [vmem:[#allocation493_spill] sm:$0xff]  ;;  %v14644_v54 = vld [vmem:[#allocation494_spill] sm:$0xff] }
 0x704   : > { %v9944_v19 = vpop.eup %9943  ;;  %8219 = vmatprep.subr.bf16.mxu1 %v14638_v57 }
 0x705   : > { %v9946_v26 = vpop.eup %9945  ;;  %v8326_v36 = vadd.bf16 1065369472, %v9944_v19  ;;  %v14655_v19 = vld [vmem:[#allocation505_spill] sm:$0xff] }
 0x706   : > { %v9948_v37 = vpop.eup %9947  ;;  %v8328_v48 = vadd.bf16 1065369472, %v9946_v26  ;;  %8134 = vmatpush1.bf16.msra.mxu0 %v14639_v51  ;;  %v14657_v26 = vld [vmem:[#allocation14_spill] sm:$0xff]  ;;  %v9508_v51 = vmul.bf16 3216621497, %v8275_v10 }
 0x707   : > { %v9950_v22 = vpop.eup %9949  ;;  %9951 = vrcp.bf16 %v8326_v36  ;;  %v8327_v0 = vadd.bf16 1065369472, %v9948_v37  ;;  %8220 = vmatpush1.bf16.msra.mxu1 %v14640_v43  ;;  %8135 = vmatprep.subr.bf16.mxu0 %v14641_v21 }
 0x708   : > { %9953 = vrcp.bf16 %v8328_v48  ;;  %v8329_v3 = vadd.bf16 1065369472, %v9950_v22  ;;  %8221 = vmatprep.subr.bf16.mxu1 %v14642_v6  ;;  %v9509_v48 = vmul.bf16 3216621497, %v8276_v12  ;;  %v9510_v22 = vmul.bf16 3216621497, %v8277_v7 }
 0x709   : > { %9955 = vrcp.bf16 %v8327_v0  ;;  %v10031_v7 = vld [vmem:[#allocation3 + $0x140] sm:$0xff]  ;;  %v7467_v6 = vld [vmem:[#allocation3 + $0x1d0] sm:$0xff] }
 0x70a   : > { %9957 = vrcp.bf16 %v8329_v3  ;;  %8136 = vmatpush1.bf16.msra.mxu0 %v12257_v30  ;;  %v14650_v30 = vld [vmem:[#allocation500_spill] sm:$0xff] }
 0x70b   : > { %8222 = vmatpush1.bf16.msra.mxu1 %v14643_v17  ;;  %8137 = vmatprep.subr.bf16.mxu0 %v14644_v54  ;;  %v7466_v54 = vld [vmem:[#allocation3 + $0x1c8] sm:$0xff] }
 0x70c   : > { %8223 = vmatprep.subr.bf16.mxu1 %v12266_v32  ;;  %v14652_v32 = vld [vmem:[#allocation502_spill] sm:$0xff] }
 0x70e   : > { %8138 = vmatpush1.bf16.msra.mxu0 %v14645_v39 }
 0x70f   : > { %8224 = vmatpush1.bf16.msra.mxu1 %v14646_v63  ;;  %8139 = vmatprep.subr.bf16.mxu0 %v14647_v61  ;;  %v10032_v63 = vld [vmem:[#allocation3 + $0x150] sm:$0xff] }
 0x710   : > { %8225 = vmatprep.subr.bf16.mxu1 %v14648_v46  ;;  %v10033_v46 = vld [vmem:[#allocation3 + $0x148] sm:$0xff] }
 0x712   : > { %v9952_v44 = vpop.eup %9951  ;;  %8140 = vmatpush1.bf16.msra.mxu0 %v14649_v28 }
 0x713   : > { %v9954_v13 = vpop.eup %9953  ;;  %v8339_v35 = vmul.bf16 1065369472, %v9952_v44  ;;  %8226 = vmatpush1.bf16.msra.mxu1 %v14650_v30  ;;  %8141 = vmatprep.subr.bf16.mxu0 %v14651_v9  ;;  %v10034_v9 = vld [vmem:[#allocation3 + $0x158] sm:$0xff] }
 0x714   : > { %v9956_v62 = vpop.eup %9955  ;;  %v8343_v45 = vmul.bf16 1065369472, %v9954_v13  ;;  %8227 = vmatprep.subr.bf16.mxu1 %v14652_v32 }
 0x715   : > { %v9958_v40 = vpop.eup %9957  ;;  %v8386_v55 = vunpack.c.l.bf16 %v8339_v35  ;;  %v8390_v42 = vunpack.c.h.bf16 %v8339_v35  ;;  %v8341_v20 = vmul.bf16 1065369472, %v9956_v62  ;;  %v7468_v35 = vld [vmem:[#allocation3 + $0x1d8] sm:$0xff] }
 0x716   : > { %v8388_v2 = vunpack.c.l.bf16 %v8343_v45  ;;  %v8392_v27 = vunpack.c.h.bf16 %v8343_v45  ;;  %v8345_v56 = vmul.bf16 1065369472, %v9958_v40  ;;  %8142 = vmatpush1.bf16.msra.mxu0 %v14653_v18 }
 0x717   : > { %v13069_v4 = vmul.f32 %v12491_v38, %v8386_v55  ;;  %v13072_v23 = vmul.f32 %v12494_v59, %v8390_v42  ;;  %v8387_v33 = vunpack.c.l.bf16 %v8341_v20  ;;  %v8391_v15 = vunpack.c.h.bf16 %v8341_v20  ;;  %8228 = vmatpush1.bf16.msra.mxu1 %v14654_v47  ;;  %8143 = vmatprep.subr.bf16.mxu0 %v12299_v52  ;;  %v14656_v59 = vld [vmem:[#allocation15_spill] sm:$0xff]  ;;  %v14658_v52 = vld [vmem:[#allocation16_spill] sm:$0xff] }
 0x718   : > { %v13077_v8 = vmul.f32 %v12508_v41, %v8388_v2  ;;  %v13080_v25 = vmul.f32 %v12511_v11, %v8392_v27  ;;  %v8389_v29 = vunpack.c.l.bf16 %v8345_v56  ;;  %v8393_v16 = vunpack.c.h.bf16 %v8345_v56  ;;  %8229 = vmatprep.subr.bf16.mxu1 %v14655_v19  ;;  %v14659_v41 = vld [vmem:[#allocation506_spill] sm:$0xff]  ;;  %v14660_v11 = vld [vmem:[#allocation507_spill] sm:$0xff] }
 0x719   : > { %v13084_v38 = vmul.f32 %v12514_v14, %v8387_v33  ;;  %v13087_v57 = vmul.f32 %v14656_v59, %v8391_v15  ;;  %v9507_v14 = vmul.bf16 3216621497, %v8274_v34 }
 0x71a   : > { %v13090_v36 = vmul.f32 %v14657_v26, %v8389_v29  ;;  %v13093_v37 = vmul.f32 %v14658_v52, %v8393_v16  ;;  %8144 = vmatpush1.bf16.msra.mxu0 %v14659_v41 }
 0x71b   : > { %8230 = vmatpush1.bf16.msra.mxu1 %v14660_v11  ;;  %9959 = vpow.bf16 %v9507_v14 }
 0x71c   : > { %9961 = vpow.bf16 %v9509_v48 }
 0x71d   : > { %8146 = vmatmul.mubr.bf16.vlgmr.msra.gmra.mrb[60].mxu0 %v12577_v1  ;;  %9963 = vpow.bf16 %v9508_v51 }
 0x71e   : > { %8232 = vmatmul.mubr.bf16.vlgmr.msra.gmra.mrb[60].mxu1 %v12577_v1  ;;  %9965 = vpow.bf16 %v9510_v22 }
 0x726   : > { %v9960_v1 = vpop.eup %9959 }
 0x727   : > { %v9962_v0 = vpop.eup %9961  ;;  %v8322_v34 = vadd.bf16 1065369472, %v9960_v1 }
 0x728   : > { %v9964_v58 = vpop.eup %9963  ;;  %v8324_v43 = vadd.bf16 1065369472, %v9962_v0 }
 0x729   : > { %v9966_v5 = vpop.eup %9965  ;;  %v8323_v50 = vadd.bf16 1065369472, %v9964_v58  ;;  %9967 = vrcp.bf16 %v8322_v34 }
 0x72a   : > { %v8325_v31 = vadd.bf16 1065369472, %v9966_v5  ;;  %9969 = vrcp.bf16 %v8324_v43 }
 0x72b   : > { %9971 = vrcp.bf16 %v8323_v50 }
 0x72c   : > { %9973 = vrcp.bf16 %v8325_v31 }
 0x734   : > { %v9968_v20 = vpop.eup %9967 }
 0x735   : > { %v9970_v2 = vpop.eup %9969  ;;  %v8331_v18 = vmul.bf16 1065369472, %v9968_v20 }
 0x736   : > { %v9972_v27 = vpop.eup %9971  ;;  %v8335_v33 = vmul.bf16 1065369472, %v9970_v2 }
 0x737   : > { %v9974_v56 = vpop.eup %9973  ;;  %v8333_v15 = vmul.bf16 1065369472, %v9972_v27  ;;  %v8378_v16 = vunpack.c.l.bf16 %v8331_v18  ;;  %v8382_v19 = vunpack.c.h.bf16 %v8331_v18 }
 0x738   : > { %v8337_v47 = vmul.bf16 1065369472, %v9974_v56  ;;  %v8380_v59 = vunpack.c.l.bf16 %v8335_v33  ;;  %v8384_v26 = vunpack.c.h.bf16 %v8335_v33  ;;  %v7472_v56 = vld [vmem:[#allocation3 + $0x1f8] sm:$0xff] }
 0x739   : > { %v8379_v41 = vunpack.c.l.bf16 %v8333_v15  ;;  %v8383_v11 = vunpack.c.h.bf16 %v8333_v15  ;;  %v10038_v33 = vld [vmem:[#allocation3 + $0x178] sm:$0xff] }
 0x73a   : > { %v8381_v22 = vunpack.c.l.bf16 %v8337_v47  ;;  %v8385_v1 = vunpack.c.h.bf16 %v8337_v47 }
 0x770   : > { %v7975_v60 = vpop.f32.mrb[56].mxu0 }
 0x771   : > { %v8061_v24 = vpop.f32.mrb[56].mxu1  ;;  %v7977_v12 = vpop.f32.mrb[57].mxu0  ;;  %v8250_v21 = vadd.f32 %v10031_v7, %v7975_v60 }
 0x772   : > { %v8063_v53 = vpop.f32.mrb[57].mxu1  ;;  %v7979_v10 = vpop.f32.mrb[58].mxu0  ;;  %v8252_v61 = vadd.f32 %v10032_v63, %v8061_v24  ;;  %v8251_v44 = vadd.f32 %v10033_v46, %v7977_v12 }
 0x773   : > { %v8266_v3 = vadd.f32 %v7979_v10, %v7465_v49  ;;  %v8065_v17 = vpop.f32.mrb[58].mxu1  ;;  %v7981_v39 = vpop.f32.mrb[59].mxu0  ;;  %v8253_v62 = vadd.f32 %v10034_v9, %v8063_v53  ;;  %v7469_v9 = vld [vmem:[#allocation3 + $0x1e0] sm:$0xff] }
 0x774   : > { %v8268_v28 = vadd.f32 %v8065_v17, %v7467_v6  ;;  %v8267_v13 = vadd.f32 %v7981_v39, %v7466_v54  ;;  %v8067_v30 = vpop.f32.mrb[59].mxu1 }
 0x775   : > { %v8282_v45 = vpack.c.bf16 %v8266_v3, %v8250_v21  ;;  %v8269_v32 = vadd.f32 %v8067_v30, %v7468_v35 }
 0x776   : > { %v8284_v40 = vpack.c.bf16 %v8268_v28, %v8252_v61  ;;  %v8283_v55 = vpack.c.bf16 %v8267_v13, %v8251_v44 }
 0x777   : > { %9975 = vtanh.bf16 %v8282_v45  ;;  %v8285_v42 = vpack.c.bf16 %v8269_v32, %v8253_v62  ;;  %v10035_v62 = vld [vmem:[#allocation3 + $0x160] sm:$0xff] }
 0x778   : > { %9977 = vtanh.bf16 %v8284_v40  ;;  %v7471_v40 = vld [vmem:[#allocation3 + $0x1f0] sm:$0xff] }
 0x779   : > { %9979 = vtanh.bf16 %v8283_v55  ;;  %v7470_v55 = vld [vmem:[#allocation3 + $0x1e8] sm:$0xff] }
 0x77a   : > { %9981 = vtanh.bf16 %v8285_v42  ;;  %v10036_v42 = vld [vmem:[#allocation3 + $0x170] sm:$0xff] }
 0x782   : > { %v9976_v29 = vpop.eup %9975 }
 0x783   : > { %v9978_v52 = vpop.eup %9977  ;;  %v8442_v14 = vunpack.c.l.bf16 %v9976_v29  ;;  %v8446_v48 = vunpack.c.h.bf16 %v9976_v29 }
 0x784   : > { %v9980_v51 = vpop.eup %9979  ;;  %v8444_v0 = vunpack.c.l.bf16 %v9978_v52  ;;  %v8448_v58 = vunpack.c.h.bf16 %v9978_v52 }
 0x785   : > { %v9982_v5 = vpop.eup %9981  ;;  %v8450_v34 = vmul.f32 %v8442_v14, %v8378_v16  ;;  %v8454_v43 = vmul.f32 %v8446_v48, %v8382_v19  ;;  %v8443_v50 = vunpack.c.l.bf16 %v9980_v51  ;;  %v8447_v31 = vunpack.c.h.bf16 %v9980_v51 }
 0x786   : > { %v8452_v60 = vmul.f32 %v8444_v0, %v8380_v59  ;;  %v8456_v24 = vmul.f32 %v8448_v58, %v8384_v26  ;;  %v8445_v12 = vunpack.c.l.bf16 %v9982_v5  ;;  %v8449_v53 = vunpack.c.h.bf16 %v9982_v5 }
 0x787   : > { %v8458_v49 = vadd.f32 %v8450_v34, %v13069_v4  ;;  %v8462_v10 = vadd.f32 %v8454_v43, %v13072_v23  ;;  %v8451_v7 = vmul.f32 %v8443_v50, %v8379_v41  ;;  %v8455_v21 = vmul.f32 %v8447_v31, %v8383_v11 }
 0x788   : > { %v8460_v3 = vadd.f32 %v8452_v60, %v13077_v8  ;;  %v8464_v6 = vadd.f32 %v8456_v24, %v13080_v25  ;;  %v8453_v17 = vmul.f32 %v8445_v12, %v8381_v22  ;;  %v8457_v54 = vmul.f32 %v8449_v53, %v8385_v1 }
 0x789   : > { %v8466_v39 = vpack.c.bf16 %v8462_v10, %v8458_v49  ;;  %v8459_v63 = vadd.f32 %v8451_v7, %v13084_v38  ;;  %v8463_v61 = vadd.f32 %v8455_v21, %v13087_v57 }
 0x78a   : > { %v8468_v46 = vpack.c.bf16 %v8464_v6, %v8460_v3  ;;  %v8461_v44 = vadd.f32 %v8453_v17, %v13090_v36  ;;  %v8465_v4 = vadd.f32 %v8457_v54, %v13093_v37  ;;  %v10037_v36 = vld [vmem:[#allocation3 + $0x168] sm:$0xff] }
 0x78b   : > { %v8467_v28 = vpack.c.bf16 %v8463_v61, %v8459_v63 }
 0x78c   : > { %v8469_v23 = vpack.c.bf16 %v8465_v4, %v8461_v44 }
 0x7f0   : > { %v8147_v13 = vpop.f32.mrb[60].mxu0 }
 0x7f1   : > { %v8233_v35 = vpop.f32.mrb[60].mxu1  ;;  %v8149_v30 = vpop.f32.mrb[61].mxu0  ;;  %v8254_v45 = vadd.f32 %v10035_v62, %v8147_v13 }
 0x7f2   : > { %v8235_v8 = vpop.f32.mrb[61].mxu1  ;;  %v8151_v25 = vpop.f32.mrb[62].mxu0  ;;  %v8256_v20 = vadd.f32 %v10036_v42, %v8233_v35  ;;  %v8255_v2 = vadd.f32 %v10037_v36, %v8149_v30 }
 0x7f3   : > { %v8270_v32 = vadd.f32 %v8151_v25, %v7469_v9  ;;  %v8237_v38 = vpop.f32.mrb[62].mxu1  ;;  %v8153_v57 = vpop.f32.mrb[63].mxu0  ;;  %v8257_v15 = vadd.f32 %v10038_v33, %v8235_v8 }
 0x7f4   : > { %v8272_v37 = vadd.f32 %v8237_v38, %v7471_v40  ;;  %v8271_v27 = vadd.f32 %v8153_v57, %v7470_v55  ;;  %v8239_v18 = vpop.f32.mrb[63].mxu1 }
 0x7f5   : > { %v8286_v47 = vpack.c.bf16 %v8270_v32, %v8254_v45  ;;  %v8273_v29 = vadd.f32 %v8239_v18, %v7472_v56 }
 0x7f6   : > { %v8288_v16 = vpack.c.bf16 %v8272_v37, %v8256_v20  ;;  %v8287_v19 = vpack.c.bf16 %v8271_v27, %v8255_v2 }
 0x7f7   : > { %v9515_v59 = vmul.bf16 3216621497, %v8286_v47  ;;  %v8289_v26 = vpack.c.bf16 %v8273_v29, %v8257_v15 }
 0x7f8   : > { %v9517_v52 = vmul.bf16 3216621497, %v8288_v16  ;;  %v9516_v41 = vmul.bf16 3216621497, %v8287_v19 }
 0x7f9   : > { %9983 = vpow.bf16 %v9515_v59  ;;  %v9518_v11 = vmul.bf16 3216621497, %v8289_v26 }
 0x7fa   : > { %9985 = vpow.bf16 %v9517_v52 }
 0x7fb   : > { %9987 = vpow.bf16 %v9516_v41 }
 0x7fc   : > { %9989 = vpow.bf16 %v9518_v11 }
 0x7fd   : > { %9991 = vtanh.bf16 %v8466_v39 }
 0x7fe   : > { %9993 = vtanh.bf16 %v8468_v46 }
 0x7ff   : > { %9995 = vtanh.bf16 %v8467_v28 }
 0x800   : > { %9997 = vtanh.bf16 %v8469_v23 }
 0x804   : > { %v9984_v14 = vpop.eup %9983 }
 0x805   : > { %v9986_v48 = vpop.eup %9985  ;;  %v8366_v51 = vadd.bf16 1065369472, %v9984_v14 }
 0x806   : > { %v9988_v22 = vpop.eup %9987  ;;  %v8368_v1 = vadd.bf16 1065369472, %v9986_v48 }
 0x807   : > { %v9990_v0 = vpop.eup %9989  ;;  %9999 = vrcp.bf16 %v8366_v51  ;;  %v8367_v58 = vadd.bf16 1065369472, %v9988_v22 }
 0x808   : > { %10001 = vrcp.bf16 %v8368_v1  ;;  %v8369_v5 = vadd.bf16 1065369472, %v9990_v0  ;;  %v9992_v34 = vpop.eup %9991 }
 0x809   : > { %10003 = vrcp.bf16 %v8367_v58  ;;  %v9994_v43 = vpop.eup %9993  ;;  %v8482_v53 = vunpack.c.l.bf16 %v9992_v34  ;;  %v8486_v49 = vunpack.c.h.bf16 %v9992_v34 }
 0x80a   : > { %10005 = vrcp.bf16 %v8369_v5  ;;  %v9996_v50 = vpop.eup %9995  ;;  %v8484_v10 = vunpack.c.l.bf16 %v9994_v43  ;;  %v8488_v3 = vunpack.c.h.bf16 %v9994_v43 }
 0x80b   : > { %v9998_v31 = vpop.eup %9997  ;;  %v8483_v6 = vunpack.c.l.bf16 %v9996_v50  ;;  %v8487_v17 = vunpack.c.h.bf16 %v9996_v50 }
 0x80c   : > { %v8485_v46 = vunpack.c.l.bf16 %v9998_v31  ;;  %v8489_v23 = vunpack.c.h.bf16 %v9998_v31 }
 0x812   : > { %v10000_v60 = vpop.eup %9999 }
 0x813   : > { %v10002_v24 = vpop.eup %10001  ;;  %v8371_v12 = vmul.bf16 1065369472, %v10000_v60 }
 0x814   : > { %v10004_v7 = vpop.eup %10003  ;;  %v8375_v21 = vmul.bf16 1065369472, %v10002_v24 }
 0x815   : > { %v10006_v54 = vpop.eup %10005  ;;  %v8470_v39 = vunpack.c.l.bf16 %v8371_v12  ;;  %v8474_v63 = vunpack.c.h.bf16 %v8371_v12  ;;  %v8373_v61 = vmul.bf16 1065369472, %v10004_v7 }
 0x816   : > { %v8472_v44 = vunpack.c.l.bf16 %v8375_v21  ;;  %v8476_v4 = vunpack.c.h.bf16 %v8375_v21  ;;  %v8377_v28 = vmul.bf16 1065369472, %v10006_v54 }
 0x817   : > { %v8490_v13 = vmul.f32 %v8482_v53, %v8470_v39  ;;  %v8494_v35 = vmul.f32 %v8486_v49, %v8474_v63  ;;  %v8471_v30 = vunpack.c.l.bf16 %v8373_v61  ;;  %v8475_v8 = vunpack.c.h.bf16 %v8373_v61 }
 0x818   : > { %v8492_v9 = vmul.f32 %v8484_v10, %v8472_v44  ;;  %v8496_v25 = vmul.f32 %v8488_v3, %v8476_v4  ;;  %v8473_v62 = vunpack.c.l.bf16 %v8377_v28  ;;  %v8477_v45 = vunpack.c.h.bf16 %v8377_v28 }
 0x819   : > { %8498 = vst [vmem:[%s383_s16] sm:$0xff] %v8490_v13  ;;  %8502 = vst [vmem:[%s383_s16 + $0x20] sm:$0xff] %v8494_v35  ;;  %v8491_v32 = vmul.f32 %v8483_v6, %v8471_v30  ;;  %v8495_v40 = vmul.f32 %v8487_v17, %v8475_v8 }
 0x81a   : > { %8500 = vst [vmem:[%s383_s16 + $0x10] sm:$0xff] %v8492_v9  ;;  %8504 = vst [vmem:[%s383_s16 + $0x30] sm:$0xff] %v8496_v25  ;;  %v8493_v38 = vmul.f32 %v8485_v46, %v8473_v62  ;;  %v8497_v55 = vmul.f32 %v8489_v23, %v8477_v45 }
 0x81b   : > { %8499 = vst [vmem:[%s383_s16 + $0x8] sm:$0xff] %v8491_v32  ;;  %8503 = vst [vmem:[%s383_s16 + $0x28] sm:$0xff] %v8495_v40 }
 0x81c   : > { %8501 = vst [vmem:[%s383_s16 + $0x18] sm:$0xff] %v8493_v38  ;;  %8505 = vst [vmem:[%s383_s16 + $0x38] sm:$0xff] %v8497_v55 }
 0x81d PF: > { %s19_s23 = sadd.s32 1, %s10185_s23   ;;  %s14661_s21 = smov %s10181_s22 }
 0x81e   : > { %p16_p8 = scmp.ge.s32.totalorder %s19_s23, 4   ;;  %s14662_s22 = smov %s14664_s29 }
 0x820   :  { %18 = sbr.rel (!%p16_p8) target bundleno = 4 (0x4), region = 98 }
 0x827   :  { %8538 = vsyncpa [#allocation5], 1 }
 0x828   :  { %8540 = vsyncpa [#allocation5 + $0x1], 1 }
 0x829   :  { %8541 = vsyncpa [#allocation7], 1 }
 0x82a   :  { %8542 = vsyncpa [#allocation10], 1 }

</bundles_post_ra>
